<compile_context>
chip_gen: v7x
topology: tpu7x:2x2x1
jax: 0.10.0
libtpu: 0.0.40
codegen_flags: <defaults>
</compile_context>

<pallas_src>
import functools

import jax
import jax.numpy as jnp
import numpy as np
from jax.experimental import pallas as pl
from jax.experimental.pallas import tpu as pltpu

# ConvBlock config: ConvBlock(in_planes=4, planes=8, w=16, h=16, stride=1, multiply=4)
N, IN_PLANES, PLANES, MULT = 2, 4, 8, 4
CSQ = PLANES // MULT          # squeeze channels = planes / multiply = 2
H = W = 16
EPS = 1e-5


# ---------------------------------------------------------------------------
# Fused kernel: conv1(3x3+BN+ReLU+Lowcost) -> conv2(same) -> += shortcut(1x1+BN)
# ---------------------------------------------------------------------------
def _convblock_kernel(x_ref, w1_ref, s1_ref, b1_ref, lw1_ref,
                      w2_ref, s2_ref, b2_ref, lw2_ref,
                      wsc_ref, ssc_ref, bsc_ref,
                      out_ref,
                      xpad1_ref, xpad2_ref,
                      *, h, w, cin, csq, cout, mult):
    """Whole ConvBlock forward for one batch element (everything stays in VMEM).

    x_ref:    (1, cin, h*w)   NCHW input, spatial flattened (lane-dense read)
    w1_ref:   (9*cin, csq)    conv1 weights, im2col layout (row = tap*cin + ic)
    s1/b1:    (1, csq)        conv1 folded BN scale / shift
    lw1_ref:  (h*w, cout)     conv1 Lowcost per-pixel expansion weights
    w2_ref:   (9*cout, csq)   conv2 weights
    lw2_ref:  (h*w, cout)
    wsc_ref:  (cin, cout)     shortcut 1x1 conv weights
    ssc/bsc:  (1, cout)       shortcut folded BN scale / shift
    out_ref:  (1, cout, h*w)  NCHW output, spatial flattened (lane-dense store)
    xpad1/2:  VMEM scratch (h+2, w+2, c) zero-padded conv inputs
    """
    hw = h * w

    def conv3x3_bn_relu_expand(xpad_ref, c, w_ref, s_ref, b_ref, lw_ref):
        xp = xpad_ref[...]                                        # (h+2, w+2, c)
        # im2col: one (hw, 9c) patch matrix -> a single MXU matmul (not 9 tiny ones).
        taps = []
        for dy in range(3):
            for dx in range(3):
                sl = jax.lax.slice(xp, (dy, dx, 0), (dy + h, dx + w, c))
                taps.append(sl.reshape(hw, c))
        patches = jnp.concatenate(taps, axis=-1)                  # (hw, 9c)
        acc = jnp.dot(patches, w_ref[...],
                      preferred_element_type=jnp.float32)         # (hw, csq)
        y = jnp.maximum(acc * s_ref[...] + b_ref[...], 0.0)       # BN + ReLU
        # Lowcost ghost expansion: output channel k = m*csq + c' is
        # y[:, c'] * lw[:, k]; weights applied at squeeze width so no
        # unweighted copies of y are materialized.
        return jnp.concatenate(
            [y * lw_ref[:, m * csq:(m + 1) * csq] for m in range(mult)],
            axis=-1)                                              # (hw, cout)

    def fill_padded(xpad_ref, v_hwc):
        # In-kernel zero padding: zero the halo buffer, store the interior.
        xpad_ref[...] = jnp.zeros_like(xpad_ref)
        xpad_ref[1:h + 1, 1:w + 1, :] = v_hwc

    # Input tile: relayout (C, HW) -> (HW, C) in VMEM (keeps the HBM read
    # lane-dense and avoids any wrapper-side transpose/pad HBM pass).
    x_cm = x_ref[0]                                               # (cin, hw)
    x_pm = jnp.transpose(x_cm)                                    # (hw, cin)

    # conv1 path
    fill_padded(xpad1_ref, x_pm.reshape(h, w, cin))
    h1 = conv3x3_bn_relu_expand(xpad1_ref, cin, w1_ref, s1_ref, b1_ref, lw1_ref)

    # conv2 path (h1 never leaves VMEM)
    fill_padded(xpad2_ref, h1.reshape(h, w, cout))
    h2 = conv3x3_bn_relu_expand(xpad2_ref, cout, w2_ref, s2_ref, b2_ref, lw2_ref)

    # shortcut: 1x1 conv + BN, fused with the residual add
    sc = jnp.dot(x_pm, wsc_ref[...], preferred_element_type=jnp.float32)
    sc = sc * ssc_ref[...] + bsc_ref[...]                         # (hw, cout)

    # Lane-dense store: (cout, h*w) puts 256 elements on the lane axis
    # (full 128-lane stores); reshaping back to NCHW in the wrapper is free.
    out_ref[0] = jnp.transpose(h2 + sc)                           # (cout, hw)


# ---------------------------------------------------------------------------
# Wrapper (single pallas_call)
# ---------------------------------------------------------------------------
def convblock_forward(x_nchw, p):
    n, cin, h, w = x_nchw.shape
    csq = p["c1_w"].shape[-1]
    cout = p["c1_lw"].shape[-1]
    mult = cout // csq
    hw = h * w

    x_flat = x_nchw.reshape(n, cin, hw)                           # free reshape

    kernel = functools.partial(_convblock_kernel, h=h, w=w, cin=cin,
                               csq=csq, cout=cout, mult=mult)
    out_flat = pl.pallas_call(
        kernel,
        out_shape=jax.ShapeDtypeStruct((n, cout, hw), jnp.float32),
        grid=(n,),
        in_specs=[
            pl.BlockSpec((1, cin, hw), lambda i: (i, 0, 0)),      # x
            pl.BlockSpec((9 * cin, csq), lambda i: (0, 0)),       # conv1 weights
            pl.BlockSpec((1, csq), lambda i: (0, 0)),             # conv1 BN scale
            pl.BlockSpec((1, csq), lambda i: (0, 0)),             # conv1 BN shift
            pl.BlockSpec((hw, cout), lambda i: (0, 0)),           # conv1 Lowcost w
            pl.BlockSpec((9 * cout, csq), lambda i: (0, 0)),      # conv2 weights
            pl.BlockSpec((1, csq), lambda i: (0, 0)),             # conv2 BN scale
            pl.BlockSpec((1, csq), lambda i: (0, 0)),             # conv2 BN shift
            pl.BlockSpec((hw, cout), lambda i: (0, 0)),           # conv2 Lowcost w
            pl.BlockSpec((cin, cout), lambda i: (0, 0)),          # shortcut weights
            pl.BlockSpec((1, cout), lambda i: (0, 0)),            # shortcut BN scale
            pl.BlockSpec((1, cout), lambda i: (0, 0)),            # shortcut BN shift
        ],
        out_specs=pl.BlockSpec((1, cout, hw), lambda i: (i, 0, 0)),
        scratch_shapes=[pltpu.VMEM((h + 2, w + 2, cin), jnp.float32),
                        pltpu.VMEM((h + 2, w + 2, cout), jnp.float32)],
        # "parallel" lets v7x's two TensorCores take one batch element each;
        # on v5e/v6e this is a cheap sequential 2-step grid.
        compiler_params=pltpu.CompilerParams(dimension_semantics=("parallel",)),
    )(x_flat,
      p["c1_w"], p["c1_scale"], p["c1_shift"], p["c1_lw"],
      p["c2_w"], p["c2_scale"], p["c2_shift"], p["c2_lw"],
      p["sc_w"], p["sc_scale"], p["sc_shift"])
    return out_flat.reshape(n, cout, h, w)                        # free reshape


# ---------------------------------------------------------------------------
# Deterministic parameter init (shapes from module __init__)
# ---------------------------------------------------------------------------
def _fold_bn(gamma, beta, mean, var):
    scale = gamma / jnp.sqrt(var + EPS)
    shift = beta - mean * scale
    return scale, shift


def init_params(key):
    keys = iter(jax.random.split(key, 32))
    nk = lambda: next(keys)
    p = {}

    def make_squeeze(prefix, cin, cout, csq):
        w_oihw = 0.3 * jax.random.normal(nk(), (csq, cin, 3, 3), jnp.float32)
        gamma = 1.0 + 0.1 * jax.random.normal(nk(), (csq,), jnp.float32)
        beta = 0.1 * jax.random.normal(nk(), (csq,), jnp.float32)
        mean = 0.1 * jax.random.normal(nk(), (csq,), jnp.float32)
        var = 0.5 + 0.25 * jax.random.uniform(nk(), (csq,), jnp.float32)
        lw_chw = 0.5 + 0.3 * jax.random.normal(nk(), (cout, H, W), jnp.float32)
        scale, shift = _fold_bn(gamma, beta, mean, var)
        # reference layouts
        p[prefix + "_w_oihw"] = w_oihw
        p[prefix + "_lw_chw"] = lw_chw
        # kernel layouts: im2col weights (row = (dy*3+dx)*cin + ic), pixel-major lw
        p[prefix + "_w"] = jnp.transpose(w_oihw, (2, 3, 1, 0)).reshape(9 * cin, csq)
        p[prefix + "_scale"] = scale.reshape(1, csq)
        p[prefix + "_shift"] = shift.reshape(1, csq)
        p[prefix + "_lw"] = jnp.transpose(lw_chw.reshape(cout, H * W))  # (H*W, cout)

    make_squeeze("c1", IN_PLANES, PLANES, CSQ)
    make_squeeze("c2", PLANES, PLANES, CSQ)

    sc_oihw = 0.3 * jax.random.normal(nk(), (PLANES, IN_PLANES, 1, 1), jnp.float32)
    gamma = 1.0 + 0.1 * jax.random.normal(nk(), (PLANES,), jnp.float32)
    beta = 0.1 * jax.random.normal(nk(), (PLANES,), jnp.float32)
    mean = 0.1 * jax.random.normal(nk(), (PLANES,), jnp.float32)
    var = 0.5 + 0.25 * jax.random.uniform(nk(), (PLANES,), jnp.float32)
    scale, shift = _fold_bn(gamma, beta, mean, var)
    p["sc_w_oihw"] = sc_oihw
    p["sc_w"] = jnp.transpose(sc_oihw[:, :, 0, 0], (1, 0))       # (Cin, Cout)
    p["sc_scale"] = scale.reshape(1, PLANES)
    p["sc_shift"] = shift.reshape(1, PLANES)
    return p


# ---------------------------------------------------------------------------
# Pure-JAX reference (NCHW, same math) for validation
# ---------------------------------------------------------------------------
def ref_forward(x_nchw, p):
    def squeeze(x, w_oihw, scale, shift, lw_chw):
        y = jax.lax.conv_general_dilated(
            x, w_oihw, window_strides=(1, 1), padding=((1, 1), (1, 1)),
            dimension_numbers=("NCHW", "OIHW", "NCHW"),
            precision=jax.lax.Precision.HIGHEST)
        y = y * scale.reshape(1, -1, 1, 1) + shift.reshape(1, -1, 1, 1)
        y = jnp.maximum(y, 0.0)
        y = jnp.tile(y, (1, MULT, 1, 1))
        return y * lw_chw[None]

    h1 = squeeze(x_nchw, p["c1_w_oihw"], p["c1_scale"], p["c1_shift"], p["c1_lw_chw"])
    h2 = squeeze(h1, p["c2_w_oihw"], p["c2_scale"], p["c2_shift"], p["c2_lw_chw"])
    sc = jax.lax.conv_general_dilated(
        x_nchw, p["sc_w_oihw"], window_strides=(1, 1), padding=((0, 0), (0, 0)),
        dimension_numbers=("NCHW", "OIHW", "NCHW"),
        precision=jax.lax.Precision.HIGHEST)
    sc = sc * p["sc_scale"].reshape(1, -1, 1, 1) + p["sc_shift"].reshape(1, -1, 1, 1)
    return h2 + sc


if __name__ == "__main__":
    key = jax.random.PRNGKey(0)
    kx, kp = jax.random.split(key)
    x = jax.random.normal(kx, (N, IN_PLANES, H, W), jnp.float32)   # NCHW like PyTorch
    params = init_params(kp)

    out = jax.jit(convblock_forward)(x, params)
    out = jax.block_until_ready(out)

    assert out.shape == (N, PLANES, H, W), out.shape
    ref = ref_forward(x, params)
    np.testing.assert_allclose(np.asarray(out), np.asarray(ref), rtol=2e-3, atol=2e-3)
    print("KERNEL_OK")
</pallas_src>

<mosaic_0001>
module attributes {stable_mosaic.version = 11 : i64} {
  func.func @_convblock_kernel(%arg0: i32, %arg1: memref<1x4x256xf32, #tpu.memory_space<vmem>>, %arg2: memref<36x2xf32, #tpu.memory_space<vmem>>, %arg3: memref<1x2xf32, #tpu.memory_space<vmem>>, %arg4: memref<1x2xf32, #tpu.memory_space<vmem>>, %arg5: memref<256x8xf32, #tpu.memory_space<vmem>>, %arg6: memref<72x2xf32, #tpu.memory_space<vmem>>, %arg7: memref<1x2xf32, #tpu.memory_space<vmem>>, %arg8: memref<1x2xf32, #tpu.memory_space<vmem>>, %arg9: memref<256x8xf32, #tpu.memory_space<vmem>>, %arg10: memref<4x8xf32, #tpu.memory_space<vmem>>, %arg11: memref<1x8xf32, #tpu.memory_space<vmem>>, %arg12: memref<1x8xf32, #tpu.memory_space<vmem>>, %arg13: memref<1x8x256xf32, #tpu.memory_space<vmem>>, %arg14: memref<18x18x4xf32, #tpu.memory_space<vmem>>, %arg15: memref<18x18x8xf32, #tpu.memory_space<vmem>>) attributes {dimension_semantics = [#tpu.dimension_semantics<parallel>], iteration_bounds = array<i64: 2>, scalar_prefetch = 0 : i64, scratch_operands = 2 : i64, tpu.core_type = #tpu.core_type<tc>, window_params = [{transform_indices = @transform_0, window_bounds = array<i64: 1, 4, 256>}, {pipeline_mode = #tpu.pipeline_mode<synchronous>, transform_indices = @transform_1, window_bounds = array<i64: 36, 2>}, {pipeline_mode = #tpu.pipeline_mode<synchronous>, transform_indices = @transform_2, window_bounds = array<i64: 1, 2>}, {pipeline_mode = #tpu.pipeline_mode<synchronous>, transform_indices = @transform_3, window_bounds = array<i64: 1, 2>}, {pipeline_mode = #tpu.pipeline_mode<synchronous>, transform_indices = @transform_4, window_bounds = array<i64: 256, 8>}, {pipeline_mode = #tpu.pipeline_mode<synchronous>, transform_indices = @transform_5, window_bounds = array<i64: 72, 2>}, {pipeline_mode = #tpu.pipeline_mode<synchronous>, transform_indices = @transform_6, window_bounds = array<i64: 1, 2>}, {pipeline_mode = #tpu.pipeline_mode<synchronous>, transform_indices = @transform_7, window_bounds = array<i64: 1, 2>}, {pipeline_mode = #tpu.pipeline_mode<synchronous>, transform_indices = @transform_8, window_bounds = array<i64: 256, 8>}, {pipeline_mode = #tpu.pipeline_mode<synchronous>, transform_indices = @transform_9, window_bounds = array<i64: 4, 8>}, {pipeline_mode = #tpu.pipeline_mode<synchronous>, transform_indices = @transform_10, window_bounds = array<i64: 1, 8>}, {pipeline_mode = #tpu.pipeline_mode<synchronous>, transform_indices = @transform_11, window_bounds = array<i64: 1, 8>}, {transform_indices = @transform_12, window_bounds = array<i64: 1, 8, 256>}]} {
    %c0 = arith.constant 0 : index
    %c0_0 = arith.constant 0 : index
    %c0_1 = arith.constant 0 : index
    %0 = vector.load %arg1[%c0, %c0_0, %c0_1] : memref<1x4x256xf32, #tpu.memory_space<vmem>>, vector<1x4x256xf32>
    %1 = vector.shape_cast %0 : vector<1x4x256xf32> to vector<4x256xf32>
    %2 = tpu.transpose %1, [1, 0] : vector<4x256xf32> -> vector<256x4xf32>
    %3 = vector.shape_cast %2 : vector<256x4xf32> to vector<16x16x4xf32>
    %cst = arith.constant 0.000000e+00 : f32
    %4 = vector.broadcast %cst : f32 to vector<18x18x4xf32>
    %c0_2 = arith.constant 0 : index
    %c0_3 = arith.constant 0 : index
    %c0_4 = arith.constant 0 : index
    %5 = vector.load %arg14[%c0_2, %c0_3, %c0_4] : memref<18x18x4xf32, #tpu.memory_space<vmem>>, vector<18x18x4xf32>
    tpu.vector_store %arg14[%c0_2, %c0_3, %c0_4], %4 {strides = array<i32>} : memref<18x18x4xf32, #tpu.memory_space<vmem>>, vector<18x18x4xf32>,
    %c1 = arith.constant 1 : index
    %c1_5 = arith.constant 1 : index
    %c0_6 = arith.constant 0 : index
    %6 = vector.load %arg14[%c1, %c1_5, %c0_6] : memref<18x18x4xf32, #tpu.memory_space<vmem>>, vector<16x16x4xf32>
    tpu.vector_store %arg14[%c1, %c1_5, %c0_6], %3 {strides = array<i32>} : memref<18x18x4xf32, #tpu.memory_space<vmem>>, vector<16x16x4xf32>,
    %c0_7 = arith.constant 0 : index
    %c0_8 = arith.constant 0 : index
    %c0_9 = arith.constant 0 : index
    %7 = vector.load %arg14[%c0_7, %c0_8, %c0_9] : memref<18x18x4xf32, #tpu.memory_space<vmem>>, vector<18x18x4xf32>
    %8 = vector.extract_strided_slice %7 {offsets = [0, 0, 0], sizes = [16, 16, 4], strides = [1, 1, 1]} : vector<18x18x4xf32> to vector<16x16x4xf32>
    %9 = vector.shape_cast %8 : vector<16x16x4xf32> to vector<256x4xf32>
    %10 = vector.extract_strided_slice %7 {offsets = [0, 1, 0], sizes = [16, 16, 4], strides = [1, 1, 1]} : vector<18x18x4xf32> to vector<16x16x4xf32>
    %11 = vector.shape_cast %10 : vector<16x16x4xf32> to vector<256x4xf32>
    %12 = vector.extract_strided_slice %7 {offsets = [0, 2, 0], sizes = [16, 16, 4], strides = [1, 1, 1]} : vector<18x18x4xf32> to vector<16x16x4xf32>
    %13 = vector.shape_cast %12 : vector<16x16x4xf32> to vector<256x4xf32>
    %14 = vector.extract_strided_slice %7 {offsets = [1, 0, 0], sizes = [16, 16, 4], strides = [1, 1, 1]} : vector<18x18x4xf32> to vector<16x16x4xf32>
    %15 = vector.shape_cast %14 : vector<16x16x4xf32> to vector<256x4xf32>
    %16 = vector.extract_strided_slice %7 {offsets = [1, 1, 0], sizes = [16, 16, 4], strides = [1, 1, 1]} : vector<18x18x4xf32> to vector<16x16x4xf32>
    %17 = vector.shape_cast %16 : vector<16x16x4xf32> to vector<256x4xf32>
    %18 = vector.extract_strided_slice %7 {offsets = [1, 2, 0], sizes = [16, 16, 4], strides = [1, 1, 1]} : vector<18x18x4xf32> to vector<16x16x4xf32>
    %19 = vector.shape_cast %18 : vector<16x16x4xf32> to vector<256x4xf32>
    %20 = vector.extract_strided_slice %7 {offsets = [2, 0, 0], sizes = [16, 16, 4], strides = [1, 1, 1]} : vector<18x18x4xf32> to vector<16x16x4xf32>
    %21 = vector.shape_cast %20 : vector<16x16x4xf32> to vector<256x4xf32>
    %22 = vector.extract_strided_slice %7 {offsets = [2, 1, 0], sizes = [16, 16, 4], strides = [1, 1, 1]} : vector<18x18x4xf32> to vector<16x16x4xf32>
    %23 = vector.shape_cast %22 : vector<16x16x4xf32> to vector<256x4xf32>
    %24 = vector.extract_strided_slice %7 {offsets = [2, 2, 0], sizes = [16, 16, 4], strides = [1, 1, 1]} : vector<18x18x4xf32> to vector<16x16x4xf32>
    %25 = vector.shape_cast %24 : vector<16x16x4xf32> to vector<256x4xf32>
    %26 = tpu.concatenate %9, %11, %13, %15, %17, %19, %21, %23, %25 in 1 : vector<256x4xf32>, vector<256x4xf32>, vector<256x4xf32>, vector<256x4xf32>, vector<256x4xf32>, vector<256x4xf32>, vector<256x4xf32>, vector<256x4xf32>, vector<256x4xf32> -> vector<256x36xf32>
    %c0_10 = arith.constant 0 : index
    %c0_11 = arith.constant 0 : index
    %27 = vector.load %arg2[%c0_10, %c0_11] : memref<36x2xf32, #tpu.memory_space<vmem>>, vector<36x2xf32>
    %cst_12 = arith.constant dense<0.000000e+00> : vector<256x2xf32>
    %28 = tpu.matmul %26, %27, %cst_12 {dimension_numbers = #tpu.dot_dimension_numbers<[1], [0], [0], [1], [0, 0, 1, 1], [], []>} : vector<256x36xf32>, vector<36x2xf32>, vector<256x2xf32> -> vector<256x2xf32>
    %c0_13 = arith.constant 0 : index
    %c0_14 = arith.constant 0 : index
    %29 = vector.load %arg3[%c0_13, %c0_14] : memref<1x2xf32, #tpu.memory_space<vmem>>, vector<1x2xf32>
    %30 = vector.broadcast %29 : vector<1x2xf32> to vector<256x2xf32>
    %31 = arith.mulf %28, %30 : vector<256x2xf32>
    %c0_15 = arith.constant 0 : index
    %c0_16 = arith.constant 0 : index
    %32 = vector.load %arg4[%c0_15, %c0_16] : memref<1x2xf32, #tpu.memory_space<vmem>>, vector<1x2xf32>
    %33 = vector.broadcast %32 : vector<1x2xf32> to vector<256x2xf32>
    %34 = arith.addf %31, %33 : vector<256x2xf32>
    %cst_17 = arith.constant 0.000000e+00 : f32
    %35 = vector.broadcast %cst_17 : f32 to vector<256x2xf32>
    %36 = arith.maximumf %34, %35 : vector<256x2xf32>
    %c0_18 = arith.constant 0 : index
    %c0_19 = arith.constant 0 : index
    %37 = vector.load %arg5[%c0_18, %c0_19] : memref<256x8xf32, #tpu.memory_space<vmem>>, vector<256x2xf32>
    %38 = arith.mulf %36, %37 : vector<256x2xf32>
    %c0_20 = arith.constant 0 : index
    %c2 = arith.constant 2 : index
    %39 = vector.load %arg5[%c0_20, %c2] : memref<256x8xf32, #tpu.memory_space<vmem>>, vector<256x2xf32>
    %40 = arith.mulf %36, %39 : vector<256x2xf32>
    %c0_21 = arith.constant 0 : index
    %c4 = arith.constant 4 : index
    %41 = vector.load %arg5[%c0_21, %c4] : memref<256x8xf32, #tpu.memory_space<vmem>>, vector<256x2xf32>
    %42 = arith.mulf %36, %41 : vector<256x2xf32>
    %c0_22 = arith.constant 0 : index
    %c6 = arith.constant 6 : index
    %43 = vector.load %arg5[%c0_22, %c6] : memref<256x8xf32, #tpu.memory_space<vmem>>, vector<256x2xf32>
    %44 = arith.mulf %36, %43 : vector<256x2xf32>
    %45 = tpu.concatenate %38, %40, %42, %44 in 1 : vector<256x2xf32>, vector<256x2xf32>, vector<256x2xf32>, vector<256x2xf32> -> vector<256x8xf32>
    %46 = vector.shape_cast %45 : vector<256x8xf32> to vector<16x16x8xf32>
    %cst_23 = arith.constant 0.000000e+00 : f32
    %47 = vector.broadcast %cst_23 : f32 to vector<18x18x8xf32>
    %c0_24 = arith.constant 0 : index
    %c0_25 = arith.constant 0 : index
    %c0_26 = arith.constant 0 : index
    %48 = vector.load %arg15[%c0_24, %c0_25, %c0_26] : memref<18x18x8xf32, #tpu.memory_space<vmem>>, vector<18x18x8xf32>
    tpu.vector_store %arg15[%c0_24, %c0_25, %c0_26], %47 {strides = array<i32>} : memref<18x18x8xf32, #tpu.memory_space<vmem>>, vector<18x18x8xf32>,
    %c1_27 = arith.constant 1 : index
    %c1_28 = arith.constant 1 : index
    %c0_29 = arith.constant 0 : index
    %49 = vector.load %arg15[%c1_27, %c1_28, %c0_29] : memref<18x18x8xf32, #tpu.memory_space<vmem>>, vector<16x16x8xf32>
    tpu.vector_store %arg15[%c1_27, %c1_28, %c0_29], %46 {strides = array<i32>} : memref<18x18x8xf32, #tpu.memory_space<vmem>>, vector<16x16x8xf32>,
    %c0_30 = arith.constant 0 : index
    %c0_31 = arith.constant 0 : index
    %c0_32 = arith.constant 0 : index
    %50 = vector.load %arg15[%c0_30, %c0_31, %c0_32] : memref<18x18x8xf32, #tpu.memory_space<vmem>>, vector<18x18x8xf32>
    %51 = vector.extract_strided_slice %50 {offsets = [0, 0, 0], sizes = [16, 16, 8], strides = [1, 1, 1]} : vector<18x18x8xf32> to vector<16x16x8xf32>
    %52 = vector.shape_cast %51 : vector<16x16x8xf32> to vector<256x8xf32>
    %53 = vector.extract_strided_slice %50 {offsets = [0, 1, 0], sizes = [16, 16, 8], strides = [1, 1, 1]} : vector<18x18x8xf32> to vector<16x16x8xf32>
    %54 = vector.shape_cast %53 : vector<16x16x8xf32> to vector<256x8xf32>
    %55 = vector.extract_strided_slice %50 {offsets = [0, 2, 0], sizes = [16, 16, 8], strides = [1, 1, 1]} : vector<18x18x8xf32> to vector<16x16x8xf32>
    %56 = vector.shape_cast %55 : vector<16x16x8xf32> to vector<256x8xf32>
    %57 = vector.extract_strided_slice %50 {offsets = [1, 0, 0], sizes = [16, 16, 8], strides = [1, 1, 1]} : vector<18x18x8xf32> to vector<16x16x8xf32>
    %58 = vector.shape_cast %57 : vector<16x16x8xf32> to vector<256x8xf32>
    %59 = vector.extract_strided_slice %50 {offsets = [1, 1, 0], sizes = [16, 16, 8], strides = [1, 1, 1]} : vector<18x18x8xf32> to vector<16x16x8xf32>
    %60 = vector.shape_cast %59 : vector<16x16x8xf32> to vector<256x8xf32>
    %61 = vector.extract_strided_slice %50 {offsets = [1, 2, 0], sizes = [16, 16, 8], strides = [1, 1, 1]} : vector<18x18x8xf32> to vector<16x16x8xf32>
    %62 = vector.shape_cast %61 : vector<16x16x8xf32> to vector<256x8xf32>
    %63 = vector.extract_strided_slice %50 {offsets = [2, 0, 0], sizes = [16, 16, 8], strides = [1, 1, 1]} : vector<18x18x8xf32> to vector<16x16x8xf32>
    %64 = vector.shape_cast %63 : vector<16x16x8xf32> to vector<256x8xf32>
    %65 = vector.extract_strided_slice %50 {offsets = [2, 1, 0], sizes = [16, 16, 8], strides = [1, 1, 1]} : vector<18x18x8xf32> to vector<16x16x8xf32>
    %66 = vector.shape_cast %65 : vector<16x16x8xf32> to vector<256x8xf32>
    %67 = vector.extract_strided_slice %50 {offsets = [2, 2, 0], sizes = [16, 16, 8], strides = [1, 1, 1]} : vector<18x18x8xf32> to vector<16x16x8xf32>
    %68 = vector.shape_cast %67 : vector<16x16x8xf32> to vector<256x8xf32>
    %69 = tpu.concatenate %52, %54, %56, %58, %60, %62, %64, %66, %68 in 1 : vector<256x8xf32>, vector<256x8xf32>, vector<256x8xf32>, vector<256x8xf32>, vector<256x8xf32>, vector<256x8xf32>, vector<256x8xf32>, vector<256x8xf32>, vector<256x8xf32> -> vector<256x72xf32>
    %c0_33 = arith.constant 0 : index
    %c0_34 = arith.constant 0 : index
    %70 = vector.load %arg6[%c0_33, %c0_34] : memref<72x2xf32, #tpu.memory_space<vmem>>, vector<72x2xf32>
    %cst_35 = arith.constant dense<0.000000e+00> : vector<256x2xf32>
    %71 = tpu.matmul %69, %70, %cst_35 {dimension_numbers = #tpu.dot_dimension_numbers<[1], [0], [0], [1], [0, 0, 1, 1], [], []>} : vector<256x72xf32>, vector<72x2xf32>, vector<256x2xf32> -> vector<256x2xf32>
    %c0_36 = arith.constant 0 : index
    %c0_37 = arith.constant 0 : index
    %72 = vector.load %arg7[%c0_36, %c0_37] : memref<1x2xf32, #tpu.memory_space<vmem>>, vector<1x2xf32>
    %73 = vector.broadcast %72 : vector<1x2xf32> to vector<256x2xf32>
    %74 = arith.mulf %71, %73 : vector<256x2xf32>
    %c0_38 = arith.constant 0 : index
    %c0_39 = arith.constant 0 : index
    %75 = vector.load %arg8[%c0_38, %c0_39] : memref<1x2xf32, #tpu.memory_space<vmem>>, vector<1x2xf32>
    %76 = vector.broadcast %75 : vector<1x2xf32> to vector<256x2xf32>
    %77 = arith.addf %74, %76 : vector<256x2xf32>
    %cst_40 = arith.constant 0.000000e+00 : f32
    %78 = vector.broadcast %cst_40 : f32 to vector<256x2xf32>
    %79 = arith.maximumf %77, %78 : vector<256x2xf32>
    %c0_41 = arith.constant 0 : index
    %c0_42 = arith.constant 0 : index
    %80 = vector.load %arg9[%c0_41, %c0_42] : memref<256x8xf32, #tpu.memory_space<vmem>>, vector<256x2xf32>
    %81 = arith.mulf %79, %80 : vector<256x2xf32>
    %c0_43 = arith.constant 0 : index
    %c2_44 = arith.constant 2 : index
    %82 = vector.load %arg9[%c0_43, %c2_44] : memref<256x8xf32, #tpu.memory_space<vmem>>, vector<256x2xf32>
    %83 = arith.mulf %79, %82 : vector<256x2xf32>
    %c0_45 = arith.constant 0 : index
    %c4_46 = arith.constant 4 : index
    %84 = vector.load %arg9[%c0_45, %c4_46] : memref<256x8xf32, #tpu.memory_space<vmem>>, vector<256x2xf32>
    %85 = arith.mulf %79, %84 : vector<256x2xf32>
    %c0_47 = arith.constant 0 : index
    %c6_48 = arith.constant 6 : index
    %86 = vector.load %arg9[%c0_47, %c6_48] : memref<256x8xf32, #tpu.memory_space<vmem>>, vector<256x2xf32>
    %87 = arith.mulf %79, %86 : vector<256x2xf32>
    %88 = tpu.concatenate %81, %83, %85, %87 in 1 : vector<256x2xf32>, vector<256x2xf32>, vector<256x2xf32>, vector<256x2xf32> -> vector<256x8xf32>
    %c0_49 = arith.constant 0 : index
    %c0_50 = arith.constant 0 : index
    %89 = vector.load %arg10[%c0_49, %c0_50] : memref<4x8xf32, #tpu.memory_space<vmem>>, vector<4x8xf32>
    %cst_51 = arith.constant dense<0.000000e+00> : vector<256x8xf32>
    %90 = tpu.matmul %2, %89, %cst_51 {dimension_numbers = #tpu.dot_dimension_numbers<[1], [0], [0], [1], [0, 0, 1, 1], [], []>} : vector<256x4xf32>, vector<4x8xf32>, vector<256x8xf32> -> vector<256x8xf32>
    %c0_52 = arith.constant 0 : index
    %c0_53 = arith.constant 0 : index
    %91 = vector.load %arg11[%c0_52, %c0_53] : memref<1x8xf32, #tpu.memory_space<vmem>>, vector<1x8xf32>
    %92 = vector.broadcast %91 : vector<1x8xf32> to vector<256x8xf32>
    %93 = arith.mulf %90, %92 : vector<256x8xf32>
    %c0_54 = arith.constant 0 : index
    %c0_55 = arith.constant 0 : index
    %94 = vector.load %arg12[%c0_54, %c0_55] : memref<1x8xf32, #tpu.memory_space<vmem>>, vector<1x8xf32>
    %95 = vector.broadcast %94 : vector<1x8xf32> to vector<256x8xf32>
    %96 = arith.addf %93, %95 : vector<256x8xf32>
    %97 = arith.addf %88, %96 : vector<256x8xf32>
    %98 = tpu.transpose %97, [1, 0] : vector<256x8xf32> -> vector<8x256xf32>
    %c0_56 = arith.constant 0 : index
    %c0_57 = arith.constant 0 : index
    %c0_58 = arith.constant 0 : index
    %99 = vector.load %arg13[%c0_56, %c0_57, %c0_58] : memref<1x8x256xf32, #tpu.memory_space<vmem>>, vector<1x8x256xf32>
    %100 = vector.shape_cast %99 : vector<1x8x256xf32> to vector<8x256xf32>
    %101 = vector.shape_cast %98 : vector<8x256xf32> to vector<1x8x256xf32>
    tpu.vector_store %arg13[%c0_56, %c0_57, %c0_58], %101 {strides = array<i32>} : memref<1x8x256xf32, #tpu.memory_space<vmem>>, vector<1x8x256xf32>,
    return
  }
  func.func @transform_0(%arg0: i32) -> (i32, i32, i32) {
    %c0_i32 = arith.constant 0 : i32
    %c0_i32_0 = arith.constant 0 : i32
    %c0_i32_1 = arith.constant 0 : i32
    return %arg0, %c0_i32, %c0_i32_0 : i32, i32, i32
  }
  func.func @transform_1(%arg0: i32) -> (i32, i32) {
    %c0_i32 = arith.constant 0 : i32
    %c0_i32_0 = arith.constant 0 : i32
    %c0_i32_1 = arith.constant 0 : i32
    return %c0_i32, %c0_i32_0 : i32, i32
  }
  func.func @transform_2(%arg0: i32) -> (i32, i32) {
    %c0_i32 = arith.constant 0 : i32
    %c0_i32_0 = arith.constant 0 : i32
    %c0_i32_1 = arith.constant 0 : i32
    return %c0_i32, %c0_i32_0 : i32, i32
  }
  func.func @transform_3(%arg0: i32) -> (i32, i32) {
    %c0_i32 = arith.constant 0 : i32
    %c0_i32_0 = arith.constant 0 : i32
    %c0_i32_1 = arith.constant 0 : i32
    return %c0_i32, %c0_i32_0 : i32, i32
  }
  func.func @transform_4(%arg0: i32) -> (i32, i32) {
    %c0_i32 = arith.constant 0 : i32
    %c0_i32_0 = arith.constant 0 : i32
    %c0_i32_1 = arith.constant 0 : i32
    return %c0_i32, %c0_i32_0 : i32, i32
  }
  func.func @transform_5(%arg0: i32) -> (i32, i32) {
    %c0_i32 = arith.constant 0 : i32
    %c0_i32_0 = arith.constant 0 : i32
    %c0_i32_1 = arith.constant 0 : i32
    return %c0_i32, %c0_i32_0 : i32, i32
  }
  func.func @transform_6(%arg0: i32) -> (i32, i32) {
    %c0_i32 = arith.constant 0 : i32
    %c0_i32_0 = arith.constant 0 : i32
    %c0_i32_1 = arith.constant 0 : i32
    return %c0_i32, %c0_i32_0 : i32, i32
  }
  func.func @transform_7(%arg0: i32) -> (i32, i32) {
    %c0_i32 = arith.constant 0 : i32
    %c0_i32_0 = arith.constant 0 : i32
    %c0_i32_1 = arith.constant 0 : i32
    return %c0_i32, %c0_i32_0 : i32, i32
  }
  func.func @transform_8(%arg0: i32) -> (i32, i32) {
    %c0_i32 = arith.constant 0 : i32
    %c0_i32_0 = arith.constant 0 : i32
    %c0_i32_1 = arith.constant 0 : i32
    return %c0_i32, %c0_i32_0 : i32, i32
  }
  func.func @transform_9(%arg0: i32) -> (i32, i32) {
    %c0_i32 = arith.constant 0 : i32
    %c0_i32_0 = arith.constant 0 : i32
    %c0_i32_1 = arith.constant 0 : i32
    return %c0_i32, %c0_i32_0 : i32, i32
  }
  func.func @transform_10(%arg0: i32) -> (i32, i32) {
    %c0_i32 = arith.constant 0 : i32
    %c0_i32_0 = arith.constant 0 : i32
    %c0_i32_1 = arith.constant 0 : i32
    return %c0_i32, %c0_i32_0 : i32, i32
  }
  func.func @transform_11(%arg0: i32) -> (i32, i32) {
    %c0_i32 = arith.constant 0 : i32
    %c0_i32_0 = arith.constant 0 : i32
    %c0_i32_1 = arith.constant 0 : i32
    return %c0_i32, %c0_i32_0 : i32, i32
  }
  func.func @transform_12(%arg0: i32) -> (i32, i32, i32) {
    %c0_i32 = arith.constant 0 : i32
    %c0_i32_0 = arith.constant 0 : i32
    %c0_i32_1 = arith.constant 0 : i32
    return %arg0, %c0_i32, %c0_i32_0 : i32, i32, i32
  }
}

</mosaic_0001>

<bundles_post_ra>
// kernel: convblock_forward.1
= control target key start
LH: loop header
LB: loop body
LE: loop exit
PB: predicated region body
PF: predicated region fallthrough
CT: control target
= control target key end

     0   :  { %s7336_s21 = smov 0   ;;  %s14884_s0 = inlined_call_operand.vmem [shape: f32[2,4,256], index: 0, kind: input, shape index: {}]   ;;  %s14885_s1 = inlined_call_operand.vmem [shape: f32[36,2], index: 1, kind: input, shape index: {}]   ;;  %s14886_s2 = inlined_call_operand.vmem [shape: f32[1,2], index: 2, kind: input, shape index: {}]   ;;  %s14887_s3 = inlined_call_operand.vmem [shape: f32[1,2], index: 3, kind: input, shape index: {}]   ;;  %s14888_s4 = inlined_call_operand.vmem [shape: f32[256,8], index: 4, kind: input, shape index: {}]   ;;  %s14889_s5 = inlined_call_operand.vmem [shape: f32[72,2], index: 5, kind: input, shape index: {}]   ;;  %s14890_s6 = inlined_call_operand.vmem [shape: f32[1,2], index: 6, kind: input, shape index: {}]   ;;  %s14891_s7 = inlined_call_operand.vmem [shape: f32[1,2], index: 7, kind: input, shape index: {}]   ;;  %s14892_s8 = inlined_call_operand.vmem [shape: f32[256,8], index: 8, kind: input, shape index: {}]   ;;  %s14893_s9 = inlined_call_operand.vmem [shape: f32[4,8], index: 9, kind: input, shape index: {}]   ;;  %s14894_s10 = inlined_call_operand.vmem [shape: f32[1,8], index: 10, kind: input, shape index: {}]   ;;  %s14895_s11 = inlined_call_operand.vmem [shape: f32[1,8], index: 11, kind: input, shape index: {}]   ;;  %s14896_s12 = inlined_call_operand.vmem [shape: f32[2,8,256], index: 12, kind: output, shape index: {}]  }
   0x1 LB: > { %s6656_s22 = sadd.s32 4294967295, %s7251_s21   ;;  %p6660_p0 = scmp.ge.s32.totalorder %s7251_s21, 1  ;;  %s7251_s21 = sphi %s7336_s21, %s22_s21  }
   0x2   : > { %p362_p1 = scmp.lt.s32.totalorder %s7251_s21, 3 }
   0x4   : > { %p363_p2 = pnand %p6660_p0, %p362_p1 }
   0x6   : > { %366 = sbr.rel (%p363_p2) target bundleno = 2492 (0x9bc), region = 68 }
   0xd   : > { %p7346_p3 = scmp.lt.s32.totalorder %s6656_s22, 1  ;;  %vm482_vm0 = vcmask 31744   ;;  %v14897_v0 = vmov 0.0   ;;  %vm485_vm1 = vcmask 25600   ;;  %vm673_vm2 = vcmask 1046528   ;;  %s7254_s28 = smov 4  }
   0xe   : > { %487 = vst.msk [vmem:[#allocation2 + $0x18] sm:$0xff] %vm482_vm0, %v14897_v0  ;;  %488 = vst.msk [vmem:[#allocation2 + $0x20] sm:$0xff] %vm482_vm0, %v14897_v0  ;;  %vm1661_vm3 = vcmask 64512   ;;  %vm754_vm4 = vcmask 1045504   ;;  %s7255_s29 = smov 8   ;;  %s7256_s30 = smov 12  }
   0xf   : > { %483 = vst.msk [vmem:[#allocation2] sm:$0xff] %vm482_vm0, %v14897_v0  ;;  %484 = vst.msk [vmem:[#allocation2 + $0x8] sm:$0xff] %vm482_vm0, %v14897_v0  ;;  %s16650_s22 = smov (!%p7346_p3, %s6656_s22), 1  ;;  %s7257_s13 = smov 16   ;;  %vm1994_vm5 = vcmask 1043456   ;;  %vm1694_vm6 = vcmask 97280  }
  0x10   : > { %490 = vst.msk [vmem:[#allocation2 + $0x30] sm:$0xff] %vm482_vm0, %v14897_v0  ;;  %491 = vst.msk [vmem:[#allocation2 + $0x38] sm:$0xff] %vm482_vm0, %v14897_v0  ;;  %s6771_s24 = sshll.u32 %s16650_s22, 3  ;;  %s7258_s14 = smov 20   ;;  %vm1727_vm7 = vcmask 130048   ;;  %vm1760_vm8 = vcmask 162816  }
  0x11   : > { %493 = vst.msk [vmem:[#allocation2 + $0x48] sm:$0xff] %vm482_vm0, %v14897_v0  ;;  %494 = vst.msk [vmem:[#allocation2 + $0x50] sm:$0xff] %vm482_vm0, %v14897_v0  ;;  %s408_s27 = scalar_lea.vmem %s14884_s0, %s6771_s24  ;;  %s7259_s15 = smov 24   ;;  %vm1793_vm9 = vcmask 195584   ;;  %vm1826_vm10 = vcmask 228352   ;;  %vm1859_vm11 = vcmask 261120  }
  0x12   : > { %496 = vst.msk [vmem:[#allocation2 + $0x60] sm:$0xff] %vm482_vm0, %v14897_v0  ;;  %497 = vst.msk [vmem:[#allocation2 + $0x68] sm:$0xff] %vm482_vm0, %v14897_v0  ;;  %v414_v1 = vld [vmem:[%s408_s27] sm:$0xff]  ;;  %s7260_s16 = smov 28   ;;  %s7261_s17 = smov 32   ;;  %vm1897_vm12 = vcmask 293888  }
  0x13   : > { %499 = vst.msk [vmem:[#allocation2 + $0x78] sm:$0xff] %vm482_vm0, %v14897_v0  ;;  %500 = vst.msk [vmem:[#allocation2 + $0x80] sm:$0xff] %vm482_vm0, %v14897_v0  ;;  %418 = vxpose.xlu0.b32.start.end [1/1] (short) %v414_v1, 128  ;;  %v416_v10 = vcombine.high %v414_v1, %v414_v1  ;;  %s7262_s20 = smov 126   ;;  %s7263_s27 = smov 124   ;;  %vm3297_vm13 = vcmask 58368   ;;  %vm3197_vm14 = vcmask 15360  }
  0x14   : > { %502 = vst.msk [vmem:[#allocation2 + $0x90] sm:$0xff] %vm482_vm0, %v14897_v0  ;;  %503 = vst.msk [vmem:[#allocation2 + $0x98] sm:$0xff] %vm482_vm0, %v14897_v0  ;;  %s7264_s19 = smov 122   ;;  %s7266_s26 = smov 6   ;;  %vm3262_vm15 = vcmask 48128  }
  0x15   : > { %505 = vst.msk [vmem:[#allocation2 + $0xa8] sm:$0xff] %vm482_vm0, %v14897_v0  ;;  %506 = vst.msk [vmem:[#allocation2 + $0xb0] sm:$0xff] %vm482_vm0, %v14897_v0  ;;  %s6772_s24 = sshll.u32 %s16650_s22, 4 }
  0x16   : > { %508 = vst.msk [vmem:[#allocation2 + $0xc0] sm:$0xff] %vm482_vm0, %v14897_v0  ;;  %509 = vst.msk [vmem:[#allocation2 + $0xc8] sm:$0xff] %vm482_vm0, %v14897_v0  ;;  %v7468_v2 = vld [vmem:[#allocation2] sm:$0xff]  ;;  %v7470_v3 = vld [vmem:[#allocation2 + $0x8] sm:$0xff] }
  0x17   : > { %511 = vst.msk [vmem:[#allocation2 + $0xd8] sm:$0xff] %vm482_vm0, %v14897_v0  ;;  %512 = vst.msk [vmem:[#allocation2 + $0xe0] sm:$0xff] %vm482_vm0, %v14897_v0  ;;  %v674_v4 = vrot.slane %v7468_v2, 1  ;;  %v675_v5 = vrot.slane %v7470_v3, 1 }
  0x18   : > { %514 = vst.msk [vmem:[#allocation2 + $0xf0] sm:$0xff] %vm482_vm0, %v14897_v0  ;;  %515 = vst.msk [vmem:[#allocation2 + $0xf8] sm:$0xff] %vm482_vm0, %v14897_v0 }
  0x19   : > { %517 = vst.msk [vmem:[#allocation2 + $0x108] sm:$0xff] %vm482_vm0, %v14897_v0  ;;  %518 = vst.msk [vmem:[#allocation2 + $0x110] sm:$0xff] %vm482_vm0, %v14897_v0  ;;  %v676_v6 = vsel %vm673_vm2, %v674_v4, %v675_v5 }
  0x1a   : > { %520 = vst.msk [vmem:[#allocation2 + $0x120] sm:$0xff] %vm482_vm0, %v14897_v0  ;;  %521 = vst.msk [vmem:[#allocation2 + $0x128] sm:$0xff] %vm482_vm0, %v14897_v0  ;;  %861 = vrot.lane.b32.xlu1 %v676_v6, %s7254_s28 }
  0x1b   : > { %523 = vst.msk [vmem:[#allocation2 + $0x138] sm:$0xff] %vm482_vm0, %v14897_v0  ;;  %524 = vst.msk [vmem:[#allocation2 + $0x140] sm:$0xff] %vm482_vm0, %v14897_v0 }
  0x1c   : > { %526 = vst.msk [vmem:[#allocation2 + $0x150] sm:$0xff] %vm482_vm0, %v14897_v0  ;;  %527 = vst.msk [vmem:[#allocation2 + $0x158] sm:$0xff] %vm482_vm0, %v14897_v0 }
  0x1d   : > { %529 = vst.msk [vmem:[#allocation2 + $0x168] sm:$0xff] %vm482_vm0, %v14897_v0  ;;  %530 = vst.msk [vmem:[#allocation2 + $0x170] sm:$0xff] %vm482_vm0, %v14897_v0 }
  0x1e   : > { %532 = vst.msk [vmem:[#allocation2 + $0x180] sm:$0xff] %vm482_vm0, %v14897_v0  ;;  %533 = vst.msk [vmem:[#allocation2 + $0x188] sm:$0xff] %vm482_vm0, %v14897_v0 }
  0x1f   : > { %535 = vst.msk [vmem:[#allocation2 + $0x198] sm:$0xff] %vm482_vm0, %v14897_v0  ;;  %536 = vst.msk [vmem:[#allocation2 + $0x1a0] sm:$0xff] %vm482_vm0, %v14897_v0 }
  0x20   : > { %489 = vst.msk [vmem:[#allocation2 + $0x28] sm:$0x3] %vm485_vm1, %v14897_v0  ;;  %486 = vst.msk [vmem:[#allocation2 + $0x10] sm:$0x3] %vm485_vm1, %v14897_v0 }
  0x21   : > { %492 = vst.msk [vmem:[#allocation2 + $0x40] sm:$0x3] %vm485_vm1, %v14897_v0  ;;  %495 = vst.msk [vmem:[#allocation2 + $0x58] sm:$0x3] %vm485_vm1, %v14897_v0 }
  0x22   : > { %498 = vst.msk [vmem:[#allocation2 + $0x70] sm:$0x3] %vm485_vm1, %v14897_v0  ;;  %501 = vst.msk [vmem:[#allocation2 + $0x88] sm:$0x3] %vm485_vm1, %v14897_v0 }
  0x23   : > { %504 = vst.msk [vmem:[#allocation2 + $0xa0] sm:$0x3] %vm485_vm1, %v14897_v0  ;;  %507 = vst.msk [vmem:[#allocation2 + $0xb8] sm:$0x3] %vm485_vm1, %v14897_v0 }
  0x24   : > { %510 = vst.msk [vmem:[#allocation2 + $0xd0] sm:$0x3] %vm485_vm1, %v14897_v0  ;;  %513 = vst.msk [vmem:[#allocation2 + $0xe8] sm:$0x3] %vm485_vm1, %v14897_v0 }
  0x25   : > { %516 = vst.msk [vmem:[#allocation2 + $0x100] sm:$0x3] %vm485_vm1, %v14897_v0  ;;  %519 = vst.msk [vmem:[#allocation2 + $0x118] sm:$0x3] %vm485_vm1, %v14897_v0 }
  0x26   : > { %522 = vst.msk [vmem:[#allocation2 + $0x130] sm:$0x3] %vm485_vm1, %v14897_v0  ;;  %525 = vst.msk [vmem:[#allocation2 + $0x148] sm:$0x3] %vm485_vm1, %v14897_v0 }
  0x27   : > { %528 = vst.msk [vmem:[#allocation2 + $0x160] sm:$0x3] %vm485_vm1, %v14897_v0  ;;  %531 = vst.msk [vmem:[#allocation2 + $0x178] sm:$0x3] %vm485_vm1, %v14897_v0  ;;  %v7476_v7 = vld [vmem:[#allocation2 + $0x10] sm:$0x3] }
  0x28   : > { %534 = vst.msk [vmem:[#allocation2 + $0x190] sm:$0x3] %vm485_vm1, %v14897_v0  ;;  %537 = vst.msk [vmem:[#allocation2 + $0x1a8] sm:$0x3] %vm485_vm1, %v14897_v0  ;;  %v677_v8 = vrot.slane %v7476_v7, 1  ;;  %vm4567_vm1 = vcmask 326656  }
  0x29   : > { %3295 = vst.msk [vmem:[#allocation3] sm:$0xff] %vm1661_vm3, %v14897_v0  ;;  %3296 = vst.msk [vmem:[#allocation3 + $0x8] sm:$0xff] %vm1661_vm3, %v14897_v0 }
  0x2a   : > { %v678_v9 = vsel %vm673_vm2, %v675_v5, %v677_v8  ;;  %3299 = vst.msk [vmem:[#allocation3 + $0x18] sm:$0xff] %vm1661_vm3, %v14897_v0  ;;  %3300 = vst.msk [vmem:[#allocation3 + $0x20] sm:$0xff] %vm1661_vm3, %v14897_v0 }
  0x2b   : > { %863 = vrot.lane.b32.xlu1 %v678_v9, %s7254_s28  ;;  %3302 = vst.msk [vmem:[#allocation3 + $0x30] sm:$0xff] %vm1661_vm3, %v14897_v0  ;;  %3303 = vst.msk [vmem:[#allocation3 + $0x38] sm:$0xff] %vm1661_vm3, %v14897_v0 }
  0x2c   : > { %3305 = vst.msk [vmem:[#allocation3 + $0x48] sm:$0xff] %vm1661_vm3, %v14897_v0  ;;  %3306 = vst.msk [vmem:[#allocation3 + $0x50] sm:$0xff] %vm1661_vm3, %v14897_v0 }
  0x2d   : > { %3308 = vst.msk [vmem:[#allocation3 + $0x60] sm:$0xff] %vm1661_vm3, %v14897_v0  ;;  %3309 = vst.msk [vmem:[#allocation3 + $0x68] sm:$0xff] %vm1661_vm3, %v14897_v0 }
  0x2e   : > { %3311 = vst.msk [vmem:[#allocation3 + $0x78] sm:$0xff] %vm1661_vm3, %v14897_v0  ;;  %3312 = vst.msk [vmem:[#allocation3 + $0x80] sm:$0xff] %vm1661_vm3, %v14897_v0 }
  0x2f   : > { %3314 = vst.msk [vmem:[#allocation3 + $0x90] sm:$0xff] %vm1661_vm3, %v14897_v0  ;;  %3315 = vst.msk [vmem:[#allocation3 + $0x98] sm:$0xff] %vm1661_vm3, %v14897_v0 }
  0x30   : > { %3317 = vst.msk [vmem:[#allocation3 + $0xa8] sm:$0xff] %vm1661_vm3, %v14897_v0  ;;  %3318 = vst.msk [vmem:[#allocation3 + $0xb0] sm:$0xff] %vm1661_vm3, %v14897_v0 }
  0x31   : > { %3320 = vst.msk [vmem:[#allocation3 + $0xc0] sm:$0xff] %vm1661_vm3, %v14897_v0  ;;  %3321 = vst.msk [vmem:[#allocation3 + $0xc8] sm:$0xff] %vm1661_vm3, %v14897_v0 }
  0x32   : > { %3323 = vst.msk [vmem:[#allocation3 + $0xd8] sm:$0xff] %vm1661_vm3, %v14897_v0  ;;  %3324 = vst.msk [vmem:[#allocation3 + $0xe0] sm:$0xff] %vm1661_vm3, %v14897_v0 }
  0x33   : > { %3326 = vst.msk [vmem:[#allocation3 + $0xf0] sm:$0xff] %vm1661_vm3, %v14897_v0  ;;  %3327 = vst.msk [vmem:[#allocation3 + $0xf8] sm:$0xff] %vm1661_vm3, %v14897_v0 }
  0x34   : > { %3329 = vst.msk [vmem:[#allocation3 + $0x108] sm:$0xff] %vm1661_vm3, %v14897_v0  ;;  %3330 = vst.msk [vmem:[#allocation3 + $0x110] sm:$0xff] %vm1661_vm3, %v14897_v0 }
  0x35   : > { %3332 = vst.msk [vmem:[#allocation3 + $0x120] sm:$0xff] %vm1661_vm3, %v14897_v0  ;;  %3333 = vst.msk [vmem:[#allocation3 + $0x128] sm:$0xff] %vm1661_vm3, %v14897_v0 }
  0x36   : > { %3335 = vst.msk [vmem:[#allocation3 + $0x138] sm:$0xff] %vm1661_vm3, %v14897_v0  ;;  %3336 = vst.msk [vmem:[#allocation3 + $0x140] sm:$0xff] %vm1661_vm3, %v14897_v0 }
  0x37   : > { %3338 = vst.msk [vmem:[#allocation3 + $0x150] sm:$0xff] %vm1661_vm3, %v14897_v0  ;;  %3339 = vst.msk [vmem:[#allocation3 + $0x158] sm:$0xff] %vm1661_vm3, %v14897_v0 }
  0x38   : > { %3341 = vst.msk [vmem:[#allocation3 + $0x168] sm:$0xff] %vm1661_vm3, %v14897_v0  ;;  %3342 = vst.msk [vmem:[#allocation3 + $0x170] sm:$0xff] %vm1661_vm3, %v14897_v0 }
  0x39   : > { %3344 = vst.msk [vmem:[#allocation3 + $0x180] sm:$0xff] %vm1661_vm3, %v14897_v0  ;;  %3345 = vst.msk [vmem:[#allocation3 + $0x188] sm:$0xff] %vm1661_vm3, %v14897_v0 }
  0x3a   : > { %3347 = vst.msk [vmem:[#allocation3 + $0x198] sm:$0xff] %vm1661_vm3, %v14897_v0  ;;  %3348 = vst.msk [vmem:[#allocation3 + $0x1a0] sm:$0xff] %vm1661_vm3, %v14897_v0 }
  0x50   : > { %450 = vxpose.xlu0.b32.start.end [1/1] (short) %v416_v10, 128 }
  0x93   : > { %v7481_v11 = vpop.trf.xlu0 }
  0x94   : > { %15171 = vst [vmem:[#allocation4_spill] sm:$0xff] %v7481_v11  ;;  %539 = vst.msk [vmem:[#allocation2 + $0x19] sm:$0xff] %vm482_vm0, %v7481_v11 }
  0x97   : > { %v7485_v12 = vpop.trf.xlu0 }
  0x98   : > { %15172 = vst [vmem:[#allocation5_spill] sm:$0xff] %v7485_v12  ;;  %540 = vst.msk [vmem:[#allocation2 + $0x21] sm:$0xff] %vm482_vm0, %v7485_v12 }
  0x9b   : > { %v7489_v13 = vpop.trf.xlu0  ;;  %v7493_v14 = vld [vmem:[#allocation2 + $0x18] sm:$0xff] }
  0x9c   : > { %15173 = vst [vmem:[#allocation6_spill] sm:$0xff] %v7489_v13  ;;  %541 = vst.msk [vmem:[#allocation2 + $0x31] sm:$0xff] %vm482_vm0, %v7489_v13  ;;  %v679_v18 = vrot.slane %v7493_v14, 1 }
  0x9f   : > { %v7495_v15 = vpop.trf.xlu0  ;;  %v7497_v16 = vld [vmem:[#allocation2 + $0x20] sm:$0xff]  ;;  %v7499_v17 = vld [vmem:[#allocation2 + $0x28] sm:$0x3] }
  0xa0   : > { %15174 = vst [vmem:[#allocation7_spill] sm:$0xff] %v7495_v15  ;;  %542 = vst.msk [vmem:[#allocation2 + $0x39] sm:$0xff] %vm482_vm0, %v7495_v15  ;;  %v680_v19 = vrot.slane %v7497_v16, 1  ;;  %v682_v21 = vrot.slane %v7499_v17, 1 }
  0xa2   : > { %v7506_v20 = vsel %vm673_vm2, %v679_v18, %v680_v19  ;;  %v7518_v24 = vsel %vm673_vm2, %v680_v19, %v682_v21 }
  0xa3   : > { %15175 = vst [vmem:[#allocation8_spill] sm:$0xff] %v7506_v20  ;;  %865 = vrot.lane.b32.xlu1 %v7506_v20, %s7254_s28  ;;  %v7511_v22 = vpop.trf.xlu0  ;;  %v7515_v23 = vld [vmem:[#allocation2 + $0x30] sm:$0xff]  ;;  %v756_v20 = vrot.slane %v7470_v3, 2 }
  0xa4   : > { %15176 = vst [vmem:[#allocation9_spill] sm:$0xff] %v7511_v22  ;;  %543 = vst.msk [vmem:[#allocation2 + $0x49] sm:$0xff] %vm482_vm0, %v7511_v22  ;;  %v684_v28 = vrot.slane %v7515_v23, 1 }
  0xa7   : > { %867 = vrot.lane.b32.xlu1 %v7518_v24, %s7254_s28  ;;  %v7522_v25 = vpop.trf.xlu0  ;;  %v7524_v26 = vld [vmem:[#allocation2 + $0x38] sm:$0xff]  ;;  %v7526_v27 = vld [vmem:[#allocation2 + $0x40] sm:$0x3] }
  0xa8   : > { %15177 = vst [vmem:[#allocation10_spill] sm:$0xff] %v7522_v25  ;;  %544 = vst.msk [vmem:[#allocation2 + $0x51] sm:$0xff] %vm482_vm0, %v7522_v25  ;;  %v685_v29 = vrot.slane %v7524_v26, 1  ;;  %v687_v31 = vrot.slane %v7526_v27, 1 }
  0xaa   : > { %v7533_v30 = vsel %vm673_vm2, %v684_v28, %v685_v29  ;;  %v7545_v34 = vsel %vm673_vm2, %v685_v29, %v687_v31 }
  0xab   : > { %15178 = vst [vmem:[#allocation11_spill] sm:$0xff] %v7533_v30  ;;  %869 = vrot.lane.b32.xlu1 %v7533_v30, %s7254_s28  ;;  %v7538_v32 = vpop.trf.xlu0  ;;  %v7542_v33 = vld [vmem:[#allocation2 + $0x48] sm:$0xff]  ;;  %15180 = vst [vmem:[#allocation13_spill] sm:$0xff] %v7545_v34 }
  0xac   : > { %15179 = vst [vmem:[#allocation12_spill] sm:$0xff] %v7538_v32  ;;  %545 = vst.msk [vmem:[#allocation2 + $0x61] sm:$0xff] %vm482_vm0, %v7538_v32  ;;  %v689_v38 = vrot.slane %v7542_v33, 1 }
  0xaf   : > { %871 = vrot.lane.b32.xlu1 %v7545_v34, %s7254_s28  ;;  %v7549_v35 = vpop.trf.xlu0  ;;  %v7551_v36 = vld [vmem:[#allocation2 + $0x50] sm:$0xff]  ;;  %v7553_v37 = vld [vmem:[#allocation2 + $0x58] sm:$0x3] }
  0xb0   : > { %15181 = vst [vmem:[#allocation14_spill] sm:$0xff] %v7549_v35  ;;  %546 = vst.msk [vmem:[#allocation2 + $0x69] sm:$0xff] %vm482_vm0, %v7549_v35  ;;  %v690_v39 = vrot.slane %v7551_v36, 1  ;;  %v692_v41 = vrot.slane %v7553_v37, 1 }
  0xb2   : > { %v7560_v40 = vsel %vm673_vm2, %v689_v38, %v690_v39  ;;  %v7572_v44 = vsel %vm673_vm2, %v690_v39, %v692_v41 }
  0xb3   : > { %15182 = vst [vmem:[#allocation15_spill] sm:$0xff] %v7560_v40  ;;  %873 = vrot.lane.b32.xlu1 %v7560_v40, %s7254_s28  ;;  %v7565_v42 = vpop.trf.xlu0  ;;  %v7569_v43 = vld [vmem:[#allocation2 + $0x60] sm:$0xff]  ;;  %15184 = vst [vmem:[#allocation17_spill] sm:$0xff] %v7572_v44 }
  0xb4   : > { %15183 = vst [vmem:[#allocation16_spill] sm:$0xff] %v7565_v42  ;;  %547 = vst.msk [vmem:[#allocation2 + $0x79] sm:$0xff] %vm482_vm0, %v7565_v42  ;;  %v694_v48 = vrot.slane %v7569_v43, 1 }
  0xb7   : > { %875 = vrot.lane.b32.xlu1 %v7572_v44, %s7254_s28  ;;  %v7576_v45 = vpop.trf.xlu0  ;;  %v7578_v46 = vld [vmem:[#allocation2 + $0x68] sm:$0xff]  ;;  %v7580_v47 = vld [vmem:[#allocation2 + $0x70] sm:$0x3] }
  0xb8   : > { %15185 = vst [vmem:[#allocation18_spill] sm:$0xff] %v7576_v45  ;;  %548 = vst.msk [vmem:[#allocation2 + $0x81] sm:$0xff] %vm482_vm0, %v7576_v45  ;;  %v695_v49 = vrot.slane %v7578_v46, 1  ;;  %v697_v51 = vrot.slane %v7580_v47, 1 }
  0xba   : > { %v7587_v50 = vsel %vm673_vm2, %v694_v48, %v695_v49  ;;  %v7599_v54 = vsel %vm673_vm2, %v695_v49, %v697_v51 }
  0xbb   : > { %15186 = vst [vmem:[#allocation19_spill] sm:$0xff] %v7587_v50  ;;  %877 = vrot.lane.b32.xlu1 %v7587_v50, %s7254_s28  ;;  %v7592_v52 = vpop.trf.xlu0  ;;  %v7596_v53 = vld [vmem:[#allocation2 + $0x78] sm:$0xff]  ;;  %15188 = vst [vmem:[#allocation21_spill] sm:$0xff] %v7599_v54 }
  0xbc   : > { %15187 = vst [vmem:[#allocation20_spill] sm:$0xff] %v7592_v52  ;;  %549 = vst.msk [vmem:[#allocation2 + $0x91] sm:$0xff] %vm482_vm0, %v7592_v52  ;;  %v699_v58 = vrot.slane %v7596_v53, 1 }
  0xbf   : > { %879 = vrot.lane.b32.xlu1 %v7599_v54, %s7254_s28  ;;  %v7603_v55 = vpop.trf.xlu0  ;;  %v7605_v56 = vld [vmem:[#allocation2 + $0x80] sm:$0xff]  ;;  %v7607_v57 = vld [vmem:[#allocation2 + $0x88] sm:$0x3] }
  0xc0   : > { %15189 = vst [vmem:[#allocation22_spill] sm:$0xff] %v7603_v55  ;;  %550 = vst.msk [vmem:[#allocation2 + $0x99] sm:$0xff] %vm482_vm0, %v7603_v55  ;;  %v700_v59 = vrot.slane %v7605_v56, 1  ;;  %v702_v61 = vrot.slane %v7607_v57, 1 }
  0xc2   : > { %v7614_v60 = vsel %vm673_vm2, %v699_v58, %v700_v59  ;;  %v7626_v1 = vsel %vm673_vm2, %v700_v59, %v702_v61 }
  0xc3   : > { %15190 = vst [vmem:[#allocation23_spill] sm:$0xff] %v7614_v60  ;;  %881 = vrot.lane.b32.xlu1 %v7614_v60, %s7254_s28  ;;  %v7619_v62 = vpop.trf.xlu0  ;;  %v7623_v63 = vld [vmem:[#allocation2 + $0x90] sm:$0xff] }
  0xc4   : > { %15191 = vst [vmem:[#allocation24_spill] sm:$0xff] %v7619_v62  ;;  %551 = vst.msk [vmem:[#allocation2 + $0xa9] sm:$0xff] %vm482_vm0, %v7619_v62  ;;  %v704_v8 = vrot.slane %v7623_v63, 1 }
  0xc7   : > { %883 = vrot.lane.b32.xlu1 %v7626_v1, %s7254_s28  ;;  %v7630_v4 = vpop.trf.xlu0  ;;  %v7632_v5 = vld [vmem:[#allocation2 + $0x98] sm:$0xff]  ;;  %v7634_v6 = vld [vmem:[#allocation2 + $0xa0] sm:$0x3] }
  0xc8   : > { %15192 = vst [vmem:[#allocation25_spill] sm:$0xff] %v7630_v4  ;;  %552 = vst.msk [vmem:[#allocation2 + $0xb1] sm:$0xff] %vm482_vm0, %v7630_v4  ;;  %v705_v9 = vrot.slane %v7632_v5, 1  ;;  %v707_v18 = vrot.slane %v7634_v6, 1  ;;  %v15202_v62 = vrot.slane %v7632_v5, 2 }
  0xca   : > { %v7641_v10 = vsel %vm673_vm2, %v704_v8, %v705_v9  ;;  %v7653_v28 = vsel %vm673_vm2, %v705_v9, %v707_v18 }
  0xcb   : > { %15193 = vst [vmem:[#allocation26_spill] sm:$0xff] %v7641_v10  ;;  %885 = vrot.lane.b32.xlu1 %v7641_v10, %s7254_s28  ;;  %v7646_v19 = vpop.trf.xlu0  ;;  %v7650_v21 = vld [vmem:[#allocation2 + $0xa8] sm:$0xff] }
  0xcc   : > { %15194 = vst [vmem:[#allocation27_spill] sm:$0xff] %v7646_v19  ;;  %553 = vst.msk [vmem:[#allocation2 + $0xc1] sm:$0xff] %vm482_vm0, %v7646_v19  ;;  %v709_v39 = vrot.slane %v7650_v21, 1 }
  0xcf   : > { %887 = vrot.lane.b32.xlu1 %v7653_v28, %s7254_s28  ;;  %v7657_v29 = vpop.trf.xlu0  ;;  %v7659_v31 = vld [vmem:[#allocation2 + $0xb0] sm:$0xff]  ;;  %v7661_v38 = vld [vmem:[#allocation2 + $0xb8] sm:$0x3] }
  0xd0   : > { %15195 = vst [vmem:[#allocation28_spill] sm:$0xff] %v7657_v29  ;;  %554 = vst.msk [vmem:[#allocation2 + $0xc9] sm:$0xff] %vm482_vm0, %v7657_v29  ;;  %v710_v41 = vrot.slane %v7659_v31, 1  ;;  %v712_v49 = vrot.slane %v7661_v38, 1  ;;  %v783_v29 = vrot.slane %v7607_v57, 2  ;;  %v14913_v55 = vrot.slane %v7659_v31, 2 }
  0xd1   : > { %v793_v52 = vrot.slane %v7661_v38, 2 }
  0xd2   : > { %v7740_v48 = vsel %vm673_vm2, %v709_v39, %v710_v41  ;;  %v7752_v59 = vsel %vm673_vm2, %v710_v41, %v712_v49  ;;  %v14906_v49 = vrot.slane %v7605_v56, 2 }
  0xd3   : > { %15196 = vst [vmem:[#allocation29_spill] sm:$0xff] %v7740_v48  ;;  %889 = vrot.lane.b32.xlu1 %v7740_v48, %s7254_s28  ;;  %v7745_v51 = vpop.trf.xlu0  ;;  %v7749_v58 = vld [vmem:[#allocation2 + $0xc0] sm:$0xff]  ;;  %v7823_v38 = vsel %vm754_vm4, %v14913_v55, %v793_v52 }
  0xd4   : > { %15197 = vst [vmem:[#allocation30_spill] sm:$0xff] %v7745_v51  ;;  %555 = vst.msk [vmem:[#allocation2 + $0xd9] sm:$0xff] %vm482_vm0, %v7745_v51  ;;  %v714_v18 = vrot.slane %v7749_v58, 1  ;;  %v7787_v57 = vsel %vm754_vm4, %v14906_v49, %v783_v29 }
  0xd5   : > { %15206 = vst [vmem:[#allocation38_spill] sm:$0xff] %v7823_v38 }
  0xd7   : > { %891 = vrot.lane.b32.xlu1 %v7752_v59, %s7254_s28  ;;  %v7756_v61 = vpop.trf.xlu0  ;;  %v7758_v8 = vld [vmem:[#allocation2 + $0xc8] sm:$0xff]  ;;  %v597_v9 = vld [vmem:[#allocation2 + $0xd0] sm:$0x3] }
  0xd8   : > { %15198 = vst [vmem:[#allocation31_spill] sm:$0xff] %v7756_v61  ;;  %556 = vst.msk [vmem:[#allocation2 + $0xe1] sm:$0xff] %vm482_vm0, %v7756_v61  ;;  %v715_v39 = vrot.slane %v7758_v8, 1  ;;  %v717_v0 = vrot.slane %v597_v9, 1 }
  0xda   : > { %v7765_v51 = vsel %vm673_vm2, %v714_v18, %v715_v39  ;;  %v7768_v41 = vsel %vm673_vm2, %v715_v39, %v717_v0  ;;  %v788_v0 = vrot.slane %v7634_v6, 2 }
  0xdb   : > { %15199 = vst [vmem:[#allocation32_spill] sm:$0xff] %v7765_v51  ;;  %893 = vrot.lane.b32.xlu1 %v7765_v51, %s7254_s28  ;;  %895 = vrot.lane.b32.xlu0 %v7768_v41, %s7254_s28  ;;  %v7776_v61 = vpop.trf.xlu0  ;;  %v7782_v39 = vld [vmem:[#allocation2 + $0xd8] sm:$0xff] }
  0xdc   : > { %15200 = vst [vmem:[#allocation33_spill] sm:$0xff] %v7776_v61  ;;  %557 = vst.msk [vmem:[#allocation2 + $0xf1] sm:$0xff] %vm482_vm0, %v7776_v61  ;;  %v719_v6 = vrot.slane %v7782_v39, 1  ;;  %v7802_v29 = vsel %vm754_vm4, %v15202_v62, %v788_v0  ;;  %v798_v0 = vrot.slane %v597_v9, 2 }
  0xdd   : > { %15203 = vst [vmem:[#allocation35_spill] sm:$0xff] %v7802_v29 }
  0xdf   : > { %979 = vrot.lane.b32.xlu0 %v7787_v57, %s7255_s29  ;;  %v7791_v19 = vpop.trf.xlu0  ;;  %v7793_v4 = vld [vmem:[#allocation2 + $0xe0] sm:$0xff]  ;;  %v600_v61 = vld [vmem:[#allocation2 + $0xe8] sm:$0x3] }
  0xe0   : > { %15201 = vst [vmem:[#allocation34_spill] sm:$0xff] %v7791_v19  ;;  %558 = vst.msk [vmem:[#allocation2 + $0xf9] sm:$0xff] %vm482_vm0, %v7791_v19  ;;  %v720_v18 = vrot.slane %v7793_v4, 1  ;;  %v722_v45 = vrot.slane %v600_v61, 1  ;;  %v14921_v32 = vrot.slane %v7793_v4, 2  ;;  %v803_v25 = vrot.slane %v600_v61, 2 }
  0xe2   : > { %v7805_v49 = vsel %vm673_vm2, %v719_v6, %v720_v18  ;;  %v7826_v42 = vsel %vm673_vm2, %v720_v18, %v722_v45  ;;  %v15208_v45 = vrot.slane %v7758_v8, 2  ;;  %v7863_v61 = vsel %vm754_vm4, %v14921_v32, %v803_v25 }
  0xe3   : > { %15204 = vst [vmem:[#allocation36_spill] sm:$0xff] %v7805_v49  ;;  %983 = vrot.lane.b32.xlu0 %v7802_v29, %s7255_s29  ;;  %897 = vrot.lane.b32.xlu1 %v7805_v49, %s7254_s28  ;;  %v7813_v19 = vpop.trf.xlu0  ;;  %v7818_v6 = vld [vmem:[#allocation2 + $0xf0] sm:$0xff]  ;;  %15212 = vst [vmem:[#allocation43_spill] sm:$0xff] %v7863_v61 }
  0xe4   : > { %15205 = vst [vmem:[#allocation37_spill] sm:$0xff] %v7813_v19  ;;  %559 = vst.msk [vmem:[#allocation2 + $0x109] sm:$0xff] %vm482_vm0, %v7813_v19  ;;  %v724_v52 = vrot.slane %v7818_v6, 1  ;;  %v7843_v18 = vsel %vm754_vm4, %v15208_v45, %v798_v0 }
  0xe5   : > { %15209 = vst [vmem:[#allocation40_spill] sm:$0xff] %v7843_v18 }
  0xe7   : > { %987 = vrot.lane.b32.xlu0 %v7823_v38, %s7255_s29  ;;  %899 = vrot.lane.b32.xlu1 %v7826_v42, %s7254_s28  ;;  %v7832_v19 = vpop.trf.xlu0  ;;  %v7834_v62 = vld [vmem:[#allocation2 + $0xf8] sm:$0xff]  ;;  %v603_v9 = vld [vmem:[#allocation2 + $0x100] sm:$0x3]  ;;  %v755_v38 = vrot.slane %v7468_v2, 2 }
  0xe8   : > { %15207 = vst [vmem:[#allocation39_spill] sm:$0xff] %v7832_v19  ;;  %560 = vst.msk [vmem:[#allocation2 + $0x111] sm:$0xff] %vm482_vm0, %v7832_v19  ;;  %v725_v55 = vrot.slane %v7834_v62, 1  ;;  %v727_v22 = vrot.slane %v603_v9, 1  ;;  %v808_v45 = vrot.slane %v603_v9, 2 }
  0xea   : > { %v7846_v35 = vsel %vm673_vm2, %v724_v52, %v725_v55  ;;  %v7866_v15 = vsel %vm673_vm2, %v725_v55, %v727_v22  ;;  %v15214_v22 = vrot.slane %v7834_v62, 2 }
  0xeb   : > { %15210 = vst [vmem:[#allocation41_spill] sm:$0xff] %v7846_v35  ;;  %991 = vrot.lane.b32.xlu0 %v7843_v18, %s7255_s29  ;;  %901 = vrot.lane.b32.xlu1 %v7846_v35, %s7254_s28  ;;  %v7853_v19 = vpop.trf.xlu0  ;;  %v7858_v52 = vld [vmem:[#allocation2 + $0x108] sm:$0xff] }
  0xec   : > { %15211 = vst [vmem:[#allocation42_spill] sm:$0xff] %v7853_v19  ;;  %561 = vst.msk [vmem:[#allocation2 + $0x121] sm:$0xff] %vm482_vm0, %v7853_v19  ;;  %v729_v25 = vrot.slane %v7858_v52, 1  ;;  %v7883_v55 = vsel %vm754_vm4, %v15214_v22, %v808_v45 }
  0xed   : > { %15215 = vst [vmem:[#allocation45_spill] sm:$0xff] %v7883_v55 }
  0xef   : > { %995 = vrot.lane.b32.xlu0 %v7863_v61, %s7255_s29  ;;  %903 = vrot.lane.b32.xlu1 %v7866_v15, %s7254_s28  ;;  %v7872_v19 = vpop.trf.xlu0  ;;  %v7874_v0 = vld [vmem:[#allocation2 + $0x110] sm:$0xff]  ;;  %v606_v9 = vld [vmem:[#allocation2 + $0x118] sm:$0x3] }
  0xf0   : > { %15213 = vst [vmem:[#allocation44_spill] sm:$0xff] %v7872_v19  ;;  %562 = vst.msk [vmem:[#allocation2 + $0x129] sm:$0xff] %vm482_vm0, %v7872_v19  ;;  %v730_v32 = vrot.slane %v7874_v0, 1  ;;  %v14931_v12 = vrot.slane %v7874_v0, 2  ;;  %v813_v11 = vrot.slane %v606_v9, 2  ;;  %v732_v35 = vrot.slane %v606_v9, 1 }
  0xf2   : > { %v7886_v13 = vsel %vm673_vm2, %v729_v25, %v730_v32  ;;  %v7902_v25 = vsel %vm754_vm4, %v14931_v12, %v813_v11  ;;  %v7905_v9 = vsel %vm673_vm2, %v730_v32, %v732_v35 }
  0xf3   : > { %15216 = vst [vmem:[#allocation46_spill] sm:$0xff] %v7886_v13  ;;  %999 = vrot.lane.b32.xlu0 %v7883_v55, %s7255_s29  ;;  %905 = vrot.lane.b32.xlu1 %v7886_v13, %s7254_s28  ;;  %v7893_v19 = vpop.trf.xlu0  ;;  %v7897_v45 = vld [vmem:[#allocation2 + $0x120] sm:$0xff]  ;;  %15218 = vst [vmem:[#allocation48_spill] sm:$0xff] %v7902_v25 }
  0xf4   : > { %15217 = vst [vmem:[#allocation47_spill] sm:$0xff] %v7893_v19  ;;  %563 = vst.msk [vmem:[#allocation2 + $0x139] sm:$0xff] %vm482_vm0, %v7893_v19  ;;  %v734_v32 = vrot.slane %v7897_v45, 1 }
  0xf7   : > { %1003 = vrot.lane.b32.xlu0 %v7902_v25, %s7255_s29  ;;  %907 = vrot.lane.b32.xlu1 %v7905_v9, %s7254_s28  ;;  %v7911_v22 = vpop.trf.xlu0  ;;  %v7913_v13 = vld [vmem:[#allocation2 + $0x128] sm:$0xff]  ;;  %v609_v19 = vld [vmem:[#allocation2 + $0x130] sm:$0x3] }
  0xf8   : > { %15219 = vst [vmem:[#allocation49_spill] sm:$0xff] %v7911_v22  ;;  %564 = vst.msk [vmem:[#allocation2 + $0x141] sm:$0xff] %vm482_vm0, %v7911_v22  ;;  %v14941_v11 = vrot.slane %v7913_v13, 2  ;;  %v818_v12 = vrot.slane %v609_v19, 2  ;;  %v735_v35 = vrot.slane %v7913_v13, 1  ;;  %v737_v48 = vrot.slane %v609_v19, 1 }
  0xfa   : > { %v7923_v49 = vsel %vm754_vm4, %v14941_v11, %v818_v12  ;;  %v7926_v51 = vsel %vm673_vm2, %v734_v32, %v735_v35  ;;  %v7939_v12 = vsel %vm673_vm2, %v735_v35, %v737_v48 }
  0xfb   : > { %15220 = vst [vmem:[#allocation50_spill] sm:$0xff] %v7923_v49  ;;  %15221 = vst [vmem:[#allocation51_spill] sm:$0xff] %v7926_v51  ;;  %1007 = vrot.lane.b32.xlu0 %v7923_v49, %s7255_s29  ;;  %909 = vrot.lane.b32.xlu1 %v7926_v51, %s7254_s28  ;;  %v7932_v22 = vpop.trf.xlu0  ;;  %v7936_v10 = vld [vmem:[#allocation2 + $0x138] sm:$0xff] }
  0xfc   : > { %15222 = vst [vmem:[#allocation52_spill] sm:$0xff] %v7932_v22  ;;  %565 = vst.msk [vmem:[#allocation2 + $0x151] sm:$0xff] %vm482_vm0, %v7932_v22  ;;  %v739_v22 = vrot.slane %v7936_v10, 1 }
  0xff   : > { %911 = vrot.lane.b32.xlu1 %v7939_v12, %s7254_s28  ;;  %v7943_v19 = vpop.trf.xlu0  ;;  %v7945_v32 = vld [vmem:[#allocation2 + $0x140] sm:$0xff]  ;;  %v612_v11 = vld [vmem:[#allocation2 + $0x148] sm:$0x3] }
 0x100   : > { %15223 = vst [vmem:[#allocation53_spill] sm:$0xff] %v7943_v19  ;;  %566 = vst.msk [vmem:[#allocation2 + $0x159] sm:$0xff] %vm482_vm0, %v7943_v19  ;;  %v14954_v51 = vrot.slane %v7945_v32, 2  ;;  %v823_v49 = vrot.slane %v612_v11, 2  ;;  %v740_v25 = vrot.slane %v7945_v32, 1  ;;  %v742_v60 = vrot.slane %v612_v11, 1 }
 0x102   : > { %v7955_v48 = vsel %vm754_vm4, %v14954_v51, %v823_v49  ;;  %v7958_v35 = vsel %vm673_vm2, %v739_v22, %v740_v25  ;;  %v7971_v49 = vsel %vm673_vm2, %v740_v25, %v742_v60  ;;  %v7984_v60 = vpop.permute.xlu1 %861 }
 0x103   : > { %15224 = vst [vmem:[#allocation54_spill] sm:$0xff] %v7955_v48  ;;  %15225 = vst [vmem:[#allocation55_spill] sm:$0xff] %v7958_v35  ;;  %1011 = vrot.lane.b32.xlu0 %v7955_v48, %s7255_s29  ;;  %913 = vrot.lane.b32.xlu1 %v7958_v35, %s7254_s28  ;;  %v7964_v19 = vpop.trf.xlu0  ;;  %v7968_v55 = vld [vmem:[#allocation2 + $0x150] sm:$0xff] }
 0x104   : > { %15226 = vst [vmem:[#allocation56_spill] sm:$0xff] %v7964_v19  ;;  %567 = vst.msk [vmem:[#allocation2 + $0x169] sm:$0xff] %vm482_vm0, %v7964_v19  ;;  %v744_v19 = vrot.slane %v7968_v55, 1 }
 0x105   : > { %15228 = vst [vmem:[#allocation58_spill] sm:$0xff] %v7984_v60 }
 0x107   : > { %915 = vrot.lane.b32.xlu1 %v7971_v49, %s7254_s28  ;;  %v7975_v22 = vpop.trf.xlu0  ;;  %v7977_v11 = vld [vmem:[#allocation2 + $0x158] sm:$0xff]  ;;  %v615_v51 = vld [vmem:[#allocation2 + $0x160] sm:$0x3] }
 0x108   : > { %15227 = vst [vmem:[#allocation57_spill] sm:$0xff] %v7975_v22  ;;  %568 = vst.msk [vmem:[#allocation2 + $0x171] sm:$0xff] %vm482_vm0, %v7975_v22  ;;  %v14967_v35 = vrot.slane %v7977_v11, 2  ;;  %v828_v48 = vrot.slane %v615_v51, 2  ;;  %v745_v50 = vrot.slane %v7977_v11, 1  ;;  %v747_v40 = vrot.slane %v615_v51, 1  ;;  %v8009_v51 = vpop.permute.xlu1 %863 }
 0x109   : > { %15232 = vst [vmem:[#allocation62_spill] sm:$0xff] %v8009_v51 }
 0x10a   : > { %v7989_v25 = vsel %vm754_vm4, %v14967_v35, %v828_v48  ;;  %v7992_v61 = vsel %vm673_vm2, %v744_v19, %v745_v50  ;;  %v8005_v48 = vsel %vm673_vm2, %v745_v50, %v747_v40 }
 0x10b   : > { %15229 = vst [vmem:[#allocation59_spill] sm:$0xff] %v7989_v25  ;;  %15230 = vst [vmem:[#allocation60_spill] sm:$0xff] %v7992_v61  ;;  %1015 = vrot.lane.b32.xlu0 %v7989_v25, %s7255_s29  ;;  %917 = vrot.lane.b32.xlu1 %v7992_v61, %s7254_s28  ;;  %v7998_v22 = vpop.trf.xlu0  ;;  %v8002_v60 = vld [vmem:[#allocation2 + $0x168] sm:$0xff] }
 0x10c   : > { %15231 = vst [vmem:[#allocation61_spill] sm:$0xff] %v7998_v22  ;;  %569 = vst.msk [vmem:[#allocation2 + $0x181] sm:$0xff] %vm482_vm0, %v7998_v22  ;;  %v749_v22 = vrot.slane %v8002_v60, 1 }
 0x10f   : > { %919 = vrot.lane.b32.xlu1 %v8005_v48, %s7254_s28  ;;  %v8011_v19 = vld [vmem:[#allocation2 + $0x170] sm:$0xff]  ;;  %v618_v35 = vld [vmem:[#allocation2 + $0x178] sm:$0x3]  ;;  %v8013_v25 = vpop.trf.xlu0 }
 0x110   : > { %15233 = vst [vmem:[#allocation63_spill] sm:$0xff] %v8013_v25  ;;  %v14983_v61 = vrot.slane %v8011_v19, 2  ;;  %v833_v18 = vrot.slane %v618_v35, 2  ;;  %v750_v30 = vrot.slane %v8011_v19, 1  ;;  %570 = vst.msk [vmem:[#allocation2 + $0x189] sm:$0xff] %vm482_vm0, %v8013_v25  ;;  %v752_v51 = vrot.slane %v618_v35, 1 }
 0x111   : > { %v758_v35 = vrot.slane %v7476_v7, 2  ;;  %v760_v7 = vrot.slane %v7493_v14, 2 }
 0x112   : > { %v8023_v40 = vsel %vm754_vm4, %v14983_v61, %v833_v18  ;;  %v8026_v50 = vsel %vm673_vm2, %v749_v22, %v750_v30  ;;  %v8037_v29 = vsel %vm673_vm2, %v750_v30, %v752_v51  ;;  %v757_v18 = vsel %vm754_vm4, %v755_v38, %v756_v20 }
 0x113   : > { %15234 = vst [vmem:[#allocation64_spill] sm:$0xff] %v8023_v40  ;;  %1019 = vrot.lane.b32.xlu0 %v8023_v40, %s7255_s29  ;;  %921 = vrot.lane.b32.xlu1 %v8026_v50, %s7254_s28  ;;  %v759_v2 = vsel %vm754_vm4, %v756_v20, %v758_v35  ;;  %v761_v30 = vrot.slane %v7497_v16, 2  ;;  %v766_v35 = vrot.slane %v7524_v26, 2  ;;  %v768_v61 = vrot.slane %v7526_v27, 2 }
 0x114   : > { %v770_v27 = vrot.slane %v7542_v33, 2 }
 0x115   : > { %v8034_v25 = vpop.permute.xlu1 %865  ;;  %v8061_v51 = vsel %vm754_vm4, %v760_v7, %v761_v30 }
 0x116   : > { %15235 = vst [vmem:[#allocation65_spill] sm:$0xff] %v8034_v25 }
 0x117   : > { %1055 = vrot.lane.b32.xlu0 %v7497_v16, %s7256_s30  ;;  %923 = vrot.lane.b32.xlu1 %v8037_v29, %s7254_s28 }
 0x119   : > { %v8045_v22 = vpop.permute.xlu1 %867 }
 0x11a   : > { %15236 = vst [vmem:[#allocation66_spill] sm:$0xff] %v8045_v22 }
 0x11b   : > { %1059 = vrot.lane.b32.xlu0 %v7524_v26, %s7256_s30  ;;  %957 = vrot.lane.b32.xlu1 %v757_v18, %s7255_s29  ;;  %v763_v18 = vrot.slane %v7499_v17, 2  ;;  %v765_v17 = vrot.slane %v7515_v23, 2 }
 0x11d   : > { %v8051_v3 = vpop.permute.xlu1 %869  ;;  %v8071_v20 = vsel %vm754_vm4, %v761_v30, %v763_v18  ;;  %v8082_v7 = vsel %vm754_vm4, %v765_v17, %v766_v35  ;;  %v8092_v30 = vsel %vm754_vm4, %v766_v35, %v768_v61  ;;  %v771_v18 = vrot.slane %v7551_v36, 2 }
 0x11e   : > { %15237 = vst [vmem:[#allocation67_spill] sm:$0xff] %v8051_v3 }
 0x11f   : > { %1063 = vrot.lane.b32.xlu0 %v7551_v36, %s7256_s30  ;;  %959 = vrot.lane.b32.xlu1 %v759_v2, %s7255_s29 }
 0x121   : > { %v8058_v38 = vpop.permute.xlu1 %871 }
 0x122   : > { %15238 = vst [vmem:[#allocation68_spill] sm:$0xff] %v8058_v38 }
 0x123   : > { %1067 = vrot.lane.b32.xlu0 %v7578_v46, %s7256_s30  ;;  %961 = vrot.lane.b32.xlu1 %v8061_v51, %s7255_s29 }
 0x125   : > { %v8068_v16 = vpop.permute.xlu1 %873 }
 0x126   : > { %15239 = vst [vmem:[#allocation69_spill] sm:$0xff] %v8068_v16  ;;  %v776_v16 = vrot.slane %v7578_v46, 2 }
 0x127   : > { %1071 = vrot.lane.b32.xlu0 %v7605_v56, %s7256_s30  ;;  %963 = vrot.lane.b32.xlu1 %v8071_v20, %s7255_s29 }
 0x129   : > { %v8079_v2 = vpop.permute.xlu1 %875 }
 0x12a   : > { %15240 = vst [vmem:[#allocation70_spill] sm:$0xff] %v8079_v2  ;;  %v8103_v2 = vsel %vm754_vm4, %v770_v27, %v771_v18 }
 0x12b   : > { %1075 = vrot.lane.b32.xlu0 %v7632_v5, %s7256_s30  ;;  %965 = vrot.lane.b32.xlu1 %v8082_v7, %s7255_s29 }
 0x12d   : > { %v8089_v26 = vpop.permute.xlu1 %877 }
 0x12e   : > { %15241 = vst [vmem:[#allocation71_spill] sm:$0xff] %v8089_v26  ;;  %v773_v26 = vrot.slane %v7553_v37, 2  ;;  %v775_v37 = vrot.slane %v7569_v43, 2 }
 0x12f   : > { %1079 = vrot.lane.b32.xlu0 %v7659_v31, %s7256_s30  ;;  %967 = vrot.lane.b32.xlu1 %v8092_v30, %s7255_s29 }
 0x130   : > { %v8113_v35 = vsel %vm754_vm4, %v771_v18, %v773_v26 }
 0x131   : > { %v8100_v17 = vpop.permute.xlu1 %879 }
 0x132   : > { %15242 = vst [vmem:[#allocation72_spill] sm:$0xff] %v8100_v17  ;;  %v8124_v17 = vsel %vm754_vm4, %v775_v37, %v776_v16  ;;  %v780_v37 = vrot.slane %v7596_v53, 2 }
 0x133   : > { %1083 = vrot.lane.b32.xlu0 %v7758_v8, %s7256_s30  ;;  %969 = vrot.lane.b32.xlu1 %v8103_v2, %s7255_s29 }
 0x135   : > { %v8110_v61 = vpop.permute.xlu1 %881 }
 0x136   : > { %15243 = vst [vmem:[#allocation73_spill] sm:$0xff] %v8110_v61  ;;  %v778_v61 = vrot.slane %v7580_v47, 2 }
 0x137   : > { %1087 = vrot.lane.b32.xlu0 %v7793_v4, %s7256_s30  ;;  %971 = vrot.lane.b32.xlu1 %v8113_v35, %s7255_s29 }
 0x138   : > { %v8134_v18 = vsel %vm754_vm4, %v776_v16, %v778_v61  ;;  %v785_v16 = vrot.slane %v7623_v63, 2 }
 0x139   : > { %v8121_v27 = vpop.permute.xlu1 %883 }
 0x13a   : > { %15244 = vst [vmem:[#allocation74_spill] sm:$0xff] %v8121_v27  ;;  %v15247_v27 = vrot.slane %v7605_v56, 2 }
 0x13b   : > { %1091 = vrot.lane.b32.xlu0 %v7834_v62, %s7256_s30  ;;  %973 = vrot.lane.b32.xlu1 %v8124_v17, %s7255_s29 }
 0x13c   : > { %v8146_v38 = vsel %vm754_vm4, %v780_v37, %v15247_v27  ;;  %v790_v27 = vrot.slane %v7650_v21, 2  ;;  %v15251_v37 = vrot.slane %v7659_v31, 2 }
 0x13d   : > { %v8131_v26 = vpop.permute.xlu1 %885 }
 0x13e   : > { %15245 = vst [vmem:[#allocation75_spill] sm:$0xff] %v8131_v26  ;;  %v15249_v26 = vrot.slane %v7632_v5, 2 }
 0x13f   : > { %1095 = vrot.lane.b32.xlu0 %v7874_v0, %s7256_s30  ;;  %975 = vrot.lane.b32.xlu1 %v8134_v18, %s7255_s29 }
 0x140   : > { %v8158_v3 = vsel %vm754_vm4, %v785_v16, %v15249_v26  ;;  %v795_v26 = vrot.slane %v7749_v58, 2 }
 0x141   : > { %v8141_v47 = vpop.permute.xlu1 %887  ;;  %15250 = vst [vmem:[#allocation78_spill] sm:$0xff] %v8158_v3 }
 0x142   : > { %15246 = vst [vmem:[#allocation76_spill] sm:$0xff] %v8141_v47  ;;  %v8168_v47 = vsel %vm754_vm4, %v790_v27, %v15251_v37  ;;  %v800_v27 = vrot.slane %v7782_v39, 2  ;;  %v8189_v37 = vld [vmem:[#allocation2 + $0x188] sm:$0xff] }
 0x143   : > { %1099 = vrot.lane.b32.xlu0 %v7913_v13, %s7256_s30  ;;  %977 = vrot.lane.b32.xlu1 %v8146_v38, %s7255_s29  ;;  %15252 = vst [vmem:[#allocation79_spill] sm:$0xff] %v8168_v47 }
 0x145   : > { %v8153_v61 = vpop.permute.xlu1 %889 }
 0x146   : > { %15248 = vst [vmem:[#allocation77_spill] sm:$0xff] %v8153_v61  ;;  %v15255_v61 = vrot.slane %v7758_v8, 2 }
 0x147   : > { %1103 = vrot.lane.b32.xlu0 %v7945_v32, %s7256_s30  ;;  %981 = vrot.lane.b32.xlu1 %v8158_v3, %s7255_s29 }
 0x148   : > { %v8182_v25 = vsel %vm754_vm4, %v795_v26, %v15255_v61  ;;  %v805_v61 = vrot.slane %v7818_v6, 2 }
 0x149   : > { %v8170_v22 = vpop.permute.xlu1 %891  ;;  %15256 = vst [vmem:[#allocation82_spill] sm:$0xff] %v8182_v25 }
 0x14a   : > { %15253 = vst [vmem:[#allocation80_spill] sm:$0xff] %v8170_v22 }
 0x14b   : > { %1107 = vrot.lane.b32.xlu0 %v7977_v11, %s7256_s30  ;;  %985 = vrot.lane.b32.xlu1 %v8168_v47, %s7255_s29 }
 0x14d   : > { %v8177_v16 = vpop.permute.xlu0 %895  ;;  %v8191_v22 = vpop.permute.xlu1 %893 }
 0x14e   : > { %15254 = vst [vmem:[#allocation81_spill] sm:$0xff] %v8177_v16  ;;  %15257 = vst [vmem:[#allocation83_spill] sm:$0xff] %v8191_v22  ;;  %v15259_v16 = vrot.slane %v7793_v4, 2  ;;  %v15263_v22 = vrot.slane %v7834_v62, 2 }
 0x14f   : > { %1111 = vrot.lane.b32.xlu0 %v8011_v19, %s7256_s30  ;;  %989 = vrot.lane.b32.xlu1 %v8182_v25, %s7255_s29 }
 0x150   : > { %v8198_v3 = vsel %vm754_vm4, %v800_v27, %v15259_v16  ;;  %v810_v16 = vrot.slane %v7858_v52, 2 }
 0x151   : > { %v8193_v47 = vpop.permute.xlu0 %979  ;;  %15260 = vst [vmem:[#allocation85_spill] sm:$0xff] %v8198_v3 }
 0x152   : > { %15258 = vst [vmem:[#allocation84_spill] sm:$0xff] %v8193_v47  ;;  %v8212_v47 = vsel %vm754_vm4, %v805_v61, %v15263_v22  ;;  %v815_v22 = vrot.slane %v7897_v45, 2  ;;  %v15268_v61 = vrot.slane %v7913_v13, 2 }
 0x153   : > { %993 = vrot.lane.b32.xlu1 %v8198_v3, %s7255_s29  ;;  %1115 = vrot.lane.b32.xlu0 %v8189_v37, %s7256_s30 }
 0x155   : > { %v8205_v26 = vpop.permute.xlu1 %897  ;;  %v8207_v25 = vpop.permute.xlu0 %983 }
 0x156   : > { %15261 = vst [vmem:[#allocation86_spill] sm:$0xff] %v8205_v26  ;;  %15262 = vst [vmem:[#allocation87_spill] sm:$0xff] %v8207_v25  ;;  %v15265_v26 = vrot.slane %v7874_v0, 2 }
 0x157   : > { %997 = vrot.lane.b32.xlu1 %v8212_v47, %s7255_s29  ;;  %1151 = vrot.lane.b32.xlu0 %v7518_v24, %s7257_s13 }
 0x158   : > { %v8224_v25 = vsel %vm754_vm4, %v810_v16, %v15265_v26  ;;  %v820_v26 = vrot.slane %v7936_v10, 2 }
 0x159   : > { %v8219_v27 = vpop.permute.xlu1 %899  ;;  %v8226_v3 = vpop.permute.xlu0 %987 }
 0x15a   : > { %15264 = vst [vmem:[#allocation88_spill] sm:$0xff] %v8219_v27  ;;  %15266 = vst [vmem:[#allocation89_spill] sm:$0xff] %v8226_v3  ;;  %v8238_v27 = vsel %vm754_vm4, %v815_v22, %v15268_v61  ;;  %v825_v22 = vrot.slane %v7968_v55, 2 }
 0x15b   : > { %1001 = vrot.lane.b32.xlu1 %v8224_v25, %s7255_s29  ;;  %1155 = vrot.lane.b32.xlu0 %v7545_v34, %s7257_s13  ;;  %v15271_v34 = vrot.slane %v7945_v32, 2 }
 0x15d   : > { %v8233_v24 = vpop.permute.xlu1 %901  ;;  %v8245_v16 = vpop.permute.xlu0 %991 }
 0x15e   : > { %15267 = vst [vmem:[#allocation90_spill] sm:$0xff] %v8233_v24  ;;  %15269 = vst [vmem:[#allocation91_spill] sm:$0xff] %v8245_v16  ;;  %v8252_v24 = vsel %vm754_vm4, %v820_v26, %v15271_v34  ;;  %v830_v34 = vrot.slane %v8002_v60, 2 }
 0x15f   : > { %1005 = vrot.lane.b32.xlu1 %v8238_v27, %s7255_s29  ;;  %1159 = vrot.lane.b32.xlu0 %v7572_v44, %s7257_s13  ;;  %v15273_v44 = vrot.slane %v7977_v11, 2 }
 0x161   : > { %v8247_v3 = vpop.permute.xlu1 %903  ;;  %v8264_v16 = vsel %vm754_vm4, %v825_v22, %v15273_v44 }
 0x162   : > { %15270 = vst [vmem:[#allocation92_spill] sm:$0xff] %v8247_v3  ;;  %v8266_v3 = vpop.permute.xlu0 %995 }
 0x163   : > { %1009 = vrot.lane.b32.xlu1 %v8252_v24, %s7255_s29  ;;  %1163 = vrot.lane.b32.xlu0 %v7599_v54, %s7257_s13  ;;  %15274 = vst [vmem:[#allocation94_spill] sm:$0xff] %v8266_v3  ;;  %v15276_v54 = vrot.slane %v8011_v19, 2 }
 0x165   : > { %v8259_v61 = vpop.permute.xlu1 %905 }
 0x166   : > { %15272 = vst [vmem:[#allocation93_spill] sm:$0xff] %v8259_v61  ;;  %v8278_v61 = vsel %vm754_vm4, %v830_v34, %v15276_v54  ;;  %v8284_v44 = vpop.permute.xlu0 %999 }
 0x167   : > { %1013 = vrot.lane.b32.xlu1 %v8264_v16, %s7255_s29  ;;  %1167 = vrot.lane.b32.xlu0 %v7626_v1, %s7257_s13  ;;  %15277 = vst [vmem:[#allocation96_spill] sm:$0xff] %v8284_v44 }
 0x169   : > { %v8273_v26 = vpop.permute.xlu1 %907 }
 0x16a   : > { %15275 = vst [vmem:[#allocation95_spill] sm:$0xff] %v8273_v26  ;;  %v8294_v54 = vpop.permute.xlu0 %1003  ;;  %v15324_v26 = vld [vmem:[#allocation45_spill] sm:$0xff] }
 0x16b   : > { %1017 = vrot.lane.b32.xlu1 %v8278_v61, %s7255_s29  ;;  %1171 = vrot.lane.b32.xlu0 %v7653_v28, %s7257_s13  ;;  %15280 = vst [vmem:[#allocation99_spill] sm:$0xff] %v8294_v54 }
 0x16d   : > { %v8286_v22 = vpop.permute.xlu1 %909 }
 0x16e   : > { %15278 = vst [vmem:[#allocation97_spill] sm:$0xff] %v8286_v22 }
 0x16f   : > { %1053 = vrot.lane.b32.xlu1 %v7493_v14, %s7256_s30  ;;  %1175 = vrot.lane.b32.xlu0 %v7752_v59, %s7257_s13  ;;  %v8306_v14 = vpop.permute.xlu0 %1007 }
 0x170   : > { %15282 = vst [vmem:[#allocation101_spill] sm:$0xff] %v8306_v14  ;;  %v15312_v14 = vld [vmem:[#allocation38_spill] sm:$0xff] }
 0x171   : > { %v8292_v3 = vpop.permute.xlu1 %911 }
 0x172   : > { %15279 = vst [vmem:[#allocation98_spill] sm:$0xff] %v8292_v3 }
 0x173   : > { %1057 = vrot.lane.b32.xlu1 %v7515_v23, %s7256_s30  ;;  %1179 = vrot.lane.b32.xlu0 %v7768_v41, %s7257_s13 }
 0x175   : > { %v8300_v34 = vpop.permute.xlu1 %913  ;;  %v8314_v23 = vpop.permute.xlu0 %1011 }
 0x176   : > { %15281 = vst [vmem:[#allocation100_spill] sm:$0xff] %v8300_v34  ;;  %15284 = vst [vmem:[#allocation103_spill] sm:$0xff] %v8314_v23 }
 0x177   : > { %1061 = vrot.lane.b32.xlu1 %v7542_v33, %s7256_s30  ;;  %1183 = vrot.lane.b32.xlu0 %v7826_v42, %s7257_s13 }
 0x179   : > { %v8308_v22 = vpop.permute.xlu1 %915 }
 0x17a   : > { %15283 = vst [vmem:[#allocation102_spill] sm:$0xff] %v8308_v22  ;;  %v15311_v22 = vld [vmem:[#allocation8_spill] sm:$0xff] }
 0x17b   : > { %1065 = vrot.lane.b32.xlu1 %v7569_v43, %s7256_s30  ;;  %1187 = vrot.lane.b32.xlu0 %v7866_v15, %s7257_s13 }
 0x17d   : > { %v8316_v54 = vpop.permute.xlu1 %917  ;;  %v8322_v33 = vpop.permute.xlu0 %1015 }
 0x17e   : > { %15285 = vst [vmem:[#allocation104_spill] sm:$0xff] %v8316_v54  ;;  %15286 = vst [vmem:[#allocation105_spill] sm:$0xff] %v8322_v33 }
 0x17f   : > { %1069 = vrot.lane.b32.xlu1 %v7596_v53, %s7256_s30  ;;  %1191 = vrot.lane.b32.xlu0 %v7905_v9, %s7257_s13 }
 0x181   : > { %v8324_v34 = vpop.permute.xlu1 %919 }
 0x182   : > { %15287 = vst [vmem:[#allocation106_spill] sm:$0xff] %v8324_v34  ;;  %v8342_v34 = vld [vmem:[#allocation2 + $0x190] sm:$0x3] }
 0x183   : > { %1073 = vrot.lane.b32.xlu1 %v7623_v63, %s7256_s30  ;;  %1195 = vrot.lane.b32.xlu0 %v7939_v12, %s7257_s13  ;;  %v14995_v63 = vrot.slane %v8189_v37, 1 }
 0x185   : > { %v8330_v43 = vpop.permute.xlu1 %921  ;;  %v8332_v23 = vpop.permute.xlu0 %1019 }
 0x186   : > { %15288 = vst [vmem:[#allocation107_spill] sm:$0xff] %v8330_v43  ;;  %15289 = vst [vmem:[#allocation108_spill] sm:$0xff] %v8332_v23  ;;  %v841_v23 = vrot.slane %v8342_v34, 1 }
 0x187   : > { %1077 = vrot.lane.b32.xlu1 %v7650_v21, %s7256_s30  ;;  %1199 = vrot.lane.b32.xlu0 %v7971_v49, %s7257_s13 }
 0x189   : > { %v8338_v53 = vpop.permute.xlu1 %923  ;;  %v8340_v33 = vpop.permute.xlu0 %1055 }
 0x18a   : > { %15290 = vst [vmem:[#allocation109_spill] sm:$0xff] %v8338_v53  ;;  %15291 = vst [vmem:[#allocation110_spill] sm:$0xff] %v8340_v33 }
 0x18b   : > { %1081 = vrot.lane.b32.xlu1 %v7749_v58, %s7256_s30  ;;  %1203 = vrot.lane.b32.xlu0 %v8005_v48, %s7257_s13  ;;  %v8361_v58 = vsel %vm673_vm2, %v14995_v63, %v841_v23 }
 0x18d   : > { %v8350_v21 = vpop.permute.xlu1 %957  ;;  %v8352_v43 = vpop.permute.xlu0 %1059 }
 0x18e   : > { %15292 = vst [vmem:[#allocation111_spill] sm:$0xff] %v8350_v21  ;;  %15293 = vst [vmem:[#allocation112_spill] sm:$0xff] %v8352_v43  ;;  %v15315_v21 = vld [vmem:[#allocation11_spill] sm:$0xff] }
 0x18f   : > { %1085 = vrot.lane.b32.xlu1 %v7782_v39, %s7256_s30  ;;  %1207 = vrot.lane.b32.xlu0 %v8037_v29, %s7257_s13 }
 0x191   : > { %v8363_v53 = vpop.permute.xlu1 %959  ;;  %v8365_v54 = vpop.permute.xlu0 %1063 }
 0x192   : > { %15294 = vst [vmem:[#allocation113_spill] sm:$0xff] %v8363_v53  ;;  %15295 = vst [vmem:[#allocation114_spill] sm:$0xff] %v8365_v54  ;;  %v15316_v53 = vld [vmem:[#allocation40_spill] sm:$0xff] }
 0x193   : > { %1089 = vrot.lane.b32.xlu1 %v7818_v6, %s7256_s30  ;;  %1211 = vrot.lane.b32.xlu0 %v8361_v58, %s7257_s13 }
 0x195   : > { %v8371_v43 = vpop.permute.xlu1 %961  ;;  %v8373_v33 = vpop.permute.xlu0 %1067 }
 0x196   : > { %15296 = vst [vmem:[#allocation115_spill] sm:$0xff] %v8371_v43  ;;  %15297 = vst [vmem:[#allocation116_spill] sm:$0xff] %v8373_v33 }
 0x197   : > { %1093 = vrot.lane.b32.xlu1 %v7858_v52, %s7256_s30  ;;  %1247 = vrot.lane.b32.xlu0 %v8071_v20, %s7258_s14 }
 0x199   : > { %v8379_v23 = vpop.permute.xlu1 %963  ;;  %v8381_v63 = vpop.permute.xlu0 %1071 }
 0x19a   : > { %15298 = vst [vmem:[#allocation117_spill] sm:$0xff] %v8379_v23  ;;  %15299 = vst [vmem:[#allocation118_spill] sm:$0xff] %v8381_v63  ;;  %v15308_v23 = vld [vmem:[#allocation35_spill] sm:$0xff] }
 0x19b   : > { %1097 = vrot.lane.b32.xlu1 %v7897_v45, %s7256_s30  ;;  %1251 = vrot.lane.b32.xlu0 %v8092_v30, %s7258_s14 }
 0x19d   : > { %v8387_v54 = vpop.permute.xlu1 %965  ;;  %v8389_v33 = vpop.permute.xlu0 %1075 }
 0x19e   : > { %15300 = vst [vmem:[#allocation119_spill] sm:$0xff] %v8387_v54  ;;  %15301 = vst [vmem:[#allocation120_spill] sm:$0xff] %v8389_v33 }
 0x19f   : > { %1101 = vrot.lane.b32.xlu1 %v7936_v10, %s7256_s30  ;;  %1255 = vrot.lane.b32.xlu0 %v8113_v35, %s7258_s14 }
 0x1a1   : > { %v8395_v20 = vpop.permute.xlu1 %967  ;;  %v8397_v43 = vpop.permute.xlu0 %1079 }
 0x1a2   : > { %15302 = vst [vmem:[#allocation121_spill] sm:$0xff] %v8395_v20  ;;  %15303 = vst [vmem:[#allocation122_spill] sm:$0xff] %v8397_v43  ;;  %v8415_v43 = vld [vmem:[#allocation2 + $0x180] sm:$0xff] }
 0x1a3   : > { %1105 = vrot.lane.b32.xlu1 %v7968_v55, %s7256_s30  ;;  %1259 = vrot.lane.b32.xlu0 %v8134_v18, %s7258_s14 }
 0x1a5   : > { %v8403_v63 = vpop.permute.xlu1 %969  ;;  %v8405_v54 = vpop.permute.xlu0 %1083 }
 0x1a6   : > { %15304 = vst [vmem:[#allocation123_spill] sm:$0xff] %v8403_v63  ;;  %15305 = vst [vmem:[#allocation124_spill] sm:$0xff] %v8405_v54 }
 0x1a7   : > { %1109 = vrot.lane.b32.xlu1 %v8002_v60, %s7256_s30  ;;  %1263 = vrot.lane.b32.xlu0 %v7787_v57, %s7258_s14 }
 0x1a9   : > { %v8411_v33 = vpop.permute.xlu1 %971  ;;  %v8413_v20 = vpop.permute.xlu0 %1087 }
 0x1aa   : > { %15306 = vst [vmem:[#allocation125_spill] sm:$0xff] %v8411_v33  ;;  %15307 = vst [vmem:[#allocation126_spill] sm:$0xff] %v8413_v20 }
 0x1ab   : > { %1113 = vrot.lane.b32.xlu1 %v8415_v43, %s7256_s30  ;;  %1267 = vrot.lane.b32.xlu0 %v15308_v23, %s7258_s14 }
 0x1ad   : > { %v8421_v63 = vpop.permute.xlu1 %973  ;;  %v8423_v54 = vpop.permute.xlu0 %1091 }
 0x1ae   : > { %15309 = vst [vmem:[#allocation35_spill] sm:$0xff] %v8421_v63  ;;  %15310 = vst [vmem:[#allocation127_spill] sm:$0xff] %v8423_v54  ;;  %v15319_v54 = vld [vmem:[#allocation15_spill] sm:$0xff] }
 0x1af   : > { %1149 = vrot.lane.b32.xlu1 %v15311_v22, %s7257_s13  ;;  %1271 = vrot.lane.b32.xlu0 %v15312_v14, %s7258_s14  ;;  %v15320_v22 = vld [vmem:[#allocation43_spill] sm:$0xff] }
 0x1b1   : > { %v8429_v33 = vpop.permute.xlu1 %975  ;;  %v8431_v20 = vpop.permute.xlu0 %1095 }
 0x1b2   : > { %15313 = vst [vmem:[#allocation8_spill] sm:$0xff] %v8429_v33  ;;  %15314 = vst [vmem:[#allocation38_spill] sm:$0xff] %v8431_v20  ;;  %v15323_v20 = vld [vmem:[#allocation19_spill] sm:$0xff] }
 0x1b3   : > { %1153 = vrot.lane.b32.xlu1 %v15315_v21, %s7257_s13  ;;  %1275 = vrot.lane.b32.xlu0 %v15316_v53, %s7258_s14 }
 0x1b5   : > { %v8437_v44 = vpop.permute.xlu1 %977  ;;  %v8439_v63 = vpop.permute.xlu0 %1099 }
 0x1b6   : > { %15317 = vst [vmem:[#allocation11_spill] sm:$0xff] %v8437_v44  ;;  %15318 = vst [vmem:[#allocation128_spill] sm:$0xff] %v8439_v63  ;;  %v15327_v63 = vld [vmem:[#allocation23_spill] sm:$0xff] }
 0x1b7   : > { %1157 = vrot.lane.b32.xlu1 %v15319_v54, %s7257_s13  ;;  %1279 = vrot.lane.b32.xlu0 %v15320_v22, %s7258_s14  ;;  %v15328_v54 = vld [vmem:[#allocation48_spill] sm:$0xff] }
 0x1b9   : > { %v8445_v3 = vpop.permute.xlu1 %981  ;;  %v8447_v33 = vpop.permute.xlu0 %1103 }
 0x1ba   : > { %15321 = vst [vmem:[#allocation129_spill] sm:$0xff] %v8445_v3  ;;  %15322 = vst [vmem:[#allocation130_spill] sm:$0xff] %v8447_v33  ;;  %v15331_v33 = vld [vmem:[#allocation26_spill] sm:$0xff] }
 0x1bb   : > { %1161 = vrot.lane.b32.xlu1 %v15323_v20, %s7257_s13  ;;  %1283 = vrot.lane.b32.xlu0 %v15324_v26, %s7258_s14  ;;  %v15332_v20 = vld [vmem:[#allocation50_spill] sm:$0xff] }
 0x1bd   : > { %v8453_v53 = vpop.permute.xlu1 %985  ;;  %v8455_v44 = vpop.permute.xlu0 %1107 }
 0x1be   : > { %15325 = vst [vmem:[#allocation131_spill] sm:$0xff] %v8453_v53  ;;  %15326 = vst [vmem:[#allocation132_spill] sm:$0xff] %v8455_v44  ;;  %v15335_v44 = vld [vmem:[#allocation29_spill] sm:$0xff] }
 0x1bf   : > { %1165 = vrot.lane.b32.xlu1 %v15327_v63, %s7257_s13  ;;  %1287 = vrot.lane.b32.xlu0 %v15328_v54, %s7258_s14  ;;  %v15336_v63 = vld [vmem:[#allocation54_spill] sm:$0xff] }
 0x1c1   : > { %v8461_v22 = vpop.permute.xlu1 %989  ;;  %v8463_v3 = vpop.permute.xlu0 %1111 }
 0x1c2   : > { %15329 = vst [vmem:[#allocation133_spill] sm:$0xff] %v8461_v22  ;;  %15330 = vst [vmem:[#allocation134_spill] sm:$0xff] %v8463_v3  ;;  %v15339_v3 = vld [vmem:[#allocation32_spill] sm:$0xff] }
 0x1c3   : > { %1169 = vrot.lane.b32.xlu1 %v15331_v33, %s7257_s13  ;;  %1291 = vrot.lane.b32.xlu0 %v15332_v20, %s7258_s14  ;;  %v15340_v33 = vld [vmem:[#allocation59_spill] sm:$0xff] }
 0x1c5   : > { %v8469_v26 = vpop.permute.xlu1 %993  ;;  %v8471_v53 = vpop.permute.xlu0 %1115 }
 0x1c6   : > { %15333 = vst [vmem:[#allocation135_spill] sm:$0xff] %v8469_v26  ;;  %15334 = vst [vmem:[#allocation136_spill] sm:$0xff] %v8471_v53  ;;  %v14997_v53 = vrot.slane %v8189_v37, 2 }
 0x1c7   : > { %1173 = vrot.lane.b32.xlu1 %v15335_v44, %s7257_s13  ;;  %1295 = vrot.lane.b32.xlu0 %v15336_v63, %s7258_s14  ;;  %v846_v44 = vrot.slane %v8342_v34, 2  ;;  %v15343_v63 = vld [vmem:[#allocation36_spill] sm:$0xff] }
 0x1c9   : > { %v8477_v54 = vpop.permute.xlu1 %997  ;;  %v8479_v22 = vpop.permute.xlu0 %1151 }
 0x1ca   : > { %15337 = vst [vmem:[#allocation137_spill] sm:$0xff] %v8477_v54  ;;  %15338 = vst [vmem:[#allocation138_spill] sm:$0xff] %v8479_v22 }
 0x1cb   : > { %1177 = vrot.lane.b32.xlu1 %v15339_v3, %s7257_s13  ;;  %1299 = vrot.lane.b32.xlu0 %v15340_v33, %s7258_s14 }
 0x1cd   : > { %v8485_v20 = vpop.permute.xlu1 %1001  ;;  %v8487_v26 = vpop.permute.xlu0 %1155 }
 0x1ce   : > { %15341 = vst [vmem:[#allocation32_spill] sm:$0xff] %v8485_v20  ;;  %15342 = vst [vmem:[#allocation59_spill] sm:$0xff] %v8487_v26  ;;  %v8502_v20 = vsel %vm754_vm4, %v14997_v53, %v846_v44  ;;  %v15346_v26 = vld [vmem:[#allocation41_spill] sm:$0xff] }
 0x1cf   : > { %1181 = vrot.lane.b32.xlu1 %v15343_v63, %s7257_s13  ;;  %1303 = vrot.lane.b32.xlu0 %v8023_v40, %s7258_s14  ;;  %v15349_v40 = vld [vmem:[#allocation46_spill] sm:$0xff] }
 0x1d1   : > { %v8495_v54 = vpop.permute.xlu1 %1005  ;;  %v8497_v22 = vpop.permute.xlu0 %1159 }
 0x1d2   : > { %15344 = vst [vmem:[#allocation139_spill] sm:$0xff] %v8495_v54  ;;  %15345 = vst [vmem:[#allocation140_spill] sm:$0xff] %v8497_v22  ;;  %v8514_v54 = vld [vmem:[#allocation2 + $0x38] sm:$0xff] }
 0x1d3   : > { %1185 = vrot.lane.b32.xlu1 %v15346_v26, %s7257_s13  ;;  %1307 = vrot.lane.b32.xlu0 %v8502_v20, %s7258_s14  ;;  %15350 = vst [vmem:[#allocation142_spill] sm:$0xff] %v8514_v54  ;;  %v15353_v22 = vld [vmem:[#allocation51_spill] sm:$0xff] }
 0x1d5   : > { %v8508_v34 = vpop.permute.xlu1 %1009  ;;  %v8510_v63 = vpop.permute.xlu0 %1163 }
 0x1d6   : > { %15347 = vst [vmem:[#allocation41_spill] sm:$0xff] %v8508_v34  ;;  %15348 = vst [vmem:[#allocation141_spill] sm:$0xff] %v8510_v63 }
 0x1d7   : > { %1189 = vrot.lane.b32.xlu1 %v15349_v40, %s7257_s13  ;;  %1343 = vrot.lane.b32.xlu0 %v8514_v54, %s7259_s15  ;;  %v15356_v40 = vld [vmem:[#allocation55_spill] sm:$0xff] }
 0x1d9   : > { %v8518_v44 = vpop.permute.xlu1 %1013  ;;  %v8520_v53 = vpop.permute.xlu0 %1167 }
 0x1da   : > { %15351 = vst [vmem:[#allocation143_spill] sm:$0xff] %v8518_v44  ;;  %15352 = vst [vmem:[#allocation144_spill] sm:$0xff] %v8520_v53  ;;  %v15359_v53 = vld [vmem:[#allocation60_spill] sm:$0xff] }
 0x1db   : > { %1193 = vrot.lane.b32.xlu1 %v15353_v22, %s7257_s13  ;;  %1347 = vrot.lane.b32.xlu0 %v7551_v36, %s7259_s15 }
 0x1dd   : > { %v8526_v34 = vpop.permute.xlu1 %1017  ;;  %v8528_v63 = vpop.permute.xlu0 %1171 }
 0x1de   : > { %15354 = vst [vmem:[#allocation51_spill] sm:$0xff] %v8526_v34  ;;  %15355 = vst [vmem:[#allocation145_spill] sm:$0xff] %v8528_v63  ;;  %v838_v63 = vrot.slane %v8415_v43, 1 }
 0x1df   : > { %1197 = vrot.lane.b32.xlu1 %v15356_v40, %s7257_s13  ;;  %1351 = vrot.lane.b32.xlu0 %v7578_v46, %s7259_s15 }
 0x1e1   : > { %v8534_v54 = vpop.permute.xlu1 %1053  ;;  %v8536_v44 = vpop.permute.xlu0 %1175 }
 0x1e2   : > { %15357 = vst [vmem:[#allocation55_spill] sm:$0xff] %v8534_v54  ;;  %15358 = vst [vmem:[#allocation146_spill] sm:$0xff] %v8536_v44  ;;  %v15363_v54 = vrot.slane %v8189_v37, 1 }
 0x1e3   : > { %1201 = vrot.lane.b32.xlu1 %v15359_v53, %s7257_s13  ;;  %1355 = vrot.lane.b32.xlu0 %v7605_v56, %s7259_s15 }
 0x1e4   : > { %v8558_v56 = vsel %vm673_vm2, %v838_v63, %v15363_v54 }
 0x1e5   : > { %v8542_v36 = vpop.permute.xlu1 %1057  ;;  %v8544_v34 = vpop.permute.xlu0 %1179 }
 0x1e6   : > { %15360 = vst [vmem:[#allocation60_spill] sm:$0xff] %v8542_v36  ;;  %15361 = vst [vmem:[#allocation147_spill] sm:$0xff] %v8544_v34 }
 0x1e7   : > { %1205 = vrot.lane.b32.xlu1 %v8026_v50, %s7257_s13  ;;  %1359 = vrot.lane.b32.xlu0 %v7632_v5, %s7259_s15 }
 0x1e9   : > { %v8551_v46 = vpop.permute.xlu1 %1061  ;;  %v8553_v44 = vpop.permute.xlu0 %1183 }
 0x1ea   : > { %15362 = vst [vmem:[#allocation148_spill] sm:$0xff] %v8553_v44 }
 0x1eb   : > { %1209 = vrot.lane.b32.xlu1 %v8558_v56, %s7257_s13  ;;  %1363 = vrot.lane.b32.xlu0 %v7659_v31, %s7259_s15 }
 0x1ed   : > { %v8564_v34 = vpop.permute.xlu1 %1065  ;;  %v8566_v36 = vpop.permute.xlu0 %1187 }
 0x1ee   : > { %15364 = vst [vmem:[#allocation149_spill] sm:$0xff] %v8564_v34  ;;  %15365 = vst [vmem:[#allocation150_spill] sm:$0xff] %v8566_v36 }
 0x1ef   : > { %1245 = vrot.lane.b32.xlu1 %v8061_v51, %s7258_s14  ;;  %1367 = vrot.lane.b32.xlu0 %v7758_v8, %s7259_s15 }
 0x1f1   : > { %v8572_v5 = vpop.permute.xlu1 %1069  ;;  %v8574_v54 = vpop.permute.xlu0 %1191 }
 0x1f2   : > { %15366 = vst [vmem:[#allocation151_spill] sm:$0xff] %v8572_v5  ;;  %15367 = vst [vmem:[#allocation152_spill] sm:$0xff] %v8574_v54 }
 0x1f3   : > { %1249 = vrot.lane.b32.xlu1 %v8082_v7, %s7258_s14  ;;  %1371 = vrot.lane.b32.xlu0 %v7793_v4, %s7259_s15 }
 0x1f5   : > { %v8580_v31 = vpop.permute.xlu1 %1073  ;;  %v8582_v63 = vpop.permute.xlu0 %1195 }
 0x1f6   : > { %15368 = vst [vmem:[#allocation153_spill] sm:$0xff] %v8580_v31  ;;  %15369 = vst [vmem:[#allocation154_spill] sm:$0xff] %v8582_v63  ;;  %v15390_v31 = vld [vmem:[#allocation17_spill] sm:$0xff] }
 0x1f7   : > { %1253 = vrot.lane.b32.xlu1 %v8103_v2, %s7258_s14  ;;  %1375 = vrot.lane.b32.xlu0 %v7834_v62, %s7259_s15 }
 0x1f9   : > { %v8588_v8 = vpop.permute.xlu1 %1077  ;;  %v8590_v51 = vpop.permute.xlu0 %1199 }
 0x1fa   : > { %15370 = vst [vmem:[#allocation155_spill] sm:$0xff] %v8588_v8  ;;  %15371 = vst [vmem:[#allocation156_spill] sm:$0xff] %v8590_v51  ;;  %v15376_v51 = vld [vmem:[#allocation78_spill] sm:$0xff] }
 0x1fb   : > { %1257 = vrot.lane.b32.xlu1 %v8124_v17, %s7258_s14  ;;  %1379 = vrot.lane.b32.xlu0 %v7874_v0, %s7259_s15 }
 0x1fd   : > { %v8596_v4 = vpop.permute.xlu1 %1081  ;;  %v8598_v54 = vpop.permute.xlu0 %1203 }
 0x1fe   : > { %15372 = vst [vmem:[#allocation157_spill] sm:$0xff] %v8596_v4  ;;  %15373 = vst [vmem:[#allocation158_spill] sm:$0xff] %v8598_v54  ;;  %v15379_v54 = vld [vmem:[#allocation79_spill] sm:$0xff]  ;;  %v15387_v4 = vld [vmem:[#allocation13_spill] sm:$0xff] }
 0x1ff   : > { %1261 = vrot.lane.b32.xlu1 %v8146_v38, %s7258_s14  ;;  %1383 = vrot.lane.b32.xlu0 %v7913_v13, %s7259_s15 }
 0x201   : > { %v8604_v62 = vpop.permute.xlu1 %1085  ;;  %v8606_v63 = vpop.permute.xlu0 %1207 }
 0x202   : > { %15374 = vst [vmem:[#allocation159_spill] sm:$0xff] %v8604_v62  ;;  %15375 = vst [vmem:[#allocation160_spill] sm:$0xff] %v8606_v63  ;;  %v15381_v63 = vld [vmem:[#allocation82_spill] sm:$0xff] }
 0x203   : > { %1265 = vrot.lane.b32.xlu1 %v15376_v51, %s7258_s14  ;;  %1387 = vrot.lane.b32.xlu0 %v7945_v32, %s7259_s15 }
 0x205   : > { %v8612_v0 = vpop.permute.xlu1 %1089  ;;  %v8614_v36 = vpop.permute.xlu0 %1211 }
 0x206   : > { %15377 = vst [vmem:[#allocation78_spill] sm:$0xff] %v8612_v0  ;;  %15378 = vst [vmem:[#allocation161_spill] sm:$0xff] %v8614_v36  ;;  %v15383_v36 = vld [vmem:[#allocation85_spill] sm:$0xff] }
 0x207   : > { %1269 = vrot.lane.b32.xlu1 %v15379_v54, %s7258_s14  ;;  %1391 = vrot.lane.b32.xlu0 %v7977_v11, %s7259_s15  ;;  %v8636_v11 = vld [vmem:[#allocation2 + $0x1a0] sm:$0xff] }
 0x209   : > { %v8620_v13 = vpop.permute.xlu1 %1093  ;;  %v8622_v44 = vpop.permute.xlu0 %1247 }
 0x20a   : > { %15380 = vst [vmem:[#allocation79_spill] sm:$0xff] %v8620_v13 }
 0x20b   : > { %1273 = vrot.lane.b32.xlu1 %v15381_v63, %s7258_s14  ;;  %1395 = vrot.lane.b32.xlu0 %v8011_v19, %s7259_s15 }
 0x20d   : > { %v8628_v32 = vpop.permute.xlu1 %1097  ;;  %v8630_v0 = vpop.permute.xlu0 %1251 }
 0x20e   : > { %15382 = vst [vmem:[#allocation82_spill] sm:$0xff] %v8628_v32 }
 0x20f   : > { %1277 = vrot.lane.b32.xlu1 %v15383_v36, %s7258_s14  ;;  %1399 = vrot.lane.b32.xlu0 %v8189_v37, %s7259_s15 }
 0x211   : > { %v8638_v13 = vpop.permute.xlu1 %1101  ;;  %v8640_v62 = vpop.permute.xlu0 %1255 }
 0x212   : > { %15384 = vst [vmem:[#allocation85_spill] sm:$0xff] %v8638_v13 }
 0x213   : > { %1281 = vrot.lane.b32.xlu1 %v8212_v47, %s7258_s14  ;;  %1403 = vrot.lane.b32.xlu0 %v8636_v11, %s7259_s15 }
 0x215   : > { %v8646_v19 = vpop.permute.xlu1 %1105  ;;  %v8648_v32 = vpop.permute.xlu0 %1259 }
 0x216   : > { %15385 = vst [vmem:[#allocation162_spill] sm:$0xff] %v8646_v19  ;;  %15386 = vst [vmem:[#allocation163_spill] sm:$0xff] %v8648_v32  ;;  %v15393_v32 = vld [vmem:[#allocation21_spill] sm:$0xff] }
 0x217   : > { %1285 = vrot.lane.b32.xlu1 %v8224_v25, %s7258_s14  ;;  %1439 = vrot.lane.b32.xlu0 %v15387_v4, %s7260_s16 }
 0x219   : > { %v8654_v13 = vpop.permute.xlu1 %1109  ;;  %v8656_v8 = vpop.permute.xlu0 %1263 }
 0x21a   : > { %15388 = vst [vmem:[#allocation13_spill] sm:$0xff] %v8654_v13  ;;  %15389 = vst [vmem:[#allocation164_spill] sm:$0xff] %v8656_v8  ;;  %v15397_v8 = vrot.slane %v8189_v37, 2 }
 0x21b   : > { %1289 = vrot.lane.b32.xlu1 %v8238_v27, %s7258_s14  ;;  %1443 = vrot.lane.b32.xlu0 %v15390_v31, %s7260_s16 }
 0x21d   : > { %v8662_v19 = vpop.permute.xlu1 %1113  ;;  %v8664_v5 = vpop.permute.xlu0 %1267 }
 0x21e   : > { %15391 = vst [vmem:[#allocation17_spill] sm:$0xff] %v8662_v19  ;;  %15392 = vst [vmem:[#allocation165_spill] sm:$0xff] %v8664_v5  ;;  %v843_v5 = vrot.slane %v8415_v43, 2 }
 0x21f   : > { %1293 = vrot.lane.b32.xlu1 %v8252_v24, %s7258_s14  ;;  %1447 = vrot.lane.b32.xlu0 %v15393_v32, %s7260_s16 }
 0x221   : > { %v8670_v4 = vpop.permute.xlu1 %1149  ;;  %v8672_v13 = vpop.permute.xlu0 %1271 }
 0x222   : > { %15394 = vst [vmem:[#allocation21_spill] sm:$0xff] %v8672_v13 }
 0x223   : > { %1297 = vrot.lane.b32.xlu1 %v8264_v16, %s7258_s14  ;;  %1451 = vrot.lane.b32.xlu0 %v7626_v1, %s7260_s16  ;;  %v8694_v1 = vsel %vm754_vm4, %v843_v5, %v15397_v8  ;;  %v8714_v8 = vld [vmem:[#allocation2 + $0x48] sm:$0xff] }
 0x225   : > { %v8678_v31 = vpop.permute.xlu1 %1153  ;;  %v8680_v19 = vpop.permute.xlu0 %1275 }
 0x226   : > { %15395 = vst [vmem:[#allocation166_spill] sm:$0xff] %v8680_v19 }
 0x227   : > { %1301 = vrot.lane.b32.xlu1 %v8278_v61, %s7258_s14  ;;  %1455 = vrot.lane.b32.xlu0 %v7653_v28, %s7260_s16  ;;  %v8704_v28 = vld [vmem:[#allocation2 + $0x30] sm:$0xff] }
 0x229   : > { %v8687_v32 = vpop.permute.xlu1 %1157  ;;  %v8689_v13 = vpop.permute.xlu0 %1279 }
 0x22a   : > { %15396 = vst [vmem:[#allocation167_spill] sm:$0xff] %v8689_v13  ;;  %v8724_v13 = vld [vmem:[#allocation2 + $0x60] sm:$0xff] }
 0x22b   : > { %1305 = vrot.lane.b32.xlu1 %v8694_v1, %s7258_s14  ;;  %1459 = vrot.lane.b32.xlu0 %v7752_v59, %s7260_s16  ;;  %s7265_s14 = smov 2  }
 0x22d   : > { %v8700_v19 = vpop.permute.xlu1 %1161  ;;  %v8702_v34 = vpop.permute.xlu0 %1283 }
 0x22e   : > { %15398 = vst [vmem:[#allocation168_spill] sm:$0xff] %v8700_v19  ;;  %15399 = vst [vmem:[#allocation169_spill] sm:$0xff] %v8702_v34 }
 0x22f   : > { %1341 = vrot.lane.b32.xlu1 %v8704_v28, %s7259_s15  ;;  %1463 = vrot.lane.b32.xlu0 %v7768_v41, %s7260_s16 }
 0x231   : > { %v8710_v37 = vpop.permute.xlu1 %1165  ;;  %v8712_v5 = vpop.permute.xlu0 %1287 }
 0x232   : > { %15400 = vst [vmem:[#allocation170_spill] sm:$0xff] %v8710_v37  ;;  %15401 = vst [vmem:[#allocation171_spill] sm:$0xff] %v8712_v5  ;;  %v8734_v37 = vld [vmem:[#allocation2 + $0x78] sm:$0xff] }
 0x233   : > { %1345 = vrot.lane.b32.xlu1 %v8714_v8, %s7259_s15  ;;  %1467 = vrot.lane.b32.xlu0 %v7826_v42, %s7260_s16 }
 0x235   : > { %v8720_v59 = vpop.permute.xlu1 %1169  ;;  %v8722_v34 = vpop.permute.xlu0 %1291 }
 0x236   : > { %15402 = vst [vmem:[#allocation172_spill] sm:$0xff] %v8720_v59  ;;  %15403 = vst [vmem:[#allocation173_spill] sm:$0xff] %v8722_v34  ;;  %v8744_v59 = vld [vmem:[#allocation2 + $0x90] sm:$0xff] }
 0x237   : > { %1349 = vrot.lane.b32.xlu1 %v8724_v13, %s7259_s15  ;;  %1471 = vrot.lane.b32.xlu0 %v7866_v15, %s7260_s16 }
 0x239   : > { %v8730_v41 = vpop.permute.xlu1 %1173  ;;  %v8732_v5 = vpop.permute.xlu0 %1295 }
 0x23a   : > { %15404 = vst [vmem:[#allocation174_spill] sm:$0xff] %v8730_v41  ;;  %15405 = vst [vmem:[#allocation175_spill] sm:$0xff] %v8732_v5  ;;  %v8754_v41 = vld [vmem:[#allocation2 + $0xa8] sm:$0xff] }
 0x23b   : > { %1353 = vrot.lane.b32.xlu1 %v8734_v37, %s7259_s15  ;;  %1475 = vrot.lane.b32.xlu0 %v7905_v9, %s7260_s16 }
 0x23d   : > { %v8740_v42 = vpop.permute.xlu1 %1177  ;;  %v8742_v34 = vpop.permute.xlu0 %1299 }
 0x23e   : > { %15406 = vst [vmem:[#allocation176_spill] sm:$0xff] %v8740_v42  ;;  %15407 = vst [vmem:[#allocation177_spill] sm:$0xff] %v8742_v34  ;;  %v8764_v42 = vld [vmem:[#allocation2 + $0xc0] sm:$0xff] }
 0x23f   : > { %1357 = vrot.lane.b32.xlu1 %v8744_v59, %s7259_s15  ;;  %1479 = vrot.lane.b32.xlu0 %v7939_v12, %s7260_s16 }
 0x241   : > { %v8750_v15 = vpop.permute.xlu1 %1181  ;;  %v8752_v5 = vpop.permute.xlu0 %1303 }
 0x242   : > { %15408 = vst [vmem:[#allocation178_spill] sm:$0xff] %v8750_v15  ;;  %15409 = vst [vmem:[#allocation179_spill] sm:$0xff] %v8752_v5  ;;  %v8774_v15 = vld [vmem:[#allocation2 + $0x1a8] sm:$0x3] }
 0x243   : > { %1361 = vrot.lane.b32.xlu1 %v8754_v41, %s7259_s15  ;;  %1483 = vrot.lane.b32.xlu0 %v7971_v49, %s7260_s16  ;;  %v14999_v49 = vrot.slane %v8636_v11, 1 }
 0x245   : > { %v8760_v9 = vpop.permute.xlu1 %1185  ;;  %v8762_v34 = vpop.permute.xlu0 %1307 }
 0x246   : > { %15410 = vst [vmem:[#allocation180_spill] sm:$0xff] %v8760_v9  ;;  %15411 = vst [vmem:[#allocation181_spill] sm:$0xff] %v8762_v34  ;;  %v854_v34 = vrot.slane %v8774_v15, 1 }
 0x247   : > { %1365 = vrot.lane.b32.xlu1 %v8764_v42, %s7259_s15  ;;  %1487 = vrot.lane.b32.xlu0 %v8005_v48, %s7260_s16 }
 0x249   : > { %v8770_v12 = vpop.permute.xlu1 %1189  ;;  %v8772_v5 = vpop.permute.xlu0 %1343 }
 0x24a   : > { %15412 = vst [vmem:[#allocation182_spill] sm:$0xff] %v8770_v12 }
 0x24b   : > { %1369 = vrot.lane.b32.xlu1 %v7782_v39, %s7259_s15  ;;  %1491 = vrot.lane.b32.xlu0 %v8037_v29, %s7260_s16  ;;  %v855_v39 = vsel %vm673_vm2, %v14999_v49, %v854_v34 }
 0x24d   : > { %v8782_v9 = vpop.permute.xlu1 %1193  ;;  %v8784_v19 = vpop.permute.xlu0 %1347 }
 0x24e   : > { %15413 = vst [vmem:[#allocation183_spill] sm:$0xff] %v8782_v9 }
 0x24f   : > { %1373 = vrot.lane.b32.xlu1 %v7818_v6, %s7259_s15  ;;  %1495 = vrot.lane.b32.xlu0 %v8361_v58, %s7260_s16 }
 0x251   : > { %v8793_v48 = vpop.permute.xlu1 %1197  ;;  %v8795_v29 = vpop.permute.xlu0 %1351 }
 0x252   : > { %15414 = vst [vmem:[#allocation184_spill] sm:$0xff] %v8793_v48  ;;  %v15431_v48 = vld [vmem:[#allocation19_spill] sm:$0xff] }
 0x253   : > { %1377 = vrot.lane.b32.xlu1 %v7858_v52, %s7259_s15  ;;  %1499 = vrot.lane.b32.xlu0 %v855_v39, %s7260_s16 }
 0x255   : > { %v8800_v9 = vpop.permute.xlu1 %1201  ;;  %v8802_v12 = vpop.permute.xlu0 %1355 }
 0x256   : > { %15415 = vst [vmem:[#allocation185_spill] sm:$0xff] %v8800_v9 }
 0x257   : > { %1381 = vrot.lane.b32.xlu1 %v7897_v45, %s7259_s15  ;;  %1535 = vrot.lane.b32.xlu0 %v8092_v30, %s7261_s17 }
 0x259   : > { %v8808_v6 = vpop.permute.xlu1 %1205  ;;  %v8810_v58 = vpop.permute.xlu0 %1359 }
 0x25a   : > { %15416 = vst [vmem:[#allocation186_spill] sm:$0xff] %v8808_v6  ;;  %15417 = vst [vmem:[#allocation187_spill] sm:$0xff] %v8810_v58  ;;  %v15428_v6 = vld [vmem:[#allocation43_spill] sm:$0xff]  ;;  %v15527_v58 = vld [vmem:[#allocation72_spill] sm:$0xff] }
 0x25b   : > { %1385 = vrot.lane.b32.xlu1 %v7936_v10, %s7259_s15  ;;  %1539 = vrot.lane.b32.xlu0 %v8113_v35, %s7261_s17 }
 0x25d   : > { %v8816_v52 = vpop.permute.xlu1 %1209  ;;  %v8818_v34 = vpop.permute.xlu0 %1363 }
 0x25e   : > { %15418 = vst [vmem:[#allocation188_spill] sm:$0xff] %v8816_v52  ;;  %15419 = vst [vmem:[#allocation189_spill] sm:$0xff] %v8818_v34  ;;  %v15427_v52 = vld [vmem:[#allocation15_spill] sm:$0xff] }
 0x25f   : > { %1389 = vrot.lane.b32.xlu1 %v7968_v55, %s7259_s15  ;;  %1543 = vrot.lane.b32.xlu0 %v8134_v18, %s7261_s17  ;;  %v8840_v55 = vld [vmem:[#allocation2 + $0x198] sm:$0xff] }
 0x261   : > { %v8824_v45 = vpop.permute.xlu1 %1245  ;;  %v8826_v30 = vpop.permute.xlu0 %1367 }
 0x262   : > { %15420 = vst [vmem:[#allocation190_spill] sm:$0xff] %v8826_v30 }
 0x263   : > { %1393 = vrot.lane.b32.xlu1 %v8002_v60, %s7259_s15  ;;  %1547 = vrot.lane.b32.xlu0 %v7787_v57, %s7261_s17 }
 0x265   : > { %v8832_v10 = vpop.permute.xlu1 %1249  ;;  %v8834_v35 = vpop.permute.xlu0 %1371 }
 0x266   : > { %15421 = vst [vmem:[#allocation191_spill] sm:$0xff] %v8834_v35 }
 0x267   : > { %1397 = vrot.lane.b32.xlu1 %v8415_v43, %s7259_s15  ;;  %1551 = vrot.lane.b32.xlu0 %v15308_v23, %s7261_s17  ;;  %v15424_v43 = vld [vmem:[#allocation40_spill] sm:$0xff] }
 0x269   : > { %v8842_v18 = vpop.permute.xlu1 %1253  ;;  %v8844_v39 = vpop.permute.xlu0 %1375 }
 0x26a   : > { %15422 = vst [vmem:[#allocation192_spill] sm:$0xff] %v8844_v39 }
 0x26b   : > { %1401 = vrot.lane.b32.xlu1 %v8840_v55, %s7259_s15  ;;  %1555 = vrot.lane.b32.xlu0 %v15312_v14, %s7261_s17 }
 0x26d   : > { %v8850_v57 = vpop.permute.xlu1 %1257  ;;  %v8852_v60 = vpop.permute.xlu0 %1379 }
 0x26e   : > { %15423 = vst [vmem:[#allocation193_spill] sm:$0xff] %v8852_v60 }
 0x26f   : > { %1437 = vrot.lane.b32.xlu1 %v15315_v21, %s7260_s16  ;;  %1559 = vrot.lane.b32.xlu0 %v15424_v43, %s7261_s17  ;;  %v15432_v21 = vld [vmem:[#allocation45_spill] sm:$0xff] }
 0x271   : > { %v8858_v23 = vpop.permute.xlu1 %1261  ;;  %v8860_v49 = vpop.permute.xlu0 %1383 }
 0x272   : > { %15425 = vst [vmem:[#allocation40_spill] sm:$0xff] %v8858_v23  ;;  %15426 = vst [vmem:[#allocation194_spill] sm:$0xff] %v8860_v49  ;;  %v15435_v49 = vld [vmem:[#allocation23_spill] sm:$0xff]  ;;  %v15534_v23 = vld [vmem:[#allocation76_spill] sm:$0xff] }
 0x273   : > { %1441 = vrot.lane.b32.xlu1 %v15427_v52, %s7260_s16  ;;  %1563 = vrot.lane.b32.xlu0 %v15428_v6, %s7261_s17  ;;  %v15436_v52 = vld [vmem:[#allocation48_spill] sm:$0xff] }
 0x275   : > { %v8866_v14 = vpop.permute.xlu1 %1265  ;;  %v8868_v9 = vpop.permute.xlu0 %1387 }
 0x276   : > { %15429 = vst [vmem:[#allocation15_spill] sm:$0xff] %v8866_v14  ;;  %15430 = vst [vmem:[#allocation43_spill] sm:$0xff] %v8868_v9  ;;  %v15439_v9 = vld [vmem:[#allocation26_spill] sm:$0xff] }
 0x277   : > { %1445 = vrot.lane.b32.xlu1 %v15431_v48, %s7260_s16  ;;  %1567 = vrot.lane.b32.xlu0 %v15432_v21, %s7261_s17  ;;  %v15440_v48 = vld [vmem:[#allocation50_spill] sm:$0xff] }
 0x279   : > { %v8874_v43 = vpop.permute.xlu1 %1269  ;;  %v8876_v60 = vpop.permute.xlu0 %1391 }
 0x27a   : > { %15433 = vst [vmem:[#allocation19_spill] sm:$0xff] %v8874_v43  ;;  %15434 = vst [vmem:[#allocation45_spill] sm:$0xff] %v8876_v60  ;;  %v15443_v60 = vld [vmem:[#allocation29_spill] sm:$0xff] }
 0x27b   : > { %1449 = vrot.lane.b32.xlu1 %v15435_v49, %s7260_s16  ;;  %1571 = vrot.lane.b32.xlu0 %v15436_v52, %s7261_s17  ;;  %v15444_v49 = vld [vmem:[#allocation54_spill] sm:$0xff] }
 0x27d   : > { %v8882_v6 = vpop.permute.xlu1 %1273  ;;  %v8884_v39 = vpop.permute.xlu0 %1395 }
 0x27e   : > { %15437 = vst [vmem:[#allocation23_spill] sm:$0xff] %v8882_v6  ;;  %15438 = vst [vmem:[#allocation48_spill] sm:$0xff] %v8884_v39  ;;  %v859_v39 = vrot.slane %v8774_v15, 2  ;;  %v8933_v15 = vld [vmem:[%s14888_s4 + $0x8] sm:$0xff] }
 0x27f   : > { %1453 = vrot.lane.b32.xlu1 %v15439_v9, %s7260_s16  ;;  %1575 = vrot.lane.b32.xlu0 %v15440_v48, %s7261_s17 }
 0x281   : > { %v8890_v21 = vpop.permute.xlu1 %1277  ;;  %v8892_v35 = vpop.permute.xlu0 %1399 }
 0x282   : > { %15441 = vst [vmem:[#allocation26_spill] sm:$0xff] %v8890_v21  ;;  %15442 = vst [vmem:[#allocation50_spill] sm:$0xff] %v8892_v35  ;;  %v15448_v35 = vld [vmem:[#allocation36_spill] sm:$0xff]  ;;  %v9019_v21 = vld [vmem:[%s14888_s4 + $0x58] sm:$0xff] }
 0x283   : > { %1457 = vrot.lane.b32.xlu1 %v15443_v60, %s7260_s16  ;;  %1579 = vrot.lane.b32.xlu0 %v15444_v49, %s7261_s17  ;;  %v15449_v60 = vld [vmem:[#allocation64_spill] sm:$0xff]  ;;  %v15000_v49 = vrot.slane %v8636_v11, 2 }
 0x285   : > { %v8898_v52 = vpop.permute.xlu1 %1281  ;;  %v8904_v9 = vpop.permute.xlu0 %1403 }
 0x286   : > { %15445 = vst [vmem:[#allocation29_spill] sm:$0xff] %v8898_v52  ;;  %15446 = vst [vmem:[#allocation54_spill] sm:$0xff] %v8904_v9 }
 0x287   : > { %1461 = vrot.lane.b32.xlu1 %v15339_v3, %s7260_s16  ;;  %1583 = vrot.lane.b32.xlu0 %v15340_v33, %s7261_s17  ;;  %v860_v33 = vsel %vm754_vm4, %v15000_v49, %v859_v39  ;;  %v1893_v39 = vld [vmem:[%s14885_s1 + $0x8] sm:$0xff] }
 0x289   : > { %v8906_v48 = vpop.permute.xlu1 %1285  ;;  %v8916_v3 = vpop.permute.xlu0 %1439 }
 0x28a   : > { %15447 = vst [vmem:[#allocation195_spill] sm:$0xff] %v8906_v48 }
 0x28b   : > { %1465 = vrot.lane.b32.xlu1 %v15448_v35, %s7260_s16  ;;  %1587 = vrot.lane.b32.xlu0 %v15449_v60, %s7261_s17  ;;  %v15452_v60 = vld [vmem:[#allocation46_spill] sm:$0xff] }
 0x28d   : > { %v8914_v52 = vpop.permute.xlu1 %1289 }
 0x28e   : > { %15450 = vst [vmem:[#allocation36_spill] sm:$0xff] %v8914_v52 }
 0x28f   : > { %1469 = vrot.lane.b32.xlu1 %v15346_v26, %s7260_s16  ;;  %1591 = vrot.lane.b32.xlu0 %v8502_v20, %s7261_s17  ;;  %v8935_v26 = vpop.permute.xlu0 %1443  ;;  %v1892_v20 = vld [vmem:[%s14885_s1] sm:$0xff] }
 0x291   : > { %v8925_v35 = vpop.permute.xlu1 %1293 }
 0x292   : > { %15451 = vst [vmem:[#allocation64_spill] sm:$0xff] %v8925_v35  ;;  %v8982_v35 = vld [vmem:[%s14888_s4 + $0x38] sm:$0xff] }
 0x293   : > { %1473 = vrot.lane.b32.xlu1 %v15452_v60, %s7260_s16  ;;  %1595 = vrot.lane.b32.xlu0 %v860_v33, %s7261_s17  ;;  %v8952_v33 = vld [vmem:[%s14888_s4 + $0x18] sm:$0xff]  ;;  %v7058_v60 = vpack.c.bf16 %v1893_v39, %v1892_v20  ;;  %v8971_v39 = vld [vmem:[%s14888_s4 + $0x28] sm:$0xff] }
 0x294   : > { %v1895_v20 = vld [vmem:[%s14885_s1 + $0x18] sm:$0xff] }
 0x295   : > { %v8937_v9 = vpop.permute.xlu1 %1297  ;;  %7059 = vmatprep.subr.bf16.mxu0 %v7058_v60  ;;  %7082 = vmatprep.subr.bf16.mxu1 %v7058_v60 }
 0x296   : > { %15453 = vst [vmem:[#allocation46_spill] sm:$0xff] %v8937_v9  ;;  %v1894_v9 = vld [vmem:[%s14885_s1 + $0x10] sm:$0xff]  ;;  %7061 = vmatpush3.bf16.msra.mxu0 %v7058_v60  ;;  %7085 = vmatpush3.bf16.msra.mxu1 %v7058_v60  ;;  %v1896_v60 = vld [vmem:[%s14885_s1 + $0x20] sm:$0xf] }
 0x297   : > { %1477 = vrot.lane.b32.xlu1 %v15353_v22, %s7260_s16  ;;  %2431 = vrot.lane.b32.xlu0 %v8933_v15, %s7262_s20  ;;  %v8956_v22 = vpop.permute.xlu0 %1447 }
 0x299   : > { %v8954_v49 = vpop.permute.xlu1 %1301 }
 0x29a   : > { %15454 = vst [vmem:[#allocation196_spill] sm:$0xff] %v8954_v49  ;;  %v7062_v49 = vpack.c.bf16 %v1895_v20, %v1894_v9 }
 0x29b   : > { %1481 = vrot.lane.b32.xlu1 %v15356_v40, %s7260_s16  ;;  %2435 = vrot.lane.b32.xlu0 %v8952_v33, %s7262_s20  ;;  %v8984_v52 = vpop.permute.xlu0 %1451 }
 0x29c   : > { %7063 = vmatprep.subr.bf16.mxu0 %v7062_v49  ;;  %7083 = vmatprep.subr.bf16.mxu1 %v7062_v49  ;;  %15456 = vst [vmem:[#allocation198_spill] sm:$0xff] %v8984_v52  ;;  %v15538_v52 = vld [vmem:[#allocation83_spill] sm:$0xff] }
 0x29d   : > { %v8973_v40 = vpop.permute.xlu1 %1305  ;;  %7065 = vmatpush3.bf16.msra.mxu0 %v7062_v49  ;;  %7086 = vmatpush3.bf16.msra.mxu1 %v7062_v49  ;;  %v9001_v49 = vld [vmem:[%s14888_s4 + $0x48] sm:$0xff] }
 0x29e   : > { %15455 = vst [vmem:[#allocation197_spill] sm:$0xff] %v8973_v40  ;;  %6892 = vmatprep.subr.msk.mxu0 %vm1994_vm5, %v1896_v60  ;;  %7084 = vmatprep.subr.msk.mxu1 %vm1994_vm5, %v1896_v60 }
 0x29f   : > { %1485 = vrot.lane.b32.xlu1 %v15359_v53, %s7260_s16  ;;  %2439 = vrot.lane.b32.xlu0 %v8971_v39, %s7262_s20  ;;  %v851_v53 = vrot.slane %v8840_v55, 1  ;;  %v9007_v40 = vpop.permute.xlu0 %1455 }
 0x2a0   : > { %15457 = vst [vmem:[#allocation199_spill] sm:$0xff] %v9007_v40  ;;  %v7126_v40 = vld [vmem:[#allocation2 + $0x20] sm:$0xff] }
 0x2a1   : > { %v8986_v9 = vpop.permute.xlu1 %1341  ;;  %6893 = vmatpush3.msk.msra.mxu0 %vm1994_vm5, %v1896_v60  ;;  %7087 = vmatpush3.msk.msra.mxu1 %vm1994_vm5, %v1896_v60 }
 0x2a3   : > { %1489 = vrot.lane.b32.xlu1 %v8026_v50, %s7260_s16  ;;  %2443 = vrot.lane.b32.xlu0 %v8982_v35, %s7262_s20  ;;  %v15458_v50 = vrot.slane %v8636_v11, 1  ;;  %v9031_v6 = vpop.permute.xlu0 %1459 }
 0x2a4   : > { %15460 = vst [vmem:[#allocation201_spill] sm:$0xff] %v9031_v6 }
 0x2a5   : > { %v9005_v20 = vpop.permute.xlu1 %1345  ;;  %v853_v48 = vsel %vm673_vm2, %v851_v53, %v15458_v50 }
 0x2a7   : > { %1493 = vrot.lane.b32.xlu1 %v8558_v56, %s7260_s16  ;;  %2447 = vrot.lane.b32.xlu0 %v9001_v49, %s7262_s20  ;;  %v9029_v56 = vld [vmem:[%s14888_s4 + $0x68] sm:$0xff]  ;;  %v9046_v30 = vpop.permute.xlu0 %1463 }
 0x2a8   : > { %15459 = vst [vmem:[#allocation200_spill] sm:$0xff] %v9029_v56  ;;  %15463 = vst [vmem:[#allocation204_spill] sm:$0xff] %v9046_v30 }
 0x2a9   : > { %v9021_v60 = vpop.permute.xlu1 %1349 }
 0x2ab   : > { %1497 = vrot.lane.b32.xlu1 %v853_v48, %s7260_s16  ;;  %2451 = vrot.lane.b32.xlu0 %v9019_v21, %s7262_s20  ;;  %v9042_v48 = vld [vmem:[%s14888_s4 + $0x78] sm:$0xff]  ;;  %v9068_v30 = vpop.permute.xlu0 %1467 }
 0x2ac   : > { %15461 = vst [vmem:[#allocation202_spill] sm:$0xff] %v9042_v48  ;;  %15467 = vst [vmem:[#allocation208_spill] sm:$0xff] %v9068_v30 }
 0x2ad   : > { %v9033_v53 = vpop.permute.xlu1 %1353 }
 0x2af   : > { %1533 = vrot.lane.b32.xlu1 %v8082_v7, %s7261_s17  ;;  %2455 = vrot.lane.b32.xlu0 %v9029_v56, %s7262_s20  ;;  %v9055_v7 = vld [vmem:[%s14888_s4 + $0x88] sm:$0xff] }
 0x2b0   : > { %15464 = vst [vmem:[#allocation205_spill] sm:$0xff] %v9055_v7 }
 0x2b1   : > { %v9044_v50 = vpop.permute.xlu1 %1357 }
 0x2b2   : > { %15462 = vst [vmem:[#allocation203_spill] sm:$0xff] %v9044_v50 }
 0x2b3   : > { %1537 = vrot.lane.b32.xlu1 %v8103_v2, %s7261_s17  ;;  %2459 = vrot.lane.b32.xlu0 %v9042_v48, %s7262_s20  ;;  %v9066_v2 = vld [vmem:[%s14888_s4 + $0x98] sm:$0xff] }
 0x2b4   : > { %15466 = vst [vmem:[#allocation207_spill] sm:$0xff] %v9066_v2 }
 0x2b5   : > { %v9057_v43 = vpop.permute.xlu1 %1361 }
 0x2b6   : > { %15465 = vst [vmem:[#allocation206_spill] sm:$0xff] %v9057_v43  ;;  %v9083_v43 = vpop.permute.xlu0 %1471 }
 0x2b7   : > { %1541 = vrot.lane.b32.xlu1 %v8124_v17, %s7261_s17  ;;  %2463 = vrot.lane.b32.xlu0 %v9055_v7, %s7262_s20  ;;  %v9079_v17 = vld [vmem:[%s14888_s4 + $0xa8] sm:$0xff]  ;;  %15471 = vst [vmem:[#allocation212_spill] sm:$0xff] %v9083_v43 }
 0x2b8   : > { %15469 = vst [vmem:[#allocation210_spill] sm:$0xff] %v9079_v17 }
 0x2b9   : > { %v9070_v6 = vpop.permute.xlu1 %1365 }
 0x2ba   : > { %15468 = vst [vmem:[#allocation209_spill] sm:$0xff] %v9070_v6  ;;  %v9099_v6 = vld [vmem:[%s14893_s9] sm:$0xf]  ;;  %v9112_v43 = vpop.permute.xlu0 %1475 }
 0x2bb   : > { %1545 = vrot.lane.b32.xlu1 %v8146_v38, %s7261_s17  ;;  %2467 = vrot.lane.b32.xlu0 %v9066_v2, %s7262_s20  ;;  %v9092_v38 = vld [vmem:[%s14888_s4 + $0xb8] sm:$0xff]  ;;  %15475 = vst [vmem:[#allocation216_spill] sm:$0xff] %v9112_v43 }
 0x2bc   : > { %15472 = vst [vmem:[#allocation213_spill] sm:$0xff] %v9092_v38  ;;  %7008 = vmatprep.subr.msk.mxu0 %vm1994_vm5, %v9099_v6 }
 0x2bd   : > { %v9081_v34 = vpop.permute.xlu1 %1369 }
 0x2be   : > { %15470 = vst [vmem:[#allocation211_spill] sm:$0xff] %v9081_v34  ;;  %v9127_v14 = vpop.permute.xlu0 %1479 }
 0x2bf   : > { %1549 = vrot.lane.b32.xlu1 %v15376_v51, %s7261_s17  ;;  %2471 = vrot.lane.b32.xlu0 %v9079_v17, %s7262_s20  ;;  %v9110_v51 = vld [vmem:[%s14888_s4 + $0xc8] sm:$0xff]  ;;  %15479 = vst [vmem:[#allocation220_spill] sm:$0xff] %v9127_v14 }
 0x2c0   : > { %15474 = vst [vmem:[#allocation215_spill] sm:$0xff] %v9110_v51 }
 0x2c1   : > { %v9094_v30 = vpop.permute.xlu1 %1373 }
 0x2c2   : > { %15473 = vst [vmem:[#allocation214_spill] sm:$0xff] %v9094_v30  ;;  %v9149_v14 = vpop.permute.xlu0 %1483 }
 0x2c3   : > { %1553 = vrot.lane.b32.xlu1 %v15379_v54, %s7261_s17  ;;  %2475 = vrot.lane.b32.xlu0 %v9092_v38, %s7262_s20  ;;  %v9123_v54 = vld [vmem:[%s14888_s4 + $0xd8] sm:$0xff]  ;;  %15483 = vst [vmem:[#allocation224_spill] sm:$0xff] %v9149_v14 }
 0x2c4   : > { %15477 = vst [vmem:[#allocation218_spill] sm:$0xff] %v9123_v54 }
 0x2c5   : > { %v9114_v30 = vpop.permute.xlu1 %1377 }
 0x2c6   : > { %15476 = vst [vmem:[#allocation217_spill] sm:$0xff] %v9114_v30 }
 0x2c7   : > { %1557 = vrot.lane.b32.xlu1 %v15381_v63, %s7261_s17  ;;  %2479 = vrot.lane.b32.xlu0 %v9110_v51, %s7262_s20  ;;  %v9136_v63 = vld [vmem:[%s14888_s4 + $0xe8] sm:$0xff] }
 0x2c8   : > { %15480 = vst [vmem:[#allocation221_spill] sm:$0xff] %v9136_v63 }
 0x2c9   : > { %v9125_v34 = vpop.permute.xlu1 %1381 }
 0x2ca   : > { %15478 = vst [vmem:[#allocation219_spill] sm:$0xff] %v9125_v34 }
 0x2cb   : > { %1561 = vrot.lane.b32.xlu1 %v15383_v36, %s7261_s17  ;;  %2483 = vrot.lane.b32.xlu0 %v9123_v54, %s7262_s20  ;;  %v9147_v36 = vld [vmem:[%s14888_s4 + $0xf8] sm:$0xff] }
 0x2cc   : > { %15482 = vst [vmem:[#allocation223_spill] sm:$0xff] %v9147_v36 }
 0x2cd   : > { %v9138_v43 = vpop.permute.xlu1 %1385 }
 0x2ce   : > { %15481 = vst [vmem:[#allocation222_spill] sm:$0xff] %v9138_v43 }
 0x2cf   : > { %1565 = vrot.lane.b32.xlu1 %v8212_v47, %s7261_s17  ;;  %2487 = vrot.lane.b32.xlu0 %v9136_v63, %s7262_s20  ;;  %v9159_v47 = vpop.permute.xlu0 %1487 }
 0x2d0   : > { %15486 = vst [vmem:[#allocation227_spill] sm:$0xff] %v9159_v47 }
 0x2d1   : > { %v9151_v34 = vpop.permute.xlu1 %1389 }
 0x2d2   : > { %15484 = vst [vmem:[#allocation225_spill] sm:$0xff] %v9151_v34  ;;  %v9244_v34 = vld [vmem:[%s14888_s4 + $0x30] sm:$0xff] }
 0x2d3   : > { %1569 = vrot.lane.b32.xlu1 %v8224_v25, %s7261_s17  ;;  %2491 = vrot.lane.b32.xlu0 %v9147_v36, %s7262_s20  ;;  %v9171_v25 = vpop.permute.xlu0 %1491  ;;  %15498 = vst [vmem:[#allocation238_spill] sm:$0xff] %v9244_v34 }
 0x2d4   : > { %15488 = vst [vmem:[#allocation229_spill] sm:$0xff] %v9171_v25 }
 0x2d5   : > { %v9157_v43 = vpop.permute.xlu1 %1393 }
 0x2d6   : > { %15485 = vst [vmem:[#allocation226_spill] sm:$0xff] %v9157_v43 }
 0x2d7   : > { %1573 = vrot.lane.b32.xlu1 %v8238_v27, %s7261_s17  ;;  %2559 = vrot.lane.b32.xlu0 %v8933_v15, %s7263_s27  ;;  %v9181_v47 = vpop.permute.xlu0 %1495 }
 0x2d8   : > { %15490 = vst [vmem:[#allocation231_spill] sm:$0xff] %v9181_v47 }
 0x2d9   : > { %v9165_v14 = vpop.permute.xlu1 %1397 }
 0x2da   : > { %15487 = vst [vmem:[#allocation228_spill] sm:$0xff] %v9165_v14 }
 0x2db   : > { %1577 = vrot.lane.b32.xlu1 %v8252_v24, %s7261_s17  ;;  %2563 = vrot.lane.b32.xlu0 %v8952_v33, %s7263_s27  ;;  %v856_v24 = vrot.slane %v8840_v55, 2  ;;  %v9197_v47 = vpop.permute.xlu0 %1499 }
 0x2dc   : > { %15492 = vst [vmem:[#allocation232_spill] sm:$0xff] %v9197_v47 }
 0x2dd   : > { %v9173_v43 = vpop.permute.xlu1 %1401 }
 0x2de   : > { %15489 = vst [vmem:[#allocation230_spill] sm:$0xff] %v9173_v43 }
 0x2df   : > { %1581 = vrot.lane.b32.xlu1 %v8264_v16, %s7261_s17  ;;  %2567 = vrot.lane.b32.xlu0 %v8971_v39, %s7263_s27  ;;  %v15491_v16 = vrot.slane %v8636_v11, 2  ;;  %v9211_v25 = vpop.permute.xlu0 %1535  ;;  %v9220_v11 = vld [vmem:[%s14888_s4 + $0x10] sm:$0xff] }
 0x2e0   : > { %15494 = vst [vmem:[#allocation234_spill] sm:$0xff] %v9220_v11 }
 0x2e1   : > { %v9179_v27 = vpop.permute.xlu1 %1437  ;;  %v858_v43 = vsel %vm754_vm4, %v856_v24, %v15491_v16  ;;  %v9231_v24 = vld [vmem:[%s14888_s4 + $0x20] sm:$0xff] }
 0x2e2   : > { %15496 = vst [vmem:[#allocation236_spill] sm:$0xff] %v9231_v24 }
 0x2e3   : > { %1585 = vrot.lane.b32.xlu1 %v8278_v61, %s7261_s17  ;;  %2571 = vrot.lane.b32.xlu0 %v8982_v35, %s7263_s27  ;;  %v9233_v16 = vpop.permute.xlu0 %1539 }
 0x2e5   : > { %v9188_v14 = vpop.permute.xlu1 %1441 }
 0x2e7   : > { %1589 = vrot.lane.b32.xlu1 %v8694_v1, %s7261_s17  ;;  %2575 = vrot.lane.b32.xlu0 %v9001_v49, %s7263_s27  ;;  %v9207_v1 = vld [vmem:[%s14888_s4] sm:$0xff] }
 0x2e8   : > { %15493 = vst [vmem:[#allocation233_spill] sm:$0xff] %v9207_v1 }
 0x2e9   : > { %v9199_v61 = vpop.permute.xlu1 %1445 }
 0x2eb   : > { %1593 = vrot.lane.b32.xlu1 %v858_v43, %s7261_s17  ;;  %2579 = vrot.lane.b32.xlu0 %v9019_v21, %s7263_s27 }
 0x2ed   : > { %v9209_v55 = vpop.permute.xlu1 %1449 }
 0x2ef   : > { %2429 = vrot.lane.b32.xlu1 %v9207_v1, %s7262_s20  ;;  %2583 = vrot.lane.b32.xlu0 %v9029_v56, %s7263_s27  ;;  %v15529_v1 = vld [vmem:[#allocation73_spill] sm:$0xff] }
 0x2f1   : > { %v9222_v43 = vpop.permute.xlu1 %1453 }
 0x2f2   : > { %15495 = vst [vmem:[#allocation235_spill] sm:$0xff] %v9222_v43  ;;  %v15520_v43 = vld [vmem:[#allocation67_spill] sm:$0xff] }
 0x2f3   : > { %2433 = vrot.lane.b32.xlu1 %v9220_v11, %s7262_s20  ;;  %2587 = vrot.lane.b32.xlu0 %v9042_v48, %s7263_s27  ;;  %v9248_v48 = vpop.permute.xlu0 %1543 }
 0x2f5   : > { %v9235_v47 = vpop.permute.xlu1 %1457 }
 0x2f6   : > { %15497 = vst [vmem:[#allocation237_spill] sm:$0xff] %v9235_v47 }
 0x2f7   : > { %2437 = vrot.lane.b32.xlu1 %v9231_v24, %s7262_s20  ;;  %2591 = vrot.lane.b32.xlu0 %v9055_v7, %s7263_s27  ;;  %v9257_v24 = vld [vmem:[%s14888_s4 + $0x40] sm:$0xff] }
 0x2f8   : > { %15500 = vst [vmem:[#allocation240_spill] sm:$0xff] %v9257_v24 }
 0x2f9   : > { %v9246_v30 = vpop.permute.xlu1 %1461 }
 0x2fa   : > { %15499 = vst [vmem:[#allocation239_spill] sm:$0xff] %v9246_v30  ;;  %v9270_v30 = vpop.permute.xlu0 %1547 }
 0x2fb   : > { %2441 = vrot.lane.b32.xlu1 %v9244_v34, %s7262_s20  ;;  %2595 = vrot.lane.b32.xlu0 %v9066_v2, %s7263_s27  ;;  %v9268_v34 = vld [vmem:[%s14888_s4 + $0x50] sm:$0xff]  ;;  %15503 = vst [vmem:[#allocation243_spill] sm:$0xff] %v9270_v30  ;;  %v15532_v30 = vld [vmem:[#allocation75_spill] sm:$0xff] }
 0x2fc   : > { %15502 = vst [vmem:[#allocation242_spill] sm:$0xff] %v9268_v34 }
 0x2fd   : > { %v9259_v7 = vpop.permute.xlu1 %1465 }
 0x2fe   : > { %15501 = vst [vmem:[#allocation241_spill] sm:$0xff] %v9259_v7  ;;  %v9285_v7 = vpop.permute.xlu0 %1551 }
 0x2ff   : > { %2445 = vrot.lane.b32.xlu1 %v9257_v24, %s7262_s20  ;;  %2599 = vrot.lane.b32.xlu0 %v9079_v17, %s7263_s27  ;;  %v9281_v24 = vld [vmem:[%s14888_s4 + $0x60] sm:$0xff]  ;;  %15507 = vst [vmem:[#allocation247_spill] sm:$0xff] %v9285_v7  ;;  %v15518_v7 = vld [vmem:[#allocation65_spill] sm:$0xff] }
 0x300   : > { %15505 = vst [vmem:[#allocation245_spill] sm:$0xff] %v9281_v24 }
 0x301   : > { %v9272_v2 = vpop.permute.xlu1 %1469 }
 0x302   : > { %15504 = vst [vmem:[#allocation244_spill] sm:$0xff] %v9272_v2  ;;  %v15515_v2 = vld [vmem:[#allocation58_spill] sm:$0xff] }
 0x303   : > { %2449 = vrot.lane.b32.xlu1 %v9268_v34, %s7262_s20  ;;  %2603 = vrot.lane.b32.xlu0 %v9092_v38, %s7263_s27  ;;  %v9294_v34 = vld [vmem:[%s14888_s4 + $0x70] sm:$0xff] }
 0x304   : > { %15508 = vst [vmem:[#allocation248_spill] sm:$0xff] %v9294_v34 }
 0x305   : > { %v9283_v17 = vpop.permute.xlu1 %1473 }
 0x306   : > { %15506 = vst [vmem:[#allocation246_spill] sm:$0xff] %v9283_v17  ;;  %v9307_v17 = vpop.permute.xlu0 %1555 }
 0x307   : > { %2453 = vrot.lane.b32.xlu1 %v9281_v24, %s7262_s20  ;;  %2607 = vrot.lane.b32.xlu0 %v9110_v51, %s7263_s27  ;;  %v9305_v24 = vld [vmem:[%s14888_s4 + $0x80] sm:$0xff]  ;;  %15511 = vst [vmem:[#allocation251_spill] sm:$0xff] %v9307_v17  ;;  %v7124_v17 = vld [vmem:[#allocation2 + $0x8] sm:$0xff] }
 0x308   : > { %15510 = vst [vmem:[#allocation250_spill] sm:$0xff] %v9305_v24 }
 0x309   : > { %v9296_v38 = vpop.permute.xlu1 %1477 }
 0x30a   : > { %15509 = vst [vmem:[#allocation249_spill] sm:$0xff] %v9296_v38  ;;  %v7123_v38 = vld [vmem:[#allocation2] sm:$0xff] }
 0x30b   : > { %2457 = vrot.lane.b32.xlu1 %v9294_v34, %s7262_s20  ;;  %2611 = vrot.lane.b32.xlu0 %v9123_v54, %s7263_s27  ;;  %v9318_v34 = vld [vmem:[%s14888_s4 + $0x90] sm:$0xff]  ;;  %v9324_v47 = vsel %vm482_vm0, %v7123_v38, %v15515_v2 }
 0x30c   : > { %15513 = vst [vmem:[#allocation253_spill] sm:$0xff] %v9318_v34  ;;  %v15519_v2 = vld [vmem:[#allocation66_spill] sm:$0xff] }
 0x30d   : > { %v9309_v51 = vpop.permute.xlu1 %1481  ;;  %v9340_v38 = vsel %vm482_vm0, %v7126_v40, %v15519_v2  ;;  %v7127_v2 = vld [vmem:[#allocation2 + $0x50] sm:$0xff] }
 0x30e   : > { %15512 = vst [vmem:[#allocation252_spill] sm:$0xff] %v9309_v51  ;;  %v15516_v51 = vld [vmem:[#allocation62_spill] sm:$0xff] }
 0x30f   : > { %2461 = vrot.lane.b32.xlu1 %v9305_v24, %s7262_s20  ;;  %2615 = vrot.lane.b32.xlu0 %v9136_v63, %s7263_s27  ;;  %v1630_v11 = vsel %vm482_vm0, %v7124_v17, %v15516_v51  ;;  %v9328_v24 = vpop.permute.xlu0 %1559  ;;  %v7125_v63 = vld [vmem:[#allocation2 + $0x18] sm:$0xff]  ;;  %v9345_v17 = vsel %vm482_vm0, %v8704_v28, %v15520_v43  ;;  %v15521_v51 = vld [vmem:[#allocation68_spill] sm:$0xff] }
 0x310   : > { %15517 = vst [vmem:[#allocation58_spill] sm:$0xff] %v9328_v24  ;;  %v15526_v43 = vld [vmem:[#allocation71_spill] sm:$0xff] }
 0x311   : > { %v9320_v54 = vpop.permute.xlu1 %1485 }
 0x312   : > { %15514 = vst [vmem:[#allocation254_spill] sm:$0xff] %v9320_v54  ;;  %v9336_v54 = vsel %vm482_vm0, %v7125_v63, %v15518_v7  ;;  %v9355_v7 = vld [vmem:[%s14888_s4 + $0xa0] sm:$0xff]  ;;  %v15524_v63 = vld [vmem:[#allocation69_spill] sm:$0xff] }
 0x313   : > { %2465 = vrot.lane.b32.xlu1 %v9318_v34, %s7262_s20  ;;  %2619 = vrot.lane.b32.xlu0 %v9147_v36, %s7263_s27  ;;  %v15522_v34 = vld [vmem:[#allocation142_spill] sm:$0xff]  ;;  %15523 = vst [vmem:[#allocation62_spill] sm:$0xff] %v9355_v7  ;;  %v9360_v40 = vsel %vm482_vm0, %v8714_v8, %v15524_v63  ;;  %v9380_v8 = vsel %vm482_vm0, %v8734_v37, %v15529_v1  ;;  %v7129_v63 = vld [vmem:[#allocation2 + $0x80] sm:$0xff] }
 0x314   : > { %v9350_v24 = vsel %vm482_vm0, %v15522_v34, %v15521_v51  ;;  %v15525_v36 = vld [vmem:[#allocation70_spill] sm:$0xff]  ;;  %v9369_v34 = vsel %vm482_vm0, %v8724_v13, %v15526_v43  ;;  %v7128_v51 = vld [vmem:[#allocation2 + $0x68] sm:$0xff]  ;;  %15530 = vst [vmem:[#allocation66_spill] sm:$0xff] %v9380_v8  ;;  %v9387_v13 = vsel %vm482_vm0, %v8744_v59, %v15532_v30  ;;  %v7130_v43 = vld [vmem:[#allocation2 + $0x98] sm:$0xff] }
 0x315   : > { %v9364_v28 = vsel %vm482_vm0, %v7127_v2, %v15525_v36  ;;  %v9373_v56 = vsel %vm482_vm0, %v7128_v51, %v15527_v58  ;;  %v9375_v50 = vpop.permute.xlu1 %1489  ;;  %v15531_v36 = vld [vmem:[#allocation74_spill] sm:$0xff]  ;;  %15533 = vst [vmem:[#allocation67_spill] sm:$0xff] %v9387_v13  ;;  %v1642_v58 = vsel %vm482_vm0, %v7130_v43, %v15534_v23  ;;  %v15535_v51 = vld [vmem:[#allocation77_spill] sm:$0xff]  ;;  %v15537_v1 = vld [vmem:[#allocation80_spill] sm:$0xff] }
 0x316   : > { %15528 = vst [vmem:[#allocation65_spill] sm:$0xff] %v9375_v50  ;;  %v1640_v2 = vsel %vm482_vm0, %v7129_v63, %v15531_v36  ;;  %v9394_v50 = vsel %vm482_vm0, %v8754_v41, %v15535_v51  ;;  %v7131_v37 = vld [vmem:[#allocation2 + $0xb0] sm:$0xff]  ;;  %v9401_v63 = vsel %vm482_vm0, %v8764_v42, %v15538_v52  ;;  %v7132_v59 = vld [vmem:[#allocation2 + $0xc8] sm:$0xff]  ;;  %v15541_v23 = vld [vmem:[#allocation84_spill] sm:$0xff] }
 0x317   : > { %15536 = vst [vmem:[#allocation68_spill] sm:$0xff] %v9394_v50  ;;  %v1644_v8 = vsel %vm482_vm0, %v7131_v37, %v15537_v1  ;;  %15539 = vst [vmem:[#allocation142_spill] sm:$0xff] %v9401_v63  ;;  %2469 = vrot.lane.b32.xlu1 %v9355_v7, %s7262_s20  ;;  %2687 = vrot.lane.b32.xlu0 %v8933_v15, %s7264_s19  ;;  %v15540_v41 = vld [vmem:[#allocation81_spill] sm:$0xff]  ;;  %v9411_v36 = vsel %vm1661_vm3, %v1640_v2, %v15541_v23  ;;  %v7133_v43 = vld [vmem:[#allocation2 + $0xd8] sm:$0xff]  ;;  %v9436_v63 = vpop.permute.xlu0 %1563 }
 0x318   : > { %v1646_v30 = vsel %vm482_vm0, %v7132_v59, %v15540_v41  ;;  %15542 = vst [vmem:[#allocation69_spill] sm:$0xff] %v9411_v36  ;;  %v15543_v51 = vld [vmem:[#allocation86_spill] sm:$0xff]  ;;  %v15545_v52 = vld [vmem:[#allocation87_spill] sm:$0xff]  ;;  %v7134_v1 = vld [vmem:[#allocation2 + $0xe0] sm:$0xff] }
 0x319   : > { %v9415_v42 = vsel %vm482_vm0, %v7133_v43, %v15543_v51  ;;  %v9419_v37 = vsel %vm1661_vm3, %v1642_v58, %v15545_v52  ;;  %v9424_v15 = vld [vmem:[%s14888_s4 + $0xb0] sm:$0xff]  ;;  %v15548_v59 = vld [vmem:[#allocation88_spill] sm:$0xff]  ;;  %v15549_v2 = vld [vmem:[#allocation89_spill] sm:$0xff]  ;;  %15553 = vst [vmem:[#allocation74_spill] sm:$0xff] %v9436_v63  ;;  %v9438_v50 = vpop.permute.xlu1 %1493 }
 0x31a   : > { %15544 = vst [vmem:[#allocation70_spill] sm:$0xff] %v9415_v42  ;;  %15546 = vst [vmem:[#allocation71_spill] sm:$0xff] %v9419_v37  ;;  %v1648_v41 = vsel %vm482_vm0, %v7134_v1, %v15548_v59  ;;  %v9430_v23 = vsel %vm1661_vm3, %v1644_v8, %v15549_v2  ;;  %v7135_v7 = vld [vmem:[#allocation2 + $0x110] sm:$0xff]  ;;  %v15551_v43 = vld [vmem:[#allocation95_spill] sm:$0xff] }
 0x31b   : > { %15547 = vst [vmem:[#allocation72_spill] sm:$0xff] %v9424_v15  ;;  %15550 = vst [vmem:[#allocation73_spill] sm:$0xff] %v9430_v23  ;;  %v1652_v51 = vsel %vm482_vm0, %v7135_v7, %v15551_v43  ;;  %v7136_v42 = vld [vmem:[#allocation2 + $0x128] sm:$0xff]  ;;  %v15552_v58 = vld [vmem:[#allocation98_spill] sm:$0xff]  ;;  %2473 = vrot.lane.b32.xlu1 %v9424_v15, %s7262_s20  ;;  %2691 = vrot.lane.b32.xlu0 %v8952_v33, %s7264_s19 }
 0x31c   : > { %v1654_v52 = vsel %vm482_vm0, %v7136_v42, %v15552_v58  ;;  %15554 = vst [vmem:[#allocation75_spill] sm:$0xff] %v9438_v50  ;;  %v7137_v37 = vld [vmem:[#allocation2 + $0xf0] sm:$0xff]  ;;  %v15556_v59 = vld [vmem:[#allocation91_spill] sm:$0xff]  ;;  %v15557_v23 = vld [vmem:[#allocation92_spill] sm:$0xff] }
 0x31d   : > { %v15555_v13 = vld [vmem:[#allocation90_spill] sm:$0xff]  ;;  %v9446_v8 = vsel %vm1661_vm3, %v1646_v30, %v15556_v59  ;;  %v7138_v2 = vld [vmem:[#allocation2 + $0xf8] sm:$0xff]  ;;  %v7139_v58 = vld [vmem:[#allocation2 + $0x108] sm:$0xff] }
 0x31e   : > { %v9442_v1 = vsel %vm482_vm0, %v7137_v37, %v15555_v13  ;;  %v1650_v7 = vsel %vm482_vm0, %v7138_v2, %v15557_v23  ;;  %v15558_v43 = vld [vmem:[#allocation94_spill] sm:$0xff]  ;;  %v15559_v63 = vld [vmem:[#allocation93_spill] sm:$0xff]  ;;  %v15560_v36 = vld [vmem:[#allocation96_spill] sm:$0xff] }
 0x31f   : > { %v9452_v42 = vsel %vm1661_vm3, %v1648_v41, %v15558_v43  ;;  %v9456_v50 = vsel %vm482_vm0, %v7139_v58, %v15559_v63  ;;  %v9460_v13 = vsel %vm1661_vm3, %v1650_v7, %v15560_v36  ;;  %v15561_v37 = vld [vmem:[#allocation113_spill] sm:$0xff]  ;;  %v15562_v41 = vld [vmem:[#allocation99_spill] sm:$0xff]  ;;  %v7140_v63 = vld [vmem:[#allocation2 + $0x120] sm:$0xff]  ;;  %2695 = vrot.lane.b32.xlu0 %v8971_v39, %s7264_s19 }
 0x320   : > { %v1663_v30 = vsel %vm1661_vm3, %v1630_v11, %v15561_v37  ;;  %v9470_v23 = vsel %vm1661_vm3, %v1652_v51, %v15562_v41  ;;  %v15563_v59 = vld [vmem:[#allocation97_spill] sm:$0xff]  ;;  %v15565_v36 = vld [vmem:[#allocation111_spill] sm:$0xff]  ;;  %v9486_v33 = vld [vmem:[%s14888_s4 + $0xc0] sm:$0xff] }
 0x321   : > { %v9474_v2 = vsel %vm482_vm0, %v7140_v63, %v15563_v59  ;;  %v1662_v11 = vsel %vm1661_vm3, %v9324_v47, %v15565_v36  ;;  %v15566_v7 = vld [vmem:[#allocation101_spill] sm:$0xff]  ;;  %v7141_v51 = vld [vmem:[#allocation2 + $0x138] sm:$0xff]  ;;  %v15568_v58 = vld [vmem:[#allocation100_spill] sm:$0xff]  ;;  %2477 = vrot.lane.b32.xlu1 %v9486_v33, %s7262_s20 }
 0x322   : > { %15564 = vst [vmem:[#allocation76_spill] sm:$0xff] %v9474_v2  ;;  %v9481_v43 = vsel %vm1661_vm3, %v1654_v52, %v15566_v7  ;;  %v9490_v37 = vsel %vm482_vm0, %v7141_v51, %v15568_v58  ;;  %v7142_v41 = vld [vmem:[#allocation2 + $0x140] sm:$0xff]  ;;  %v15569_v63 = vld [vmem:[#allocation102_spill] sm:$0xff]  ;;  %v15570_v47 = vld [vmem:[#allocation55_spill] sm:$0xff]  ;;  %v9498_v52 = vpop.permute.xlu1 %1497 }
 0x323   : > { %15567 = vst [vmem:[#allocation77_spill] sm:$0xff] %v9481_v43  ;;  %v9494_v59 = vsel %vm482_vm0, %v7142_v41, %v15569_v63  ;;  %v1695_v36 = vsel %vm1694_vm6, %v1662_v11, %v15570_v47  ;;  %15571 = vst [vmem:[#allocation80_spill] sm:$0xff] %v9498_v52  ;;  %v15572_v7 = vld [vmem:[#allocation117_spill] sm:$0xff]  ;;  %v15573_v43 = vld [vmem:[#allocation110_spill] sm:$0xff]  ;;  %v9514_v52 = vpop.permute.xlu0 %1567  ;;  %2699 = vrot.lane.b32.xlu0 %v8982_v35, %s7264_s19 }
 0x324   : > { %v1665_v15 = vsel %vm1661_vm3, %v9340_v38, %v15572_v7  ;;  %v1696_v2 = vsel %vm1694_vm6, %v1663_v30, %v15573_v43  ;;  %v1728_v51 = vsel %vm1727_vm7, %v1695_v36, %v8670_v4  ;;  %v15574_v58 = vld [vmem:[#allocation115_spill] sm:$0xff]  ;;  %v15575_v63 = vld [vmem:[#allocation138_spill] sm:$0xff]  ;;  %v15576_v38 = vld [vmem:[#allocation112_spill] sm:$0xff] }
 0x325   : > { %v1664_v41 = vsel %vm1661_vm3, %v9336_v54, %v15574_v58  ;;  %v1729_v11 = vsel %vm1727_vm7, %v1696_v2, %v15575_v63  ;;  %v1761_v47 = vsel %vm1760_vm8, %v1728_v51, %v8824_v45  ;;  %v9527_v45 = vld [vmem:[%s14888_s4 + $0xd0] sm:$0xff]  ;;  %v1698_v30 = vsel %vm1694_vm6, %v1665_v15, %v15576_v38  ;;  %v15577_v2 = vld [vmem:[#allocation60_spill] sm:$0xff]  ;;  %v15578_v36 = vld [vmem:[#allocation121_spill] sm:$0xff] }
 0x326   : > { %v1762_v4 = vsel %vm1760_vm8, %v1729_v11, %v8622_v44  ;;  %v1794_v54 = vsel %vm1793_vm9, %v1761_v47, %v8986_v9  ;;  %v1697_v43 = vsel %vm1694_vm6, %v1664_v41, %v15577_v2  ;;  %v1534_v9 = vpop.permute.xlu1 %1533  ;;  %v1667_v7 = vsel %vm1661_vm3, %v9350_v24, %v15578_v36  ;;  %v15579_v41 = vld [vmem:[#allocation59_spill] sm:$0xff]  ;;  %2481 = vrot.lane.b32.xlu1 %v9527_v45, %s7262_s20  ;;  %v15582_v38 = vld [vmem:[#allocation125_spill] sm:$0xff]  ;;  %v15583_v2 = vld [vmem:[#allocation140_spill] sm:$0xff] }
 0x327   : > { %v1795_v39 = vsel %vm1793_vm9, %v1762_v4, %v8772_v5  ;;  %v1827_v44 = vsel %vm1826_vm10, %v1794_v54, %v9179_v27  ;;  %v1730_v51 = vsel %vm1727_vm7, %v1697_v43, %v8678_v31  ;;  %v1731_v63 = vsel %vm1727_vm7, %v1698_v30, %v15579_v41  ;;  %v15580_v31 = vld [vmem:[#allocation119_spill] sm:$0xff]  ;;  %v9577_v4 = vpop.permute.xlu0 %1571  ;;  %2703 = vrot.lane.b32.xlu0 %v9001_v49, %s7264_s19 }
 0x328   : > { %v1828_v15 = vsel %vm1826_vm10, %v1795_v39, %v8916_v3  ;;  %v1860_v58 = vsel %vm1859_vm11, %v1827_v44, %v1534_v9  ;;  %v1763_v5 = vsel %vm1760_vm8, %v1730_v51, %v8832_v10  ;;  %v1666_v3 = vsel %vm1661_vm3, %v9345_v17, %v15580_v31  ;;  %v9565_v10 = vld [vmem:[%s14888_s4 + $0xe0] sm:$0xff]  ;;  %v15591_v31 = vld [vmem:[#allocation163_spill] sm:$0xff] }
 0x329   : > { %v1861_v27 = vsel %vm1859_vm11, %v1828_v15, %v9211_v25  ;;  %6894 = vmatprep.mubr.msk.f32.mxu0 %vm1897_vm12, %v1860_v58  ;;  %v1764_v24 = vsel %vm1760_vm8, %v1731_v63, %v8630_v0  ;;  %v1796_v11 = vsel %vm1793_vm9, %v1763_v5, %v9005_v20  ;;  %v15581_v25 = vld [vmem:[#allocation114_spill] sm:$0xff]  ;;  %v1699_v17 = vsel %vm1694_vm6, %v1666_v3, %v8551_v46  ;;  %v15588_v15 = vld [vmem:[#allocation168_spill] sm:$0xff]  ;;  %v15589_v63 = vld [vmem:[#allocation141_spill] sm:$0xff] }
 0x32a   : > { %6895 = vmatmul.mubr.msk.f32.vlgmr.msra.gmra.mrb[0].mxu0 %vm1897_vm12, %v1861_v27  ;;  %v1700_v47 = vsel %vm1694_vm6, %v1667_v7, %v15581_v25  ;;  %v1797_v0 = vsel %vm1793_vm9, %v1764_v24, %v8784_v19  ;;  %v1829_v20 = vsel %vm1826_vm10, %v1796_v11, %v9188_v14  ;;  %v1538_v54 = vpop.permute.xlu1 %1537  ;;  %v1669_v35 = vsel %vm1661_vm3, %v9364_v28, %v15582_v38  ;;  %v15587_v7 = vld [vmem:[#allocation8_spill] sm:$0xff]  ;;  %v15593_v11 = vld [vmem:[#allocation151_spill] sm:$0xff] }
 0x32b   : > { %7009 = vmatpush3.msk.msra.mxu0 %vm1994_vm5, %v9099_v6  ;;  %v1732_v30 = vsel %vm1727_vm7, %v1699_v17, %v8687_v32  ;;  %v1830_v46 = vsel %vm1826_vm10, %v1797_v0, %v8935_v26  ;;  %v1862_v19 = vsel %vm1859_vm11, %v1829_v20, %v1538_v54  ;;  %v1733_v14 = vsel %vm1727_vm7, %v1700_v47, %v15583_v2  ;;  %v15584_v32 = vld [vmem:[#allocation123_spill] sm:$0xff]  ;;  %v9635_v27 = vpop.permute.xlu0 %1575  ;;  %v15594_v17 = vld [vmem:[#allocation118_spill] sm:$0xff]  ;;  %v15600_v2 = vld [vmem:[#allocation233_spill] sm:$0xff] }
 0x32c   : > { %v1765_v43 = vsel %vm1760_vm8, %v1732_v30, %v8842_v18  ;;  %v1863_v6 = vsel %vm1859_vm11, %v1830_v46, %v9233_v16  ;;  %6897 = vmatprep.mubr.msk.f32.mxu0 %vm1897_vm12, %v1862_v19  ;;  %2485 = vrot.lane.b32.xlu1 %v9565_v10, %s7262_s20  ;;  %v1668_v26 = vsel %vm1661_vm3, %v9360_v40, %v15584_v32  ;;  %v9609_v18 = vld [vmem:[%s14888_s4 + $0xf0] sm:$0xff]  ;;  %v15585_v16 = vld [vmem:[#allocation116_spill] sm:$0xff]  ;;  %v15586_v40 = vld [vmem:[#allocation149_spill] sm:$0xff]  ;;  %vm4666_vm5 = vcmask 523264  }
 0x32d   : > { %v1766_v28 = vsel %vm1760_vm8, %v1733_v14, %v8640_v62  ;;  %v1798_v39 = vsel %vm1793_vm9, %v1765_v43, %v9021_v60  ;;  %v1702_v44 = vsel %vm1694_vm6, %v1669_v35, %v15585_v16  ;;  %v1701_v9 = vsel %vm1694_vm6, %v1668_v26, %v15586_v40  ;;  %2707 = vrot.lane.b32.xlu0 %v9019_v21, %s7264_s19  ;;  %v15595_v20 = vld [vmem:[#allocation170_spill] sm:$0xff]  ;;  %v15597_v35 = vld [vmem:[#allocation144_spill] sm:$0xff]  ;;  %v15599_v19 = vld [vmem:[#allocation243_spill] sm:$0xff] }
 0x32e   : > { %6898 = vmatmul.mubr.msk.f32.gmra.mrb[2].mxu0 %vm1897_vm12, %v1863_v6  ;;  %v1799_v62 = vsel %vm1793_vm9, %v1766_v28, %v8795_v29  ;;  %v1831_v60 = vsel %vm1826_vm10, %v1798_v39, %v9199_v61  ;;  %v1542_v36 = vpop.permute.xlu1 %1541  ;;  %v1671_v51 = vsel %vm1661_vm3, %v9373_v56, %v15587_v7  ;;  %v1734_v49 = vsel %vm1727_vm7, %v1701_v9, %v15588_v15  ;;  %v15590_v56 = vld [vmem:[#allocation35_spill] sm:$0xff]  ;;  %v15596_v54 = vld [vmem:[#allocation198_spill] sm:$0xff]  ;;  %v15598_v46 = vld [vmem:[#allocation40_spill] sm:$0xff] }
 0x32f   : > { %v1832_v58 = vsel %vm1826_vm10, %v1799_v62, %v8956_v22  ;;  %v1864_v41 = vsel %vm1859_vm11, %v1831_v60, %v1542_v36  ;;  %v1735_v5 = vsel %vm1727_vm7, %v1702_v44, %v15589_v63  ;;  %v1767_v29 = vsel %vm1760_vm8, %v1734_v49, %v8850_v57  ;;  %v15601_v14 = vld [vmem:[#allocation11_spill] sm:$0xff]  ;;  %v15602_v43 = vld [vmem:[#allocation66_spill] sm:$0xff]  ;;  %v15603_v32 = vld [vmem:[#allocation164_spill] sm:$0xff]  ;;  %v9697_v49 = vpop.permute.xlu0 %1579 }
 0x330   : > { %v1865_v61 = vsel %vm1859_vm11, %v1832_v58, %v9248_v48  ;;  %6900 = vmatprep.mubr.msk.f32.mxu0 %vm1897_vm12, %v1864_v41  ;;  %2489 = vrot.lane.b32.xlu1 %v9609_v18, %s7262_s20  ;;  %v1670_v22 = vsel %vm1661_vm3, %v9369_v34, %v15590_v56  ;;  %v1768_v3 = vsel %vm1760_vm8, %v1735_v5, %v15591_v31  ;;  %v15592_v48 = vld [vmem:[#allocation103_spill] sm:$0xff]  ;;  %v15605_v16 = vld [vmem:[#allocation200_spill] sm:$0xff]  ;;  %v7143_v44 = vld [vmem:[#allocation2 + $0x150] sm:$0xff] }
 0x331   : > { %v1800_v57 = vsel %vm1793_vm9, %v1767_v29, %v9033_v53  ;;  %v9653_v24 = vsel %vm1661_vm3, %v9494_v59, %v15592_v48  ;;  %v1703_v25 = vsel %vm1694_vm6, %v1670_v22, %v15593_v11  ;;  %v1801_v34 = vsel %vm1793_vm9, %v1768_v3, %v8802_v12  ;;  %v15604_v28 = vld [vmem:[#allocation203_spill] sm:$0xff]  ;;  %2711 = vrot.lane.b32.xlu0 %v15605_v16, %s7264_s19  ;;  %v15606_v40 = vld [vmem:[#allocation104_spill] sm:$0xff]  ;;  %v15607_v62 = vld [vmem:[#allocation153_spill] sm:$0xff] }
 0x332   : > { %6901 = vmatmul.mubr.msk.f32.gmra.mrb[4].mxu0 %vm1897_vm12, %v1865_v61  ;;  %v1833_v47 = vsel %vm1826_vm10, %v1800_v57, %v9209_v55  ;;  %v1546_v53 = vpop.permute.xlu1 %1545  ;;  %v1704_v0 = vsel %vm1694_vm6, %v1671_v51, %v15594_v17  ;;  %v1736_v21 = vsel %vm1727_vm7, %v1703_v25, %v15595_v20  ;;  %v1834_v59 = vsel %vm1826_vm10, %v1801_v34, %v15596_v54  ;;  %v15608_v36 = vld [vmem:[#allocation187_spill] sm:$0xff]  ;;  %v15610_v41 = vld [vmem:[#allocation120_spill] sm:$0xff]  ;;  %v15611_v63 = vld [vmem:[#allocation69_spill] sm:$0xff] }
 0x333   : > { %v1866_v38 = vsel %vm1859_vm11, %v1833_v47, %v1546_v53  ;;  %v1737_v30 = vsel %vm1727_vm7, %v1704_v0, %v15597_v35  ;;  %v1769_v12 = vsel %vm1760_vm8, %v1736_v21, %v15598_v46  ;;  %v1867_v55 = vsel %vm1859_vm11, %v1834_v59, %v15599_v19  ;;  %v15609_v51 = vld [vmem:[#allocation235_spill] sm:$0xff]  ;;  %v15612_v29 = vld [vmem:[#allocation172_spill] sm:$0xff]  ;;  %v15614_v3 = vld [vmem:[#allocation145_spill] sm:$0xff] }
 0x334   : > { %6903 = vmatprep.mubr.msk.f32.mxu0 %vm1897_vm12, %v1866_v38  ;;  %2557 = vrot.lane.b32.xlu1 %v15600_v2, %s7263_s27  ;;  %v1672_v6 = vsel %vm1661_vm3, %v15602_v43, %v15601_v14  ;;  %v1770_v26 = vsel %vm1760_vm8, %v1737_v30, %v15603_v32  ;;  %v1802_v39 = vsel %vm1793_vm9, %v1769_v12, %v15604_v28  ;;  %v15613_v56 = vld [vmem:[#allocation199_spill] sm:$0xff]  ;;  %v15617_v47 = vld [vmem:[#allocation234_spill] sm:$0xff]  ;;  %v15618_v53 = vld [vmem:[#allocation129_spill] sm:$0xff] }
 0x335   : > { %v9689_v9 = vsel %vm482_vm0, %v7143_v44, %v15606_v40  ;;  %v1705_v60 = vsel %vm1694_vm6, %v1672_v6, %v15607_v62  ;;  %v1803_v7 = vsel %vm1793_vm9, %v1770_v26, %v15608_v36  ;;  %v1835_v15 = vsel %vm1826_vm10, %v1802_v39, %v15609_v51  ;;  %v15615_v48 = vld [vmem:[#allocation15_spill] sm:$0xff]  ;;  %v15620_v20 = vld [vmem:[#allocation165_spill] sm:$0xff]  ;;  %v15621_v54 = vld [vmem:[#allocation206_spill] sm:$0xff] }
 0x336   : > { %6904 = vmatmul.mubr.msk.f32.gmra.mrb[6].mxu0 %vm1897_vm12, %v1867_v55  ;;  %v1550_v58 = vpop.permute.xlu1 %1549  ;;  %v1706_v5 = vsel %vm1694_vm6, %v15611_v63, %v15610_v41  ;;  %v1738_v61 = vsel %vm1727_vm7, %v1705_v60, %v15612_v29  ;;  %v1836_v22 = vsel %vm1826_vm10, %v1803_v7, %v15613_v56  ;;  %v15616_v25 = vld [vmem:[#allocation247_spill] sm:$0xff]  ;;  %v15622_v38 = vld [vmem:[#allocation202_spill] sm:$0xff]  ;;  %v15625_v55 = vld [vmem:[#allocation189_spill] sm:$0xff]  ;;  %v9748_v63 = vpop.permute.xlu0 %1583 }
 0x337   : > { %v1868_v31 = vsel %vm1859_vm11, %v1835_v15, %v1550_v58  ;;  %v1739_v57 = vsel %vm1727_vm7, %v1706_v5, %v15614_v3  ;;  %v1771_v11 = vsel %vm1760_vm8, %v1738_v61, %v15615_v48  ;;  %v1869_v34 = vsel %vm1859_vm11, %v1836_v22, %v15616_v25  ;;  %v15619_v17 = vld [vmem:[#allocation67_spill] sm:$0xff]  ;;  %2715 = vrot.lane.b32.xlu0 %v15622_v38, %s7264_s19  ;;  %v15623_v30 = vld [vmem:[#allocation106_spill] sm:$0xff]  ;;  %v15626_v43 = vld [vmem:[#allocation237_spill] sm:$0xff] }
 0x338   : > { %6906 = vmatprep.mubr.msk.f32.mxu0 %vm1897_vm12, %v1868_v31  ;;  %2561 = vrot.lane.b32.xlu1 %v15617_v47, %s7263_s27  ;;  %v1674_v0 = vsel %vm1661_vm3, %v15619_v17, %v15618_v53  ;;  %v1772_v21 = vsel %vm1760_vm8, %v1739_v57, %v15620_v20  ;;  %v1804_v59 = vsel %vm1793_vm9, %v1771_v11, %v15621_v54  ;;  %v7144_v35 = vld [vmem:[#allocation2 + $0x158] sm:$0xff]  ;;  %v15627_v26 = vld [vmem:[#allocation122_spill] sm:$0xff]  ;;  %v15630_v40 = vld [vmem:[#allocation201_spill] sm:$0xff] }
 0x339   : > { %v1658_v46 = vsel %vm482_vm0, %v7144_v35, %v15623_v30  ;;  %v15624_v12 = vld [vmem:[#allocation155_spill] sm:$0xff]  ;;  %v1805_v14 = vsel %vm1793_vm9, %v1772_v21, %v15625_v55  ;;  %v1837_v6 = vsel %vm1826_vm10, %v1804_v59, %v15626_v43  ;;  %v15629_v16 = vld [vmem:[#allocation174_spill] sm:$0xff]  ;;  %v15634_v5 = vld [vmem:[#allocation236_spill] sm:$0xff] }
 0x33a   : > { %6907 = vmatmul.mubr.msk.f32.gmra.mrb[8].mxu0 %vm1897_vm12, %v1869_v34  ;;  %v1707_v19 = vsel %vm1694_vm6, %v1674_v0, %v15624_v12  ;;  %v1554_v32 = vpop.permute.xlu1 %1553  ;;  %v15628_v28 = vld [vmem:[#allocation71_spill] sm:$0xff]  ;;  %v1838_v62 = vsel %vm1826_vm10, %v1805_v14, %v15630_v40  ;;  %v15631_v36 = vld [vmem:[#allocation146_spill] sm:$0xff]  ;;  %v15636_v61 = vld [vmem:[#allocation68_spill] sm:$0xff] }
 0x33b   : > { %v1708_v39 = vsel %vm1694_vm6, %v15628_v28, %v15627_v26  ;;  %v1740_v44 = vsel %vm1727_vm7, %v1707_v19, %v15629_v16  ;;  %v1870_v60 = vsel %vm1859_vm11, %v1837_v6, %v1554_v32  ;;  %v15632_v51 = vld [vmem:[#allocation19_spill] sm:$0xff]  ;;  %v15637_v22 = vld [vmem:[#allocation21_spill] sm:$0xff]  ;;  %v15642_v17 = vld [vmem:[#allocation190_spill] sm:$0xff] }
 0x33c   : > { %v1741_v7 = vsel %vm1727_vm7, %v1708_v39, %v15631_v36  ;;  %v1773_v15 = vsel %vm1760_vm8, %v1740_v44, %v15632_v51  ;;  %v15633_v58 = vld [vmem:[#allocation251_spill] sm:$0xff]  ;;  %6909 = vmatprep.mubr.msk.f32.mxu0 %vm1897_vm12, %v1870_v60  ;;  %2565 = vrot.lane.b32.xlu1 %v15634_v5, %s7263_s27  ;;  %v15638_v3 = vld [vmem:[#allocation209_spill] sm:$0xff]  ;;  %v15644_v59 = vld [vmem:[#allocation124_spill] sm:$0xff] }
 0x33d   : > { %v1871_v41 = vsel %vm1859_vm11, %v1838_v62, %v15633_v58  ;;  %v15635_v29 = vld [vmem:[#allocation131_spill] sm:$0xff]  ;;  %v1774_v31 = vsel %vm1760_vm8, %v1741_v7, %v15637_v22  ;;  %v1806_v57 = vsel %vm1793_vm9, %v1773_v15, %v15638_v3  ;;  %v15639_v48 = vld [vmem:[#allocation205_spill] sm:$0xff]  ;;  %v15646_v30 = vld [vmem:[#allocation176_spill] sm:$0xff] }
 0x33e   : > { %v1676_v56 = vsel %vm1661_vm3, %v15636_v61, %v15635_v29  ;;  %6910 = vmatmul.mubr.msk.f32.gmra.mrb[10].mxu0 %vm1897_vm12, %v1871_v41  ;;  %2719 = vrot.lane.b32.xlu0 %v15639_v48, %s7264_s19  ;;  %v15640_v11 = vld [vmem:[#allocation105_spill] sm:$0xff]  ;;  %v1807_v0 = vsel %vm1793_vm9, %v1774_v31, %v15642_v17  ;;  %v15643_v20 = vld [vmem:[#allocation239_spill] sm:$0xff]  ;;  %v1558_v54 = vpop.permute.xlu1 %1557  ;;  %v15647_v19 = vld [vmem:[#allocation204_spill] sm:$0xff] }
 0x33f   : > { %v9765_v25 = vsel %vm1661_vm3, %v1658_v46, %v15640_v11  ;;  %v15641_v34 = vld [vmem:[#allocation157_spill] sm:$0xff]  ;;  %v1839_v21 = vsel %vm1826_vm10, %v1806_v57, %v15643_v20  ;;  %v1840_v46 = vsel %vm1826_vm10, %v1807_v0, %v15647_v19  ;;  %v15648_v14 = vld [vmem:[#allocation147_spill] sm:$0xff]  ;;  %v15650_v26 = vld [vmem:[#allocation58_spill] sm:$0xff]  ;;  %v9810_v57 = vpop.permute.xlu0 %1587 }
 0x340   : > { %v1709_v53 = vsel %vm1694_vm6, %v1676_v56, %v15641_v34  ;;  %v15645_v38 = vld [vmem:[#allocation73_spill] sm:$0xff]  ;;  %v1872_v55 = vsel %vm1859_vm11, %v1839_v21, %v1558_v54  ;;  %v15649_v6 = vld [vmem:[#allocation23_spill] sm:$0xff]  ;;  %v1873_v28 = vsel %vm1859_vm11, %v1840_v46, %v15650_v26  ;;  %v15651_v39 = vld [vmem:[#allocation238_spill] sm:$0xff] }
 0x341   : > { %v1710_v35 = vsel %vm1694_vm6, %v15645_v38, %v15644_v59  ;;  %v1742_v12 = vsel %vm1727_vm7, %v1709_v53, %v15646_v30  ;;  %6912 = vmatprep.mubr.msk.f32.mxu0 %vm1897_vm12, %v1872_v55  ;;  %2569 = vrot.lane.b32.xlu1 %v15651_v39, %s7263_s27  ;;  %v15652_v16 = vld [vmem:[#allocation133_spill] sm:$0xff]  ;;  %v15653_v44 = vld [vmem:[#allocation142_spill] sm:$0xff]  ;;  %v15655_v36 = vld [vmem:[#allocation211_spill] sm:$0xff] }
 0x342   : > { %v1743_v43 = vsel %vm1727_vm7, %v1710_v35, %v15648_v14  ;;  %v1775_v32 = vsel %vm1760_vm8, %v1742_v12, %v15649_v6  ;;  %v1678_v40 = vsel %vm1661_vm3, %v15653_v44, %v15652_v16  ;;  %v15654_v62 = vld [vmem:[#allocation166_spill] sm:$0xff]  ;;  %6913 = vmatmul.mubr.msk.f32.gmra.mrb[12].mxu0 %vm1897_vm12, %v1873_v28  ;;  %v15656_v51 = vld [vmem:[#allocation207_spill] sm:$0xff]  ;;  %v7145_v15 = vld [vmem:[#allocation2 + $0x168] sm:$0xff]  ;;  %v1562_v48 = vpop.permute.xlu1 %1561 }
 0x343   : > { %v1776_v60 = vsel %vm1760_vm8, %v1743_v43, %v15654_v62  ;;  %v1808_v7 = vsel %vm1793_vm9, %v1775_v32, %v15655_v36  ;;  %2723 = vrot.lane.b32.xlu0 %v15656_v51, %s7264_s19  ;;  %v15657_v58 = vld [vmem:[#allocation107_spill] sm:$0xff]  ;;  %v15660_v31 = vld [vmem:[#allocation241_spill] sm:$0xff]  ;;  %v15661_v11 = vld [vmem:[#allocation126_spill] sm:$0xff] }
 0x344   : > { %v9802_v41 = vsel %vm482_vm0, %v7145_v15, %v15657_v58  ;;  %v15658_v29 = vld [vmem:[#allocation159_spill] sm:$0xff]  ;;  %v1841_v3 = vsel %vm1826_vm10, %v1808_v7, %v15660_v31  ;;  %v1712_v34 = vsel %vm1694_vm6, %v9446_v8, %v15661_v11  ;;  %v15662_v53 = vld [vmem:[#allocation178_spill] sm:$0xff]  ;;  %v15663_v0 = vld [vmem:[#allocation208_spill] sm:$0xff] }
 0x345   : > { %v1711_v61 = vsel %vm1694_vm6, %v1678_v40, %v15658_v29  ;;  %v15659_v56 = vld [vmem:[#allocation191_spill] sm:$0xff]  ;;  %v1874_v21 = vsel %vm1859_vm11, %v1841_v3, %v1562_v48  ;;  %v15664_v54 = vld [vmem:[#allocation148_spill] sm:$0xff]  ;;  %v15665_v38 = vld [vmem:[#allocation26_spill] sm:$0xff] }
 0x346   : > { %v1809_v22 = vsel %vm1793_vm9, %v1776_v60, %v15659_v56  ;;  %v1744_v17 = vsel %vm1727_vm7, %v1711_v61, %v15662_v53  ;;  %v1745_v59 = vsel %vm1727_vm7, %v1712_v34, %v15664_v54  ;;  %v15666_v30 = vld [vmem:[#allocation74_spill] sm:$0xff]  ;;  %6915 = vmatprep.mubr.msk.f32.mxu0 %vm1897_vm12, %v1874_v21  ;;  %v15667_v8 = vld [vmem:[#allocation240_spill] sm:$0xff]  ;;  %v15668_v19 = vld [vmem:[#allocation135_spill] sm:$0xff]  ;;  %v1566_v15 = vpop.permute.xlu1 %1565 }
 0x347   : > { %v1842_v20 = vsel %vm1826_vm10, %v1809_v22, %v15663_v0  ;;  %v1777_v35 = vsel %vm1760_vm8, %v1744_v17, %v15665_v38  ;;  %2573 = vrot.lane.b32.xlu1 %v15667_v8, %s7263_s27  ;;  %v15669_v46 = vld [vmem:[#allocation70_spill] sm:$0xff]  ;;  %v15670_v14 = vld [vmem:[#allocation167_spill] sm:$0xff]  ;;  %v15673_v16 = vld [vmem:[#allocation109_spill] sm:$0xff] }
 0x348   : > { %v1875_v12 = vsel %vm1859_vm11, %v1842_v20, %v15666_v30  ;;  %v1680_v55 = vsel %vm1661_vm3, %v15669_v46, %v15668_v19  ;;  %v1778_v43 = vsel %vm1760_vm8, %v1745_v59, %v15670_v14  ;;  %v15671_v6 = vld [vmem:[#allocation214_spill] sm:$0xff]  ;;  %v15675_v60 = vld [vmem:[#allocation192_spill] sm:$0xff]  ;;  %v15678_v29 = vld [vmem:[#allocation127_spill] sm:$0xff]  ;;  %v9865_v20 = vpop.permute.xlu0 %1591 }
 0x349   : > { %v1810_v32 = vsel %vm1793_vm9, %v1777_v35, %v15671_v6  ;;  %6916 = vmatmul.mubr.msk.f32.gmra.mrb[14].mxu0 %vm1897_vm12, %v1875_v12  ;;  %v15672_v26 = vld [vmem:[#allocation210_spill] sm:$0xff]  ;;  %v1811_v36 = vsel %vm1793_vm9, %v1778_v43, %v15675_v60  ;;  %v15676_v7 = vld [vmem:[#allocation244_spill] sm:$0xff]  ;;  %v1714_v61 = vsel %vm1694_vm6, %v9452_v42, %v15678_v29  ;;  %v15682_v53 = vld [vmem:[#allocation29_spill] sm:$0xff] }
 0x34a   : > { %2727 = vrot.lane.b32.xlu0 %v15672_v26, %s7264_s19  ;;  %v7146_v28 = vld [vmem:[#allocation2 + $0x170] sm:$0xff]  ;;  %v1843_v51 = vsel %vm1826_vm10, %v1810_v32, %v15676_v7  ;;  %v15677_v58 = vld [vmem:[#allocation4_spill] sm:$0xff]  ;;  %v15684_v21 = vld [vmem:[#allocation137_spill] sm:$0xff]  ;;  %v1570_v43 = vpop.permute.xlu1 %1569 }
 0x34b   : > { %v9841_v44 = vsel %vm482_vm0, %v7146_v28, %v15673_v16  ;;  %v15674_v40 = vld [vmem:[#allocation78_spill] sm:$0xff]  ;;  %7010 = vmatprep.mubr.msk.f32.mxu0 %vm482_vm0, %v15677_v58  ;;  %v15679_v56 = vld [vmem:[#allocation180_spill] sm:$0xff]  ;;  %v1876_v48 = vsel %vm1859_vm11, %v1843_v51, %v1566_v15  ;;  %v1682_v54 = vsel %vm1661_vm3, %v9442_v1, %v15684_v21  ;;  %v15685_v59 = vld [vmem:[#allocation169_spill] sm:$0xff] }
 0x34c   : > { %v1713_v62 = vsel %vm1694_vm6, %v1680_v55, %v15674_v40  ;;  %v15680_v31 = vld [vmem:[#allocation212_spill] sm:$0xff]  ;;  %v15681_v11 = vld [vmem:[#allocation150_spill] sm:$0xff]  ;;  %6918 = vmatprep.mubr.msk.f32.mxu1 %vm1897_vm12, %v1876_v48  ;;  %v15686_v35 = vld [vmem:[#allocation217_spill] sm:$0xff] }
 0x34d   : > { %v1746_v22 = vsel %vm1727_vm7, %v1713_v62, %v15679_v56  ;;  %v1844_v3 = vsel %vm1826_vm10, %v1811_v36, %v15680_v31  ;;  %v1747_v34 = vsel %vm1727_vm7, %v1714_v61, %v15681_v11  ;;  %v15683_v42 = vld [vmem:[#allocation242_spill] sm:$0xff]  ;;  %v15688_v12 = vld [vmem:[#allocation79_spill] sm:$0xff]  ;;  %v15689_v46 = vld [vmem:[#allocation193_spill] sm:$0xff] }
 0x34e   : > { %v1779_v17 = vsel %vm1760_vm8, %v1746_v22, %v15682_v53  ;;  %v1877_v0 = vsel %vm1859_vm11, %v1844_v3, %v9514_v52  ;;  %2577 = vrot.lane.b32.xlu1 %v15683_v42, %s7263_s27  ;;  %v1780_v38 = vsel %vm1760_vm8, %v1747_v34, %v15685_v59  ;;  %v15687_v52 = vld [vmem:[#allocation5_spill] sm:$0xff]  ;;  %v1715_v19 = vsel %vm1694_vm6, %v1682_v54, %v15688_v12  ;;  %v15690_v14 = vld [vmem:[#allocation246_spill] sm:$0xff]  ;;  %v15695_v62 = vld [vmem:[#allocation216_spill] sm:$0xff]  ;;  %v1574_v54 = vpop.permute.xlu1 %1573 }
 0x34f   : > { %v1812_v30 = vsel %vm1793_vm9, %v1779_v17, %v15686_v35  ;;  %6919 = vmatmul.mubr.msk.f32.vlgmr.msra.gmra.mrb[0].mxu1 %vm1897_vm12, %v1877_v0  ;;  %7011 = vmatmul.mubr.msk.f32.vlgmr.msra.gmra.mrb[16].mxu0 %vm482_vm0, %v15687_v52  ;;  %v1813_v55 = vsel %vm1793_vm9, %v1780_v38, %v15689_v46  ;;  %v15691_v6 = vld [vmem:[#allocation6_spill] sm:$0xff]  ;;  %v15692_v32 = vld [vmem:[#allocation213_spill] sm:$0xff]  ;;  %v15696_v7 = vld [vmem:[#allocation152_spill] sm:$0xff]  ;;  %v9921_v0 = vpop.permute.xlu0 %1595 }
 0x350   : > { %v1845_v1 = vsel %vm1826_vm10, %v1812_v30, %v15690_v14  ;;  %7013 = vmatprep.mubr.msk.f32.mxu0 %vm482_vm0, %v15691_v6  ;;  %2731 = vrot.lane.b32.xlu0 %v15692_v32, %s7264_s19  ;;  %v15693_v26 = vld [vmem:[#allocation38_spill] sm:$0xff]  ;;  %v1846_v60 = vsel %vm1826_vm10, %v1813_v55, %v15695_v62  ;;  %v15697_v15 = vld [vmem:[#allocation195_spill] sm:$0xff]  ;;  %v15699_v61 = vld [vmem:[#allocation32_spill] sm:$0xff] }
 0x351   : > { %v1716_v28 = vsel %vm1694_vm6, %v9460_v13, %v15693_v26  ;;  %v15694_v16 = vld [vmem:[#allocation182_spill] sm:$0xff]  ;;  %v1878_v36 = vsel %vm1859_vm11, %v1845_v1, %v1570_v43  ;;  %v1879_v29 = vsel %vm1859_vm11, %v1846_v60, %v9577_v4  ;;  %v15698_v13 = vld [vmem:[#allocation245_spill] sm:$0xff]  ;;  %v1684_v56 = vsel %vm1661_vm3, %v9456_v50, %v15699_v61  ;;  %v15700_v22 = vld [vmem:[#allocation171_spill] sm:$0xff] }
 0x352   : > { %v1748_v40 = vsel %vm1727_vm7, %v1715_v19, %v15694_v16  ;;  %v1749_v51 = vsel %vm1727_vm7, %v1716_v28, %v15696_v7  ;;  %6921 = vmatprep.mubr.msk.f32.mxu1 %vm1897_vm12, %v1878_v36  ;;  %2581 = vrot.lane.b32.xlu1 %v15698_v13, %s7263_s27  ;;  %v15701_v3 = vld [vmem:[#allocation219_spill] sm:$0xff]  ;;  %v15703_v4 = vld [vmem:[#allocation82_spill] sm:$0xff]  ;;  %v15705_v50 = vld [vmem:[#allocation249_spill] sm:$0xff] }
 0x353   : > { %v1781_v58 = vsel %vm1760_vm8, %v1748_v40, %v15697_v15  ;;  %v1782_v31 = vsel %vm1760_vm8, %v1749_v51, %v15700_v22  ;;  %6922 = vmatmul.mubr.msk.f32.gmra.mrb[2].mxu1 %vm1897_vm12, %v1879_v29  ;;  %v15702_v11 = vld [vmem:[#allocation7_spill] sm:$0xff]  ;;  %v1717_v34 = vsel %vm1694_vm6, %v1684_v56, %v15703_v4  ;;  %v15704_v53 = vld [vmem:[#allocation194_spill] sm:$0xff]  ;;  %v15706_v59 = vld [vmem:[#allocation9_spill] sm:$0xff]  ;;  %v1578_v56 = vpop.permute.xlu1 %1577 }
 0x354   : > { %v1814_v48 = vsel %vm1793_vm9, %v1781_v58, %v15701_v3  ;;  %7014 = vmatmul.mubr.msk.f32.gmra.mrb[18].mxu0 %vm482_vm0, %v15702_v11  ;;  %v1815_v17 = vsel %vm1793_vm9, %v1782_v31, %v15704_v53  ;;  %v15707_v38 = vld [vmem:[#allocation215_spill] sm:$0xff]  ;;  %v15708_v35 = vld [vmem:[#allocation128_spill] sm:$0xff]  ;;  %v15711_v14 = vld [vmem:[#allocation154_spill] sm:$0xff]  ;;  %v9964_v31 = vpop.permute.xlu0 %2431 }
 0x355   : > { %v1847_v21 = vsel %vm1826_vm10, %v1814_v48, %v15705_v50  ;;  %7016 = vmatprep.mubr.msk.f32.mxu0 %vm482_vm0, %v15706_v59  ;;  %2735 = vrot.lane.b32.xlu0 %v15707_v38, %s7264_s19  ;;  %v1718_v30 = vsel %vm1694_vm6, %v9470_v23, %v15708_v35  ;;  %v15709_v52 = vld [vmem:[#allocation183_spill] sm:$0xff]  ;;  %v15710_v19 = vld [vmem:[#allocation220_spill] sm:$0xff]  ;;  %v15716_v40 = vld [vmem:[#allocation173_spill] sm:$0xff] }
 0x356   : > { %v1750_v12 = vsel %vm1727_vm7, %v1717_v34, %v15709_v52  ;;  %v1848_v46 = vsel %vm1826_vm10, %v1815_v17, %v15710_v19  ;;  %v1880_v55 = vsel %vm1859_vm11, %v1847_v21, %v1574_v54  ;;  %v1751_v1 = vsel %vm1727_vm7, %v1718_v30, %v15711_v14  ;;  %v15712_v43 = vld [vmem:[#allocation36_spill] sm:$0xff]  ;;  %v15714_v26 = vld [vmem:[#allocation139_spill] sm:$0xff]  ;;  %v15717_v60 = vld [vmem:[#allocation222_spill] sm:$0xff] }
 0x357   : > { %v1783_v6 = vsel %vm1760_vm8, %v1750_v12, %v15712_v43  ;;  %v1881_v32 = vsel %vm1859_vm11, %v1848_v46, %v9635_v27  ;;  %6924 = vmatprep.mubr.msk.f32.mxu1 %vm1897_vm12, %v1880_v55  ;;  %v15713_v23 = vld [vmem:[#allocation248_spill] sm:$0xff]  ;;  %v1784_v62 = vsel %vm1760_vm8, %v1751_v1, %v15716_v40  ;;  %v15718_v7 = vld [vmem:[#allocation10_spill] sm:$0xff]  ;;  %v15719_v27 = vld [vmem:[#allocation85_spill] sm:$0xff] }
 0x358   : > { %2585 = vrot.lane.b32.xlu1 %v15713_v23, %s7263_s27  ;;  %v15715_v28 = vld [vmem:[#allocation76_spill] sm:$0xff]  ;;  %v1816_v36 = vsel %vm1793_vm9, %v1783_v6, %v15717_v60  ;;  %6925 = vmatmul.mubr.msk.f32.gmra.mrb[4].mxu1 %vm1897_vm12, %v1881_v32  ;;  %v15720_v15 = vld [vmem:[#allocation43_spill] sm:$0xff]  ;;  %v15723_v3 = vld [vmem:[#allocation218_spill] sm:$0xff] }
 0x359   : > { %v1686_v16 = vsel %vm1661_vm3, %v15715_v28, %v15714_v26  ;;  %7017 = vmatmul.mubr.msk.f32.gmra.mrb[20].mxu0 %vm482_vm0, %v15718_v7  ;;  %v1817_v58 = vsel %vm1793_vm9, %v1784_v62, %v15720_v15  ;;  %v15721_v29 = vld [vmem:[#allocation252_spill] sm:$0xff]  ;;  %2739 = vrot.lane.b32.xlu0 %v15723_v3, %s7264_s19  ;;  %v15724_v48 = vld [vmem:[#allocation130_spill] sm:$0xff]  ;;  %v15725_v11 = vld [vmem:[#allocation77_spill] sm:$0xff] }
 0x35a   : > { %v1719_v51 = vsel %vm1694_vm6, %v1686_v16, %v15719_v27  ;;  %v1849_v61 = vsel %vm1826_vm10, %v1816_v36, %v15721_v29  ;;  %v15722_v22 = vld [vmem:[#allocation12_spill] sm:$0xff]  ;;  %v1720_v4 = vsel %vm1694_vm6, %v15725_v11, %v15724_v48  ;;  %v15730_v52 = vld [vmem:[#allocation250_spill] sm:$0xff]  ;;  %v15731_v12 = vld [vmem:[#allocation41_spill] sm:$0xff]  ;;  %v1582_v16 = vpop.permute.xlu1 %1581  ;;  %v10022_v48 = vpop.permute.xlu0 %2435 }
 0x35b   : > { %7019 = vmatprep.mubr.msk.f32.mxu0 %vm482_vm0, %v15722_v22  ;;  %v15726_v34 = vld [vmem:[#allocation184_spill] sm:$0xff]  ;;  %v1882_v21 = vsel %vm1859_vm11, %v1849_v61, %v1578_v56  ;;  %v1688_v19 = vsel %vm1661_vm3, %v9490_v37, %v15731_v12  ;;  %v15732_v46 = vld [vmem:[#allocation175_spill] sm:$0xff]  ;;  %v15733_v14 = vld [vmem:[#allocation225_spill] sm:$0xff] }
 0x35c   : > { %v1752_v53 = vsel %vm1727_vm7, %v1719_v51, %v15726_v34  ;;  %v15727_v17 = vld [vmem:[#allocation224_spill] sm:$0xff]  ;;  %6927 = vmatprep.mubr.msk.f32.mxu1 %vm1897_vm12, %v1882_v21  ;;  %2589 = vrot.lane.b32.xlu1 %v15730_v52, %s7263_s27  ;;  %v15734_v43 = vld [vmem:[#allocation14_spill] sm:$0xff]  ;;  %v15736_v32 = vld [vmem:[#allocation45_spill] sm:$0xff] }
 0x35d   : > { %v1850_v50 = vsel %vm1826_vm10, %v1817_v58, %v15727_v17  ;;  %v15728_v54 = vld [vmem:[#allocation156_spill] sm:$0xff]  ;;  %7020 = vmatmul.mubr.msk.f32.gmra.mrb[22].mxu0 %vm482_vm0, %v15734_v43  ;;  %v15737_v28 = vld [vmem:[#allocation254_spill] sm:$0xff]  ;;  %v15739_v62 = vld [vmem:[#allocation221_spill] sm:$0xff] }
 0x35e   : > { %v1753_v59 = vsel %vm1727_vm7, %v1720_v4, %v15728_v54  ;;  %v15729_v38 = vld [vmem:[#allocation64_spill] sm:$0xff]  ;;  %v1883_v30 = vsel %vm1859_vm11, %v1850_v50, %v9697_v49  ;;  %v15735_v49 = vld [vmem:[#allocation162_spill] sm:$0xff]  ;;  %2743 = vrot.lane.b32.xlu0 %v15739_v62, %s7264_s19  ;;  %v15741_v7 = vld [vmem:[#allocation185_spill] sm:$0xff] }
 0x35f   : > { %v1785_v35 = vsel %vm1760_vm8, %v1752_v53, %v15729_v38  ;;  %v1786_v55 = vsel %vm1760_vm8, %v1753_v59, %v15732_v46  ;;  %6928 = vmatmul.mubr.msk.f32.gmra.mrb[6].mxu1 %vm1897_vm12, %v1883_v30  ;;  %v1721_v6 = vsel %vm1694_vm6, %v1688_v19, %v15735_v49  ;;  %v15738_v40 = vld [vmem:[#allocation16_spill] sm:$0xff]  ;;  %v15742_v51 = vld [vmem:[#allocation227_spill] sm:$0xff]  ;;  %v15743_v29 = vld [vmem:[#allocation158_spill] sm:$0xff]  ;;  %v1586_v30 = vpop.permute.xlu1 %1585 }
 0x360   : > { %v1818_v1 = vsel %vm1793_vm9, %v1785_v35, %v15733_v14  ;;  %v1819_v26 = vsel %vm1793_vm9, %v1786_v55, %v15736_v32  ;;  %7022 = vmatprep.mubr.msk.f32.mxu0 %vm482_vm0, %v15738_v40  ;;  %v15740_v60 = vld [vmem:[#allocation132_spill] sm:$0xff]  ;;  %v1754_v27 = vsel %vm1727_vm7, %v1721_v6, %v15741_v7  ;;  %v15744_v56 = vld [vmem:[#allocation46_spill] sm:$0xff]  ;;  %v15746_v11 = vld [vmem:[#allocation143_spill] sm:$0xff] }
 0x361   : > { %v1851_v37 = vsel %vm1826_vm10, %v1818_v1, %v15737_v28  ;;  %v1722_v36 = vsel %vm1694_vm6, %v9653_v24, %v15740_v60  ;;  %v1852_v15 = vsel %vm1826_vm10, %v1819_v26, %v15742_v51  ;;  %v1787_v22 = vsel %vm1760_vm8, %v1754_v27, %v15744_v56  ;;  %v15745_v24 = vld [vmem:[#allocation253_spill] sm:$0xff]  ;;  %v15748_v17 = vld [vmem:[#allocation226_spill] sm:$0xff]  ;;  %v15751_v59 = vld [vmem:[#allocation48_spill] sm:$0xff] }
 0x362   : > { %v1884_v58 = vsel %vm1859_vm11, %v1851_v37, %v1582_v16  ;;  %v1755_v61 = vsel %vm1727_vm7, %v1722_v36, %v15743_v29  ;;  %v1885_v3 = vsel %vm1859_vm11, %v1852_v15, %v9748_v63  ;;  %2593 = vrot.lane.b32.xlu1 %v15745_v24, %s7263_s27  ;;  %v1690_v4 = vsel %vm1661_vm3, %v9689_v9, %v15746_v11  ;;  %v15747_v34 = vld [vmem:[#allocation177_spill] sm:$0xff]  ;;  %v15749_v63 = vld [vmem:[#allocation18_spill] sm:$0xff]  ;;  %v15753_v12 = vld [vmem:[#allocation20_spill] sm:$0xff] }
 0x363   : > { %6930 = vmatprep.mubr.msk.f32.mxu1 %vm1897_vm12, %v1884_v58  ;;  %v1788_v53 = vsel %vm1760_vm8, %v1755_v61, %v15747_v34  ;;  %v1820_v50 = vsel %vm1793_vm9, %v1787_v22, %v15748_v17  ;;  %7023 = vmatmul.mubr.msk.f32.gmra.mrb[24].mxu0 %vm482_vm0, %v15749_v63  ;;  %v15750_v21 = vld [vmem:[#allocation13_spill] sm:$0xff]  ;;  %v15754_v19 = vld [vmem:[#allocation223_spill] sm:$0xff]  ;;  %v15755_v46 = vld [vmem:[#allocation134_spill] sm:$0xff] }
 0x364   : > { %6931 = vmatmul.mubr.msk.f32.gmra.mrb[8].mxu1 %vm1897_vm12, %v1885_v3  ;;  %v1723_v54 = vsel %vm1694_vm6, %v1690_v4, %v15750_v21  ;;  %v1821_v38 = vsel %vm1793_vm9, %v1788_v53, %v15751_v59  ;;  %v15752_v35 = vld [vmem:[#allocation65_spill] sm:$0xff]  ;;  %7025 = vmatprep.mubr.msk.f32.mxu0 %vm482_vm0, %v15753_v12  ;;  %v1724_v55 = vsel %vm1694_vm6, %v9765_v25, %v15755_v46  ;;  %v15756_v14 = vld [vmem:[#allocation186_spill] sm:$0xff]  ;;  %v15758_v32 = vld [vmem:[#allocation160_spill] sm:$0xff]  ;;  %v1590_v3 = vpop.permute.xlu1 %1589  ;;  %v10082_v4 = vpop.permute.xlu0 %2439 }
 0x365   : > { %v1853_v9 = vsel %vm1826_vm10, %v1820_v50, %v15752_v35  ;;  %2747 = vrot.lane.b32.xlu0 %v15754_v19, %s7264_s19  ;;  %v1756_v1 = vsel %vm1727_vm7, %v1723_v54, %v15756_v14  ;;  %v15757_v43 = vld [vmem:[#allocation229_spill] sm:$0xff]  ;;  %v1757_v26 = vsel %vm1727_vm7, %v1724_v55, %v15758_v32  ;;  %v15759_v28 = vld [vmem:[#allocation196_spill] sm:$0xff]  ;;  %v15760_v25 = vld [vmem:[#allocation62_spill] sm:$0xff] }
 0x366   : > { %v1854_v49 = vsel %vm1826_vm10, %v1821_v38, %v15757_v43  ;;  %v1886_v6 = vsel %vm1859_vm11, %v1853_v9, %v1586_v30  ;;  %v1789_v37 = vsel %vm1760_vm8, %v1756_v1, %v15759_v28  ;;  %2597 = vrot.lane.b32.xlu1 %v15760_v25, %s7263_s27  ;;  %v15761_v40 = vld [vmem:[#allocation51_spill] sm:$0xff]  ;;  %v15763_v7 = vld [vmem:[#allocation228_spill] sm:$0xff]  ;;  %v15764_v51 = vld [vmem:[#allocation22_spill] sm:$0xff] }
 0x367   : > { %v1887_v16 = vsel %vm1859_vm11, %v1854_v49, %v9810_v57  ;;  %6933 = vmatprep.mubr.msk.f32.mxu1 %vm1897_vm12, %v1886_v6  ;;  %v1692_v62 = vsel %vm1661_vm3, %v9802_v41, %v15761_v40  ;;  %v15762_v60 = vld [vmem:[#allocation179_spill] sm:$0xff]  ;;  %v1822_v27 = vsel %vm1793_vm9, %v1789_v37, %v15763_v7  ;;  %7026 = vmatmul.mubr.msk.f32.gmra.mrb[26].mxu0 %vm482_vm0, %v15764_v51  ;;  %v15765_v57 = vld [vmem:[#allocation108_spill] sm:$0xff]  ;;  %v15766_v58 = vld [vmem:[#allocation17_spill] sm:$0xff] }
 0x368   : > { %v1790_v36 = vsel %vm1760_vm8, %v1757_v26, %v15762_v60  ;;  %6934 = vmatmul.mubr.msk.f32.gmra.mrb[10].mxu1 %vm1897_vm12, %v1887_v16  ;;  %v1693_v15 = vsel %vm1661_vm3, %v9841_v44, %v15765_v57  ;;  %v1725_v29 = vsel %vm1694_vm6, %v1692_v62, %v15766_v58  ;;  %v15767_v61 = vld [vmem:[#allocation50_spill] sm:$0xff]  ;;  %v15768_v56 = vld [vmem:[#allocation75_spill] sm:$0xff]  ;;  %v15769_v11 = vld [vmem:[#allocation24_spill] sm:$0xff]  ;;  %v1594_v6 = vpop.permute.xlu1 %1593  ;;  %v10121_v40 = vpop.permute.xlu0 %2443 }
 0x369   : > { %v1823_v41 = vsel %vm1793_vm9, %v1790_v36, %v15767_v61  ;;  %v1855_v22 = vsel %vm1826_vm10, %v1822_v27, %v15768_v56  ;;  %7028 = vmatprep.mubr.msk.f32.mxu0 %vm482_vm0, %v15769_v11  ;;  %v15770_v34 = vld [vmem:[#allocation136_spill] sm:$0xff]  ;;  %v15772_v50 = vld [vmem:[#allocation231_spill] sm:$0xff]  ;;  %v15773_v54 = vld [vmem:[#allocation161_spill] sm:$0xff] }
 0x36a   : > { %v1726_v53 = vsel %vm1694_vm6, %v1693_v15, %v15770_v34  ;;  %v15771_v17 = vld [vmem:[#allocation188_spill] sm:$0xff]  ;;  %v1856_v63 = vsel %vm1826_vm10, %v1823_v41, %v15772_v50  ;;  %v1888_v21 = vsel %vm1859_vm11, %v1855_v22, %v1590_v3  ;;  %v15774_v38 = vld [vmem:[#allocation197_spill] sm:$0xff]  ;;  %v15777_v46 = vld [vmem:[#allocation230_spill] sm:$0xff] }
 0x36b   : > { %v1758_v44 = vsel %vm1727_vm7, %v1725_v29, %v15771_v17  ;;  %v1759_v59 = vsel %vm1727_vm7, %v1726_v53, %v15773_v54  ;;  %v1889_v9 = vsel %vm1859_vm11, %v1856_v63, %v9865_v20  ;;  %6936 = vmatprep.mubr.msk.f32.mxu1 %vm1897_vm12, %v1888_v21  ;;  %v15775_v30 = vld [vmem:[#allocation72_spill] sm:$0xff]  ;;  %v15776_v12 = vld [vmem:[#allocation181_spill] sm:$0xff]  ;;  %v15779_v1 = vld [vmem:[#allocation54_spill] sm:$0xff] }
 0x36c   : > { %v1791_v35 = vsel %vm1760_vm8, %v1758_v44, %v15774_v38  ;;  %2601 = vrot.lane.b32.xlu1 %v15775_v30, %s7263_s27  ;;  %v1792_v19 = vsel %vm1760_vm8, %v1759_v59, %v15776_v12  ;;  %6937 = vmatmul.mubr.msk.f32.gmra.mrb[12].mxu1 %vm1897_vm12, %v1889_v9  ;;  %v15778_v14 = vld [vmem:[#allocation25_spill] sm:$0xff]  ;;  %v15780_v20 = vld [vmem:[#allocation80_spill] sm:$0xff]  ;;  %v15781_v32 = vld [vmem:[#allocation27_spill] sm:$0xff]  ;;  %v10128_v36 = vpop.permute.xlu1 %2429  ;;  %v10138_v51 = vpop.permute.xlu0 %2447 }
 0x36d   : > { %v1824_v55 = vsel %vm1793_vm9, %v1791_v35, %v15777_v46  ;;  %7029 = vmatmul.mubr.msk.f32.gmra.mrb[28].mxu0 %vm482_vm0, %v15778_v14  ;;  %v1825_v43 = vsel %vm1793_vm9, %v1792_v19, %v15779_v1  ;;  %v15782_v26 = vld [vmem:[#allocation232_spill] sm:$0xff]  ;;  %v15784_v60 = vld [vmem:[#allocation30_spill] sm:$0xff]  ;;  %v15786_v7 = vld [vmem:[#allocation33_spill] sm:$0xff] }
 0x36e   : > { %v1857_v49 = vsel %vm1826_vm10, %v1824_v55, %v15780_v20  ;;  %7031 = vmatprep.mubr.msk.f32.mxu0 %vm482_vm0, %v15781_v32  ;;  %v1858_v28 = vsel %vm1826_vm10, %v1825_v43, %v15782_v26  ;;  %v15783_v62 = vld [vmem:[#allocation28_spill] sm:$0xff]  ;;  %v15787_v57 = vld [vmem:[#allocation34_spill] sm:$0xff]  ;;  %v15788_v15 = vld [vmem:[#allocation37_spill] sm:$0xff] }
 0x36f   : > { %v1890_v37 = vsel %vm1859_vm11, %v1857_v49, %v1594_v6  ;;  %v1891_v16 = vsel %vm1859_vm11, %v1858_v28, %v9921_v0  ;;  %v15785_v0 = vld [vmem:[#allocation31_spill] sm:$0xff]  ;;  %v15790_v41 = vld [vmem:[#allocation42_spill] sm:$0xff]  ;;  %v15791_v22 = vld [vmem:[#allocation44_spill] sm:$0xff] }
 0x370   : > { %6939 = vmatprep.mubr.msk.f32.mxu1 %vm1897_vm12, %v1890_v37  ;;  %2605 = vrot.lane.b32.xlu1 %v9486_v33, %s7263_s27  ;;  %v10136_v27 = vpop.permute.xlu1 %2433  ;;  %v10150_v29 = vpop.permute.xlu0 %2451  ;;  %v15789_v61 = vld [vmem:[#allocation39_spill] sm:$0xff]  ;;  %v15793_v53 = vld [vmem:[#allocation49_spill] sm:$0xff]  ;;  %v15794_v17 = vld [vmem:[#allocation52_spill] sm:$0xff] }
 0x371   : > { %6940 = vmatmul.mubr.msk.f32.gmra.mrb[14].mxu1 %vm1897_vm12, %v1891_v16  ;;  %7032 = vmatmul.mubr.msk.f32.gmra.mrb[30].mxu0 %vm482_vm0, %v15783_v62  ;;  %v15792_v3 = vld [vmem:[#allocation47_spill] sm:$0xff]  ;;  %v15795_v50 = vld [vmem:[#allocation53_spill] sm:$0xff]  ;;  %v15796_v63 = vld [vmem:[#allocation56_spill] sm:$0xff] }
 0x372   : > { %7034 = vmatprep.mubr.msk.f32.mxu0 %vm482_vm0, %v15784_v60  ;;  %v15797_v21 = vld [vmem:[#allocation57_spill] sm:$0xff]  ;;  %v15799_v38 = vld [vmem:[#allocation63_spill] sm:$0xff] }
 0x373   : > { %v15798_v54 = vld [vmem:[#allocation61_spill] sm:$0xff] }
 0x374   : > { %2609 = vrot.lane.b32.xlu1 %v9527_v45, %s7263_s27  ;;  %v10146_v58 = vpop.permute.xlu1 %2437  ;;  %v10166_v34 = vpop.permute.xlu0 %2455 }
 0x375   : > { %7035 = vmatmul.mubr.msk.f32.gmra.mrb[32].mxu0 %vm482_vm0, %v15785_v0 }
 0x376   : > { %7037 = vmatprep.mubr.msk.f32.mxu0 %vm482_vm0, %v15786_v7 }
 0x378   : > { %2613 = vrot.lane.b32.xlu1 %v9565_v10, %s7263_s27  ;;  %v10156_v56 = vpop.permute.xlu1 %2441  ;;  %v10178_v44 = vpop.permute.xlu0 %2459 }
 0x379   : > { %7038 = vmatmul.mubr.msk.f32.gmra.mrb[34].mxu0 %vm482_vm0, %v15787_v57 }
 0x37a   : > { %7040 = vmatprep.mubr.msk.f32.mxu0 %vm482_vm0, %v15788_v15 }
 0x37c   : > { %2617 = vrot.lane.b32.xlu1 %v9609_v18, %s7263_s27  ;;  %v10164_v11 = vpop.permute.xlu1 %2445  ;;  %v10194_v59 = vpop.permute.xlu0 %2463 }
 0x37d   : > { %7041 = vmatmul.mubr.msk.f32.gmra.mrb[36].mxu0 %vm482_vm0, %v15789_v61 }
 0x37e   : > { %7043 = vmatprep.mubr.msk.f32.mxu0 %vm482_vm0, %v15790_v41 }
 0x380   : > { %2685 = vrot.lane.b32.xlu1 %v15600_v2, %s7264_s19  ;;  %v10174_v2 = vpop.permute.xlu1 %2449 }
 0x381   : > { %7044 = vmatmul.mubr.msk.f32.gmra.mrb[38].mxu0 %vm482_vm0, %v15791_v22 }
 0x382   : > { %7046 = vmatprep.mubr.msk.f32.mxu0 %vm482_vm0, %v15792_v3 }
 0x384   : > { %2689 = vrot.lane.b32.xlu1 %v15617_v47, %s7264_s19  ;;  %v10184_v47 = vpop.permute.xlu1 %2453 }
 0x385   : > { %7047 = vmatmul.mubr.msk.f32.gmra.mrb[40].mxu0 %vm482_vm0, %v15793_v53  ;;  %v10305_v53 = vld [vmem:[%s14886_s2] ss:$0 sm:$0xff] }
 0x386   : > { %7049 = vmatprep.mubr.msk.f32.mxu0 %vm482_vm0, %v15794_v17 }
 0x388   : > { %2693 = vrot.lane.b32.xlu1 %v15634_v5, %s7264_s19  ;;  %v10192_v5 = vpop.permute.xlu1 %2457 }
 0x389   : > { %7050 = vmatmul.mubr.msk.f32.gmra.mrb[42].mxu0 %vm482_vm0, %v15795_v50 }
 0x38a   : > { %7052 = vmatprep.mubr.msk.f32.mxu0 %vm482_vm0, %v15796_v63  ;;  %v10312_v63 = vld [vmem:[%s14887_s3] ss:$0 sm:$0xff] }
 0x38c   : > { %2697 = vrot.lane.b32.xlu1 %v15651_v39, %s7264_s19  ;;  %v10200_v35 = vpop.permute.xlu1 %2461  ;;  %v10204_v39 = vpop.permute.xlu0 %2467 }
 0x38d   : > { %7053 = vmatmul.mubr.msk.f32.gmra.mrb[44].mxu0 %vm482_vm0, %v15797_v21 }
 0x38e   : > { %7055 = vmatprep.mubr.msk.f32.mxu0 %vm482_vm0, %v15798_v54 }
 0x390   : > { %2701 = vrot.lane.b32.xlu1 %v15667_v8, %s7264_s19  ;;  %v10206_v9 = vpop.permute.xlu1 %2465  ;;  %v10210_v12 = vpop.permute.xlu0 %2471 }
 0x391   : > { %7056 = vmatmul.mubr.msk.f32.gmra.mrb[46].mxu0 %vm482_vm0, %v15799_v38 }
 0x394   : > { %2705 = vrot.lane.b32.xlu1 %v15683_v42, %s7264_s19  ;;  %v10212_v19 = vpop.permute.xlu1 %2469  ;;  %v10216_v8 = vpop.permute.xlu0 %2475 }
 0x398   : > { %2709 = vrot.lane.b32.xlu1 %v15698_v13, %s7264_s19  ;;  %v10220_v42 = vpop.permute.xlu1 %2473  ;;  %v10224_v46 = vpop.permute.xlu0 %2479 }
 0x39c   : > { %2713 = vrot.lane.b32.xlu1 %v15713_v23, %s7264_s19  ;;  %v10226_v13 = vpop.permute.xlu1 %2477  ;;  %v10230_v55 = vpop.permute.xlu0 %2483 }
 0x3a0   : > { %2717 = vrot.lane.b32.xlu1 %v15730_v52, %s7264_s19  ;;  %v10234_v23 = vpop.permute.xlu1 %2481  ;;  %v10238_v52 = vpop.permute.xlu0 %2487 }
 0x3a4   : > { %2721 = vrot.lane.b32.xlu1 %v15745_v24, %s7264_s19  ;;  %v10240_v24 = vpop.permute.xlu1 %2485  ;;  %v10244_v14 = vpop.permute.xlu0 %2491 }
 0x3a8   : > { %2725 = vrot.lane.b32.xlu1 %v15760_v25, %s7264_s19  ;;  %v10248_v25 = vpop.permute.xlu1 %2489 }
 0x3ac   : > { %2729 = vrot.lane.b32.xlu1 %v15775_v30, %s7264_s19  ;;  %v10252_v30 = vpop.permute.xlu0 %2559 }
 0x3b0   : > { %2733 = vrot.lane.b32.xlu1 %v9486_v33, %s7264_s19  ;;  %v10254_v33 = vpop.permute.xlu1 %2557  ;;  %v10256_v1 = vpop.permute.xlu0 %2563 }
 0x3b4   : > { %2737 = vrot.lane.b32.xlu1 %v9527_v45, %s7264_s19  ;;  %v10258_v43 = vpop.permute.xlu1 %2561  ;;  %v10260_v20 = vpop.permute.xlu0 %2567 }
 0x3b8   : > { %2741 = vrot.lane.b32.xlu1 %v9565_v10, %s7264_s19  ;;  %v10262_v45 = vpop.permute.xlu1 %2565  ;;  %v10264_v49 = vpop.permute.xlu0 %2571 }
 0x3bc   : > { %2745 = vrot.lane.b32.xlu1 %v9609_v18, %s7264_s19  ;;  %v10266_v10 = vpop.permute.xlu1 %2569  ;;  %v10268_v6 = vpop.permute.xlu0 %2575 }
 0x3c0   : > { %v10270_v32 = vpop.permute.xlu1 %2573  ;;  %v10272_v18 = vpop.permute.xlu0 %2579 }
 0x3c4   : > { %v10274_v26 = vpop.permute.xlu1 %2577  ;;  %v10276_v28 = vpop.permute.xlu0 %2583 }
 0x3c8   : > { %v10278_v37 = vpop.permute.xlu1 %2581  ;;  %v10280_v16 = vpop.permute.xlu0 %2587 }
 0x3cc   : > { %v10282_v62 = vpop.permute.xlu1 %2585  ;;  %v10284_v60 = vpop.permute.xlu0 %2591 }
 0x3cd   : > { %15800 = vst [vmem:[#allocation83_spill] sm:$0xff] %v10282_v62  ;;  %15801 = vst [vmem:[#allocation81_spill] sm:$0xff] %v10284_v60 }
 0x3d0   : > { %v10286_v0 = vpop.permute.xlu1 %2589  ;;  %v10288_v7 = vpop.permute.xlu0 %2595 }
 0x3d1   : > { %15802 = vst [vmem:[#allocation84_spill] sm:$0xff] %v10286_v0  ;;  %15803 = vst [vmem:[#allocation86_spill] sm:$0xff] %v10288_v7 }
 0x3d4   : > { %v10290_v57 = vpop.permute.xlu1 %2593  ;;  %v10292_v15 = vpop.permute.xlu0 %2599 }
 0x3d5   : > { %15804 = vst [vmem:[#allocation87_spill] sm:$0xff] %v10290_v57  ;;  %15805 = vst [vmem:[#allocation88_spill] sm:$0xff] %v10292_v15 }
 0x3d8   : > { %v10294_v61 = vpop.permute.xlu1 %2597  ;;  %v10296_v41 = vpop.permute.xlu0 %2603 }
 0x3d9   : > { %15806 = vst [vmem:[#allocation89_spill] sm:$0xff] %v10294_v61  ;;  %15807 = vst [vmem:[#allocation95_spill] sm:$0xff] %v10296_v41 }
 0x3dc   : > { %v10300_v3 = vpop.permute.xlu0 %2607 }
 0x3dd   : > { %15809 = vst [vmem:[#allocation90_spill] sm:$0xff] %v10300_v3 }
 0x3de   : > { %v10298_v22 = vpop.permute.xlu1 %2601 }
 0x3df   : > { %15808 = vst [vmem:[#allocation98_spill] sm:$0xff] %v10298_v22 }
 0x3e0   : > { %v10317_v22 = vpop.permute.xlu0 %2611 }
 0x3e1   : > { %15811 = vst [vmem:[#allocation92_spill] sm:$0xff] %v10317_v22 }
 0x3e2   : > { %v10307_v17 = vpop.permute.xlu1 %2605 }
 0x3e3   : > { %15810 = vst [vmem:[#allocation91_spill] sm:$0xff] %v10307_v17 }
 0x3e6   : > { %v10320_v15 = vpop.permute.xlu1 %2609 }
 0x3e7   : > { %15812 = vst [vmem:[#allocation94_spill] sm:$0xff] %v10320_v15 }
 0x3fd   : > { %v6896_v50 = vpop.f32.mrb[0].mxu0 }
 0x3fe   : > { %v2231_v21 = vmul.f32 %v6896_v50, %v10305_v53  ;;  %v2064_v54 = vpop.f32.mrb[1].mxu0 }
 0x3ff   : > { %v2230_v38 = vmul.f32 %v10305_v53, %v2064_v54 }
 0x400   : > { %v2270_v3 = vadd.f32 %v10312_v63, %v2231_v21 }
 0x401   : > { %v2269_v41 = vadd.f32 %v10312_v63, %v2230_v38  ;;  %v6899_v61 = vpop.f32.mrb[2].mxu0 }
 0x402   : > { %v10322_v17 = vmax.f32 %v2270_v3, 0.0  ;;  %v2233_v57 = vmul.f32 %v6899_v61, %v10305_v53  ;;  %v2074_v7 = vpop.f32.mrb[3].mxu0 }
 0x403   : > { %v10325_v0 = vmax.f32 %v2269_v41, 0.0  ;;  %v2232_v50 = vmul.f32 %v10305_v53, %v2074_v7  ;;  %v10338_v7 = vpop.permute.xlu0 %2615  ;;  %v10344_v41 = vpop.permute.xlu1 %2613 }
 0x404   : > { %v2272_v54 = vadd.f32 %v10312_v63, %v2233_v57  ;;  %v2526_v21 = vmul.f32 %v9964_v31, %v10322_v17  ;;  %15813 = vst [vmem:[#allocation93_spill] sm:$0xff] %v10338_v7  ;;  %15814 = vst [vmem:[#allocation96_spill] sm:$0xff] %v10344_v41 }
 0x405   : > { %v2271_v22 = vadd.f32 %v10312_v63, %v2232_v50  ;;  %v6902_v38 = vpop.f32.mrb[4].mxu0  ;;  %v2525_v15 = vmul.f32 %v10128_v36, %v10325_v0 }
 0x406   : > { %v10334_v3 = vmax.f32 %v2272_v54, 0.0  ;;  %v2235_v61 = vmul.f32 %v6902_v38, %v10305_v53  ;;  %v2084_v60 = vpop.f32.mrb[5].mxu0  ;;  %2847 = vrot.lane.b32.xlu0 %v2526_v21, %s7265_s14 }
 0x407   : > { %v10340_v57 = vmax.f32 %v2271_v22, 0.0  ;;  %v2234_v31 = vmul.f32 %v10305_v53, %v2084_v60  ;;  %2845 = vrot.lane.b32.xlu1 %v2525_v15, %s7265_s14  ;;  %v10363_v41 = vpop.permute.xlu0 %2619 }
 0x408   : > { %v2274_v36 = vadd.f32 %v10312_v63, %v2235_v61  ;;  %v2528_v50 = vmul.f32 %v10022_v48, %v10334_v3  ;;  %15815 = vst [vmem:[#allocation113_spill] sm:$0xff] %v10363_v41 }
 0x409   : > { %v2273_v54 = vadd.f32 %v10312_v63, %v2234_v31  ;;  %v6905_v38 = vpop.f32.mrb[6].mxu0  ;;  %v2527_v21 = vmul.f32 %v10136_v27, %v10340_v57 }
 0x40a   : > { %v10352_v7 = vmax.f32 %v2274_v36, 0.0  ;;  %v2237_v22 = vmul.f32 %v6905_v38, %v10305_v53  ;;  %v2094_v60 = vpop.f32.mrb[7].mxu0  ;;  %2851 = vrot.lane.b32.xlu0 %v2528_v50, %s7265_s14  ;;  %v10368_v50 = vpop.permute.xlu1 %2617 }
 0x40b   : > { %v10356_v15 = vmax.f32 %v2273_v54, 0.0  ;;  %v2236_v61 = vmul.f32 %v10305_v53, %v2094_v60  ;;  %2849 = vrot.lane.b32.xlu1 %v2527_v21, %s7265_s14  ;;  %15816 = vst [vmem:[#allocation99_spill] sm:$0xff] %v10368_v50 }
 0x40c   : > { %v2276_v48 = vadd.f32 %v10312_v63, %v2237_v22  ;;  %v2530_v31 = vmul.f32 %v10082_v4, %v10352_v7 }
 0x40d   : > { %v2275_v27 = vadd.f32 %v10312_v63, %v2236_v61  ;;  %v6908_v36 = vpop.f32.mrb[8].mxu0  ;;  %v2529_v38 = vmul.f32 %v10146_v58, %v10356_v15 }
 0x40e   : > { %v10370_v54 = vmax.f32 %v2276_v48, 0.0  ;;  %v2239_v60 = vmul.f32 %v6908_v36, %v10305_v53  ;;  %v2104_v21 = vpop.f32.mrb[9].mxu0  ;;  %2855 = vrot.lane.b32.xlu0 %v2530_v31, %s7265_s14 }
 0x40f   : > { %v10374_v22 = vmax.f32 %v2275_v27, 0.0  ;;  %v2238_v4 = vmul.f32 %v10305_v53, %v2104_v21  ;;  %2853 = vrot.lane.b32.xlu1 %v2529_v38, %s7265_s14  ;;  %v10388_v21 = vpop.permute.xlu0 %2687 }
 0x410   : > { %v2278_v61 = vadd.f32 %v10312_v63, %v2239_v60  ;;  %v2532_v58 = vmul.f32 %v10121_v40, %v10370_v54  ;;  %15817 = vst [vmem:[#allocation97_spill] sm:$0xff] %v10388_v21  ;;  %v10394_v40 = vpop.permute.xlu1 %2685 }
 0x411   : > { %v2277_v50 = vadd.f32 %v10312_v63, %v2238_v4  ;;  %v6911_v48 = vpop.f32.mrb[10].mxu0  ;;  %v2531_v36 = vmul.f32 %v10156_v56, %v10374_v22  ;;  %15818 = vst [vmem:[#allocation111_spill] sm:$0xff] %v10394_v40 }
 0x412   : > { %v10384_v41 = vmax.f32 %v2278_v61, 0.0  ;;  %v2241_v31 = vmul.f32 %v6911_v48, %v10305_v53  ;;  %v2114_v27 = vpop.f32.mrb[11].mxu0  ;;  %2859 = vrot.lane.b32.xlu0 %v2532_v58, %s7265_s14 }
 0x413   : > { %v10390_v38 = vmax.f32 %v2277_v50, 0.0  ;;  %v2240_v60 = vmul.f32 %v10305_v53, %v2114_v27  ;;  %2857 = vrot.lane.b32.xlu1 %v2531_v36, %s7265_s14  ;;  %v10413_v40 = vpop.permute.xlu0 %2691 }
 0x414   : > { %v2280_v4 = vadd.f32 %v10312_v63, %v2241_v31  ;;  %v2534_v56 = vmul.f32 %v10138_v51, %v10384_v41  ;;  %15819 = vst [vmem:[#allocation101_spill] sm:$0xff] %v10413_v40 }
 0x415   : > { %v2279_v61 = vadd.f32 %v10312_v63, %v2240_v60  ;;  %v6914_v48 = vpop.f32.mrb[12].mxu0  ;;  %v2533_v58 = vmul.f32 %v10164_v11, %v10390_v38 }
 0x416   : > { %v10402_v21 = vmax.f32 %v2280_v4, 0.0  ;;  %v2243_v50 = vmul.f32 %v6914_v48, %v10305_v53  ;;  %v2124_v27 = vpop.f32.mrb[13].mxu0  ;;  %2863 = vrot.lane.b32.xlu0 %v2534_v56, %s7265_s14  ;;  %v10418_v56 = vpop.permute.xlu1 %2689 }
 0x417   : > { %v10406_v36 = vmax.f32 %v2279_v61, 0.0  ;;  %v2242_v31 = vmul.f32 %v10305_v53, %v2124_v27  ;;  %2861 = vrot.lane.b32.xlu1 %v2533_v58, %s7265_s14  ;;  %15820 = vst [vmem:[#allocation100_spill] sm:$0xff] %v10418_v56 }
 0x418   : > { %v2282_v51 = vadd.f32 %v10312_v63, %v2243_v50  ;;  %v2536_v60 = vmul.f32 %v10150_v29, %v10402_v21 }
 0x419   : > { %v2281_v11 = vadd.f32 %v10312_v63, %v2242_v31  ;;  %v2535_v48 = vmul.f32 %v10174_v2, %v10406_v36 }
 0x41a   : > { %v10420_v61 = vmax.f32 %v2282_v51, 0.0  ;;  %2867 = vrot.lane.b32.xlu0 %v2536_v60, %s7265_s14 }
 0x41b   : > { %v10424_v50 = vmax.f32 %v2281_v11, 0.0  ;;  %2865 = vrot.lane.b32.xlu1 %v2535_v48, %s7265_s14 }
 0x41c   : > { %v6917_v4 = vpop.f32.mrb[14].mxu0  ;;  %v2538_v2 = vmul.f32 %v10166_v34, %v10420_v61 }
 0x41d   : > { %v2245_v27 = vmul.f32 %v6917_v4, %v10305_v53  ;;  %v2134_v58 = vpop.f32.mrb[15].mxu0  ;;  %v2537_v4 = vmul.f32 %v10184_v47, %v10424_v50 }
 0x41e   : > { %v2244_v29 = vmul.f32 %v10305_v53, %v2134_v58  ;;  %2871 = vrot.lane.b32.xlu0 %v2538_v2, %s7265_s14 }
 0x41f   : > { %v2284_v31 = vadd.f32 %v10312_v63, %v2245_v27  ;;  %2869 = vrot.lane.b32.xlu1 %v2537_v4, %s7265_s14  ;;  %v10446_v27 = vpop.permute.xlu0 %2695 }
 0x420   : > { %v2283_v56 = vadd.f32 %v10312_v63, %v2244_v29  ;;  %15823 = vst [vmem:[#allocation117_spill] sm:$0xff] %v10446_v27  ;;  %v10448_v29 = vpop.permute.xlu1 %2693 }
 0x421   : > { %v10436_v60 = vmax.f32 %v2284_v31, 0.0  ;;  %15824 = vst [vmem:[#allocation110_spill] sm:$0xff] %v10448_v29 }
 0x422   : > { %v6920_v51 = vpop.f32.mrb[0].mxu1  ;;  %v10432_v40 = vpop.f32.mrb[16].mxu0  ;;  %v10442_v48 = vmax.f32 %v2283_v56, 0.0 }
 0x423   : > { %15821 = vst [vmem:[#allocation102_spill] sm:$0xff] %v10432_v40  ;;  %v2247_v11 = vmul.f32 %v6920_v51, %v10305_v53  ;;  %v2144_v58 = vpop.f32.mrb[1].mxu1  ;;  %v10439_v62 = vpop.f32.mrb[17].mxu0  ;;  %v2540_v31 = vmul.f32 %v10178_v44, %v10436_v60 }
 0x424   : > { %15822 = vst [vmem:[#allocation55_spill] sm:$0xff] %v10439_v62  ;;  %v2246_v34 = vmul.f32 %v10305_v53, %v2144_v58  ;;  %v2539_v56 = vmul.f32 %v10192_v5, %v10442_v48 }
 0x425   : > { %v2286_v47 = vadd.f32 %v10312_v63, %v2247_v11  ;;  %2875 = vrot.lane.b32.xlu0 %v2540_v31, %s7265_s14 }
 0x426   : > { %v2285_v51 = vadd.f32 %v10312_v63, %v2246_v34  ;;  %v6923_v62 = vpop.f32.mrb[2].mxu1  ;;  %2873 = vrot.lane.b32.xlu1 %v2539_v56, %s7265_s14 }
 0x427   : > { %v10454_v40 = vpop.f32.mrb[18].mxu0  ;;  %v10458_v2 = vmax.f32 %v2286_v47, 0.0  ;;  %v2249_v4 = vmul.f32 %v6923_v62, %v10305_v53  ;;  %v2154_v58 = vpop.f32.mrb[3].mxu1 }
 0x428   : > { %15825 = vst [vmem:[#allocation115_spill] sm:$0xff] %v10454_v40  ;;  %v10461_v27 = vpop.f32.mrb[19].mxu0  ;;  %v10464_v11 = vmax.f32 %v2285_v51, 0.0  ;;  %v2248_v44 = vmul.f32 %v10305_v53, %v2154_v58 }
 0x429   : > { %15826 = vst [vmem:[#allocation138_spill] sm:$0xff] %v10461_v27  ;;  %v2288_v34 = vadd.f32 %v10312_v63, %v2249_v4  ;;  %v2542_v5 = vmul.f32 %v10194_v59, %v10458_v2  ;;  %v10486_v4 = vpop.permute.xlu0 %2699 }
 0x42a   : > { %v2287_v47 = vadd.f32 %v10312_v63, %v2248_v44  ;;  %v2541_v27 = vmul.f32 %v10200_v35, %v10464_v11  ;;  %15829 = vst [vmem:[#allocation121_spill] sm:$0xff] %v10486_v4  ;;  %v10488_v44 = vpop.permute.xlu1 %2697 }
 0x42b   : > { %v6926_v40 = vpop.f32.mrb[4].mxu1  ;;  %v10476_v31 = vmax.f32 %v2288_v34, 0.0  ;;  %2879 = vrot.lane.b32.xlu0 %v2542_v5, %s7265_s14  ;;  %15830 = vst [vmem:[#allocation59_spill] sm:$0xff] %v10488_v44 }
 0x42c   : > { %v10472_v62 = vpop.f32.mrb[20].mxu0  ;;  %v2251_v51 = vmul.f32 %v6926_v40, %v10305_v53  ;;  %v2164_v58 = vpop.f32.mrb[5].mxu1  ;;  %v10482_v56 = vmax.f32 %v2287_v47, 0.0  ;;  %2877 = vrot.lane.b32.xlu1 %v2541_v27, %s7265_s14 }
 0x42d   : > { %15827 = vst [vmem:[#allocation112_spill] sm:$0xff] %v10472_v62  ;;  %v10479_v29 = vpop.f32.mrb[21].mxu0  ;;  %v2250_v59 = vmul.f32 %v10305_v53, %v2164_v58  ;;  %v2544_v40 = vmul.f32 %v10204_v39, %v10476_v31 }
 0x42e   : > { %15828 = vst [vmem:[#allocation60_spill] sm:$0xff] %v10479_v29  ;;  %v2290_v35 = vadd.f32 %v10312_v63, %v2251_v51  ;;  %v2543_v5 = vmul.f32 %v10206_v9, %v10482_v56 }
 0x42f   : > { %v2289_v34 = vadd.f32 %v10312_v63, %v2250_v59  ;;  %2883 = vrot.lane.b32.xlu0 %v2544_v40, %s7265_s14 }
 0x430   : > { %v10494_v62 = vpop.f32.mrb[22].mxu0  ;;  %v10498_v47 = vmax.f32 %v2290_v35, 0.0  ;;  %2881 = vrot.lane.b32.xlu1 %v2543_v5, %s7265_s14 }
 0x431   : > { %15831 = vst [vmem:[#allocation119_spill] sm:$0xff] %v10494_v62  ;;  %v10501_v4 = vpop.f32.mrb[23].mxu0  ;;  %v10504_v51 = vmax.f32 %v2289_v34, 0.0 }
 0x432   : > { %v6929_v29 = vpop.f32.mrb[6].mxu1  ;;  %15832 = vst [vmem:[#allocation114_spill] sm:$0xff] %v10501_v4  ;;  %v2546_v9 = vmul.f32 %v10210_v12, %v10498_v47 }
 0x433   : > { %v2253_v27 = vmul.f32 %v6929_v29, %v10305_v53  ;;  %v2174_v58 = vpop.f32.mrb[7].mxu1  ;;  %v2545_v4 = vmul.f32 %v10212_v19, %v10504_v51 }
 0x434   : > { %v2252_v39 = vmul.f32 %v10305_v53, %v2174_v58  ;;  %2887 = vrot.lane.b32.xlu0 %v2546_v9, %s7265_s14 }
 0x435   : > { %v2292_v59 = vadd.f32 %v10312_v63, %v2253_v27  ;;  %2885 = vrot.lane.b32.xlu1 %v2545_v4, %s7265_s14  ;;  %v10526_v27 = vpop.permute.xlu0 %2703 }
 0x436   : > { %v2291_v35 = vadd.f32 %v10312_v63, %v2252_v39  ;;  %v10512_v29 = vpop.f32.mrb[24].mxu0  ;;  %15836 = vst [vmem:[#allocation116_spill] sm:$0xff] %v10526_v27  ;;  %v10528_v39 = vpop.permute.xlu1 %2701 }
 0x437   : > { %v6932_v62 = vpop.f32.mrb[8].mxu1  ;;  %15833 = vst [vmem:[#allocation125_spill] sm:$0xff] %v10512_v29  ;;  %v10516_v40 = vmax.f32 %v2292_v59, 0.0  ;;  %v10519_v44 = vpop.f32.mrb[25].mxu0  ;;  %15837 = vst [vmem:[#allocation149_spill] sm:$0xff] %v10528_v39 }
 0x438   : > { %v2255_v34 = vmul.f32 %v6932_v62, %v10305_v53  ;;  %v2184_v58 = vpop.f32.mrb[9].mxu1  ;;  %15834 = vst [vmem:[#allocation140_spill] sm:$0xff] %v10519_v44  ;;  %v10522_v5 = vmax.f32 %v2291_v35, 0.0 }
 0x439   : > { %v2254_v12 = vmul.f32 %v10305_v53, %v2184_v58  ;;  %v2548_v62 = vmul.f32 %v10216_v8, %v10516_v40 }
 0x43a   : > { %15835 = vst [vmem:[#allocation123_spill] sm:$0xff] %v10522_v5  ;;  %v2294_v19 = vadd.f32 %v10312_v63, %v2255_v34  ;;  %v10534_v44 = vpop.f32.mrb[26].mxu0  ;;  %v2547_v9 = vmul.f32 %v10220_v42, %v10522_v5 }
 0x43b   : > { %v2293_v59 = vadd.f32 %v10312_v63, %v2254_v12  ;;  %v6935_v29 = vpop.f32.mrb[10].mxu1  ;;  %15838 = vst [vmem:[#allocation8_spill] sm:$0xff] %v10534_v44  ;;  %v10541_v27 = vpop.f32.mrb[27].mxu0  ;;  %2891 = vrot.lane.b32.xlu0 %v2548_v62, %s7265_s14 }
 0x43c   : > { %v10538_v35 = vmax.f32 %v2294_v19, 0.0  ;;  %v2257_v4 = vmul.f32 %v6935_v29, %v10305_v53  ;;  %v2194_v58 = vpop.f32.mrb[11].mxu1  ;;  %15840 = vst [vmem:[#allocation141_spill] sm:$0xff] %v10541_v27  ;;  %2889 = vrot.lane.b32.xlu1 %v2547_v9, %s7265_s14 }
 0x43d   : > { %v10544_v34 = vmax.f32 %v2293_v59, 0.0  ;;  %v2256_v8 = vmul.f32 %v10305_v53, %v2194_v58 }
 0x43e   : > { %15839 = vst [vmem:[#allocation168_spill] sm:$0xff] %v10538_v35  ;;  %v2296_v12 = vadd.f32 %v10312_v63, %v2257_v4  ;;  %v2550_v42 = vmul.f32 %v10224_v46, %v10538_v35  ;;  %v10566_v4 = vpop.permute.xlu0 %2707 }
 0x43f   : > { %15841 = vst [vmem:[#allocation35_spill] sm:$0xff] %v10544_v34  ;;  %v2295_v19 = vadd.f32 %v10312_v63, %v2256_v8  ;;  %v6938_v44 = vpop.f32.mrb[12].mxu1  ;;  %v2549_v27 = vmul.f32 %v10226_v13, %v10544_v34  ;;  %15846 = vst [vmem:[#allocation170_spill] sm:$0xff] %v10566_v4  ;;  %v10568_v8 = vpop.permute.xlu1 %2705 }
 0x440   : > { %v10552_v29 = vpop.f32.mrb[28].mxu0  ;;  %v10556_v62 = vmax.f32 %v2296_v12, 0.0  ;;  %v2259_v59 = vmul.f32 %v6938_v44, %v10305_v53  ;;  %v2204_v58 = vpop.f32.mrb[13].mxu1  ;;  %2895 = vrot.lane.b32.xlu0 %v2550_v42, %s7265_s14 }
 0x441   : > { %15842 = vst [vmem:[#allocation163_spill] sm:$0xff] %v10552_v29  ;;  %v10559_v39 = vpop.f32.mrb[29].mxu0  ;;  %v10562_v9 = vmax.f32 %v2295_v19, 0.0  ;;  %v2258_v46 = vmul.f32 %v10305_v53, %v2204_v58  ;;  %2893 = vrot.lane.b32.xlu1 %v2549_v27, %s7265_s14 }
 0x442   : > { %15843 = vst [vmem:[#allocation103_spill] sm:$0xff] %v10556_v62  ;;  %15844 = vst [vmem:[#allocation151_spill] sm:$0xff] %v10559_v39  ;;  %v2298_v13 = vadd.f32 %v10312_v63, %v2259_v59  ;;  %v2552_v44 = vmul.f32 %v10230_v55, %v10556_v62 }
 0x443   : > { %15845 = vst [vmem:[#allocation118_spill] sm:$0xff] %v10562_v9  ;;  %v2297_v12 = vadd.f32 %v10312_v63, %v2258_v46  ;;  %v2551_v42 = vmul.f32 %v10234_v23, %v10562_v9 }
 0x444   : > { %v6941_v29 = vpop.f32.mrb[14].mxu1  ;;  %v10574_v39 = vpop.f32.mrb[30].mxu0  ;;  %v10578_v19 = vmax.f32 %v2298_v13, 0.0  ;;  %2899 = vrot.lane.b32.xlu0 %v2552_v44, %s7265_s14 }
 0x445   : > { %15847 = vst [vmem:[#allocation198_spill] sm:$0xff] %v10574_v39  ;;  %v2261_v27 = vmul.f32 %v6941_v29, %v10305_v53  ;;  %v2214_v58 = vpop.f32.mrb[15].mxu1  ;;  %v10581_v4 = vpop.f32.mrb[31].mxu0  ;;  %v10584_v59 = vmax.f32 %v2297_v12, 0.0  ;;  %2897 = vrot.lane.b32.xlu1 %v2551_v42, %s7265_s14 }
 0x446   : > { %15848 = vst [vmem:[#allocation144_spill] sm:$0xff] %v10578_v19  ;;  %15849 = vst [vmem:[#allocation40_spill] sm:$0xff] %v10581_v4  ;;  %v2260_v55 = vmul.f32 %v10305_v53, %v2214_v58  ;;  %v2554_v23 = vmul.f32 %v10238_v52, %v10578_v19  ;;  %v10596_v4 = vpop.permute.xlu0 %2711  ;;  %v10603_v53 = vpop.permute.xlu1 %2709 }
 0x447   : > { %15850 = vst [vmem:[#allocation243_spill] sm:$0xff] %v10584_v59  ;;  %v2300_v46 = vadd.f32 %v10312_v63, %v2261_v27  ;;  %v2553_v29 = vmul.f32 %v10240_v24, %v10584_v59 }
 0x448   : > { %v2299_v13 = vadd.f32 %v10312_v63, %v2260_v55  ;;  %v10592_v39 = vpop.f32.mrb[32].mxu0  ;;  %2903 = vrot.lane.b32.xlu0 %v2554_v23, %s7265_s14  ;;  %v2654_v55 = vmul.f32 %v10252_v30, %v10322_v17  ;;  %v2655_v30 = vmul.f32 %v10258_v43, %v10340_v57 }
 0x449   : > { %15851 = vst [vmem:[#allocation233_spill] sm:$0xff] %v10592_v39  ;;  %v10598_v44 = vmax.f32 %v2300_v46, 0.0  ;;  %v10600_v12 = vpop.f32.mrb[33].mxu0  ;;  %2901 = vrot.lane.b32.xlu1 %v2553_v29, %s7265_s14  ;;  %v15888_v39 = vld [vmem:[#allocation96_spill] sm:$0xff] }
 0x44a   : > { %15853 = vst [vmem:[#allocation66_spill] sm:$0xff] %v10600_v12  ;;  %v10605_v42 = vmax.f32 %v2299_v13, 0.0  ;;  %v10618_v58 = vpop.permute.xlu0 %2715  ;;  %v10622_v46 = vpop.permute.xlu1 %2713 }
 0x44b   : > { %15852 = vst [vmem:[#allocation11_spill] sm:$0xff] %v10598_v44  ;;  %v2556_v52 = vmul.f32 %v10244_v14, %v10598_v44  ;;  %v2653_v14 = vmul.f32 %v10254_v33, %v10325_v0 }
 0x44c   : > { %15854 = vst [vmem:[#allocation164_spill] sm:$0xff] %v10605_v42  ;;  %v10610_v63 = vpop.f32.mrb[34].mxu0  ;;  %v2555_v24 = vmul.f32 %v10248_v25, %v10605_v42  ;;  %v2656_v25 = vmul.f32 %v10256_v1, %v10334_v3  ;;  %v2657_v1 = vmul.f32 %v10262_v45, %v10356_v15  ;;  %v2662_v45 = vmul.f32 %v10268_v6, %v10384_v41 }
 0x44d   : > { %15855 = vst [vmem:[#allocation203_spill] sm:$0xff] %v10610_v63  ;;  %v10614_v27 = vpop.f32.mrb[35].mxu0  ;;  %2907 = vrot.lane.b32.xlu0 %v2556_v52, %s7265_s14 }
 0x44e   : > { %15856 = vst [vmem:[#allocation200_spill] sm:$0xff] %v10614_v27  ;;  %2905 = vrot.lane.b32.xlu1 %v2555_v24, %s7265_s14  ;;  %v10638_v52 = vpop.permute.xlu0 %2719  ;;  %v10643_v33 = vpop.permute.xlu1 %2717 }
 0x450   : > { %v10624_v23 = vpop.f32.mrb[36].mxu0 }
 0x451   : > { %15857 = vst [vmem:[#allocation104_spill] sm:$0xff] %v10624_v23  ;;  %v10628_v13 = vpop.f32.mrb[37].mxu0  ;;  %2975 = vrot.lane.b32.xlu0 %v2654_v55, %s7254_s28  ;;  %v2658_v55 = vmul.f32 %v10260_v20, %v10352_v7  ;;  %v2659_v20 = vmul.f32 %v10266_v10, %v10374_v22 }
 0x452   : > { %15858 = vst [vmem:[#allocation153_spill] sm:$0xff] %v10628_v13  ;;  %2973 = vrot.lane.b32.xlu1 %v2653_v14, %s7254_s28  ;;  %v10656_v43 = vpop.permute.xlu0 %2723 }
 0x454   : > { %v10634_v29 = vpop.f32.mrb[38].mxu0 }
 0x455   : > { %15859 = vst [vmem:[#allocation187_spill] sm:$0xff] %v10634_v29  ;;  %v10640_v24 = vpop.f32.mrb[39].mxu0  ;;  %2979 = vrot.lane.b32.xlu0 %v2656_v25, %s7254_s28  ;;  %v2660_v25 = vmul.f32 %v10264_v49, %v10370_v54  ;;  %v6767_v49 = vld [vmem:[%s14894_s10] ss:$0 sm:$0xff] }
 0x456   : > { %15860 = vst [vmem:[#allocation235_spill] sm:$0xff] %v10640_v24  ;;  %2977 = vrot.lane.b32.xlu1 %v2655_v30, %s7254_s28  ;;  %v10660_v30 = vpop.permute.xlu1 %2721 }
 0x458   : > { %v10648_v14 = vpop.f32.mrb[40].mxu0 }
 0x459   : > { %15861 = vst [vmem:[#allocation120_spill] sm:$0xff] %v10648_v14  ;;  %v10652_v29 = vpop.f32.mrb[41].mxu0  ;;  %2983 = vrot.lane.b32.xlu0 %v2658_v55, %s7254_s28 }
 0x45a   : > { %15862 = vst [vmem:[#allocation69_spill] sm:$0xff] %v10652_v29  ;;  %2981 = vrot.lane.b32.xlu1 %v2657_v1, %s7254_s28  ;;  %v2661_v1 = vmul.f32 %v10270_v32, %v10390_v38  ;;  %v2664_v32 = vmul.f32 %v10272_v18, %v10402_v21  ;;  %v2666_v18 = vmul.f32 %v10276_v28, %v10420_v61 }
 0x45c   : > { %v10662_v24 = vpop.f32.mrb[42].mxu0 }
 0x45d   : > { %15863 = vst [vmem:[#allocation172_spill] sm:$0xff] %v10662_v24  ;;  %v10666_v14 = vpop.f32.mrb[43].mxu0  ;;  %2987 = vrot.lane.b32.xlu0 %v2660_v25, %s7254_s28  ;;  %v10677_v24 = vpop.permute.xlu0 %2727  ;;  %v6768_v25 = vld [vmem:[%s14895_s11] ss:$0 sm:$0xff] }
 0x45e   : > { %15864 = vst [vmem:[#allocation199_spill] sm:$0xff] %v10666_v14  ;;  %2985 = vrot.lane.b32.xlu1 %v2659_v20, %s7254_s28  ;;  %v10683_v20 = vpop.permute.xlu1 %2725 }
 0x460   : > { %v7054_v55 = vpop.f32.mrb[44].mxu0 }
 0x461   : > { %v6461_v10 = vmul.f32 %v7054_v55, %v6767_v49  ;;  %v6406_v29 = vpop.f32.mrb[45].mxu0  ;;  %2991 = vrot.lane.b32.xlu0 %v2662_v45, %s7254_s28  ;;  %v2663_v45 = vmul.f32 %v10274_v26, %v10406_v36  ;;  %v2665_v26 = vmul.f32 %v10278_v37, %v10424_v50  ;;  %v15870_v37 = vld [vmem:[#allocation81_spill] sm:$0xff] }
 0x462   : > { %v6460_v6 = vmul.f32 %v6767_v49, %v6406_v29  ;;  %2989 = vrot.lane.b32.xlu1 %v2661_v1, %s7254_s28  ;;  %v10696_v29 = vpop.permute.xlu0 %2731 }
 0x463   : > { %v10686_v14 = vadd.f32 %v6768_v25, %v6461_v10  ;;  %v10702_v10 = vpop.permute.xlu1 %2729 }
 0x464   : > { %v10690_v13 = vadd.f32 %v6768_v25, %v6460_v6  ;;  %v7057_v55 = vpop.f32.mrb[46].mxu0 }
 0x465   : > { %15865 = vst [vmem:[#allocation145_spill] sm:$0xff] %v10686_v14  ;;  %v6463_v23 = vmul.f32 %v7057_v55, %v6767_v49  ;;  %v6416_v27 = vpop.f32.mrb[47].mxu0  ;;  %2995 = vrot.lane.b32.xlu0 %v2664_v32, %s7254_s28  ;;  %v15879_v14 = vld [vmem:[#allocation91_spill] sm:$0xff] }
 0x466   : > { %15866 = vst [vmem:[#allocation15_spill] sm:$0xff] %v10690_v13  ;;  %v6462_v63 = vmul.f32 %v6767_v49, %v6416_v27  ;;  %2993 = vrot.lane.b32.xlu1 %v2663_v45, %s7254_s28  ;;  %v2668_v27 = vmul.f32 %v10280_v16, %v10436_v60  ;;  %v10714_v32 = vpop.permute.xlu0 %2735  ;;  %v15872_v45 = vld [vmem:[#allocation86_spill] sm:$0xff]  ;;  %v15886_v13 = vld [vmem:[#allocation93_spill] sm:$0xff] }
 0x467   : > { %v10698_v1 = vadd.f32 %v6768_v25, %v6463_v23  ;;  %v15869_v23 = vld [vmem:[#allocation83_spill] sm:$0xff]  ;;  %v10717_v28 = vpop.permute.xlu1 %2733  ;;  %v2682_v12 = vmul.f32 %v15886_v13, %v10578_v19 }
 0x468   : > { %v10704_v6 = vadd.f32 %v6768_v25, %v6462_v63  ;;  %v2667_v49 = vmul.f32 %v15869_v23, %v10442_v48  ;;  %v2670_v63 = vmul.f32 %v15870_v37, %v10458_v2  ;;  %v15871_v25 = vld [vmem:[#allocation84_spill] sm:$0xff] }
 0x469   : > { %15867 = vst [vmem:[#allocation247_spill] sm:$0xff] %v10698_v1  ;;  %2999 = vrot.lane.b32.xlu0 %v2666_v18, %s7254_s28  ;;  %v2669_v55 = vmul.f32 %v15871_v25, %v10464_v11  ;;  %v2672_v18 = vmul.f32 %v15872_v45, %v10476_v31 }
 0x46a   : > { %15868 = vst [vmem:[#allocation234_spill] sm:$0xff] %v10704_v6  ;;  %2997 = vrot.lane.b32.xlu1 %v2665_v26, %s7254_s28  ;;  %v10726_v16 = vpop.permute.xlu0 %2739 }
 0x46b   : > { %v10730_v26 = vpop.permute.xlu1 %2737 }
 0x46d   : > { %3003 = vrot.lane.b32.xlu0 %v2668_v27, %s7254_s28  ;;  %v15873_v27 = vld [vmem:[#allocation87_spill] sm:$0xff] }
 0x46e   : > { %3001 = vrot.lane.b32.xlu1 %v2667_v49, %s7254_s28  ;;  %v2671_v23 = vmul.f32 %v15873_v27, %v10482_v56  ;;  %v15874_v49 = vld [vmem:[#allocation88_spill] sm:$0xff]  ;;  %v15876_v27 = vld [vmem:[#allocation95_spill] sm:$0xff] }
 0x46f   : > { %v2674_v37 = vmul.f32 %v15874_v49, %v10498_v47  ;;  %v10743_v45 = vpop.permute.xlu1 %2741  ;;  %v2676_v1 = vmul.f32 %v15876_v27, %v10516_v40  ;;  %v15880_v27 = vmov 0.0  }
 0x470   : > { %3301 = vst.msk [vmem:[#allocation3 + $0x28] sm:$0x3] %vm3297_vm13, %v15880_v27  ;;  %3298 = vst.msk [vmem:[#allocation3 + $0x10] sm:$0x3] %vm3297_vm13, %v15880_v27 }
 0x471   : > { %3007 = vrot.lane.b32.xlu0 %v2670_v63, %s7254_s28  ;;  %v15875_v63 = vld [vmem:[#allocation89_spill] sm:$0xff]  ;;  %3304 = vst.msk [vmem:[#allocation3 + $0x40] sm:$0x3] %vm3297_vm13, %v15880_v27  ;;  %3307 = vst.msk [vmem:[#allocation3 + $0x58] sm:$0x3] %vm3297_vm13, %v15880_v27 }
 0x472   : > { %3005 = vrot.lane.b32.xlu1 %v2669_v55, %s7254_s28  ;;  %v2673_v25 = vmul.f32 %v15875_v63, %v10504_v51  ;;  %v10740_v55 = vpop.permute.xlu0 %2743  ;;  %v15878_v63 = vld [vmem:[#allocation90_spill] sm:$0xff]  ;;  %3310 = vst.msk [vmem:[#allocation3 + $0x70] sm:$0x3] %vm3297_vm13, %v15880_v27  ;;  %3313 = vst.msk [vmem:[#allocation3 + $0x88] sm:$0x3] %vm3297_vm13, %v15880_v27 }
 0x473   : > { %v2678_v6 = vmul.f32 %v15878_v63, %v10538_v35  ;;  %3316 = vst.msk [vmem:[#allocation3 + $0xa0] sm:$0x3] %vm3297_vm13, %v15880_v27  ;;  %3319 = vst.msk [vmem:[#allocation3 + $0xb8] sm:$0x3] %vm3297_vm13, %v15880_v27 }
 0x474   : > { %3322 = vst.msk [vmem:[#allocation3 + $0xd0] sm:$0x3] %vm3297_vm13, %v15880_v27  ;;  %3325 = vst.msk [vmem:[#allocation3 + $0xe8] sm:$0x3] %vm3297_vm13, %v15880_v27 }
 0x475   : > { %3011 = vrot.lane.b32.xlu0 %v2672_v18, %s7254_s28  ;;  %v15877_v18 = vld [vmem:[#allocation98_spill] sm:$0xff]  ;;  %3328 = vst.msk [vmem:[#allocation3 + $0x100] sm:$0x3] %vm3297_vm13, %v15880_v27  ;;  %3331 = vst.msk [vmem:[#allocation3 + $0x118] sm:$0x3] %vm3297_vm13, %v15880_v27 }
 0x476   : > { %3009 = vrot.lane.b32.xlu1 %v2671_v23, %s7254_s28  ;;  %v2675_v23 = vmul.f32 %v15877_v18, %v10522_v5  ;;  %v10752_v49 = vpop.permute.xlu0 %2747  ;;  %3334 = vst.msk [vmem:[#allocation3 + $0x130] sm:$0x3] %vm3297_vm13, %v15880_v27  ;;  %3337 = vst.msk [vmem:[#allocation3 + $0x148] sm:$0x3] %vm3297_vm13, %v15880_v27 }
 0x477   : > { %3340 = vst.msk [vmem:[#allocation3 + $0x160] sm:$0x3] %vm3297_vm13, %v15880_v27  ;;  %3343 = vst.msk [vmem:[#allocation3 + $0x178] sm:$0x3] %vm3297_vm13, %v15880_v27 }
 0x478   : > { %3346 = vst.msk [vmem:[#allocation3 + $0x190] sm:$0x3] %vm3297_vm13, %v15880_v27  ;;  %3349 = vst.msk [vmem:[#allocation3 + $0x1a8] sm:$0x3] %vm3297_vm13, %v15880_v27 }
 0x479   : > { %3015 = vrot.lane.b32.xlu0 %v2674_v37, %s7254_s28  ;;  %v10756_v37 = vpop.permute.xlu1 %2745 }
 0x47a   : > { %3013 = vrot.lane.b32.xlu1 %v2673_v25, %s7254_s28  ;;  %v2677_v25 = vmul.f32 %v15879_v14, %v10544_v34  ;;  %v10798_v14 = vpop.permute.xlu0 %2847 }
 0x47b   : > { %15881 = vst [vmem:[#allocation129_spill] sm:$0xff] %v10798_v14  ;;  %v2681_v14 = vmul.f32 %v15888_v39, %v10584_v59  ;;  %v15893_v39 = vld [vmem:[#allocation97_spill] sm:$0xff] }
 0x47c   : > { %v2782_v13 = vmul.f32 %v15893_v39, %v10322_v17 }
 0x47d   : > { %3019 = vrot.lane.b32.xlu0 %v2676_v1, %s7254_s28  ;;  %v15882_v1 = vld [vmem:[#allocation92_spill] sm:$0xff]  ;;  %v10802_v18 = vpop.permute.xlu1 %2845 }
 0x47e   : > { %3017 = vrot.lane.b32.xlu1 %v2675_v23, %s7254_s28  ;;  %15883 = vst [vmem:[#allocation67_spill] sm:$0xff] %v10802_v18  ;;  %v15884_v23 = vld [vmem:[#allocation94_spill] sm:$0xff] }
 0x47f   : > { %v2679_v63 = vmul.f32 %v15884_v23, %v10562_v9 }
 0x481   : > { %3023 = vrot.lane.b32.xlu0 %v2678_v6, %s7254_s28  ;;  %v2680_v6 = vmul.f32 %v15882_v1, %v10556_v62  ;;  %v10812_v27 = vpop.permute.xlu1 %2849 }
 0x482   : > { %3021 = vrot.lane.b32.xlu1 %v2677_v25, %s7254_s28  ;;  %v10808_v25 = vpop.permute.xlu0 %2851  ;;  %15887 = vst [vmem:[#allocation206_spill] sm:$0xff] %v10812_v27 }
 0x483   : > { %15885 = vst [vmem:[#allocation165_spill] sm:$0xff] %v10808_v25  ;;  %v15892_v25 = vld [vmem:[#allocation99_spill] sm:$0xff] }
 0x484   : > { %v2683_v18 = vmul.f32 %v15892_v25, %v10605_v42  ;;  %v15897_v25 = vld [vmem:[#allocation101_spill] sm:$0xff] }
 0x485   : > { %3027 = vrot.lane.b32.xlu0 %v2680_v6, %s7254_s28  ;;  %v15890_v6 = vld [vmem:[#allocation113_spill] sm:$0xff] }
 0x486   : > { %3025 = vrot.lane.b32.xlu1 %v2679_v63, %s7254_s28  ;;  %v10818_v1 = vpop.permute.xlu0 %2855  ;;  %v2684_v23 = vmul.f32 %v15890_v6, %v10598_v44  ;;  %v10822_v63 = vpop.permute.xlu1 %2853  ;;  %v2784_v6 = vmul.f32 %v15897_v25, %v10334_v3 }
 0x487   : > { %15889 = vst [vmem:[#allocation202_spill] sm:$0xff] %v10818_v1  ;;  %15891 = vst [vmem:[#allocation106_spill] sm:$0xff] %v10822_v63 }
 0x489   : > { %3031 = vrot.lane.b32.xlu0 %v2682_v12, %s7254_s28 }
 0x48a   : > { %3029 = vrot.lane.b32.xlu1 %v2681_v14, %s7254_s28  ;;  %v10830_v12 = vpop.permute.xlu0 %2859  ;;  %v15895_v14 = vld [vmem:[#allocation111_spill] sm:$0xff]  ;;  %v10834_v27 = vpop.permute.xlu1 %2857 }
 0x48b   : > { %15894 = vst [vmem:[#allocation155_spill] sm:$0xff] %v10830_v12  ;;  %v2781_v1 = vmul.f32 %v15895_v14, %v10325_v0  ;;  %15896 = vst [vmem:[#allocation189_spill] sm:$0xff] %v10834_v27  ;;  %v15901_v14 = vld [vmem:[#allocation117_spill] sm:$0xff] }
 0x48c   : > { %v2786_v27 = vmul.f32 %v15901_v14, %v10352_v7 }
 0x48d   : > { %3035 = vrot.lane.b32.xlu0 %v2684_v23, %s7254_s28 }
 0x48e   : > { %3033 = vrot.lane.b32.xlu1 %v2683_v18, %s7254_s28  ;;  %v10840_v23 = vpop.permute.xlu0 %2863  ;;  %v15899_v18 = vld [vmem:[#allocation100_spill] sm:$0xff]  ;;  %v10844_v63 = vpop.permute.xlu1 %2861 }
 0x48f   : > { %15898 = vst [vmem:[#allocation237_spill] sm:$0xff] %v10840_v23  ;;  %v2783_v39 = vmul.f32 %v15899_v18, %v10340_v57  ;;  %15900 = vst [vmem:[#allocation122_spill] sm:$0xff] %v10844_v63  ;;  %v15905_v18 = vld [vmem:[#allocation121_spill] sm:$0xff] }
 0x490   : > { %v2788_v63 = vmul.f32 %v15905_v18, %v10370_v54 }
 0x491   : > { %3103 = vrot.lane.b32.xlu0 %v2782_v13, %s7266_s26 }
 0x492   : > { %3101 = vrot.lane.b32.xlu1 %v2781_v1, %s7266_s26  ;;  %v10850_v13 = vpop.permute.xlu0 %2867  ;;  %v15903_v1 = vld [vmem:[#allocation110_spill] sm:$0xff]  ;;  %v10854_v25 = vpop.permute.xlu1 %2865 }
 0x493   : > { %15902 = vst [vmem:[#allocation71_spill] sm:$0xff] %v10850_v13  ;;  %v2785_v12 = vmul.f32 %v15903_v1, %v10356_v15  ;;  %15904 = vst [vmem:[#allocation174_spill] sm:$0xff] %v10854_v25  ;;  %v15908_v1 = vld [vmem:[#allocation116_spill] sm:$0xff] }
 0x494   : > { %v2790_v25 = vmul.f32 %v15908_v1, %v10384_v41 }
 0x495   : > { %3107 = vrot.lane.b32.xlu0 %v2784_v6, %s7266_s26 }
 0x496   : > { %3105 = vrot.lane.b32.xlu1 %v2783_v39, %s7266_s26  ;;  %v10860_v6 = vpop.permute.xlu0 %2871  ;;  %v15906_v39 = vld [vmem:[#allocation59_spill] sm:$0xff]  ;;  %v10864_v14 = vpop.permute.xlu1 %2869 }
 0x497   : > { %v2787_v23 = vmul.f32 %v15906_v39, %v10374_v22  ;;  %15907 = vst [vmem:[#allocation201_spill] sm:$0xff] %v10864_v14  ;;  %v15910_v39 = vld [vmem:[#allocation170_spill] sm:$0xff] }
 0x498   : > { %v2792_v14 = vmul.f32 %v15910_v39, %v10402_v21 }
 0x499   : > { %3111 = vrot.lane.b32.xlu0 %v2786_v27, %s7266_s26 }
 0x49a   : > { %3109 = vrot.lane.b32.xlu1 %v2785_v12, %s7266_s26  ;;  %v10870_v27 = vpop.permute.xlu0 %2875  ;;  %v15909_v12 = vld [vmem:[#allocation149_spill] sm:$0xff]  ;;  %v10874_v18 = vpop.permute.xlu1 %2873 }
 0x49b   : > { %v2789_v13 = vmul.f32 %v15909_v12, %v10390_v38  ;;  %v2794_v12 = vmul.f32 %v10596_v4, %v10420_v61 }
 0x49d   : > { %3115 = vrot.lane.b32.xlu0 %v2788_v63, %s7266_s26 }
 0x49e   : > { %3113 = vrot.lane.b32.xlu1 %v2787_v23, %s7266_s26  ;;  %v10880_v63 = vpop.permute.xlu0 %2879  ;;  %v2791_v23 = vmul.f32 %v10568_v8, %v10406_v36  ;;  %v10884_v1 = vpop.permute.xlu1 %2877  ;;  %v2796_v8 = vmul.f32 %v10618_v58, %v10436_v60 }
 0x4a1   : > { %3119 = vrot.lane.b32.xlu0 %v2790_v25, %s7266_s26 }
 0x4a2   : > { %3117 = vrot.lane.b32.xlu1 %v2789_v13, %s7266_s26  ;;  %v10890_v25 = vpop.permute.xlu0 %2883  ;;  %v2793_v13 = vmul.f32 %v10603_v53, %v10424_v50  ;;  %v10894_v39 = vpop.permute.xlu1 %2881  ;;  %v2798_v53 = vmul.f32 %v10638_v52, %v10458_v2 }
 0x4a5   : > { %3123 = vrot.lane.b32.xlu0 %v2792_v14, %s7266_s26 }
 0x4a6   : > { %3121 = vrot.lane.b32.xlu1 %v2791_v23, %s7266_s26  ;;  %v10900_v14 = vpop.permute.xlu0 %2887  ;;  %v2795_v23 = vmul.f32 %v10622_v46, %v10442_v48  ;;  %v2800_v46 = vmul.f32 %v10656_v43, %v10476_v31 }
 0x4a7   : > { %v10904_v4 = vpop.permute.xlu1 %2885 }
 0x4a9   : > { %3127 = vrot.lane.b32.xlu0 %v2794_v12, %s7266_s26 }
 0x4aa   : > { %3125 = vrot.lane.b32.xlu1 %v2793_v13, %s7266_s26  ;;  %v2797_v13 = vmul.f32 %v10643_v33, %v10464_v11  ;;  %v2802_v33 = vmul.f32 %v10677_v24, %v10498_v47 }
 0x4ad   : > { %3131 = vrot.lane.b32.xlu0 %v2796_v8, %s7266_s26  ;;  %v10910_v12 = vpop.permute.xlu0 %2891 }
 0x4ae   : > { %3129 = vrot.lane.b32.xlu1 %v2795_v23, %s7266_s26  ;;  %15911 = vst [vmem:[#allocation146_spill] sm:$0xff] %v10910_v12  ;;  %v10914_v58 = vpop.permute.xlu1 %2889  ;;  %v2799_v23 = vmul.f32 %v10660_v30, %v10482_v56  ;;  %v2804_v30 = vmul.f32 %v10696_v29, %v10516_v40 }
 0x4af   : > { %15912 = vst [vmem:[#allocation19_spill] sm:$0xff] %v10914_v58 }
 0x4b1   : > { %3135 = vrot.lane.b32.xlu0 %v2798_v53, %s7266_s26 }
 0x4b2   : > { %3133 = vrot.lane.b32.xlu1 %v2797_v13, %s7266_s26  ;;  %v10920_v8 = vpop.permute.xlu0 %2895  ;;  %v2801_v13 = vmul.f32 %v10683_v20, %v10504_v51  ;;  %v2806_v20 = vmul.f32 %v10714_v32, %v10538_v35  ;;  %v2810_v32 = vmul.f32 %v10740_v55, %v10578_v19 }
 0x4b3   : > { %15913 = vst [vmem:[#allocation251_spill] sm:$0xff] %v10920_v8  ;;  %v10924_v52 = vpop.permute.xlu1 %2893 }
 0x4b4   : > { %15914 = vst [vmem:[#allocation236_spill] sm:$0xff] %v10924_v52 }
 0x4b5   : > { %3139 = vrot.lane.b32.xlu0 %v2800_v46, %s7266_s26 }
 0x4b6   : > { %3137 = vrot.lane.b32.xlu1 %v2799_v23, %s7266_s26  ;;  %v10930_v53 = vpop.permute.xlu0 %2899  ;;  %v2803_v23 = vmul.f32 %v10702_v10, %v10522_v5  ;;  %v2808_v10 = vmul.f32 %v10726_v16, %v10556_v62  ;;  %v2809_v16 = vmul.f32 %v10743_v45, %v10584_v59  ;;  %v2811_v45 = vmul.f32 %v10756_v37, %v10605_v42 }
 0x4b7   : > { %15915 = vst [vmem:[#allocation131_spill] sm:$0xff] %v10930_v53  ;;  %v10934_v43 = vpop.permute.xlu1 %2897 }
 0x4b8   : > { %15916 = vst [vmem:[#allocation68_spill] sm:$0xff] %v10934_v43 }
 0x4b9   : > { %3143 = vrot.lane.b32.xlu0 %v2802_v33, %s7266_s26 }
 0x4ba   : > { %3141 = vrot.lane.b32.xlu1 %v2801_v13, %s7266_s26  ;;  %v10940_v46 = vpop.permute.xlu0 %2903  ;;  %v2805_v13 = vmul.f32 %v10717_v28, %v10544_v34 }
 0x4bb   : > { %15917 = vst [vmem:[#allocation21_spill] sm:$0xff] %v10940_v46  ;;  %v10944_v24 = vpop.permute.xlu1 %2901 }
 0x4bc   : > { %15918 = vst [vmem:[#allocation209_spill] sm:$0xff] %v10944_v24 }
 0x4bd   : > { %3147 = vrot.lane.b32.xlu0 %v2804_v30, %s7266_s26 }
 0x4be   : > { %3145 = vrot.lane.b32.xlu1 %v2803_v23, %s7266_s26  ;;  %v2807_v23 = vmul.f32 %v10730_v26, %v10562_v9  ;;  %v10978_v26 = vld [vmem:[#allocation3] sm:$0xff] }
 0x4bf   : > { %v10950_v33 = vpop.permute.xlu0 %2907  ;;  %15923 = vst [vmem:[#allocation239_spill] sm:$0xff] %v10978_v26  ;;  %v3485_v46 = vrot.slane %v10978_v26, 1 }
 0x4c0   : > { %15919 = vst [vmem:[#allocation205_spill] sm:$0xff] %v10950_v33  ;;  %v10954_v29 = vpop.permute.xlu1 %2905 }
 0x4c1   : > { %15920 = vst [vmem:[#allocation105_spill] sm:$0xff] %v10954_v29  ;;  %3151 = vrot.lane.b32.xlu0 %v2806_v20, %s7266_s26  ;;  %v10970_v20 = vld [vmem:[#allocation3 + $0x8] sm:$0xff] }
 0x4c2   : > { %3149 = vrot.lane.b32.xlu1 %v2805_v13, %s7266_s26  ;;  %15921 = vst [vmem:[#allocation157_spill] sm:$0xff] %v10970_v20  ;;  %v10972_v13 = vld [vmem:[#allocation3 + $0x10] sm:$0x3] }
 0x4c3   : > { %v2976_v30 = vpop.permute.xlu0 %2975  ;;  %15922 = vst [vmem:[#allocation190_spill] sm:$0xff] %v10972_v13  ;;  %v3488_v55 = vrot.slane %v10972_v13, 1 }
 0x4c4   : > { %v10962_v24 = vpop.permute.xlu1 %2973 }
 0x4c5   : > { %3155 = vrot.lane.b32.xlu0 %v2808_v10, %s7266_s26  ;;  %v3486_v10 = vrot.slane %v10970_v20, 1 }
 0x4c6   : > { %3153 = vrot.lane.b32.xlu1 %v2807_v23, %s7266_s26  ;;  %v2812_v23 = vmul.f32 %v10752_v49, %v10598_v44 }
 0x4c7   : > { %v10968_v28 = vpop.permute.xlu0 %2979  ;;  %v3487_v13 = vsel %vm673_vm2, %v3485_v46, %v3486_v10 }
 0x4c8   : > { %v10976_v29 = vpop.permute.xlu1 %2977 }
 0x4c9   : > { %3159 = vrot.lane.b32.xlu0 %v2810_v32, %s7266_s26  ;;  %v3489_v32 = vsel %vm673_vm2, %v3486_v10, %v3488_v55 }
 0x4ca   : > { %3157 = vrot.lane.b32.xlu1 %v2809_v16, %s7266_s26 }
 0x4cb   : > { %v10986_v33 = vpop.permute.xlu0 %2983 }
 0x4cc   : > { %v10991_v59 = vpop.permute.xlu1 %2981 }
 0x4cd   : > { %3163 = vrot.lane.b32.xlu0 %v2812_v23, %s7266_s26 }
 0x4ce   : > { %3161 = vrot.lane.b32.xlu1 %v2811_v45, %s7266_s26 }
 0x4cf   : > { %v10996_v16 = vpop.permute.xlu0 %2987 }
 0x4d0   : > { %v10999_v49 = vpop.permute.xlu1 %2985 }
 0x4d1   : > { %3673 = vrot.lane.b32.xlu0 %v3489_v32, %s7255_s29 }
 0x4d2   : > { %3671 = vrot.lane.b32.xlu1 %v3487_v13, %s7255_s29 }
 0x4d3   : > { %v11003_v26 = vpop.permute.xlu0 %2991 }
 0x4d4   : > { %v11005_v37 = vpop.permute.xlu1 %2989 }
 0x4d7   : > { %v11007_v20 = vpop.permute.xlu0 %2995 }
 0x4d8   : > { %v11009_v23 = vpop.permute.xlu1 %2993 }
 0x4db   : > { %v11011_v45 = vpop.permute.xlu0 %2999 }
 0x4dc   : > { %v11013_v55 = vpop.permute.xlu1 %2997 }
 0x4df   : > { %v11015_v42 = vpop.permute.xlu0 %3003 }
 0x4e0   : > { %v11017_v46 = vpop.permute.xlu1 %3001 }
 0x4e3   : > { %v11019_v10 = vpop.permute.xlu0 %3007 }
 0x4e4   : > { %v11021_v32 = vpop.permute.xlu1 %3005 }
 0x4e7   : > { %v11023_v13 = vpop.permute.xlu0 %3011 }
 0x4e8   : > { %v11025_v44 = vpop.permute.xlu1 %3009 }
 0x4eb   : > { %v11027_v19 = vpop.permute.xlu0 %3015 }
 0x4ec   : > { %v11029_v43 = vpop.permute.xlu1 %3013 }
 0x4ed   : > { %15924 = vst [vmem:[#allocation124_spill] sm:$0xff] %v11029_v43 }
 0x4ef   : > { %v11031_v53 = vpop.permute.xlu0 %3019 }
 0x4f0   : > { %15925 = vst [vmem:[#allocation73_spill] sm:$0xff] %v11031_v53  ;;  %v11033_v9 = vpop.permute.xlu1 %3017  ;;  %v7147_v53 = vld [vmem:[%s14888_s4 + $0x8] sm:$0xff] }
 0x4f1   : > { %15926 = vst [vmem:[#allocation176_spill] sm:$0xff] %v11033_v9  ;;  %v2366_v9 = vmul.f32 %v7147_v53, %v10322_v17  ;;  %v7149_v17 = vld [vmem:[%s14888_s4 + $0x18] sm:$0xff] }
 0x4f2   : > { %v2368_v53 = vmul.f32 %v7149_v17, %v10334_v3  ;;  %v15938_v3 = vld [vmem:[#allocation206_spill] sm:$0xff] }
 0x4f3   : > { %v11035_v62 = vpop.permute.xlu0 %3023 }
 0x4f4   : > { %15927 = vst [vmem:[#allocation204_spill] sm:$0xff] %v11035_v62  ;;  %v11037_v52 = vpop.permute.xlu1 %3021 }
 0x4f5   : > { %15928 = vst [vmem:[#allocation147_spill] sm:$0xff] %v11037_v52  ;;  %v15936_v52 = vld [vmem:[#allocation67_spill] sm:$0xff] }
 0x4f7   : > { %v11039_v8 = vpop.permute.xlu0 %3027 }
 0x4f8   : > { %15929 = vst [vmem:[#allocation23_spill] sm:$0xff] %v11039_v8  ;;  %v11041_v34 = vpop.permute.xlu1 %3025  ;;  %v7148_v8 = vld [vmem:[%s14888_s4] sm:$0xff] }
 0x4f9   : > { %15930 = vst [vmem:[#allocation58_spill] sm:$0xff] %v11041_v34  ;;  %v2365_v34 = vmul.f32 %v7148_v8, %v10325_v0 }
 0x4fb   : > { %v11043_v35 = vpop.permute.xlu0 %3031 }
 0x4fc   : > { %15931 = vst [vmem:[#allocation238_spill] sm:$0xff] %v11043_v35  ;;  %v11045_v58 = vpop.permute.xlu1 %3029  ;;  %v15935_v35 = vld [vmem:[#allocation129_spill] sm:$0xff] }
 0x4fd   : > { %15932 = vst [vmem:[#allocation133_spill] sm:$0xff] %v11045_v58  ;;  %v3199_v58 = vsel %vm3197_vm14, %v2366_v9, %v15935_v35  ;;  %v7150_v35 = vld [vmem:[%s14888_s4 + $0x10] sm:$0xff] }
 0x4fe   : > { %v3231_v5 = vsel %vm482_vm0, %v3199_v58, %v2976_v30  ;;  %v15937_v58 = vld [vmem:[#allocation165_spill] sm:$0xff] }
 0x4ff   : > { %v11047_v12 = vpop.permute.xlu0 %3035 }
 0x500   : > { %15933 = vst [vmem:[#allocation142_spill] sm:$0xff] %v11047_v12  ;;  %v11053_v62 = vpop.permute.xlu1 %3033  ;;  %v3198_v12 = vsel %vm3197_vm14, %v2365_v34, %v15936_v52  ;;  %v2367_v34 = vmul.f32 %v7150_v35, %v10340_v57  ;;  %v3201_v52 = vsel %vm3197_vm14, %v2368_v53, %v15937_v58  ;;  %v7151_v57 = vld [vmem:[%s14888_s4 + $0x28] sm:$0xff]  ;;  %v7152_v53 = vld [vmem:[%s14888_s4 + $0x20] sm:$0xff] }
 0x501   : > { %15934 = vst [vmem:[#allocation166_spill] sm:$0xff] %v11053_v62  ;;  %v3230_v62 = vsel %vm482_vm0, %v3198_v12, %v10962_v24  ;;  %v2370_v24 = vmul.f32 %v7151_v57, %v10352_v7  ;;  %v15940_v7 = vld [vmem:[#allocation106_spill] sm:$0xff] }
 0x502   : > { %v3200_v12 = vsel %vm3197_vm14, %v2367_v34, %v15938_v3 }
 0x503   : > { %v3104_v43 = vpop.permute.xlu0 %3103 }
 0x504   : > { %v3264_v0 = vsel %vm3262_vm15, %v3231_v5, %v3104_v43  ;;  %v3102_v8 = vpop.permute.xlu1 %3101  ;;  %v3233_v5 = vsel %vm482_vm0, %v3201_v52, %v10968_v28 }
 0x505   : > { %3352 = vst.msk [vmem:[#allocation3 + $0x21] sm:$0xff] %vm1661_vm3, %v3264_v0  ;;  %v3263_v9 = vsel %vm3262_vm15, %v3230_v62, %v3102_v8  ;;  %v3232_v62 = vsel %vm482_vm0, %v3200_v12, %v10976_v29  ;;  %v2369_v0 = vmul.f32 %v7152_v53, %v10356_v15  ;;  %v15939_v8 = vld [vmem:[#allocation202_spill] sm:$0xff]  ;;  %v7153_v15 = vld [vmem:[%s14888_s4 + $0x38] sm:$0xff] }
 0x506   : > { %3351 = vst.msk [vmem:[#allocation3 + $0x19] sm:$0xff] %vm1661_vm3, %v3263_v9  ;;  %v3203_v35 = vsel %vm3197_vm14, %v2370_v24, %v15939_v8  ;;  %v2372_v58 = vmul.f32 %v7153_v15, %v10370_v54 }
 0x507   : > { %v3108_v43 = vpop.permute.xlu0 %3107  ;;  %v3202_v29 = vsel %vm3197_vm14, %v2369_v0, %v15940_v7  ;;  %v3235_v34 = vsel %vm482_vm0, %v3203_v35, %v10986_v33 }
 0x508   : > { %v3266_v30 = vsel %vm3262_vm15, %v3233_v5, %v3108_v43  ;;  %v3106_v17 = vpop.permute.xlu1 %3105  ;;  %v3234_v52 = vsel %vm482_vm0, %v3202_v29, %v10991_v59  ;;  %v7154_v43 = vld [vmem:[%s14888_s4 + $0x30] sm:$0xff] }
 0x509   : > { %3354 = vst.msk [vmem:[#allocation3 + $0x39] sm:$0xff] %vm1661_vm3, %v3266_v30  ;;  %v3265_v28 = vsel %vm3262_vm15, %v3232_v62, %v3106_v17  ;;  %v2371_v33 = vmul.f32 %v7154_v43, %v10374_v22  ;;  %v15941_v62 = vld [vmem:[#allocation155_spill] sm:$0xff]  ;;  %v15942_v22 = vld [vmem:[#allocation189_spill] sm:$0xff] }
 0x50a   : > { %3353 = vst.msk [vmem:[#allocation3 + $0x31] sm:$0xff] %vm1661_vm3, %v3265_v28  ;;  %v3205_v30 = vsel %vm3197_vm14, %v2372_v58, %v15941_v62  ;;  %v7155_v28 = vld [vmem:[%s14888_s4 + $0x48] sm:$0xff]  ;;  %v15944_v62 = vld [vmem:[#allocation122_spill] sm:$0xff] }
 0x50b   : > { %v3112_v9 = vpop.permute.xlu0 %3111  ;;  %v3204_v0 = vsel %vm3197_vm14, %v2371_v33, %v15942_v22  ;;  %v2374_v8 = vmul.f32 %v7155_v28, %v10384_v41  ;;  %v3237_v35 = vsel %vm482_vm0, %v3205_v30, %v10996_v16  ;;  %v7156_v41 = vld [vmem:[%s14888_s4 + $0x40] sm:$0xff]  ;;  %v15943_v33 = vld [vmem:[#allocation237_spill] sm:$0xff] }
 0x50c   : > { %v3268_v3 = vsel %vm3262_vm15, %v3235_v34, %v3112_v9  ;;  %v3110_v12 = vpop.permute.xlu1 %3109  ;;  %v11111_v5 = vld [vmem:[#allocation3 + $0x28] sm:$0x3]  ;;  %v3236_v29 = vsel %vm482_vm0, %v3204_v0, %v10999_v49  ;;  %v2373_v16 = vmul.f32 %v7156_v41, %v10390_v38 }
 0x50d   : > { %3356 = vst.msk [vmem:[#allocation3 + $0x51] sm:$0xff] %vm1661_vm3, %v3268_v3  ;;  %v3267_v57 = vsel %vm3262_vm15, %v3234_v52, %v3110_v12  ;;  %v11119_v24 = vld [vmem:[#allocation3 + $0x20] sm:$0xff]  ;;  %v3493_v54 = vrot.slane %v11111_v5, 1  ;;  %v11122_v59 = vld [vmem:[#allocation3 + $0x18] sm:$0xff] }
 0x50e   : > { %3355 = vst.msk [vmem:[#allocation3 + $0x49] sm:$0xff] %vm1661_vm3, %v3267_v57  ;;  %v3491_v17 = vrot.slane %v11119_v24, 1  ;;  %v3490_v53 = vrot.slane %v11122_v59, 1  ;;  %v3207_v57 = vsel %vm3197_vm14, %v2374_v8, %v15943_v33  ;;  %v3206_v30 = vsel %vm3197_vm14, %v2373_v16, %v15944_v62 }
 0x50f   : > { %v3116_v7 = vpop.permute.xlu0 %3115  ;;  %v3239_v22 = vsel %vm482_vm0, %v3207_v57, %v11003_v26  ;;  %v3238_v28 = vsel %vm482_vm0, %v3206_v30, %v11005_v37  ;;  %v15946_v57 = vld [vmem:[#allocation174_spill] sm:$0xff] }
 0x510   : > { %v3270_v34 = vsel %vm3262_vm15, %v3237_v35, %v3116_v7  ;;  %v3114_v9 = vpop.permute.xlu1 %3113  ;;  %v11141_v15 = vsel %vm673_vm2, %v3491_v17, %v3493_v54  ;;  %v11144_v58 = vsel %vm673_vm2, %v3490_v53, %v3491_v17  ;;  %v11146_v52 = vld [vmem:[#allocation3 + $0x40] sm:$0x3]  ;;  %v7157_v17 = vld [vmem:[%s14888_s4 + $0x58] sm:$0xff] }
 0x511   : > { %3358 = vst.msk [vmem:[#allocation3 + $0x69] sm:$0xff] %vm1661_vm3, %v3270_v34  ;;  %v3269_v49 = vsel %vm3262_vm15, %v3236_v29, %v3114_v9  ;;  %3677 = vrot.lane.b32.xlu0 %v11141_v15, %s7255_s29  ;;  %3675 = vrot.lane.b32.xlu1 %v11144_v58, %s7255_s29  ;;  %v11158_v3 = vld [vmem:[#allocation3 + $0x38] sm:$0xff]  ;;  %v3498_v12 = vrot.slane %v11146_v52, 1  ;;  %v11161_v43 = vld [vmem:[#allocation3 + $0x30] sm:$0xff]  ;;  %v2376_v53 = vmul.f32 %v7157_v17, %v10402_v21  ;;  %v7158_v21 = vld [vmem:[%s14888_s4 + $0x50] sm:$0xff] }
 0x512   : > { %3357 = vst.msk [vmem:[#allocation3 + $0x61] sm:$0xff] %vm1661_vm3, %v3269_v49  ;;  %v3496_v38 = vrot.slane %v11158_v3, 1  ;;  %v3495_v54 = vrot.slane %v11161_v43, 1  ;;  %v2375_v26 = vmul.f32 %v7158_v21, %v10406_v36  ;;  %v15945_v49 = vld [vmem:[#allocation71_spill] sm:$0xff] }
 0x513   : > { %v3120_v0 = vpop.permute.xlu0 %3119 }
 0x514   : > { %v3272_v8 = vsel %vm3262_vm15, %v3239_v22, %v3120_v0  ;;  %v3118_v35 = vpop.permute.xlu1 %3117  ;;  %v11180_v7 = vsel %vm673_vm2, %v3496_v38, %v3498_v12  ;;  %v11183_v29 = vsel %vm673_vm2, %v3495_v54, %v3496_v38  ;;  %v11185_v34 = vld [vmem:[#allocation3 + $0x58] sm:$0x3]  ;;  %v3209_v12 = vsel %vm3197_vm14, %v2376_v53, %v15945_v49 }
 0x515   : > { %3360 = vst.msk [vmem:[#allocation3 + $0x81] sm:$0xff] %vm1661_vm3, %v3272_v8  ;;  %v3271_v37 = vsel %vm3262_vm15, %v3238_v28, %v3118_v35  ;;  %3681 = vrot.lane.b32.xlu0 %v11180_v7, %s7255_s29  ;;  %3679 = vrot.lane.b32.xlu1 %v11183_v29, %s7255_s29  ;;  %v11197_v9 = vld [vmem:[#allocation3 + $0x50] sm:$0xff]  ;;  %v3503_v41 = vrot.slane %v11185_v34, 1  ;;  %v11200_v16 = vld [vmem:[#allocation3 + $0x48] sm:$0xff]  ;;  %v3208_v38 = vsel %vm3197_vm14, %v2375_v26, %v15946_v57  ;;  %v7159_v54 = vld [vmem:[%s14888_s4 + $0x68] sm:$0xff] }
 0x516   : > { %3359 = vst.msk [vmem:[#allocation3 + $0x79] sm:$0xff] %vm1661_vm3, %v3271_v37  ;;  %v3501_v36 = vrot.slane %v11197_v9, 1  ;;  %v3500_v33 = vrot.slane %v11200_v16, 1  ;;  %v2378_v62 = vmul.f32 %v7159_v54, %v10420_v61  ;;  %v3241_v30 = vsel %vm482_vm0, %v3209_v12, %v11007_v20  ;;  %v7160_v61 = vld [vmem:[%s14888_s4 + $0x60] sm:$0xff]  ;;  %v15947_v12 = vld [vmem:[#allocation201_spill] sm:$0xff] }
 0x517   : > { %v3124_v17 = vpop.permute.xlu0 %3123  ;;  %v3240_v53 = vsel %vm482_vm0, %v3208_v38, %v11009_v23  ;;  %v2377_v20 = vmul.f32 %v7160_v61, %v10424_v50 }
 0x518   : > { %v3274_v22 = vsel %vm3262_vm15, %v3241_v30, %v3124_v17  ;;  %v3122_v0 = vpop.permute.xlu1 %3121  ;;  %v11219_v28 = vsel %vm673_vm2, %v3501_v36, %v3503_v41  ;;  %v11222_v8 = vsel %vm673_vm2, %v3500_v33, %v3501_v36  ;;  %v11224_v35 = vld [vmem:[#allocation3 + $0x70] sm:$0x3]  ;;  %v3211_v41 = vsel %vm3197_vm14, %v2378_v62, %v10860_v6  ;;  %v7161_v33 = vld [vmem:[%s14888_s4 + $0x78] sm:$0xff] }
 0x519   : > { %3362 = vst.msk [vmem:[#allocation3 + $0x99] sm:$0xff] %vm1661_vm3, %v3274_v22  ;;  %v3273_v23 = vsel %vm3262_vm15, %v3240_v53, %v3122_v0  ;;  %3685 = vrot.lane.b32.xlu0 %v11219_v28, %s7255_s29  ;;  %3683 = vrot.lane.b32.xlu1 %v11222_v8, %s7255_s29  ;;  %v11236_v21 = vld [vmem:[#allocation3 + $0x68] sm:$0xff]  ;;  %v3508_v26 = vrot.slane %v11224_v35, 1  ;;  %v11239_v37 = vld [vmem:[#allocation3 + $0x60] sm:$0xff]  ;;  %v3210_v36 = vsel %vm3197_vm14, %v2377_v20, %v15947_v12 }
 0x51a   : > { %3361 = vst.msk [vmem:[#allocation3 + $0x91] sm:$0xff] %vm1661_vm3, %v3273_v23  ;;  %v3506_v50 = vrot.slane %v11236_v21, 1  ;;  %v3505_v49 = vrot.slane %v11239_v37, 1  ;;  %v2380_v57 = vmul.f32 %v7161_v33, %v10436_v60  ;;  %v3243_v38 = vsel %vm482_vm0, %v3211_v41, %v11011_v45  ;;  %v7162_v60 = vld [vmem:[%s14888_s4 + $0x70] sm:$0xff] }
 0x51b   : > { %v3128_v54 = vpop.permute.xlu0 %3127  ;;  %v3242_v6 = vsel %vm482_vm0, %v3210_v36, %v11013_v55  ;;  %v2379_v45 = vmul.f32 %v7162_v60, %v10442_v48 }
 0x51c   : > { %v3276_v62 = vsel %vm3262_vm15, %v3243_v38, %v3128_v54  ;;  %v3126_v30 = vpop.permute.xlu1 %3125  ;;  %v11258_v17 = vsel %vm673_vm2, %v3506_v50, %v3508_v26  ;;  %v11261_v53 = vsel %vm673_vm2, %v3505_v49, %v3506_v50  ;;  %v11263_v22 = vld [vmem:[#allocation3 + $0x88] sm:$0x3]  ;;  %v3213_v23 = vsel %vm3197_vm14, %v2380_v57, %v10870_v27  ;;  %v7163_v50 = vld [vmem:[%s14888_s4 + $0x88] sm:$0xff] }
 0x51d   : > { %15948 = vst [vmem:[#allocation211_spill] sm:$0xff] %v11258_v17  ;;  %3364 = vst.msk [vmem:[#allocation3 + $0xb1] sm:$0xff] %vm1661_vm3, %v3276_v62  ;;  %v3275_v55 = vsel %vm3262_vm15, %v3242_v6, %v3126_v30  ;;  %3689 = vrot.lane.b32.xlu0 %v11258_v17, %s7255_s29  ;;  %3687 = vrot.lane.b32.xlu1 %v11261_v53, %s7255_s29  ;;  %v11275_v0 = vld [vmem:[#allocation3 + $0x80] sm:$0xff]  ;;  %v3513_v61 = vrot.slane %v11263_v22, 1  ;;  %v11278_v20 = vld [vmem:[#allocation3 + $0x78] sm:$0xff]  ;;  %v3212_v41 = vsel %vm3197_vm14, %v2379_v45, %v10874_v18 }
 0x51e   : > { %3363 = vst.msk [vmem:[#allocation3 + $0xa9] sm:$0xff] %vm1661_vm3, %v3275_v55  ;;  %v3511_v48 = vrot.slane %v11275_v0, 1  ;;  %v3510_v26 = vrot.slane %v11278_v20, 1  ;;  %v2382_v49 = vmul.f32 %v7163_v50, %v10458_v2  ;;  %v3245_v12 = vsel %vm482_vm0, %v3213_v23, %v11015_v42  ;;  %v7164_v2 = vld [vmem:[%s14888_s4 + $0x80] sm:$0xff] }
 0x51f   : > { %v3132_v36 = vpop.permute.xlu0 %3131  ;;  %v3244_v27 = vsel %vm482_vm0, %v3212_v41, %v11017_v46  ;;  %v2381_v42 = vmul.f32 %v7164_v2, %v10464_v11 }
 0x520   : > { %v3278_v33 = vsel %vm3262_vm15, %v3245_v12, %v3132_v36  ;;  %v3130_v57 = vpop.permute.xlu1 %3129  ;;  %v11297_v38 = vsel %vm673_vm2, %v3511_v48, %v3513_v61  ;;  %v11300_v18 = vsel %vm673_vm2, %v3510_v26, %v3511_v48  ;;  %v11302_v54 = vld [vmem:[#allocation3 + $0xa0] sm:$0x3]  ;;  %v3215_v60 = vsel %vm3197_vm14, %v2382_v49, %v10880_v63  ;;  %v7165_v61 = vld [vmem:[%s14888_s4 + $0x98] sm:$0xff] }
 0x521   : > { %15949 = vst [vmem:[#allocation207_spill] sm:$0xff] %v11297_v38  ;;  %15950 = vst [vmem:[#allocation107_spill] sm:$0xff] %v11300_v18  ;;  %v3277_v46 = vsel %vm3262_vm15, %v3244_v27, %v3130_v57  ;;  %3693 = vrot.lane.b32.xlu0 %v11297_v38, %s7255_s29  ;;  %3691 = vrot.lane.b32.xlu1 %v11300_v18, %s7255_s29  ;;  %v11314_v6 = vld [vmem:[#allocation3 + $0x98] sm:$0xff]  ;;  %v3518_v62 = vrot.slane %v11302_v54, 1  ;;  %v11317_v30 = vld [vmem:[#allocation3 + $0x90] sm:$0xff]  ;;  %v3214_v55 = vsel %vm3197_vm14, %v2381_v42, %v10884_v1 }
 0x522   : > { %3366 = vst.msk [vmem:[#allocation3 + $0xc9] sm:$0xff] %vm1661_vm3, %v3278_v33  ;;  %3365 = vst.msk [vmem:[#allocation3 + $0xc1] sm:$0xff] %vm1661_vm3, %v3277_v46  ;;  %v3516_v11 = vrot.slane %v11314_v6, 1  ;;  %v3515_v45 = vrot.slane %v11317_v30, 1  ;;  %v2384_v23 = vmul.f32 %v7165_v61, %v10476_v31  ;;  %v3247_v48 = vsel %vm482_vm0, %v3215_v60, %v11019_v10  ;;  %v7166_v31 = vld [vmem:[%s14888_s4 + $0x90] sm:$0xff]  ;;  %v7167_v46 = vld [vmem:[%s14888_s4 + $0xa8] sm:$0xff] }
 0x523   : > { %v3136_v26 = vpop.permute.xlu0 %3135  ;;  %v3246_v63 = vsel %vm482_vm0, %v3214_v55, %v11021_v32  ;;  %v2383_v10 = vmul.f32 %v7166_v31, %v10482_v56 }
 0x524   : > { %v3280_v41 = vsel %vm3262_vm15, %v3247_v48, %v3136_v26  ;;  %v3134_v50 = vpop.permute.xlu1 %3133  ;;  %v11336_v49 = vsel %vm673_vm2, %v3516_v11, %v3518_v62  ;;  %v11339_v1 = vsel %vm673_vm2, %v3515_v45, %v3516_v11  ;;  %v11341_v12 = vld [vmem:[#allocation3 + $0xb8] sm:$0x3]  ;;  %v3217_v57 = vsel %vm3197_vm14, %v2384_v23, %v10890_v25 }
 0x525   : > { %15951 = vst [vmem:[#allocation159_spill] sm:$0xff] %v11336_v49  ;;  %15952 = vst [vmem:[#allocation191_spill] sm:$0xff] %v11339_v1  ;;  %v3279_v32 = vsel %vm3262_vm15, %v3246_v63, %v3134_v50  ;;  %3697 = vrot.lane.b32.xlu0 %v11336_v49, %s7255_s29  ;;  %3695 = vrot.lane.b32.xlu1 %v11339_v1, %s7255_s29  ;;  %v11353_v36 = vld [vmem:[#allocation3 + $0xb0] sm:$0xff]  ;;  %v3523_v27 = vrot.slane %v11341_v12, 1  ;;  %v11356_v33 = vld [vmem:[#allocation3 + $0xa8] sm:$0xff]  ;;  %v3216_v42 = vsel %vm3197_vm14, %v2383_v10, %v10894_v39 }
 0x526   : > { %3368 = vst.msk [vmem:[#allocation3 + $0xe1] sm:$0xff] %vm1661_vm3, %v3280_v41  ;;  %3367 = vst.msk [vmem:[#allocation3 + $0xd9] sm:$0xff] %vm1661_vm3, %v3279_v32  ;;  %v3521_v56 = vrot.slane %v11353_v36, 1  ;;  %v3520_v2 = vrot.slane %v11356_v33, 1  ;;  %v2386_v62 = vmul.f32 %v7167_v46, %v10498_v47  ;;  %v3249_v60 = vsel %vm482_vm0, %v3217_v57, %v11023_v13  ;;  %v7168_v47 = vld [vmem:[%s14888_s4 + $0xa0] sm:$0xff]  ;;  %v7169_v10 = vld [vmem:[%s14888_s4 + $0xb8] sm:$0xff] }
 0x527   : > { %v3140_v11 = vpop.permute.xlu0 %3139  ;;  %v3248_v25 = vsel %vm482_vm0, %v3216_v42, %v11025_v44  ;;  %v2385_v13 = vmul.f32 %v7168_v47, %v10504_v51  ;;  %v2388_v32 = vmul.f32 %v7169_v10, %v10516_v40  ;;  %v7170_v40 = vld [vmem:[%s14888_s4 + $0xb0] sm:$0xff] }
 0x528   : > { %v3282_v45 = vsel %vm3262_vm15, %v3249_v60, %v3140_v11  ;;  %v3138_v55 = vpop.permute.xlu1 %3137  ;;  %v11375_v61 = vsel %vm673_vm2, %v3521_v56, %v3523_v27  ;;  %v11378_v39 = vsel %vm673_vm2, %v3520_v2, %v3521_v56  ;;  %v3219_v41 = vsel %vm3197_vm14, %v2386_v62, %v10900_v14  ;;  %v15955_v14 = vld [vmem:[#allocation124_spill] sm:$0xff]  ;;  %v15959_v47 = vld [vmem:[#allocation146_spill] sm:$0xff] }
 0x529   : > { %15953 = vst [vmem:[#allocation241_spill] sm:$0xff] %v11375_v61  ;;  %15954 = vst [vmem:[#allocation126_spill] sm:$0xff] %v11378_v39  ;;  %v11380_v23 = vld [vmem:[#allocation3 + $0xd0] sm:$0x3]  ;;  %v3281_v44 = vsel %vm3262_vm15, %v3248_v25, %v3138_v55  ;;  %3701 = vrot.lane.b32.xlu0 %v11375_v61, %s7255_s29  ;;  %3699 = vrot.lane.b32.xlu1 %v11378_v39, %s7255_s29  ;;  %v11392_v48 = vld [vmem:[#allocation3 + $0xc8] sm:$0xff]  ;;  %v3218_v31 = vsel %vm3197_vm14, %v2385_v13, %v10904_v4 }
 0x52a   : > { %3370 = vst.msk [vmem:[#allocation3 + $0xf9] sm:$0xff] %vm1661_vm3, %v3282_v45  ;;  %v3528_v26 = vrot.slane %v11380_v23, 1  ;;  %v11395_v63 = vld [vmem:[#allocation3 + $0xc0] sm:$0xff]  ;;  %3369 = vst.msk [vmem:[#allocation3 + $0xf1] sm:$0xff] %vm1661_vm3, %v3281_v44  ;;  %v3526_v51 = vrot.slane %v11392_v48, 1  ;;  %v3251_v27 = vsel %vm482_vm0, %v3219_v41, %v11027_v19  ;;  %v3250_v56 = vsel %vm482_vm0, %v3218_v31, %v15955_v14  ;;  %v15958_v19 = vld [vmem:[#allocation123_spill] sm:$0xff] }
 0x52b   : > { %v3525_v50 = vrot.slane %v11395_v63, 1  ;;  %v3144_v57 = vpop.permute.xlu0 %3143  ;;  %v2387_v60 = vmul.f32 %v7170_v40, %v15958_v19  ;;  %v3221_v13 = vsel %vm3197_vm14, %v2388_v32, %v15959_v47  ;;  %v15960_v41 = vld [vmem:[#allocation19_spill] sm:$0xff]  ;;  %v15961_v31 = vld [vmem:[#allocation168_spill] sm:$0xff] }
 0x52c   : > { %v3284_v2 = vsel %vm3262_vm15, %v3251_v27, %v3144_v57  ;;  %v3142_v42 = vpop.permute.xlu1 %3141  ;;  %v11414_v46 = vsel %vm673_vm2, %v3526_v51, %v3528_v26  ;;  %v15962_v27 = vld [vmem:[#allocation73_spill] sm:$0xff]  ;;  %v15963_v32 = vld [vmem:[#allocation176_spill] sm:$0xff]  ;;  %v15966_v47 = vld [vmem:[#allocation35_spill] sm:$0xff] }
 0x52d   : > { %15956 = vst [vmem:[#allocation178_spill] sm:$0xff] %v11414_v46  ;;  %v11417_v4 = vsel %vm673_vm2, %v3525_v50, %v3526_v51  ;;  %v11419_v62 = vld [vmem:[#allocation3 + $0xe8] sm:$0x3]  ;;  %3372 = vst.msk [vmem:[#allocation3 + $0x111] sm:$0xff] %vm1661_vm3, %v3284_v2  ;;  %v3283_v11 = vsel %vm3262_vm15, %v3250_v56, %v3142_v42  ;;  %3705 = vrot.lane.b32.xlu0 %v11414_v46, %s7255_s29  ;;  %v11431_v25 = vld [vmem:[#allocation3 + $0xe0] sm:$0xff]  ;;  %v3220_v51 = vsel %vm3197_vm14, %v2387_v60, %v15960_v41 }
 0x52e   : > { %15957 = vst [vmem:[#allocation208_spill] sm:$0xff] %v11417_v4  ;;  %3703 = vrot.lane.b32.xlu1 %v11417_v4, %s7255_s29  ;;  %v3533_v45 = vrot.slane %v11419_v62, 1  ;;  %v11434_v55 = vld [vmem:[#allocation3 + $0xd8] sm:$0xff]  ;;  %3371 = vst.msk [vmem:[#allocation3 + $0x109] sm:$0xff] %vm1661_vm3, %v3283_v11  ;;  %v3531_v44 = vrot.slane %v11431_v25, 1  ;;  %v3253_v57 = vsel %vm482_vm0, %v3221_v13, %v15962_v27  ;;  %v3252_v56 = vsel %vm482_vm0, %v3220_v51, %v15963_v32  ;;  %v7172_v11 = vld [vmem:[%s14888_s4 + $0xc0] sm:$0xff] }
 0x52f   : > { %v3530_v26 = vrot.slane %v11434_v55, 1  ;;  %v7171_v50 = vld [vmem:[%s14888_s4 + $0xc8] sm:$0xff]  ;;  %v3148_v14 = vpop.permute.xlu0 %3147  ;;  %v2389_v13 = vmul.f32 %v7172_v11, %v15966_v47  ;;  %v15967_v51 = vld [vmem:[#allocation251_spill] sm:$0xff] }
 0x530   : > { %v2390_v10 = vmul.f32 %v7171_v50, %v15961_v31  ;;  %v3286_v2 = vsel %vm3262_vm15, %v3253_v57, %v3148_v14  ;;  %v3146_v42 = vpop.permute.xlu1 %3145  ;;  %v11453_v40 = vsel %vm673_vm2, %v3531_v44, %v3533_v45  ;;  %v15968_v57 = vld [vmem:[#allocation236_spill] sm:$0xff]  ;;  %v7173_v32 = vld [vmem:[%s14888_s4 + $0xd8] sm:$0xff] }
 0x531   : > { %15964 = vst [vmem:[#allocation148_spill] sm:$0xff] %v11453_v40  ;;  %v11456_v19 = vsel %vm673_vm2, %v3530_v26, %v3531_v44  ;;  %v11458_v60 = vld [vmem:[#allocation3 + $0x100] sm:$0x3]  ;;  %3374 = vst.msk [vmem:[#allocation3 + $0x129] sm:$0xff] %vm1661_vm3, %v3286_v2  ;;  %v3285_v41 = vsel %vm3262_vm15, %v3252_v56, %v3146_v42  ;;  %3709 = vrot.lane.b32.xlu0 %v11453_v40, %s7255_s29  ;;  %v11470_v45 = vld [vmem:[#allocation3 + $0xf8] sm:$0xff]  ;;  %v3222_v14 = vsel %vm3197_vm14, %v2389_v13, %v15968_v57 }
 0x532   : > { %15965 = vst [vmem:[#allocation26_spill] sm:$0xff] %v11456_v19  ;;  %3707 = vrot.lane.b32.xlu1 %v11456_v19, %s7255_s29  ;;  %v3538_v44 = vrot.slane %v11458_v60, 1  ;;  %v11473_v26 = vld [vmem:[#allocation3 + $0xf0] sm:$0xff]  ;;  %v3223_v50 = vsel %vm3197_vm14, %v2390_v10, %v15967_v51  ;;  %3373 = vst.msk [vmem:[#allocation3 + $0x121] sm:$0xff] %vm1661_vm3, %v3285_v41  ;;  %v3536_v31 = vrot.slane %v11470_v45, 1  ;;  %v15969_v56 = vld [vmem:[#allocation103_spill] sm:$0xff] }
 0x533   : > { %v3535_v27 = vrot.slane %v11473_v26, 1  ;;  %v2392_v2 = vmul.f32 %v7173_v32, %v15969_v56  ;;  %v15970_v42 = vld [vmem:[#allocation204_spill] sm:$0xff]  ;;  %v3152_v47 = vpop.permute.xlu0 %3151  ;;  %v15971_v10 = vld [vmem:[#allocation147_spill] sm:$0xff]  ;;  %v7174_v32 = vld [vmem:[%s14888_s4 + $0xd0] sm:$0xff] }
 0x534   : > { %v3255_v11 = vsel %vm482_vm0, %v3223_v50, %v15970_v42  ;;  %v3254_v41 = vsel %vm482_vm0, %v3222_v14, %v15971_v10  ;;  %v3150_v40 = vpop.permute.xlu1 %3149  ;;  %v11492_v19 = vsel %vm673_vm2, %v3536_v31, %v3538_v44  ;;  %v11497_v57 = vld [vmem:[#allocation3 + $0x118] sm:$0x3]  ;;  %v15974_v50 = vld [vmem:[#allocation118_spill] sm:$0xff]  ;;  %v15975_v42 = vld [vmem:[#allocation131_spill] sm:$0xff] }
 0x535   : > { %v3288_v51 = vsel %vm3262_vm15, %v3255_v11, %v3152_v47  ;;  %15972 = vst [vmem:[#allocation74_spill] sm:$0xff] %v11492_v19  ;;  %v11495_v13 = vsel %vm673_vm2, %v3535_v27, %v3536_v31  ;;  %v2391_v56 = vmul.f32 %v7174_v32, %v15974_v50  ;;  %v3287_v14 = vsel %vm3262_vm15, %v3254_v41, %v3150_v40  ;;  %v11509_v44 = vld [vmem:[#allocation3 + $0x110] sm:$0xff]  ;;  %v11512_v27 = vld [vmem:[#allocation3 + $0x108] sm:$0xff] }
 0x536   : > { %15973 = vst [vmem:[#allocation240_spill] sm:$0xff] %v11495_v13  ;;  %3376 = vst.msk [vmem:[#allocation3 + $0x141] sm:$0xff] %vm1661_vm3, %v3288_v51  ;;  %3713 = vrot.lane.b32.xlu0 %v11492_v19, %s7255_s29  ;;  %3711 = vrot.lane.b32.xlu1 %v11495_v13, %s7255_s29  ;;  %v3543_v31 = vrot.slane %v11497_v57, 1  ;;  %v3225_v11 = vsel %vm3197_vm14, %v2392_v2, %v15975_v42  ;;  %v3541_v47 = vrot.slane %v11509_v44, 1  ;;  %v3540_v40 = vrot.slane %v11512_v27, 1  ;;  %v15976_v10 = vld [vmem:[#allocation68_spill] sm:$0xff] }
 0x537   : > { %3375 = vst.msk [vmem:[#allocation3 + $0x139] sm:$0xff] %vm1661_vm3, %v3287_v14  ;;  %v3224_v41 = vsel %vm3197_vm14, %v2391_v56, %v15976_v10  ;;  %v7175_v51 = vld [vmem:[%s14888_s4 + $0xe8] sm:$0xff]  ;;  %v15977_v32 = vld [vmem:[#allocation144_spill] sm:$0xff]  ;;  %v15978_v19 = vld [vmem:[#allocation23_spill] sm:$0xff]  ;;  %v3156_v46 = vpop.permute.xlu0 %3155 }
 0x538   : > { %v2394_v50 = vmul.f32 %v7175_v51, %v15977_v32  ;;  %v3257_v13 = vsel %vm482_vm0, %v3225_v11, %v15978_v19  ;;  %v15979_v2 = vld [vmem:[#allocation58_spill] sm:$0xff]  ;;  %v3154_v4 = vpop.permute.xlu1 %3153  ;;  %v11531_v61 = vsel %vm673_vm2, %v3541_v47, %v3543_v31  ;;  %v11534_v56 = vsel %vm673_vm2, %v3540_v40, %v3541_v47  ;;  %v11536_v10 = vld [vmem:[#allocation3 + $0x130] sm:$0x3]  ;;  %v15982_v19 = vld [vmem:[#allocation243_spill] sm:$0xff] }
 0x539   : > { %v3256_v14 = vsel %vm482_vm0, %v3224_v41, %v15979_v2  ;;  %v3290_v42 = vsel %vm3262_vm15, %v3257_v13, %v3156_v46  ;;  %15980 = vst [vmem:[#allocation135_spill] sm:$0xff] %v11531_v61  ;;  %15981 = vst [vmem:[#allocation70_spill] sm:$0xff] %v11534_v56  ;;  %v7176_v51 = vld [vmem:[%s14888_s4 + $0xe0] sm:$0xff]  ;;  %v11548_v46 = vld [vmem:[#allocation3 + $0x128] sm:$0xff]  ;;  %v3548_v13 = vrot.slane %v11536_v10, 1 }
 0x53a   : > { %v2393_v11 = vmul.f32 %v7176_v51, %v15982_v19  ;;  %3378 = vst.msk [vmem:[#allocation3 + $0x159] sm:$0xff] %vm1661_vm3, %v3290_v42  ;;  %v3289_v41 = vsel %vm3262_vm15, %v3256_v14, %v3154_v4  ;;  %3717 = vrot.lane.b32.xlu0 %v11531_v61, %s7255_s29  ;;  %3715 = vrot.lane.b32.xlu1 %v11534_v56, %s7255_s29  ;;  %v11551_v31 = vld [vmem:[#allocation3 + $0x120] sm:$0xff]  ;;  %v15983_v47 = vld [vmem:[#allocation21_spill] sm:$0xff]  ;;  %v3546_v32 = vrot.slane %v11548_v46, 1  ;;  %v7177_v42 = vld [vmem:[%s14888_s4 + $0xf8] sm:$0xff] }
 0x53b   : > { %v3227_v40 = vsel %vm3197_vm14, %v2394_v50, %v15983_v47  ;;  %3377 = vst.msk [vmem:[#allocation3 + $0x151] sm:$0xff] %vm1661_vm3, %v3289_v41  ;;  %v3545_v4 = vrot.slane %v11551_v31, 1  ;;  %v15984_v2 = vld [vmem:[#allocation209_spill] sm:$0xff]  ;;  %v15985_v51 = vld [vmem:[#allocation11_spill] sm:$0xff]  ;;  %v15986_v61 = vld [vmem:[#allocation238_spill] sm:$0xff]  ;;  %v3160_v39 = vpop.permute.xlu0 %3159 }
 0x53c   : > { %v3226_v14 = vsel %vm3197_vm14, %v2393_v11, %v15984_v2  ;;  %v2396_v19 = vmul.f32 %v7177_v42, %v15985_v51  ;;  %v3259_v56 = vsel %vm482_vm0, %v3227_v40, %v15986_v61  ;;  %v15987_v50 = vld [vmem:[#allocation133_spill] sm:$0xff]  ;;  %v3158_v49 = vpop.permute.xlu1 %3157  ;;  %v11570_v1 = vsel %vm673_vm2, %v3546_v32, %v3548_v13  ;;  %v7178_v42 = vld [vmem:[%s14888_s4 + $0xf0] sm:$0xff]  ;;  %v15990_v61 = vld [vmem:[#allocation164_spill] sm:$0xff] }
 0x53d   : > { %v3258_v41 = vsel %vm482_vm0, %v3226_v14, %v15987_v50  ;;  %v3292_v47 = vsel %vm3262_vm15, %v3259_v56, %v3160_v39  ;;  %15988 = vst [vmem:[#allocation167_spill] sm:$0xff] %v11570_v1  ;;  %v11573_v11 = vsel %vm673_vm2, %v3545_v4, %v3546_v32  ;;  %v11575_v2 = vld [vmem:[#allocation3 + $0x148] sm:$0x3]  ;;  %v2395_v40 = vmul.f32 %v7178_v42, %v15990_v61  ;;  %v15991_v32 = vld [vmem:[#allocation205_spill] sm:$0xff] }
 0x53e   : > { %15989 = vst [vmem:[#allocation214_spill] sm:$0xff] %v11573_v11  ;;  %3380 = vst.msk [vmem:[#allocation3 + $0x171] sm:$0xff] %vm1661_vm3, %v3292_v47  ;;  %v3291_v14 = vsel %vm3262_vm15, %v3258_v41, %v3158_v49  ;;  %3721 = vrot.lane.b32.xlu0 %v11570_v1, %s7255_s29  ;;  %3719 = vrot.lane.b32.xlu1 %v11573_v11, %s7255_s29  ;;  %v11587_v39 = vld [vmem:[#allocation3 + $0x140] sm:$0xff]  ;;  %v3553_v56 = vrot.slane %v11575_v2, 1  ;;  %v11590_v13 = vld [vmem:[#allocation3 + $0x138] sm:$0xff]  ;;  %v3229_v4 = vsel %vm3197_vm14, %v2396_v19, %v15991_v32 }
 0x53f   : > { %3379 = vst.msk [vmem:[#allocation3 + $0x169] sm:$0xff] %vm1661_vm3, %v3291_v14  ;;  %v3551_v51 = vrot.slane %v11587_v39, 1  ;;  %v3550_v49 = vrot.slane %v11590_v13, 1  ;;  %v15992_v50 = vld [vmem:[#allocation105_spill] sm:$0xff]  ;;  %v15993_v47 = vld [vmem:[#allocation142_spill] sm:$0xff]  ;;  %v3164_v61 = vpop.permute.xlu0 %3163 }
 0x540   : > { %v3228_v41 = vsel %vm3197_vm14, %v2395_v40, %v15992_v50  ;;  %v3261_v42 = vsel %vm482_vm0, %v3229_v4, %v15993_v47  ;;  %v15994_v1 = vld [vmem:[#allocation166_spill] sm:$0xff]  ;;  %v3162_v18 = vpop.permute.xlu1 %3161 }
 0x541   : > { %v3260_v11 = vsel %vm482_vm0, %v3228_v41, %v15994_v1  ;;  %v3294_v38 = vsel %vm3262_vm15, %v3261_v42, %v3164_v61  ;;  %v11605_v19 = vsel %vm673_vm2, %v3551_v51, %v3553_v56  ;;  %v11608_v14 = vsel %vm673_vm2, %v3550_v49, %v3551_v51  ;;  %v11610_v32 = vld [vmem:[#allocation3 + $0x160] sm:$0x3]  ;;  %v15999_v42 = vld [vmem:[#allocation157_spill] sm:$0xff] }
 0x542   : > { %15995 = vst [vmem:[#allocation210_spill] sm:$0xff] %v11605_v19  ;;  %15996 = vst [vmem:[#allocation109_spill] sm:$0xff] %v11608_v14  ;;  %v3293_v40 = vsel %vm3262_vm15, %v3260_v11, %v3162_v18  ;;  %3725 = vrot.lane.b32.xlu0 %v11605_v19, %s7255_s29  ;;  %3723 = vrot.lane.b32.xlu1 %v11608_v14, %s7255_s29  ;;  %v11618_v1 = vld [vmem:[#allocation3 + $0x158] sm:$0xff]  ;;  %v3558_v56 = vrot.slane %v11610_v32, 1  ;;  %v11621_v4 = vld [vmem:[#allocation3 + $0x150] sm:$0xff]  ;;  %v3566_v61 = vrot.slane %v15999_v42, 2 }
 0x543   : > { %3382 = vst.msk [vmem:[#allocation3 + $0x189] sm:$0xff] %vm1661_vm3, %v3294_v38  ;;  %3381 = vst.msk [vmem:[#allocation3 + $0x181] sm:$0xff] %vm1661_vm3, %v3293_v40  ;;  %v3556_v51 = vrot.slane %v11618_v1, 1  ;;  %v3555_v38 = vrot.slane %v11621_v4, 1  ;;  %v16001_v19 = vld [vmem:[#allocation239_spill] sm:$0xff] }
 0x544   : > { %v3565_v14 = vrot.slane %v16001_v19, 2  ;;  %v3573_v19 = vrot.slane %v11111_v5, 2 }
 0x545   : > { %v11627_v18 = vsel %vm673_vm2, %v3556_v51, %v3558_v56  ;;  %v11630_v11 = vsel %vm673_vm2, %v3555_v38, %v3556_v51  ;;  %v11632_v49 = vld [vmem:[#allocation3 + $0x178] sm:$0x3]  ;;  %v16000_v51 = vld [vmem:[#allocation190_spill] sm:$0xff] }
 0x546   : > { %15997 = vst [vmem:[#allocation78_spill] sm:$0xff] %v11627_v18  ;;  %15998 = vst [vmem:[#allocation192_spill] sm:$0xff] %v11630_v11  ;;  %3729 = vrot.lane.b32.xlu0 %v11627_v18, %s7255_s29  ;;  %3727 = vrot.lane.b32.xlu1 %v11630_v11, %s7255_s29  ;;  %v11638_v50 = vld [vmem:[#allocation3 + $0x170] sm:$0xff]  ;;  %v3563_v41 = vrot.slane %v11632_v49, 1  ;;  %v11641_v47 = vld [vmem:[#allocation3 + $0x168] sm:$0xff]  ;;  %v3568_v38 = vrot.slane %v16000_v51, 2  ;;  %v3567_v17 = vsel %vm754_vm4, %v3565_v14, %v3566_v61 }
 0x547   : > { %v3561_v40 = vrot.slane %v11638_v50, 1  ;;  %v3560_v56 = vrot.slane %v11641_v47, 1  ;;  %v3571_v51 = vrot.slane %v11119_v24, 2  ;;  %v3575_v14 = vrot.slane %v11161_v43, 2 }
 0x548   : > { %v3569_v42 = vsel %vm754_vm4, %v3566_v61, %v3568_v38  ;;  %v3583_v61 = vrot.slane %v11185_v34, 2  ;;  %v3585_v34 = vrot.slane %v11239_v37, 2 }
 0x549   : > { %v11649_v18 = vsel %vm673_vm2, %v3561_v40, %v3563_v41  ;;  %v11652_v11 = vsel %vm673_vm2, %v3560_v56, %v3561_v40  ;;  %v3570_v41 = vrot.slane %v11122_v59, 2  ;;  %v3576_v40 = vrot.slane %v11158_v3, 2 }
 0x54a   : > { %16002 = vst [vmem:[#allocation244_spill] sm:$0xff] %v11649_v18  ;;  %16003 = vst [vmem:[#allocation4_spill] sm:$0xff] %v11652_v11  ;;  %3733 = vrot.lane.b32.xlu0 %v11649_v18, %s7255_s29  ;;  %3731 = vrot.lane.b32.xlu1 %v11652_v11, %s7255_s29  ;;  %v3578_v56 = vrot.slane %v11146_v52, 2  ;;  %v11668_v18 = vsel %vm754_vm4, %v3571_v51, %v3573_v19  ;;  %v3581_v52 = vrot.slane %v11197_v9, 2  ;;  %v3588_v19 = vrot.slane %v11224_v35, 2  ;;  %s7267_s29 = smov 40  }
 0x54b   : > { %v11671_v38 = vsel %vm754_vm4, %v3570_v41, %v3571_v51  ;;  %v3586_v51 = vrot.slane %v11236_v21, 2  ;;  %v3591_v35 = vrot.slane %v11275_v0, 2 }
 0x54c   : > { %v11679_v5 = vsel %vm754_vm4, %v3576_v40, %v3578_v56  ;;  %v11694_v41 = vsel %vm754_vm4, %v3581_v52, %v3583_v61  ;;  %v3593_v61 = vrot.slane %v11263_v22, 2  ;;  %v3595_v22 = vrot.slane %v11317_v30, 2 }
 0x54d   : > { %16004 = vst [vmem:[#allocation127_spill] sm:$0xff] %v11694_v41  ;;  %v11705_v56 = vsel %vm754_vm4, %v3586_v51, %v3588_v19  ;;  %v3598_v19 = vrot.slane %v11302_v54, 2  ;;  %v3601_v54 = vrot.slane %v11353_v36, 2 }
 0x54e   : > { %3769 = vrot.lane.b32.xlu0 %v3569_v42, %s7257_s13  ;;  %3767 = vrot.lane.b32.xlu1 %v3567_v17, %s7257_s13  ;;  %v11682_v17 = vsel %vm754_vm4, %v3575_v14, %v3576_v40  ;;  %v3580_v42 = vrot.slane %v11200_v16, 2  ;;  %16005 = vst [vmem:[#allocation180_spill] sm:$0xff] %v11705_v56  ;;  %v11708_v14 = vsel %vm754_vm4, %v3585_v34, %v3586_v51 }
 0x550   : > { %v11697_v40 = vsel %vm754_vm4, %v3580_v42, %v3581_v52  ;;  %v3590_v52 = vrot.slane %v11278_v20, 2  ;;  %v3596_v42 = vrot.slane %v11314_v6, 2 }
 0x552   : > { %3773 = vrot.lane.b32.xlu0 %v11668_v18, %s7257_s13  ;;  %3771 = vrot.lane.b32.xlu1 %v11671_v38, %s7257_s13  ;;  %v11723_v51 = vsel %vm754_vm4, %v3590_v52, %v3591_v35  ;;  %v11731_v34 = vsel %vm754_vm4, %v3596_v42, %v3598_v19  ;;  %v3606_v52 = vrot.slane %v11392_v48, 2  ;;  %v3608_v19 = vrot.slane %v11380_v23, 2 }
 0x553   : > { %16007 = vst [vmem:[#allocation150_spill] sm:$0xff] %v11731_v34  ;;  %v3611_v23 = vrot.slane %v11431_v25, 2 }
 0x556   : > { %3777 = vrot.lane.b32.xlu0 %v11679_v5, %s7257_s13  ;;  %3775 = vrot.lane.b32.xlu1 %v11682_v17, %s7257_s13 }
 0x55a   : > { %3781 = vrot.lane.b32.xlu0 %v11694_v41, %s7257_s13  ;;  %3779 = vrot.lane.b32.xlu1 %v11697_v40, %s7257_s13  ;;  %v11720_v41 = vsel %vm754_vm4, %v3591_v35, %v3593_v61  ;;  %v3603_v61 = vrot.slane %v11341_v12, 2  ;;  %v3600_v35 = vrot.slane %v11356_v33, 2  ;;  %v3605_v12 = vrot.slane %v11395_v63, 2 }
 0x55b   : > { %16006 = vst [vmem:[#allocation212_spill] sm:$0xff] %v11720_v41 }
 0x55e   : > { %3785 = vrot.lane.b32.xlu0 %v11705_v56, %s7257_s13  ;;  %3783 = vrot.lane.b32.xlu1 %v11708_v14, %s7257_s13  ;;  %v11734_v56 = vsel %vm754_vm4, %v3595_v22, %v3596_v42  ;;  %v11749_v42 = vsel %vm754_vm4, %v3600_v35, %v3601_v54  ;;  %v11757_v22 = vsel %vm754_vm4, %v3606_v52, %v3608_v19  ;;  %v3616_v35 = vrot.slane %v11470_v45, 2 }
 0x55f   : > { %16009 = vst [vmem:[#allocation242_spill] sm:$0xff] %v11757_v22  ;;  %v3618_v19 = vrot.slane %v11458_v60, 2  ;;  %v3621_v60 = vrot.slane %v11509_v44, 2 }
 0x562   : > { %3789 = vrot.lane.b32.xlu0 %v11720_v41, %s7257_s13  ;;  %3787 = vrot.lane.b32.xlu1 %v11723_v51, %s7257_s13  ;;  %v11746_v41 = vsel %vm754_vm4, %v3601_v54, %v3603_v61  ;;  %v3613_v61 = vrot.slane %v11419_v62, 2  ;;  %v3610_v54 = vrot.slane %v11434_v55, 2  ;;  %v3615_v62 = vrot.slane %v11473_v26, 2 }
 0x563   : > { %16008 = vst [vmem:[#allocation29_spill] sm:$0xff] %v11746_v41 }
 0x566   : > { %3793 = vrot.lane.b32.xlu0 %v11731_v34, %s7257_s13  ;;  %3791 = vrot.lane.b32.xlu1 %v11734_v56, %s7257_s13  ;;  %v11760_v34 = vsel %vm754_vm4, %v3605_v12, %v3606_v52  ;;  %v11775_v52 = vsel %vm754_vm4, %v3610_v54, %v3611_v23  ;;  %v11783_v12 = vsel %vm754_vm4, %v3616_v35, %v3618_v19  ;;  %v3626_v54 = vrot.slane %v11548_v46, 2 }
 0x567   : > { %16011 = vst [vmem:[#allocation169_spill] sm:$0xff] %v11775_v52  ;;  %16012 = vst [vmem:[#allocation217_spill] sm:$0xff] %v11783_v12  ;;  %v3628_v19 = vrot.slane %v11536_v10, 2  ;;  %v3631_v10 = vrot.slane %v11587_v39, 2 }
 0x56a   : > { %3797 = vrot.lane.b32.xlu0 %v11746_v41, %s7257_s13  ;;  %3795 = vrot.lane.b32.xlu1 %v11749_v42, %s7257_s13  ;;  %v11772_v41 = vsel %vm754_vm4, %v3611_v23, %v3613_v61  ;;  %v3623_v61 = vrot.slane %v11497_v57, 2  ;;  %v3620_v23 = vrot.slane %v11512_v27, 2  ;;  %v3625_v57 = vrot.slane %v11551_v31, 2 }
 0x56b   : > { %16010 = vst [vmem:[#allocation137_spill] sm:$0xff] %v11772_v41 }
 0x56e   : > { %3801 = vrot.lane.b32.xlu0 %v11757_v22, %s7257_s13  ;;  %3799 = vrot.lane.b32.xlu1 %v11760_v34, %s7257_s13  ;;  %v11786_v22 = vsel %vm754_vm4, %v3615_v62, %v3616_v35  ;;  %v11801_v35 = vsel %vm754_vm4, %v3620_v23, %v3621_v60  ;;  %v11809_v62 = vsel %vm754_vm4, %v3626_v54, %v3628_v19  ;;  %v11821_v23 = vpop.permute.xlu1 %3671  ;;  %v3636_v19 = vrot.slane %v11618_v1, 2 }
 0x56f   : > { %16014 = vst [vmem:[#allocation79_spill] sm:$0xff] %v11801_v35  ;;  %16015 = vst [vmem:[#allocation193_spill] sm:$0xff] %v11809_v62 }
 0x570   : > { %16016 = vst [vmem:[#allocation246_spill] sm:$0xff] %v11821_v23 }
 0x572   : > { %3805 = vrot.lane.b32.xlu0 %v11772_v41, %s7257_s13  ;;  %3803 = vrot.lane.b32.xlu1 %v11775_v52, %s7257_s13  ;;  %v11798_v41 = vsel %vm754_vm4, %v3621_v60, %v3623_v61  ;;  %v3633_v61 = vrot.slane %v11575_v2, 2  ;;  %v3630_v60 = vrot.slane %v11590_v13, 2 }
 0x573   : > { %16013 = vst [vmem:[#allocation5_spill] sm:$0xff] %v11798_v41 }
 0x574   : > { %v11831_v2 = vsel %vm754_vm4, %v3630_v60, %v3631_v10  ;;  %v3643_v60 = vrot.slane %v11632_v49, 2 }
 0x575   : > { %16019 = vst [vmem:[#allocation38_spill] sm:$0xff] %v11831_v2 }
 0x576   : > { %3809 = vrot.lane.b32.xlu0 %v11783_v12, %s7257_s13  ;;  %3807 = vrot.lane.b32.xlu1 %v11786_v22, %s7257_s13  ;;  %v11812_v12 = vsel %vm754_vm4, %v3625_v57, %v3626_v54  ;;  %v3638_v54 = vrot.slane %v11610_v32, 2  ;;  %v11828_v57 = vsel %vm754_vm4, %v3631_v10, %v3633_v61  ;;  %v3641_v10 = vrot.slane %v11638_v50, 2 }
 0x577   : > { %16018 = vst [vmem:[#allocation213_spill] sm:$0xff] %v11828_v57 }
 0x578   : > { %v11843_v32 = vsel %vm754_vm4, %v3636_v19, %v3638_v54  ;;  %v11860_v54 = vsel %vm754_vm4, %v3641_v10, %v3643_v60 }
 0x579   : > { %16024 = vst [vmem:[#allocation245_spill] sm:$0xff] %v11860_v54 }
 0x57a   : > { %3813 = vrot.lane.b32.xlu0 %v11798_v41, %s7257_s13  ;;  %3811 = vrot.lane.b32.xlu1 %v11801_v35, %s7257_s13  ;;  %v11823_v41 = vpop.permute.xlu0 %3673  ;;  %v3635_v35 = vrot.slane %v11621_v4, 2 }
 0x57b   : > { %16017 = vst [vmem:[#allocation6_spill] sm:$0xff] %v11823_v41 }
 0x57c   : > { %v11846_v61 = vsel %vm754_vm4, %v3635_v35, %v3636_v19 }
 0x57e   : > { %3817 = vrot.lane.b32.xlu0 %v11809_v62, %s7257_s13  ;;  %3815 = vrot.lane.b32.xlu1 %v11812_v12, %s7257_s13  ;;  %v3640_v62 = vrot.slane %v11641_v47, 2 }
 0x580   : > { %v11863_v35 = vsel %vm754_vm4, %v3640_v62, %v3641_v10 }
 0x581   : > { %16025 = vst [vmem:[#allocation32_spill] sm:$0xff] %v11863_v35 }
 0x582   : > { %3821 = vrot.lane.b32.xlu0 %v11828_v57, %s7257_s13  ;;  %3819 = vrot.lane.b32.xlu1 %v11831_v2, %s7257_s13 }
 0x583   : > { %v11838_v23 = vpop.permute.xlu1 %3675  ;;  %v11840_v41 = vpop.permute.xlu0 %3677 }
 0x584   : > { %16020 = vst [vmem:[#allocation182_spill] sm:$0xff] %v11838_v23  ;;  %16021 = vst [vmem:[#allocation216_spill] sm:$0xff] %v11840_v41 }
 0x586   : > { %3825 = vrot.lane.b32.xlu0 %v11843_v32, %s7257_s13  ;;  %3823 = vrot.lane.b32.xlu1 %v11846_v61, %s7257_s13 }
 0x587   : > { %v11855_v23 = vpop.permute.xlu1 %3679  ;;  %v11857_v41 = vpop.permute.xlu0 %3681 }
 0x588   : > { %16022 = vst [vmem:[#allocation152_spill] sm:$0xff] %v11855_v23  ;;  %16023 = vst [vmem:[#allocation195_spill] sm:$0xff] %v11857_v41  ;;  %v16098_v23 = vld [vmem:[#allocation167_spill] sm:$0xff] }
 0x58a   : > { %3829 = vrot.lane.b32.xlu0 %v11860_v54, %s7257_s13  ;;  %3827 = vrot.lane.b32.xlu1 %v11863_v35, %s7257_s13  ;;  %s7268_s13 = smov 48  }
 0x58b   : > { %v11869_v49 = vpop.permute.xlu1 %3683  ;;  %v11871_v19 = vpop.permute.xlu0 %3685 }
 0x58c   : > { %16026 = vst [vmem:[#allocation171_spill] sm:$0xff] %v11869_v49  ;;  %16027 = vst [vmem:[#allocation219_spill] sm:$0xff] %v11871_v19  ;;  %v16094_v19 = vld [vmem:[#allocation135_spill] sm:$0xff] }
 0x58e   : > { %3865 = vrot.lane.b32.xlu0 %v11119_v24, %s7259_s15  ;;  %3863 = vrot.lane.b32.xlu1 %v11122_v59, %s7259_s15 }
 0x58f   : > { %v11877_v60 = vpop.permute.xlu1 %3687  ;;  %v11879_v62 = vpop.permute.xlu0 %3689 }
 0x590   : > { %16028 = vst [vmem:[#allocation7_spill] sm:$0xff] %v11877_v60  ;;  %16029 = vst [vmem:[#allocation82_spill] sm:$0xff] %v11879_v62  ;;  %v16090_v62 = vld [vmem:[#allocation74_spill] sm:$0xff] }
 0x592   : > { %3869 = vrot.lane.b32.xlu0 %v11158_v3, %s7259_s15  ;;  %3867 = vrot.lane.b32.xlu1 %v11161_v43, %s7259_s15 }
 0x593   : > { %v11885_v10 = vpop.permute.xlu1 %3691  ;;  %v11887_v49 = vpop.permute.xlu0 %3693 }
 0x594   : > { %16030 = vst [vmem:[#allocation194_spill] sm:$0xff] %v11885_v10  ;;  %16031 = vst [vmem:[#allocation249_spill] sm:$0xff] %v11887_v49  ;;  %v16086_v49 = vld [vmem:[#allocation148_spill] sm:$0xff] }
 0x596   : > { %3873 = vrot.lane.b32.xlu0 %v11197_v9, %s7259_s15  ;;  %3871 = vrot.lane.b32.xlu1 %v11200_v16, %s7259_s15 }
 0x597   : > { %v11893_v24 = vpop.permute.xlu1 %3695  ;;  %v11895_v59 = vpop.permute.xlu0 %3697 }
 0x598   : > { %16032 = vst [vmem:[#allocation9_spill] sm:$0xff] %v11893_v24  ;;  %16033 = vst [vmem:[#allocation215_spill] sm:$0xff] %v11895_v59  ;;  %v16082_v59 = vld [vmem:[#allocation178_spill] sm:$0xff] }
 0x59a   : > { %3877 = vrot.lane.b32.xlu0 %v11236_v21, %s7259_s15  ;;  %3875 = vrot.lane.b32.xlu1 %v11239_v37, %s7259_s15 }
 0x59b   : > { %v11901_v3 = vpop.permute.xlu1 %3699  ;;  %v11903_v43 = vpop.permute.xlu0 %3701 }
 0x59c   : > { %16034 = vst [vmem:[#allocation128_spill] sm:$0xff] %v11901_v3  ;;  %16035 = vst [vmem:[#allocation183_spill] sm:$0xff] %v11903_v43  ;;  %v16078_v43 = vld [vmem:[#allocation241_spill] sm:$0xff] }
 0x59e   : > { %3881 = vrot.lane.b32.xlu0 %v11275_v0, %s7259_s15  ;;  %3879 = vrot.lane.b32.xlu1 %v11278_v20, %s7259_s15 }
 0x59f   : > { %v11911_v16 = vpop.permute.xlu0 %3705 }
 0x5a0   : > { %v11909_v9 = vpop.permute.xlu1 %3703  ;;  %16037 = vst [vmem:[#allocation154_spill] sm:$0xff] %v11911_v16  ;;  %v16074_v16 = vld [vmem:[#allocation159_spill] sm:$0xff] }
 0x5a1   : > { %16036 = vst [vmem:[#allocation220_spill] sm:$0xff] %v11909_v9 }
 0x5a2   : > { %3885 = vrot.lane.b32.xlu0 %v11314_v6, %s7259_s15  ;;  %3883 = vrot.lane.b32.xlu1 %v11317_v30, %s7259_s15 }
 0x5a3   : > { %v11919_v37 = vpop.permute.xlu0 %3709 }
 0x5a4   : > { %v11917_v21 = vpop.permute.xlu1 %3707  ;;  %16039 = vst [vmem:[#allocation248_spill] sm:$0xff] %v11919_v37 }
 0x5a5   : > { %16038 = vst [vmem:[#allocation36_spill] sm:$0xff] %v11917_v21 }
 0x5a6   : > { %3889 = vrot.lane.b32.xlu0 %v11353_v36, %s7259_s15  ;;  %3887 = vrot.lane.b32.xlu1 %v11356_v33, %s7259_s15 }
 0x5a8   : > { %v11925_v0 = vpop.permute.xlu1 %3711  ;;  %v11927_v20 = vpop.permute.xlu0 %3713 }
 0x5a9   : > { %16040 = vst [vmem:[#allocation139_spill] sm:$0xff] %v11925_v0  ;;  %16041 = vst [vmem:[#allocation76_spill] sm:$0xff] %v11927_v20  ;;  %v11995_v0 = vld [vmem:[#allocation3 + $0x188] sm:$0xff] }
 0x5aa   : > { %3893 = vrot.lane.b32.xlu0 %v11392_v48, %s7259_s15  ;;  %3891 = vrot.lane.b32.xlu1 %v11395_v63, %s7259_s15 }
 0x5ac   : > { %v11933_v6 = vpop.permute.xlu1 %3715  ;;  %v11935_v30 = vpop.permute.xlu0 %3717 }
 0x5ad   : > { %16042 = vst [vmem:[#allocation173_spill] sm:$0xff] %v11933_v6  ;;  %16043 = vst [vmem:[#allocation222_spill] sm:$0xff] %v11935_v30 }
 0x5ae   : > { %3897 = vrot.lane.b32.xlu0 %v11431_v25, %s7259_s15  ;;  %3895 = vrot.lane.b32.xlu1 %v11434_v55, %s7259_s15 }
 0x5b0   : > { %v11941_v36 = vpop.permute.xlu1 %3719  ;;  %v11943_v33 = vpop.permute.xlu0 %3721 }
 0x5b1   : > { %16044 = vst [vmem:[#allocation10_spill] sm:$0xff] %v11941_v36  ;;  %16045 = vst [vmem:[#allocation85_spill] sm:$0xff] %v11943_v33 }
 0x5b2   : > { %3901 = vrot.lane.b32.xlu0 %v11470_v45, %s7259_s15  ;;  %3899 = vrot.lane.b32.xlu1 %v11473_v26, %s7259_s15 }
 0x5b4   : > { %v11949_v20 = vpop.permute.xlu1 %3723  ;;  %v11951_v6 = vpop.permute.xlu0 %3725 }
 0x5b5   : > { %16046 = vst [vmem:[#allocation43_spill] sm:$0xff] %v11949_v20  ;;  %16047 = vst [vmem:[#allocation252_spill] sm:$0xff] %v11951_v6 }
 0x5b6   : > { %3905 = vrot.lane.b32.xlu0 %v11509_v44, %s7259_s15  ;;  %3903 = vrot.lane.b32.xlu1 %v11512_v27, %s7259_s15 }
 0x5b8   : > { %v11957_v30 = vpop.permute.xlu1 %3727  ;;  %v11959_v36 = vpop.permute.xlu0 %3729 }
 0x5b9   : > { %16048 = vst [vmem:[#allocation12_spill] sm:$0xff] %v11957_v30  ;;  %16049 = vst [vmem:[#allocation218_spill] sm:$0xff] %v11959_v36 }
 0x5ba   : > { %3909 = vrot.lane.b32.xlu0 %v11548_v46, %s7259_s15  ;;  %3907 = vrot.lane.b32.xlu1 %v11551_v31, %s7259_s15 }
 0x5bc   : > { %v11965_v33 = vpop.permute.xlu1 %3731  ;;  %v11967_v20 = vpop.permute.xlu0 %3733 }
 0x5bd   : > { %16050 = vst [vmem:[#allocation130_spill] sm:$0xff] %v11965_v33  ;;  %16051 = vst [vmem:[#allocation77_spill] sm:$0xff] %v11967_v20 }
 0x5be   : > { %3913 = vrot.lane.b32.xlu0 %v11587_v39, %s7259_s15  ;;  %3911 = vrot.lane.b32.xlu1 %v11590_v13, %s7259_s15 }
 0x5c0   : > { %v11973_v6 = vpop.permute.xlu1 %3767  ;;  %v11975_v30 = vpop.permute.xlu0 %3769 }
 0x5c1   : > { %16052 = vst [vmem:[#allocation184_spill] sm:$0xff] %v11973_v6  ;;  %16053 = vst [vmem:[#allocation224_spill] sm:$0xff] %v11975_v30  ;;  %v11993_v30 = vld [vmem:[#allocation3 + $0x180] sm:$0xff] }
 0x5c2   : > { %3917 = vrot.lane.b32.xlu0 %v11618_v1, %s7259_s15  ;;  %3915 = vrot.lane.b32.xlu1 %v11621_v4, %s7259_s15 }
 0x5c4   : > { %v11981_v36 = vpop.permute.xlu1 %3771  ;;  %v11983_v33 = vpop.permute.xlu0 %3773 }
 0x5c5   : > { %16054 = vst [vmem:[#allocation156_spill] sm:$0xff] %v11981_v36  ;;  %16055 = vst [vmem:[#allocation64_spill] sm:$0xff] %v11983_v33 }
 0x5c6   : > { %3921 = vrot.lane.b32.xlu0 %v11638_v50, %s7259_s15  ;;  %3919 = vrot.lane.b32.xlu1 %v11641_v47, %s7259_s15 }
 0x5c8   : > { %v11989_v20 = vpop.permute.xlu1 %3775  ;;  %v11991_v6 = vpop.permute.xlu0 %3777 }
 0x5c9   : > { %16056 = vst [vmem:[#allocation250_spill] sm:$0xff] %v11989_v20  ;;  %16057 = vst [vmem:[#allocation41_spill] sm:$0xff] %v11991_v6 }
 0x5ca   : > { %3923 = vrot.lane.b32.xlu1 %v11993_v30, %s7259_s15  ;;  %3925 = vrot.lane.b32.xlu0 %v11995_v0, %s7259_s15  ;;  %s7269_s15 = smov 56  }
 0x5cc   : > { %v12001_v33 = vpop.permute.xlu1 %3779  ;;  %v12003_v36 = vpop.permute.xlu0 %3781 }
 0x5cd   : > { %16058 = vst [vmem:[#allocation175_spill] sm:$0xff] %v12001_v33  ;;  %16059 = vst [vmem:[#allocation225_spill] sm:$0xff] %v12003_v36  ;;  %v16070_v36 = vld [vmem:[#allocation207_spill] sm:$0xff] }
 0x5ce   : > { %3959 = vrot.lane.b32.xlu1 %v11144_v58, %s7261_s17  ;;  %3961 = vrot.lane.b32.xlu0 %v11141_v15, %s7261_s17 }
 0x5d0   : > { %v12009_v6 = vpop.permute.xlu1 %3783  ;;  %v12011_v20 = vpop.permute.xlu0 %3785 }
 0x5d1   : > { %16060 = vst [vmem:[#allocation14_spill] sm:$0xff] %v12009_v6  ;;  %16061 = vst [vmem:[#allocation162_spill] sm:$0xff] %v12011_v20  ;;  %v16066_v20 = vld [vmem:[#allocation211_spill] sm:$0xff] }
 0x5d2   : > { %3963 = vrot.lane.b32.xlu1 %v11183_v29, %s7261_s17  ;;  %3965 = vrot.lane.b32.xlu0 %v11180_v7, %s7261_s17 }
 0x5d4   : > { %v12017_v37 = vpop.permute.xlu1 %3787  ;;  %v12019_v33 = vpop.permute.xlu0 %3789 }
 0x5d5   : > { %16062 = vst [vmem:[#allocation45_spill] sm:$0xff] %v12017_v37  ;;  %16063 = vst [vmem:[#allocation254_spill] sm:$0xff] %v12019_v33  ;;  %v16069_v33 = vld [vmem:[#allocation107_spill] sm:$0xff] }
 0x5d6   : > { %3967 = vrot.lane.b32.xlu1 %v11222_v8, %s7261_s17  ;;  %3969 = vrot.lane.b32.xlu0 %v11219_v28, %s7261_s17 }
 0x5d8   : > { %v12025_v15 = vpop.permute.xlu1 %3791  ;;  %v12027_v58 = vpop.permute.xlu0 %3793 }
 0x5d9   : > { %16064 = vst [vmem:[#allocation16_spill] sm:$0xff] %v12025_v15  ;;  %16065 = vst [vmem:[#allocation221_spill] sm:$0xff] %v12027_v58  ;;  %v16073_v58 = vld [vmem:[#allocation191_spill] sm:$0xff] }
 0x5da   : > { %3971 = vrot.lane.b32.xlu1 %v11261_v53, %s7261_s17  ;;  %3973 = vrot.lane.b32.xlu0 %v16066_v20, %s7261_s17 }
 0x5dc   : > { %v12033_v6 = vpop.permute.xlu1 %3795  ;;  %v12035_v37 = vpop.permute.xlu0 %3797 }
 0x5dd   : > { %16067 = vst [vmem:[#allocation132_spill] sm:$0xff] %v12033_v6  ;;  %16068 = vst [vmem:[#allocation185_spill] sm:$0xff] %v12035_v37  ;;  %v16077_v37 = vld [vmem:[#allocation126_spill] sm:$0xff] }
 0x5de   : > { %3975 = vrot.lane.b32.xlu1 %v16069_v33, %s7261_s17  ;;  %3977 = vrot.lane.b32.xlu0 %v16070_v36, %s7261_s17 }
 0x5e0   : > { %v12041_v21 = vpop.permute.xlu1 %3799  ;;  %v12043_v15 = vpop.permute.xlu0 %3801 }
 0x5e1   : > { %16071 = vst [vmem:[#allocation227_spill] sm:$0xff] %v12041_v21  ;;  %16072 = vst [vmem:[#allocation158_spill] sm:$0xff] %v12043_v15  ;;  %v16081_v15 = vld [vmem:[#allocation208_spill] sm:$0xff] }
 0x5e2   : > { %3979 = vrot.lane.b32.xlu1 %v16073_v58, %s7261_s17  ;;  %3981 = vrot.lane.b32.xlu0 %v16074_v16, %s7261_s17 }
 0x5e4   : > { %v12049_v9 = vpop.permute.xlu1 %3803  ;;  %v12051_v6 = vpop.permute.xlu0 %3805 }
 0x5e5   : > { %16075 = vst [vmem:[#allocation46_spill] sm:$0xff] %v12049_v9  ;;  %16076 = vst [vmem:[#allocation253_spill] sm:$0xff] %v12051_v6  ;;  %v16085_v6 = vld [vmem:[#allocation26_spill] sm:$0xff] }
 0x5e6   : > { %3983 = vrot.lane.b32.xlu1 %v16077_v37, %s7261_s17  ;;  %3985 = vrot.lane.b32.xlu0 %v16078_v43, %s7261_s17 }
 0x5e8   : > { %v12057_v3 = vpop.permute.xlu1 %3807  ;;  %v12059_v21 = vpop.permute.xlu0 %3809 }
 0x5e9   : > { %16079 = vst [vmem:[#allocation143_spill] sm:$0xff] %v12057_v3  ;;  %16080 = vst [vmem:[#allocation177_spill] sm:$0xff] %v12059_v21  ;;  %v16089_v21 = vld [vmem:[#allocation240_spill] sm:$0xff] }
 0x5ea   : > { %3987 = vrot.lane.b32.xlu1 %v16081_v15, %s7261_s17  ;;  %3989 = vrot.lane.b32.xlu0 %v16082_v59, %s7261_s17 }
 0x5ec   : > { %v12065_v24 = vpop.permute.xlu1 %3811  ;;  %v12067_v9 = vpop.permute.xlu0 %3813 }
 0x5ed   : > { %16083 = vst [vmem:[#allocation226_spill] sm:$0xff] %v12065_v24  ;;  %16084 = vst [vmem:[#allocation18_spill] sm:$0xff] %v12067_v9  ;;  %v16093_v9 = vld [vmem:[#allocation70_spill] sm:$0xff] }
 0x5ee   : > { %3991 = vrot.lane.b32.xlu1 %v16085_v6, %s7261_s17  ;;  %3993 = vrot.lane.b32.xlu0 %v16086_v49, %s7261_s17 }
 0x5f0   : > { %v12073_v10 = vpop.permute.xlu1 %3815  ;;  %v12075_v3 = vpop.permute.xlu0 %3817 }
 0x5f1   : > { %16087 = vst [vmem:[#allocation13_spill] sm:$0xff] %v12073_v10  ;;  %16088 = vst [vmem:[#allocation48_spill] sm:$0xff] %v12075_v3  ;;  %v16097_v3 = vld [vmem:[#allocation214_spill] sm:$0xff] }
 0x5f2   : > { %3995 = vrot.lane.b32.xlu1 %v16089_v21, %s7261_s17  ;;  %3997 = vrot.lane.b32.xlu0 %v16090_v62, %s7261_s17 }
 0x5f4   : > { %v12081_v60 = vpop.permute.xlu1 %3819  ;;  %v12083_v24 = vpop.permute.xlu0 %3821 }
 0x5f5   : > { %16091 = vst [vmem:[#allocation65_spill] sm:$0xff] %v12081_v60  ;;  %16092 = vst [vmem:[#allocation20_spill] sm:$0xff] %v12083_v24  ;;  %v16101_v24 = vld [vmem:[#allocation109_spill] sm:$0xff] }
 0x5f6   : > { %3999 = vrot.lane.b32.xlu1 %v16093_v9, %s7261_s17  ;;  %4001 = vrot.lane.b32.xlu0 %v16094_v19, %s7261_s17  ;;  %v16102_v9 = vld [vmem:[#allocation210_spill] sm:$0xff] }
 0x5f8   : > { %v12089_v41 = vpop.permute.xlu1 %3823  ;;  %v12091_v10 = vpop.permute.xlu0 %3825 }
 0x5f9   : > { %16095 = vst [vmem:[#allocation223_spill] sm:$0xff] %v12089_v41  ;;  %16096 = vst [vmem:[#allocation134_spill] sm:$0xff] %v12091_v10  ;;  %v16105_v10 = vld [vmem:[#allocation192_spill] sm:$0xff] }
 0x5fa   : > { %4003 = vrot.lane.b32.xlu1 %v16097_v3, %s7261_s17  ;;  %4005 = vrot.lane.b32.xlu0 %v16098_v23, %s7261_s17  ;;  %v16106_v3 = vld [vmem:[#allocation78_spill] sm:$0xff]  ;;  %v12113_v23 = vld [vmem:[#allocation3 + $0x190] sm:$0x3] }
 0x5fc   : > { %v12097_v62 = vpop.permute.xlu1 %3827  ;;  %v12099_v60 = vpop.permute.xlu0 %3829 }
 0x5fd   : > { %16099 = vst [vmem:[#allocation186_spill] sm:$0xff] %v12097_v62  ;;  %16100 = vst [vmem:[#allocation229_spill] sm:$0xff] %v12099_v60 }
 0x5fe   : > { %4007 = vrot.lane.b32.xlu1 %v16101_v24, %s7261_s17  ;;  %4009 = vrot.lane.b32.xlu0 %v16102_v9, %s7261_s17  ;;  %v3648_v24 = vrot.slane %v11993_v30, 1  ;;  %v3649_v9 = vrot.slane %v11995_v0, 1 }
 0x600   : > { %v12105_v19 = vpop.permute.xlu1 %3863  ;;  %v12107_v41 = vpop.permute.xlu0 %3865 }
 0x601   : > { %16103 = vst [vmem:[#allocation160_spill] sm:$0xff] %v12105_v19  ;;  %16104 = vst [vmem:[#allocation196_spill] sm:$0xff] %v12107_v41  ;;  %v3651_v19 = vrot.slane %v12113_v23, 1  ;;  %v16109_v41 = vld [vmem:[#allocation244_spill] sm:$0xff] }
 0x602   : > { %4011 = vrot.lane.b32.xlu1 %v16105_v10, %s7261_s17  ;;  %4013 = vrot.lane.b32.xlu0 %v16106_v3, %s7261_s17 }
 0x604   : > { %v12115_v62 = vpop.permute.xlu1 %3867  ;;  %v12117_v60 = vpop.permute.xlu0 %3869 }
 0x605   : > { %16107 = vst [vmem:[#allocation62_spill] sm:$0xff] %v12115_v62  ;;  %16108 = vst [vmem:[#allocation51_spill] sm:$0xff] %v12117_v60  ;;  %v12131_v62 = vsel %vm673_vm2, %v3648_v24, %v3649_v9  ;;  %v12134_v60 = vsel %vm673_vm2, %v3649_v9, %v3651_v19 }
 0x606   : > { %4015 = vrot.lane.b32.xlu1 %v11652_v11, %s7261_s17  ;;  %4017 = vrot.lane.b32.xlu0 %v16109_v41, %s7261_s17 }
 0x608   : > { %v12126_v10 = vpop.permute.xlu1 %3871  ;;  %v12128_v3 = vpop.permute.xlu0 %3873 }
 0x609   : > { %16110 = vst [vmem:[#allocation179_spill] sm:$0xff] %v12126_v10  ;;  %16111 = vst [vmem:[#allocation228_spill] sm:$0xff] %v12128_v3 }
 0x60a   : > { %4019 = vrot.lane.b32.xlu1 %v12131_v62, %s7261_s17  ;;  %4021 = vrot.lane.b32.xlu0 %v12134_v60, %s7261_s17  ;;  %s7270_s17 = smov 64  }
 0x60c   : > { %v12140_v11 = vpop.permute.xlu1 %3875  ;;  %v12142_v21 = vpop.permute.xlu0 %3877 }
 0x60d   : > { %16112 = vst [vmem:[#allocation22_spill] sm:$0xff] %v12140_v11  ;;  %16113 = vst [vmem:[#allocation108_spill] sm:$0xff] %v12142_v21 }
 0x60e   : > { %4055 = vrot.lane.b32.xlu1 %v11671_v38, %s7267_s29  ;;  %4057 = vrot.lane.b32.xlu0 %v11668_v18, %s7267_s29  ;;  %v16118_v38 = vld [vmem:[#allocation127_spill] sm:$0xff] }
 0x610   : > { %v12148_v24 = vpop.permute.xlu1 %3879  ;;  %v12150_v19 = vpop.permute.xlu0 %3881 }
 0x611   : > { %16114 = vst [vmem:[#allocation17_spill] sm:$0xff] %v12148_v24  ;;  %16115 = vst [vmem:[#allocation50_spill] sm:$0xff] %v12150_v19  ;;  %v16121_v19 = vld [vmem:[#allocation180_spill] sm:$0xff] }
 0x612   : > { %4059 = vrot.lane.b32.xlu1 %v11682_v17, %s7267_s29  ;;  %4061 = vrot.lane.b32.xlu0 %v11679_v5, %s7267_s29 }
 0x614   : > { %v12156_v9 = vpop.permute.xlu1 %3883  ;;  %v12158_v21 = vpop.permute.xlu0 %3885 }
 0x615   : > { %16116 = vst [vmem:[#allocation75_spill] sm:$0xff] %v12156_v9  ;;  %16117 = vst [vmem:[#allocation24_spill] sm:$0xff] %v12158_v21  ;;  %v16124_v21 = vld [vmem:[#allocation212_spill] sm:$0xff] }
 0x616   : > { %4063 = vrot.lane.b32.xlu1 %v11697_v40, %s7267_s29  ;;  %4065 = vrot.lane.b32.xlu0 %v16118_v38, %s7267_s29 }
 0x618   : > { %v12164_v18 = vpop.permute.xlu1 %3887  ;;  %v12166_v24 = vpop.permute.xlu0 %3889 }
 0x619   : > { %16119 = vst [vmem:[#allocation136_spill] sm:$0xff] %v12164_v18  ;;  %16120 = vst [vmem:[#allocation188_spill] sm:$0xff] %v12166_v24  ;;  %v16127_v24 = vld [vmem:[#allocation150_spill] sm:$0xff] }
 0x61a   : > { %4067 = vrot.lane.b32.xlu1 %v11708_v14, %s7267_s29  ;;  %4069 = vrot.lane.b32.xlu0 %v16121_v19, %s7267_s29 }
 0x61c   : > { %v12172_v11 = vpop.permute.xlu1 %3891  ;;  %v12174_v9 = vpop.permute.xlu0 %3893 }
 0x61d   : > { %16122 = vst [vmem:[#allocation231_spill] sm:$0xff] %v12172_v11  ;;  %16123 = vst [vmem:[#allocation161_spill] sm:$0xff] %v12174_v9  ;;  %v16130_v9 = vld [vmem:[#allocation29_spill] sm:$0xff] }
 0x61e   : > { %4071 = vrot.lane.b32.xlu1 %v11723_v51, %s7267_s29  ;;  %4073 = vrot.lane.b32.xlu0 %v16124_v21, %s7267_s29 }
 0x620   : > { %v12180_v3 = vpop.permute.xlu1 %3895  ;;  %v12182_v18 = vpop.permute.xlu0 %3897 }
 0x621   : > { %16125 = vst [vmem:[#allocation197_spill] sm:$0xff] %v12180_v3  ;;  %16126 = vst [vmem:[#allocation72_spill] sm:$0xff] %v12182_v18  ;;  %v16133_v18 = vld [vmem:[#allocation242_spill] sm:$0xff] }
 0x622   : > { %4075 = vrot.lane.b32.xlu1 %v11734_v56, %s7267_s29  ;;  %4077 = vrot.lane.b32.xlu0 %v16127_v24, %s7267_s29 }
 0x624   : > { %v12188_v10 = vpop.permute.xlu1 %3899  ;;  %v12190_v11 = vpop.permute.xlu0 %3901 }
 0x625   : > { %16128 = vst [vmem:[#allocation181_spill] sm:$0xff] %v12188_v10  ;;  %16129 = vst [vmem:[#allocation230_spill] sm:$0xff] %v12190_v11  ;;  %v16136_v11 = vld [vmem:[#allocation137_spill] sm:$0xff] }
 0x626   : > { %4079 = vrot.lane.b32.xlu1 %v11749_v42, %s7267_s29  ;;  %4081 = vrot.lane.b32.xlu0 %v16130_v9, %s7267_s29 }
 0x628   : > { %v12196_v21 = vpop.permute.xlu1 %3903  ;;  %v12198_v3 = vpop.permute.xlu0 %3905 }
 0x629   : > { %16131 = vst [vmem:[#allocation25_spill] sm:$0xff] %v12196_v21  ;;  %16132 = vst [vmem:[#allocation54_spill] sm:$0xff] %v12198_v3  ;;  %v16139_v3 = vld [vmem:[#allocation217_spill] sm:$0xff] }
 0x62a   : > { %4083 = vrot.lane.b32.xlu1 %v11760_v34, %s7267_s29  ;;  %4085 = vrot.lane.b32.xlu0 %v16133_v18, %s7267_s29 }
 0x62c   : > { %v12204_v24 = vpop.permute.xlu1 %3907  ;;  %v12206_v10 = vpop.permute.xlu0 %3909 }
 0x62d   : > { %16134 = vst [vmem:[#allocation80_spill] sm:$0xff] %v12204_v24  ;;  %16135 = vst [vmem:[#allocation27_spill] sm:$0xff] %v12206_v10  ;;  %v16142_v10 = vld [vmem:[#allocation79_spill] sm:$0xff] }
 0x62e   : > { %4087 = vrot.lane.b32.xlu1 %v11775_v52, %s7267_s29  ;;  %4089 = vrot.lane.b32.xlu0 %v16136_v11, %s7267_s29  ;;  %v16143_v52 = vld [vmem:[#allocation5_spill] sm:$0xff] }
 0x630   : > { %v12212_v9 = vpop.permute.xlu1 %3911  ;;  %v12214_v21 = vpop.permute.xlu0 %3913 }
 0x631   : > { %16137 = vst [vmem:[#allocation232_spill] sm:$0xff] %v12212_v9  ;;  %16138 = vst [vmem:[#allocation28_spill] sm:$0xff] %v12214_v21  ;;  %v16146_v21 = vld [vmem:[#allocation193_spill] sm:$0xff] }
 0x632   : > { %4091 = vrot.lane.b32.xlu1 %v11786_v22, %s7267_s29  ;;  %4093 = vrot.lane.b32.xlu0 %v16139_v3, %s7267_s29 }
 0x634   : > { %v12220_v18 = vpop.permute.xlu1 %3915  ;;  %v12222_v24 = vpop.permute.xlu0 %3917 }
 0x635   : > { %16140 = vst [vmem:[#allocation30_spill] sm:$0xff] %v12220_v18  ;;  %16141 = vst [vmem:[#allocation31_spill] sm:$0xff] %v12222_v24 }
 0x636   : > { %4095 = vrot.lane.b32.xlu1 %v16142_v10, %s7267_s29  ;;  %4097 = vrot.lane.b32.xlu0 %v16143_v52, %s7267_s29 }
 0x638   : > { %v12228_v11 = vpop.permute.xlu1 %3919  ;;  %v12230_v9 = vpop.permute.xlu0 %3921 }
 0x639   : > { %16144 = vst [vmem:[#allocation33_spill] sm:$0xff] %v12228_v11  ;;  %16145 = vst [vmem:[#allocation34_spill] sm:$0xff] %v12230_v9 }
 0x63a   : > { %4099 = vrot.lane.b32.xlu1 %v11812_v12, %s7267_s29  ;;  %4101 = vrot.lane.b32.xlu0 %v16146_v21, %s7267_s29 }
 0x63c   : > { %v12236_v3 = vpop.permute.xlu1 %3923  ;;  %v12238_v18 = vpop.permute.xlu0 %3925 }
 0x63d   : > { %16147 = vst [vmem:[#allocation37_spill] sm:$0xff] %v12236_v3  ;;  %16148 = vst [vmem:[#allocation39_spill] sm:$0xff] %v12238_v18  ;;  %v3653_v18 = vrot.slane %v11993_v30, 2 }
 0x63e   : > { %4103 = vrot.lane.b32.xlu1 %v11831_v2, %s7267_s29  ;;  %4105 = vrot.lane.b32.xlu0 %v11828_v57, %s7267_s29  ;;  %v3654_v2 = vrot.slane %v11995_v0, 2  ;;  %v3656_v57 = vrot.slane %v12113_v23, 2 }
 0x640   : > { %v12244_v24 = vpop.permute.xlu1 %3959  ;;  %v12246_v11 = vpop.permute.xlu0 %3961 }
 0x641   : > { %16149 = vst [vmem:[#allocation42_spill] sm:$0xff] %v12244_v24  ;;  %16150 = vst [vmem:[#allocation44_spill] sm:$0xff] %v12246_v11 }
 0x642   : > { %4107 = vrot.lane.b32.xlu1 %v11846_v61, %s7267_s29  ;;  %4109 = vrot.lane.b32.xlu0 %v11843_v32, %s7267_s29 }
 0x644   : > { %v12252_v9 = vpop.permute.xlu1 %3963  ;;  %v12254_v3 = vpop.permute.xlu0 %3965 }
 0x645   : > { %16151 = vst [vmem:[#allocation47_spill] sm:$0xff] %v12252_v9  ;;  %16152 = vst [vmem:[#allocation49_spill] sm:$0xff] %v12254_v3  ;;  %v12268_v9 = vsel %vm754_vm4, %v3653_v18, %v3654_v2  ;;  %v12271_v3 = vsel %vm754_vm4, %v3654_v2, %v3656_v57  ;;  %v12285_v18 = vld [vmem:[#allocation3 + $0x38] sm:$0xff] }
 0x646   : > { %4111 = vrot.lane.b32.xlu1 %v11863_v35, %s7267_s29  ;;  %4113 = vrot.lane.b32.xlu0 %v11860_v54, %s7267_s29  ;;  %v12281_v54 = vld [vmem:[#allocation3 + $0x30] sm:$0xff]  ;;  %16158 = vst [vmem:[#allocation63_spill] sm:$0xff] %v12285_v18 }
 0x647   : > { %16157 = vst [vmem:[#allocation61_spill] sm:$0xff] %v12281_v54 }
 0x648   : > { %v12263_v11 = vpop.permute.xlu1 %3967  ;;  %v12265_v24 = vpop.permute.xlu0 %3969 }
 0x649   : > { %16153 = vst [vmem:[#allocation52_spill] sm:$0xff] %v12263_v11  ;;  %16154 = vst [vmem:[#allocation53_spill] sm:$0xff] %v12265_v24  ;;  %v12293_v24 = vld [vmem:[#allocation3 + $0x48] sm:$0xff] }
 0x64a   : > { %4115 = vrot.lane.b32.xlu1 %v12268_v9, %s7267_s29  ;;  %4117 = vrot.lane.b32.xlu0 %v12271_v3, %s7267_s29  ;;  %16161 = vst [vmem:[#allocation84_spill] sm:$0xff] %v12293_v24 }
 0x64c   : > { %v12277_v23 = vpop.permute.xlu1 %3971  ;;  %v12279_v35 = vpop.permute.xlu0 %3973 }
 0x64d   : > { %16155 = vst [vmem:[#allocation56_spill] sm:$0xff] %v12277_v23  ;;  %16156 = vst [vmem:[#allocation57_spill] sm:$0xff] %v12279_v35  ;;  %v12297_v35 = vld [vmem:[#allocation3 + $0x50] sm:$0xff] }
 0x64e   : > { %4151 = vrot.lane.b32.xlu1 %v12281_v54, %s7268_s13  ;;  %4153 = vrot.lane.b32.xlu0 %v12285_v18, %s7268_s13  ;;  %16162 = vst [vmem:[#allocation86_spill] sm:$0xff] %v12297_v35  ;;  %v12305_v54 = vld [vmem:[#allocation3 + $0x60] sm:$0xff]  ;;  %v12317_v18 = vld [vmem:[#allocation3 + $0x78] sm:$0xff] }
 0x64f   : > { %16165 = vst [vmem:[#allocation89_spill] sm:$0xff] %v12305_v54  ;;  %16169 = vst [vmem:[#allocation91_spill] sm:$0xff] %v12317_v18 }
 0x650   : > { %v12289_v57 = vpop.permute.xlu1 %3975  ;;  %v12291_v2 = vpop.permute.xlu0 %3977 }
 0x651   : > { %16159 = vst [vmem:[#allocation83_spill] sm:$0xff] %v12289_v57  ;;  %16160 = vst [vmem:[#allocation81_spill] sm:$0xff] %v12291_v2  ;;  %v12309_v2 = vld [vmem:[#allocation3 + $0x68] sm:$0xff] }
 0x652   : > { %4155 = vrot.lane.b32.xlu1 %v12293_v24, %s7268_s13  ;;  %4157 = vrot.lane.b32.xlu0 %v12297_v35, %s7268_s13  ;;  %16166 = vst [vmem:[#allocation95_spill] sm:$0xff] %v12309_v2  ;;  %v12329_v35 = vld [vmem:[#allocation3 + $0x90] sm:$0xff] }
 0x653   : > { %16172 = vst [vmem:[#allocation93_spill] sm:$0xff] %v12329_v35 }
 0x654   : > { %v12301_v23 = vpop.permute.xlu1 %3979  ;;  %v12303_v11 = vpop.permute.xlu0 %3981 }
 0x655   : > { %16163 = vst [vmem:[#allocation87_spill] sm:$0xff] %v12301_v23  ;;  %16164 = vst [vmem:[#allocation88_spill] sm:$0xff] %v12303_v11  ;;  %v12321_v11 = vld [vmem:[#allocation3 + $0x80] sm:$0xff] }
 0x656   : > { %4159 = vrot.lane.b32.xlu1 %v12305_v54, %s7268_s13  ;;  %4161 = vrot.lane.b32.xlu0 %v12309_v2, %s7268_s13  ;;  %v12341_v2 = vld [vmem:[#allocation3 + $0xa8] sm:$0xff] }
 0x658   : > { %v12313_v57 = vpop.permute.xlu1 %3983  ;;  %v12315_v24 = vpop.permute.xlu0 %3985 }
 0x659   : > { %16167 = vst [vmem:[#allocation98_spill] sm:$0xff] %v12313_v57  ;;  %16168 = vst [vmem:[#allocation90_spill] sm:$0xff] %v12315_v24  ;;  %v12333_v24 = vld [vmem:[#allocation3 + $0x98] sm:$0xff] }
 0x65a   : > { %4163 = vrot.lane.b32.xlu1 %v12317_v18, %s7268_s13  ;;  %4165 = vrot.lane.b32.xlu0 %v12321_v11, %s7268_s13 }
 0x65c   : > { %v12325_v23 = vpop.permute.xlu1 %3987  ;;  %v12327_v54 = vpop.permute.xlu0 %3989 }
 0x65d   : > { %16170 = vst [vmem:[#allocation92_spill] sm:$0xff] %v12325_v23  ;;  %16171 = vst [vmem:[#allocation94_spill] sm:$0xff] %v12327_v54  ;;  %v12345_v54 = vld [vmem:[#allocation3 + $0xb0] sm:$0xff] }
 0x65e   : > { %4167 = vrot.lane.b32.xlu1 %v12329_v35, %s7268_s13  ;;  %4169 = vrot.lane.b32.xlu0 %v12333_v24, %s7268_s13  ;;  %16175 = vst [vmem:[#allocation99_spill] sm:$0xff] %v12345_v54 }
 0x660   : > { %v12337_v57 = vpop.permute.xlu1 %3991  ;;  %v12339_v18 = vpop.permute.xlu0 %3993 }
 0x661   : > { %16173 = vst [vmem:[#allocation96_spill] sm:$0xff] %v12337_v57  ;;  %16174 = vst [vmem:[#allocation113_spill] sm:$0xff] %v12339_v18 }
 0x662   : > { %4171 = vrot.lane.b32.xlu1 %v12341_v2, %s7268_s13  ;;  %4173 = vrot.lane.b32.xlu0 %v12345_v54, %s7268_s13 }
 0x664   : > { %v12349_v23 = vpop.permute.xlu1 %3995  ;;  %v12351_v35 = vpop.permute.xlu0 %3997 }
 0x665   : > { %16176 = vst [vmem:[#allocation97_spill] sm:$0xff] %v12349_v23  ;;  %16177 = vst [vmem:[#allocation111_spill] sm:$0xff] %v12351_v35 }
 0x666   : > { %4175 = vrot.lane.b32.xlu1 %v11395_v63, %s7268_s13  ;;  %4177 = vrot.lane.b32.xlu0 %v11392_v48, %s7268_s13 }
 0x668   : > { %v12357_v18 = vpop.permute.xlu1 %3999  ;;  %v12359_v57 = vpop.permute.xlu0 %4001 }
 0x669   : > { %16178 = vst [vmem:[#allocation101_spill] sm:$0xff] %v12357_v18  ;;  %16179 = vst [vmem:[#allocation100_spill] sm:$0xff] %v12359_v57  ;;  %v16237_v57 = vld [vmem:[#allocation169_spill] sm:$0xff] }
 0x66a   : > { %4179 = vrot.lane.b32.xlu1 %v11434_v55, %s7268_s13  ;;  %4181 = vrot.lane.b32.xlu0 %v11431_v25, %s7268_s13 }
 0x66c   : > { %v12365_v54 = vpop.permute.xlu1 %4003  ;;  %v12367_v23 = vpop.permute.xlu0 %4005 }
 0x66d   : > { %16180 = vst [vmem:[#allocation117_spill] sm:$0xff] %v12365_v54  ;;  %16181 = vst [vmem:[#allocation110_spill] sm:$0xff] %v12367_v23 }
 0x66e   : > { %4183 = vrot.lane.b32.xlu1 %v11473_v26, %s7268_s13  ;;  %4185 = vrot.lane.b32.xlu0 %v11470_v45, %s7268_s13 }
 0x670   : > { %v12373_v48 = vpop.permute.xlu1 %4007  ;;  %v12375_v63 = vpop.permute.xlu0 %4009 }
 0x671   : > { %16182 = vst [vmem:[#allocation121_spill] sm:$0xff] %v12373_v48  ;;  %16183 = vst [vmem:[#allocation59_spill] sm:$0xff] %v12375_v63 }
 0x672   : > { %4187 = vrot.lane.b32.xlu1 %v11512_v27, %s7268_s13  ;;  %4189 = vrot.lane.b32.xlu0 %v11509_v44, %s7268_s13 }
 0x674   : > { %v12381_v25 = vpop.permute.xlu1 %4011  ;;  %v12383_v55 = vpop.permute.xlu0 %4013 }
 0x675   : > { %16184 = vst [vmem:[#allocation116_spill] sm:$0xff] %v12381_v25  ;;  %16185 = vst [vmem:[#allocation149_spill] sm:$0xff] %v12383_v55 }
 0x676   : > { %4191 = vrot.lane.b32.xlu1 %v11551_v31, %s7268_s13  ;;  %4193 = vrot.lane.b32.xlu0 %v11548_v46, %s7268_s13 }
 0x678   : > { %v12389_v45 = vpop.permute.xlu1 %4015  ;;  %v12391_v26 = vpop.permute.xlu0 %4017 }
 0x679   : > { %16186 = vst [vmem:[#allocation170_spill] sm:$0xff] %v12389_v45  ;;  %16187 = vst [vmem:[#allocation129_spill] sm:$0xff] %v12391_v26 }
 0x67a   : > { %4195 = vrot.lane.b32.xlu1 %v11590_v13, %s7268_s13  ;;  %4197 = vrot.lane.b32.xlu0 %v11587_v39, %s7268_s13 }
 0x67c   : > { %v12397_v44 = vpop.permute.xlu1 %4019  ;;  %v12399_v27 = vpop.permute.xlu0 %4021 }
 0x67d   : > { %16188 = vst [vmem:[#allocation67_spill] sm:$0xff] %v12397_v44  ;;  %16189 = vst [vmem:[#allocation165_spill] sm:$0xff] %v12399_v27 }
 0x67e   : > { %4199 = vrot.lane.b32.xlu1 %v11621_v4, %s7268_s13  ;;  %4201 = vrot.lane.b32.xlu0 %v11618_v1, %s7268_s13  ;;  %v12421_v1 = vld [vmem:[#allocation3 + $0x198] sm:$0xff]  ;;  %v12423_v4 = vld [vmem:[#allocation3 + $0x1a0] sm:$0xff] }
 0x680   : > { %v12405_v46 = vpop.permute.xlu1 %4055  ;;  %v12407_v31 = vpop.permute.xlu0 %4057 }
 0x682   : > { %4203 = vrot.lane.b32.xlu1 %v11641_v47, %s7268_s13  ;;  %4205 = vrot.lane.b32.xlu0 %v11638_v50, %s7268_s13 }
 0x684   : > { %v12413_v39 = vpop.permute.xlu1 %4059  ;;  %v12415_v13 = vpop.permute.xlu0 %4061 }
 0x686   : > { %4207 = vrot.lane.b32.xlu1 %v11993_v30, %s7268_s13  ;;  %4209 = vrot.lane.b32.xlu0 %v11995_v0, %s7268_s13 }
 0x688   : > { %v12425_v27 = vpop.permute.xlu1 %4063  ;;  %v12427_v47 = vpop.permute.xlu0 %4065 }
 0x68a   : > { %4211 = vrot.lane.b32.xlu1 %v12421_v1, %s7268_s13  ;;  %4213 = vrot.lane.b32.xlu0 %v12423_v4, %s7268_s13 }
 0x68c   : > { %v12433_v50 = vpop.permute.xlu1 %4067  ;;  %v12435_v30 = vpop.permute.xlu0 %4069 }
 0x68e   : > { %4247 = vrot.lane.b32.xlu1 %v11183_v29, %s7269_s15  ;;  %4249 = vrot.lane.b32.xlu0 %v11180_v7, %s7269_s15 }
 0x690   : > { %v12441_v0 = vpop.permute.xlu1 %4071  ;;  %v12443_v44 = vpop.permute.xlu0 %4073 }
 0x692   : > { %4251 = vrot.lane.b32.xlu1 %v11222_v8, %s7269_s15  ;;  %4253 = vrot.lane.b32.xlu0 %v11219_v28, %s7269_s15 }
 0x694   : > { %v12449_v26 = vpop.permute.xlu1 %4075  ;;  %v12451_v45 = vpop.permute.xlu0 %4077 }
 0x696   : > { %4255 = vrot.lane.b32.xlu1 %v11261_v53, %s7269_s15  ;;  %4257 = vrot.lane.b32.xlu0 %v16066_v20, %s7269_s15 }
 0x698   : > { %v12457_v7 = vpop.permute.xlu1 %4079  ;;  %v12459_v29 = vpop.permute.xlu0 %4081 }
 0x699   : > { %16190 = vst [vmem:[#allocation206_spill] sm:$0xff] %v12457_v7  ;;  %16191 = vst [vmem:[#allocation202_spill] sm:$0xff] %v12459_v29 }
 0x69a   : > { %4259 = vrot.lane.b32.xlu1 %v16069_v33, %s7269_s15  ;;  %4261 = vrot.lane.b32.xlu0 %v16070_v36, %s7269_s15  ;;  %v4699_v33 = vld [vmem:[%s14889_s5] sm:$0xff]  ;;  %v4700_v36 = vld [vmem:[%s14889_s5 + $0x8] sm:$0xff] }
 0x69c   : > { %v12465_v28 = vpop.permute.xlu1 %4083  ;;  %v12467_v8 = vpop.permute.xlu0 %4085 }
 0x69d   : > { %16192 = vst [vmem:[#allocation106_spill] sm:$0xff] %v12465_v28  ;;  %16193 = vst [vmem:[#allocation155_spill] sm:$0xff] %v12467_v8  ;;  %v16289_v8 = vld [vmem:[#allocation182_spill] sm:$0xff]  ;;  %v16296_v28 = vld [vmem:[#allocation63_spill] sm:$0xff] }
 0x69e   : > { %4263 = vrot.lane.b32.xlu1 %v16073_v58, %s7269_s15  ;;  %4265 = vrot.lane.b32.xlu0 %v16074_v16, %s7269_s15  ;;  %v7066_v58 = vpack.c.bf16 %v4700_v36, %v4699_v33  ;;  %v4703_v36 = vld [vmem:[%s14889_s5 + $0x20] sm:$0xff] }
 0x6a0   : > { %v12473_v53 = vpop.permute.xlu1 %4087  ;;  %v12475_v20 = vpop.permute.xlu0 %4089  ;;  %7067 = vmatprep.subr.bf16.mxu1 %v7066_v58 }
 0x6a1   : > { %16194 = vst [vmem:[#allocation189_spill] sm:$0xff] %v12473_v53  ;;  %16195 = vst [vmem:[#allocation237_spill] sm:$0xff] %v12475_v20  ;;  %7069 = vmatpush3.bf16.msra.mxu1 %v7066_v58  ;;  %v4704_v58 = vld [vmem:[%s14889_s5 + $0x28] sm:$0xff]  ;;  %v12822_v20 = vld [vmem:[%s14892_s8 + $0x50] sm:$0xff] }
 0x6a2   : > { %4267 = vrot.lane.b32.xlu1 %v16077_v37, %s7269_s15  ;;  %4269 = vrot.lane.b32.xlu0 %v16078_v43, %s7269_s15  ;;  %v4701_v43 = vld [vmem:[%s14889_s5 + $0x10] sm:$0xff]  ;;  %v4702_v37 = vld [vmem:[%s14889_s5 + $0x18] sm:$0xff]  ;;  %16268 = vst [vmem:[#allocation180_spill] sm:$0xff] %v12822_v20 }
 0x6a4   : > { %v12487_v16 = vpop.permute.xlu1 %4091  ;;  %v12489_v55 = vpop.permute.xlu0 %4093 }
 0x6a5   : > { %16196 = vst [vmem:[#allocation122_spill] sm:$0xff] %v12487_v16  ;;  %16197 = vst [vmem:[#allocation71_spill] sm:$0xff] %v12489_v55  ;;  %v12799_v55 = vld [vmem:[%s14892_s8 + $0x48] sm:$0xff]  ;;  %v12804_v16 = vld [vmem:[%s14892_s8 + $0x40] sm:$0xff] }
 0x6a6   : > { %4271 = vrot.lane.b32.xlu1 %v16081_v15, %s7269_s15  ;;  %4273 = vrot.lane.b32.xlu0 %v16082_v59, %s7269_s15  ;;  %v7070_v15 = vpack.c.bf16 %v4702_v37, %v4701_v43  ;;  %v7074_v43 = vpack.c.bf16 %v4704_v58, %v4703_v36  ;;  %v4705_v36 = vld [vmem:[%s14889_s5 + $0x30] sm:$0xff]  ;;  %v4706_v58 = vld [vmem:[%s14889_s5 + $0x38] sm:$0xff]  ;;  %16263 = vst [vmem:[#allocation178_spill] sm:$0xff] %v12799_v55  ;;  %16264 = vst [vmem:[#allocation26_spill] sm:$0xff] %v12804_v16 }
 0x6a8   : > { %v12495_v25 = vpop.permute.xlu1 %4095  ;;  %v12497_v63 = vpop.permute.xlu0 %4097  ;;  %7071 = vmatprep.subr.bf16.mxu1 %v7070_v15 }
 0x6a9   : > { %16198 = vst [vmem:[#allocation174_spill] sm:$0xff] %v12495_v25  ;;  %16199 = vst [vmem:[#allocation201_spill] sm:$0xff] %v12497_v63  ;;  %7073 = vmatpush3.bf16.msra.mxu1 %v7070_v15  ;;  %v16206_v15 = vld [vmem:[#allocation70_spill] sm:$0xff] }
 0x6aa   : > { %4275 = vrot.lane.b32.xlu1 %v16085_v6, %s7269_s15  ;;  %4277 = vrot.lane.b32.xlu0 %v16086_v49, %s7269_s15  ;;  %v16202_v6 = vld [vmem:[#allocation240_spill] sm:$0xff]  ;;  %v16203_v49 = vld [vmem:[#allocation74_spill] sm:$0xff] }
 0x6ab   : > { %7075 = vmatprep.subr.bf16.mxu1 %v7074_v43 }
 0x6ac   : > { %v12509_v59 = vpop.permute.xlu1 %4099  ;;  %v12511_v33 = vpop.permute.xlu0 %4101 }
 0x6ad   : > { %16200 = vst [vmem:[#allocation124_spill] sm:$0xff] %v12509_v59  ;;  %16201 = vst [vmem:[#allocation123_spill] sm:$0xff] %v12511_v33  ;;  %7077 = vmatpush3.bf16.msra.mxu1 %v7074_v43  ;;  %v16207_v33 = vld [vmem:[#allocation135_spill] sm:$0xff]  ;;  %v7078_v43 = vpack.c.bf16 %v4706_v58, %v4705_v36  ;;  %v16218_v58 = vld [vmem:[#allocation192_spill] sm:$0xff] }
 0x6ae   : > { %4279 = vrot.lane.b32.xlu1 %v16202_v6, %s7269_s15  ;;  %4281 = vrot.lane.b32.xlu0 %v16203_v49, %s7269_s15  ;;  %v16210_v6 = vld [vmem:[#allocation214_spill] sm:$0xff]  ;;  %v16211_v49 = vld [vmem:[#allocation167_spill] sm:$0xff] }
 0x6af   : > { %7079 = vmatprep.subr.bf16.mxu1 %v7078_v43 }
 0x6b0   : > { %v12523_v37 = vpop.permute.xlu1 %4103  ;;  %v12525_v48 = vpop.permute.xlu0 %4105 }
 0x6b1   : > { %16204 = vst [vmem:[#allocation146_spill] sm:$0xff] %v12523_v37  ;;  %16205 = vst [vmem:[#allocation19_spill] sm:$0xff] %v12525_v48  ;;  %7081 = vmatpush3.bf16.msra.mxu1 %v7078_v43  ;;  %v16215_v48 = vld [vmem:[#allocation210_spill] sm:$0xff] }
 0x6b2   : > { %4283 = vrot.lane.b32.xlu1 %v16206_v15, %s7269_s15  ;;  %4285 = vrot.lane.b32.xlu0 %v16207_v33, %s7269_s15 }
 0x6b4   : > { %v12531_v59 = vpop.permute.xlu1 %4107  ;;  %v12533_v23 = vpop.permute.xlu0 %4109 }
 0x6b5   : > { %16208 = vst [vmem:[#allocation168_spill] sm:$0xff] %v12531_v59  ;;  %16209 = vst [vmem:[#allocation73_spill] sm:$0xff] %v12533_v23  ;;  %v4707_v23 = vld [vmem:[%s14889_s5 + $0x40] sm:$0xff]  ;;  %v16214_v59 = vld [vmem:[#allocation109_spill] sm:$0xff] }
 0x6b6   : > { %4287 = vrot.lane.b32.xlu1 %v16210_v6, %s7269_s15  ;;  %4289 = vrot.lane.b32.xlu0 %v16211_v49, %s7269_s15  ;;  %v16219_v49 = vld [vmem:[#allocation78_spill] sm:$0xff] }
 0x6b7   : > { %6958 = vmatprep.subr.mxu1 %v4707_v23 }
 0x6b8   : > { %v12545_v33 = vpop.permute.xlu1 %4111  ;;  %v12547_v15 = vpop.permute.xlu0 %4113  ;;  %6959 = vmatpush3.msra.mxu1 %v4707_v23  ;;  %v3661_v23 = vrot.slane %v12421_v1, 1 }
 0x6b9   : > { %16212 = vst [vmem:[#allocation176_spill] sm:$0xff] %v12545_v33  ;;  %16213 = vst [vmem:[#allocation35_spill] sm:$0xff] %v12547_v15 }
 0x6ba   : > { %4291 = vrot.lane.b32.xlu1 %v16214_v59, %s7269_s15  ;;  %4293 = vrot.lane.b32.xlu0 %v16215_v48, %s7269_s15  ;;  %v12568_v59 = vld [vmem:[#allocation3 + $0x1a8] sm:$0x3]  ;;  %v16220_v48 = vld [vmem:[#allocation4_spill] sm:$0xff] }
 0x6bc   : > { %v12556_v6 = vpop.permute.xlu1 %4115  ;;  %v12558_v36 = vpop.permute.xlu0 %4117 }
 0x6bd   : > { %16216 = vst [vmem:[#allocation251_spill] sm:$0xff] %v12556_v6  ;;  %16217 = vst [vmem:[#allocation236_spill] sm:$0xff] %v12558_v36  ;;  %v3662_v36 = vrot.slane %v12423_v4, 1 }
 0x6be   : > { %4295 = vrot.lane.b32.xlu1 %v16218_v58, %s7269_s15  ;;  %4297 = vrot.lane.b32.xlu0 %v16219_v49, %s7269_s15  ;;  %v3664_v58 = vrot.slane %v12568_v59, 1 }
 0x6c0   : > { %v12564_v43 = vpop.permute.xlu1 %4151  ;;  %v12566_v15 = vpop.permute.xlu0 %4153 }
 0x6c2   : > { %4299 = vrot.lane.b32.xlu1 %v16220_v48, %s7269_s15  ;;  %4301 = vrot.lane.b32.xlu0 %v16109_v41, %s7269_s15  ;;  %v3663_v48 = vsel %vm673_vm2, %v3661_v23, %v3662_v36  ;;  %v3665_v41 = vsel %vm673_vm2, %v3662_v36, %v3664_v58  ;;  %vm4600_vm2 = vcmask 392192  }
 0x6c4   : > { %v12577_v6 = vpop.permute.xlu1 %4155  ;;  %v12579_v49 = vpop.permute.xlu0 %4157 }
 0x6c6   : > { %4303 = vrot.lane.b32.xlu1 %v12131_v62, %s7269_s15  ;;  %4305 = vrot.lane.b32.xlu0 %v12134_v60, %s7269_s15 }
 0x6c8   : > { %v12587_v33 = vpop.permute.xlu1 %4159  ;;  %v12589_v37 = vpop.permute.xlu0 %4161 }
 0x6ca   : > { %4307 = vrot.lane.b32.xlu1 %v3663_v48, %s7269_s15  ;;  %4309 = vrot.lane.b32.xlu0 %v3665_v41, %s7269_s15 }
 0x6cc   : > { %v12593_v54 = vpop.permute.xlu1 %4163  ;;  %v12595_v63 = vpop.permute.xlu0 %4165 }
 0x6ce   : > { %4343 = vrot.lane.b32.xlu1 %v11682_v17, %s7270_s17  ;;  %4345 = vrot.lane.b32.xlu0 %v11679_v5, %s7270_s17 }
 0x6d0   : > { %v12601_v60 = vpop.permute.xlu1 %4167  ;;  %v12603_v62 = vpop.permute.xlu0 %4169 }
 0x6d2   : > { %4347 = vrot.lane.b32.xlu1 %v11697_v40, %s7270_s17  ;;  %4349 = vrot.lane.b32.xlu0 %v16118_v38, %s7270_s17  ;;  %v16225_v40 = vld [vmem:[#allocation212_spill] sm:$0xff] }
 0x6d4   : > { %v12609_v36 = vpop.permute.xlu1 %4171  ;;  %v12611_v23 = vpop.permute.xlu0 %4173 }
 0x6d5   : > { %16221 = vst [vmem:[#allocation103_spill] sm:$0xff] %v12609_v36  ;;  %16222 = vst [vmem:[#allocation204_spill] sm:$0xff] %v12611_v23 }
 0x6d6   : > { %4351 = vrot.lane.b32.xlu1 %v11708_v14, %s7270_s17  ;;  %4353 = vrot.lane.b32.xlu0 %v16121_v19, %s7270_s17  ;;  %v16228_v14 = vld [vmem:[#allocation150_spill] sm:$0xff] }
 0x6d8   : > { %v12617_v5 = vpop.permute.xlu1 %4175  ;;  %v12619_v17 = vpop.permute.xlu0 %4177 }
 0x6d9   : > { %16223 = vst [vmem:[#allocation147_spill] sm:$0xff] %v12617_v5  ;;  %16224 = vst [vmem:[#allocation118_spill] sm:$0xff] %v12619_v17 }
 0x6da   : > { %4355 = vrot.lane.b32.xlu1 %v11723_v51, %s7270_s17  ;;  %4357 = vrot.lane.b32.xlu0 %v16225_v40, %s7270_s17  ;;  %v16231_v51 = vld [vmem:[#allocation29_spill] sm:$0xff] }
 0x6dc   : > { %v12625_v38 = vpop.permute.xlu1 %4179  ;;  %v12627_v58 = vpop.permute.xlu0 %4181 }
 0x6dd   : > { %16226 = vst [vmem:[#allocation131_spill] sm:$0xff] %v12625_v38  ;;  %16227 = vst [vmem:[#allocation68_spill] sm:$0xff] %v12627_v58  ;;  %v16288_v58 = vld [vmem:[#allocation6_spill] sm:$0xff] }
 0x6de   : > { %4359 = vrot.lane.b32.xlu1 %v11734_v56, %s7270_s17  ;;  %4361 = vrot.lane.b32.xlu0 %v16228_v14, %s7270_s17  ;;  %v16234_v56 = vld [vmem:[#allocation242_spill] sm:$0xff] }
 0x6e0   : > { %v12633_v19 = vpop.permute.xlu1 %4183  ;;  %v12635_v48 = vpop.permute.xlu0 %4185 }
 0x6e1   : > { %16229 = vst [vmem:[#allocation144_spill] sm:$0xff] %v12633_v19  ;;  %16230 = vst [vmem:[#allocation23_spill] sm:$0xff] %v12635_v48  ;;  %v12817_v19 = vld [vmem:[%s14892_s8 + $0x58] sm:$0xff] }
 0x6e2   : > { %4363 = vrot.lane.b32.xlu1 %v11749_v42, %s7270_s17  ;;  %4365 = vrot.lane.b32.xlu0 %v16231_v51, %s7270_s17  ;;  %v16238_v42 = vld [vmem:[#allocation137_spill] sm:$0xff]  ;;  %16267 = vst [vmem:[#allocation127_spill] sm:$0xff] %v12817_v19 }
 0x6e4   : > { %v12641_v41 = vpop.permute.xlu1 %4187  ;;  %v12643_v40 = vpop.permute.xlu0 %4189 }
 0x6e5   : > { %16232 = vst [vmem:[#allocation58_spill] sm:$0xff] %v12641_v41  ;;  %16233 = vst [vmem:[#allocation243_spill] sm:$0xff] %v12643_v40 }
 0x6e6   : > { %4367 = vrot.lane.b32.xlu1 %v11760_v34, %s7270_s17  ;;  %4369 = vrot.lane.b32.xlu0 %v16234_v56, %s7270_s17  ;;  %v16241_v34 = vld [vmem:[#allocation217_spill] sm:$0xff] }
 0x6e8   : > { %v12649_v14 = vpop.permute.xlu1 %4191  ;;  %v12651_v25 = vpop.permute.xlu0 %4193 }
 0x6e9   : > { %16235 = vst [vmem:[#allocation21_spill] sm:$0xff] %v12649_v14  ;;  %16236 = vst [vmem:[#allocation209_spill] sm:$0xff] %v12651_v25  ;;  %v12786_v25 = vld [vmem:[%s14892_s8 + $0x30] sm:$0xff] }
 0x6ea   : > { %4371 = vrot.lane.b32.xlu1 %v16237_v57, %s7270_s17  ;;  %4373 = vrot.lane.b32.xlu0 %v16238_v42, %s7270_s17  ;;  %16260 = vst [vmem:[#allocation126_spill] sm:$0xff] %v12786_v25 }
 0x6ec   : > { %v12657_v51 = vpop.permute.xlu1 %4195  ;;  %v12659_v18 = vpop.permute.xlu0 %4197 }
 0x6ed   : > { %16239 = vst [vmem:[#allocation11_spill] sm:$0xff] %v12657_v51  ;;  %16240 = vst [vmem:[#allocation238_spill] sm:$0xff] %v12659_v18  ;;  %v12781_v51 = vld [vmem:[%s14892_s8 + $0x38] sm:$0xff] }
 0x6ee   : > { %4375 = vrot.lane.b32.xlu1 %v11786_v22, %s7270_s17  ;;  %4377 = vrot.lane.b32.xlu0 %v16241_v34, %s7270_s17  ;;  %16259 = vst [vmem:[#allocation159_spill] sm:$0xff] %v12781_v51 }
 0x6f0   : > { %v12665_v56 = vpop.permute.xlu1 %4199  ;;  %v12667_v14 = vpop.permute.xlu0 %4201 }
 0x6f1   : > { %16242 = vst [vmem:[#allocation133_spill] sm:$0xff] %v12665_v56  ;;  %16243 = vst [vmem:[#allocation164_spill] sm:$0xff] %v12667_v14  ;;  %v16248_v14 = vld [vmem:[#allocation38_spill] sm:$0xff] }
 0x6f2   : > { %4379 = vrot.lane.b32.xlu1 %v16142_v10, %s7270_s17  ;;  %4381 = vrot.lane.b32.xlu0 %v16143_v52, %s7270_s17  ;;  %v16249_v10 = vld [vmem:[#allocation213_spill] sm:$0xff] }
 0x6f4   : > { %v12673_v57 = vpop.permute.xlu1 %4203  ;;  %v12675_v42 = vpop.permute.xlu0 %4205 }
 0x6f5   : > { %16244 = vst [vmem:[#allocation205_spill] sm:$0xff] %v12673_v57  ;;  %16245 = vst [vmem:[#allocation105_spill] sm:$0xff] %v12675_v42  ;;  %v12768_v42 = vld [vmem:[%s14892_s8 + $0x20] sm:$0xff] }
 0x6f6   : > { %4383 = vrot.lane.b32.xlu1 %v11812_v12, %s7270_s17  ;;  %4385 = vrot.lane.b32.xlu0 %v16146_v21, %s7270_s17  ;;  %16256 = vst [vmem:[#allocation107_spill] sm:$0xff] %v12768_v42 }
 0x6f8   : > { %v12681_v22 = vpop.permute.xlu1 %4207  ;;  %v12683_v34 = vpop.permute.xlu0 %4209 }
 0x6f9   : > { %16246 = vst [vmem:[#allocation142_spill] sm:$0xff] %v12681_v22  ;;  %16247 = vst [vmem:[#allocation166_spill] sm:$0xff] %v12683_v34  ;;  %v16252_v34 = vld [vmem:[#allocation32_spill] sm:$0xff] }
 0x6fa   : > { %4387 = vrot.lane.b32.xlu1 %v16248_v14, %s7270_s17  ;;  %4389 = vrot.lane.b32.xlu0 %v16249_v10, %s7270_s17  ;;  %v16253_v14 = vld [vmem:[#allocation245_spill] sm:$0xff]  ;;  %v3666_v10 = vrot.slane %v12421_v1, 2 }
 0x6fc   : > { %v12689_v52 = vpop.permute.xlu1 %4211  ;;  %v12691_v57 = vpop.permute.xlu0 %4213 }
 0x6fd   : > { %16250 = vst [vmem:[#allocation157_spill] sm:$0xff] %v12689_v52  ;;  %16251 = vst [vmem:[#allocation190_spill] sm:$0xff] %v12691_v57  ;;  %v3667_v57 = vrot.slane %v12423_v4, 2  ;;  %v3669_v52 = vrot.slane %v12568_v59, 2  ;;  %v12727_v4 = vld [vmem:[%s14892_s8 + $0x8] sm:$0xff] }
 0x6fe   : > { %4391 = vrot.lane.b32.xlu1 %v11846_v61, %s7270_s17  ;;  %4393 = vrot.lane.b32.xlu0 %v11843_v32, %s7270_s17 }
 0x6ff   : > { %v3668_v32 = vsel %vm754_vm4, %v3666_v10, %v3667_v57 }
 0x700   : > { %v12697_v12 = vpop.permute.xlu1 %4247  ;;  %v12699_v21 = vpop.permute.xlu0 %4249 }
 0x702   : > { %4395 = vrot.lane.b32.xlu1 %v16252_v34, %s7270_s17  ;;  %4397 = vrot.lane.b32.xlu0 %v16253_v14, %s7270_s17  ;;  %v3670_v34 = vsel %vm754_vm4, %v3667_v57, %v3669_v52  ;;  %v12745_v57 = vld [vmem:[%s14892_s8 + $0x18] sm:$0xff]  ;;  %v12750_v52 = vld [vmem:[%s14892_s8 + $0x10] sm:$0xff]  ;;  %vm4633_vm4 = vcmask 457728  }
 0x703   : > { %16254 = vst [vmem:[#allocation239_spill] sm:$0xff] %v12750_v52 }
 0x704   : > { %v12708_v61 = vpop.permute.xlu1 %4251  ;;  %v12710_v22 = vpop.permute.xlu0 %4253 }
 0x706   : > { %4399 = vrot.lane.b32.xlu1 %v12268_v9, %s7270_s17  ;;  %4401 = vrot.lane.b32.xlu0 %v12271_v3, %s7270_s17  ;;  %v12732_v3 = vld [vmem:[%s14892_s8] sm:$0xff] }
 0x708   : > { %v12718_v14 = vpop.permute.xlu1 %4255  ;;  %v12720_v1 = vpop.permute.xlu0 %4257 }
 0x70a   : > { %4403 = vrot.lane.b32.xlu1 %v3668_v32, %s7270_s17  ;;  %4405 = vrot.lane.b32.xlu0 %v3670_v34, %s7270_s17  ;;  %v12763_v34 = vld [vmem:[%s14892_s8 + $0x28] sm:$0xff] }
 0x70b   : > { %16255 = vst [vmem:[#allocation211_spill] sm:$0xff] %v12763_v34 }
 0x70c   : > { %v12734_v9 = vpop.permute.xlu1 %4259  ;;  %v12736_v59 = vpop.permute.xlu0 %4261 }
 0x70e   : > { %5238 = vrot.lane.b32.xlu0 %v12727_v4, %s7262_s20  ;;  %5236 = vrot.lane.b32.xlu1 %v12732_v3, %s7262_s20 }
 0x710   : > { %v12752_v10 = vpop.permute.xlu1 %4263  ;;  %v12754_v32 = vpop.permute.xlu0 %4265 }
 0x712   : > { %5242 = vrot.lane.b32.xlu0 %v12745_v57, %s7262_s20  ;;  %5240 = vrot.lane.b32.xlu1 %v12750_v52, %s7262_s20 }
 0x714   : > { %v12770_v56 = vpop.permute.xlu1 %4267  ;;  %v12772_v18 = vpop.permute.xlu0 %4269 }
 0x715   : > { %16257 = vst [vmem:[#allocation207_spill] sm:$0xff] %v12770_v56  ;;  %16258 = vst [vmem:[#allocation191_spill] sm:$0xff] %v12772_v18  ;;  %v16311_v56 = vld [vmem:[#allocation93_spill] sm:$0xff] }
 0x716   : > { %5246 = vrot.lane.b32.xlu0 %v12763_v34, %s7262_s20  ;;  %5244 = vrot.lane.b32.xlu1 %v12768_v42, %s7262_s20  ;;  %v16298_v42 = vld [vmem:[#allocation84_spill] sm:$0xff] }
 0x718   : > { %v12788_v40 = vpop.permute.xlu1 %4271  ;;  %v12790_v41 = vpop.permute.xlu0 %4273 }
 0x719   : > { %16261 = vst [vmem:[#allocation241_spill] sm:$0xff] %v12788_v40  ;;  %16262 = vst [vmem:[#allocation208_spill] sm:$0xff] %v12790_v41  ;;  %v16297_v40 = vld [vmem:[#allocation171_spill] sm:$0xff] }
 0x71a   : > { %5250 = vrot.lane.b32.xlu0 %v12781_v51, %s7262_s20  ;;  %5248 = vrot.lane.b32.xlu1 %v12786_v25, %s7262_s20  ;;  %v7192_v25 = vld [vmem:[#allocation3 + $0x8] sm:$0xff]  ;;  %v7193_v51 = vld [vmem:[#allocation3 + $0x18] sm:$0xff]  ;;  %v12939_v17 = vsel %vm1661_vm3, %v16298_v42, %v16297_v40  ;;  %v16307_v40 = vld [vmem:[#allocation194_spill] sm:$0xff] }
 0x71b   : > { %v4440_v38 = vsel %vm1661_vm3, %v7192_v25, %v16288_v58  ;;  %v16293_v25 = vld [vmem:[#allocation152_spill] sm:$0xff]  ;;  %v16294_v58 = vld [vmem:[#allocation61_spill] sm:$0xff]  ;;  %v16308_v42 = vld [vmem:[#allocation91_spill] sm:$0xff] }
 0x71c   : > { %v12806_v35 = vpop.permute.xlu1 %4275  ;;  %v12808_v48 = vpop.permute.xlu0 %4277 }
 0x71d   : > { %16265 = vst [vmem:[#allocation148_spill] sm:$0xff] %v12806_v35  ;;  %16266 = vst [vmem:[#allocation244_spill] sm:$0xff] %v12808_v48 }
 0x71e   : > { %5254 = vrot.lane.b32.xlu0 %v12799_v55, %s7262_s20  ;;  %5252 = vrot.lane.b32.xlu1 %v12804_v16, %s7262_s20  ;;  %v12835_v16 = vld [vmem:[%s14892_s8 + $0x68] sm:$0xff]  ;;  %v12840_v55 = vld [vmem:[%s14892_s8 + $0x60] sm:$0xff] }
 0x71f   : > { %16271 = vst [vmem:[#allocation193_spill] sm:$0xff] %v12835_v16  ;;  %16272 = vst [vmem:[#allocation240_spill] sm:$0xff] %v12840_v55 }
 0x720   : > { %v12824_v53 = vpop.permute.xlu1 %4279  ;;  %v12826_v35 = vpop.permute.xlu0 %4281 }
 0x721   : > { %16269 = vst [vmem:[#allocation79_spill] sm:$0xff] %v12824_v53  ;;  %16270 = vst [vmem:[#allocation5_spill] sm:$0xff] %v12826_v35 }
 0x722   : > { %5258 = vrot.lane.b32.xlu0 %v12817_v19, %s7262_s20  ;;  %5256 = vrot.lane.b32.xlu1 %v12822_v20, %s7262_s20  ;;  %v12853_v20 = vld [vmem:[%s14892_s8 + $0x78] sm:$0xff]  ;;  %v12858_v19 = vld [vmem:[%s14892_s8 + $0x70] sm:$0xff] }
 0x723   : > { %16275 = vst [vmem:[#allocation135_spill] sm:$0xff] %v12853_v20  ;;  %16276 = vst [vmem:[#allocation214_spill] sm:$0xff] %v12858_v19 }
 0x724   : > { %v12842_v48 = vpop.permute.xlu1 %4283  ;;  %v12844_v53 = vpop.permute.xlu0 %4285 }
 0x725   : > { %16273 = vst [vmem:[#allocation74_spill] sm:$0xff] %v12842_v48  ;;  %16274 = vst [vmem:[#allocation70_spill] sm:$0xff] %v12844_v53 }
 0x726   : > { %5262 = vrot.lane.b32.xlu0 %v12835_v16, %s7262_s20  ;;  %5260 = vrot.lane.b32.xlu1 %v12840_v55, %s7262_s20  ;;  %v12871_v55 = vld [vmem:[%s14892_s8 + $0x88] sm:$0xff]  ;;  %v12876_v16 = vld [vmem:[%s14892_s8 + $0x80] sm:$0xff] }
 0x727   : > { %16279 = vst [vmem:[#allocation210_spill] sm:$0xff] %v12871_v55  ;;  %16280 = vst [vmem:[#allocation192_spill] sm:$0xff] %v12876_v16 }
 0x728   : > { %v12860_v35 = vpop.permute.xlu1 %4287  ;;  %v12862_v48 = vpop.permute.xlu0 %4289 }
 0x729   : > { %16277 = vst [vmem:[#allocation167_spill] sm:$0xff] %v12860_v35  ;;  %16278 = vst [vmem:[#allocation109_spill] sm:$0xff] %v12862_v48 }
 0x72a   : > { %5266 = vrot.lane.b32.xlu0 %v12853_v20, %s7262_s20  ;;  %5264 = vrot.lane.b32.xlu1 %v12858_v19, %s7262_s20  ;;  %v12889_v19 = vld [vmem:[%s14892_s8 + $0x98] sm:$0xff]  ;;  %v12894_v20 = vld [vmem:[%s14892_s8 + $0x90] sm:$0xff] }
 0x72b   : > { %16283 = vst [vmem:[#allocation212_spill] sm:$0xff] %v12889_v19  ;;  %16284 = vst [vmem:[#allocation150_spill] sm:$0xff] %v12894_v20 }
 0x72c   : > { %v12878_v53 = vpop.permute.xlu1 %4291  ;;  %v12880_v35 = vpop.permute.xlu0 %4293 }
 0x72d   : > { %16281 = vst [vmem:[#allocation78_spill] sm:$0xff] %v12878_v53  ;;  %16282 = vst [vmem:[#allocation4_spill] sm:$0xff] %v12880_v35 }
 0x72e   : > { %5270 = vrot.lane.b32.xlu0 %v12871_v55, %s7262_s20  ;;  %5268 = vrot.lane.b32.xlu1 %v12876_v16, %s7262_s20  ;;  %v7191_v16 = vld [vmem:[#allocation3] sm:$0xff] }
 0x72f   : > { %v16287_v55 = vld [vmem:[#allocation246_spill] sm:$0xff] }
 0x730   : > { %v12896_v48 = vpop.permute.xlu1 %4295  ;;  %v12898_v53 = vpop.permute.xlu0 %4297  ;;  %v4439_v35 = vsel %vm1661_vm3, %v7191_v16, %v16287_v55  ;;  %v7194_v55 = vld [vmem:[#allocation3 + $0x20] sm:$0xff]  ;;  %v16292_v16 = vld [vmem:[#allocation216_spill] sm:$0xff] }
 0x731   : > { %16285 = vst [vmem:[#allocation29_spill] sm:$0xff] %v12896_v48  ;;  %16286 = vst [vmem:[#allocation242_spill] sm:$0xff] %v12898_v53  ;;  %v12910_v48 = vsel %vm1661_vm3, %v7193_v51, %v16289_v8  ;;  %v12924_v53 = vsel %vm1661_vm3, %v7194_v55, %v16292_v16  ;;  %v12929_v8 = vsel %vm1661_vm3, %v16294_v58, %v16293_v25  ;;  %v16295_v51 = vld [vmem:[#allocation195_spill] sm:$0xff]  ;;  %v16302_v16 = vld [vmem:[#allocation86_spill] sm:$0xff] }
 0x732   : > { %5274 = vrot.lane.b32.xlu0 %v12889_v19, %s7262_s20  ;;  %5272 = vrot.lane.b32.xlu1 %v12894_v20, %s7262_s20  ;;  %v12915_v19 = vld [vmem:[%s14892_s8 + $0xa8] sm:$0xff]  ;;  %v12920_v20 = vld [vmem:[%s14892_s8 + $0xa0] sm:$0xff]  ;;  %v12934_v41 = vsel %vm1661_vm3, %v16296_v28, %v16295_v51  ;;  %v16301_v55 = vld [vmem:[#allocation219_spill] sm:$0xff] }
 0x733   : > { %16290 = vst [vmem:[#allocation169_spill] sm:$0xff] %v12915_v19  ;;  %16291 = vst [vmem:[#allocation137_spill] sm:$0xff] %v12920_v20  ;;  %v12948_v29 = vsel %vm1661_vm3, %v16302_v16, %v16301_v55  ;;  %v16303_v25 = vld [vmem:[#allocation7_spill] sm:$0xff]  ;;  %v16304_v58 = vld [vmem:[#allocation89_spill] sm:$0xff] }
 0x734   : > { %v12941_v5 = vpop.permute.xlu1 %4299  ;;  %v12943_v34 = vpop.permute.xlu0 %4301  ;;  %v12953_v7 = vsel %vm1661_vm3, %v16304_v58, %v16303_v25  ;;  %v16305_v28 = vld [vmem:[#allocation82_spill] sm:$0xff]  ;;  %v16306_v51 = vld [vmem:[#allocation95_spill] sm:$0xff]  ;;  %v16310_v16 = vld [vmem:[#allocation9_spill] sm:$0xff] }
 0x735   : > { %16299 = vst [vmem:[#allocation217_spill] sm:$0xff] %v12941_v5  ;;  %16300 = vst [vmem:[#allocation38_spill] sm:$0xff] %v12943_v34  ;;  %v12958_v18 = vsel %vm1661_vm3, %v16306_v51, %v16305_v28  ;;  %v12963_v5 = vsel %vm1661_vm3, %v16308_v42, %v16307_v40  ;;  %v16309_v34 = vld [vmem:[#allocation249_spill] sm:$0xff]  ;;  %v12973_v25 = vsel %vm1661_vm3, %v16311_v56, %v16310_v16  ;;  %v16312_v58 = vld [vmem:[#allocation215_spill] sm:$0xff] }
 0x736   : > { %v12968_v55 = vsel %vm1661_vm3, %v12321_v11, %v16309_v34  ;;  %v12978_v28 = vsel %vm1661_vm3, %v12333_v24, %v16312_v58  ;;  %5278 = vrot.lane.b32.xlu0 %v12915_v19, %s7262_s20  ;;  %5276 = vrot.lane.b32.xlu1 %v12920_v20, %s7262_s20  ;;  %v16314_v51 = vld [vmem:[#allocation128_spill] sm:$0xff]  ;;  %v16316_v34 = vld [vmem:[#allocation183_spill] sm:$0xff]  ;;  %v7195_v42 = vld [vmem:[#allocation3 + $0xc0] sm:$0xff] }
 0x737   : > { %16313 = vst [vmem:[#allocation213_spill] sm:$0xff] %v12978_v28  ;;  %v12987_v11 = vsel %vm1661_vm3, %v12341_v2, %v16314_v51  ;;  %v16317_v40 = vld [vmem:[#allocation99_spill] sm:$0xff]  ;;  %v16319_v16 = vld [vmem:[#allocation220_spill] sm:$0xff]  ;;  %v16321_v19 = vld [vmem:[#allocation154_spill] sm:$0xff] }
 0x738   : > { %16315 = vst [vmem:[#allocation32_spill] sm:$0xff] %v12987_v11  ;;  %v12992_v56 = vsel %vm1661_vm3, %v16317_v40, %v16316_v34  ;;  %v12996_v24 = vsel %vm1661_vm3, %v7195_v42, %v16319_v16  ;;  %v7196_v58 = vld [vmem:[#allocation3 + $0xc8] sm:$0xff]  ;;  %v13010_v51 = vld [vmem:[%s14892_s8 + $0xb0] sm:$0xff]  ;;  %v7197_v34 = vld [vmem:[#allocation3 + $0xd8] sm:$0xff]  ;;  %v13028_v36 = vpop.permute.xlu1 %4303  ;;  %v13030_v28 = vpop.permute.xlu0 %4305 }
 0x739   : > { %16318 = vst [vmem:[#allocation245_spill] sm:$0xff] %v12992_v56  ;;  %16320 = vst [vmem:[#allocation246_spill] sm:$0xff] %v12996_v24  ;;  %v13000_v52 = vsel %vm1661_vm3, %v7196_v58, %v16321_v19  ;;  %v13005_v2 = vld [vmem:[%s14892_s8 + $0xb8] sm:$0xff]  ;;  %v16325_v40 = vld [vmem:[#allocation36_spill] sm:$0xff] }
 0x73a   : > { %16322 = vst [vmem:[#allocation6_spill] sm:$0xff] %v13000_v52  ;;  %16323 = vst [vmem:[#allocation182_spill] sm:$0xff] %v13005_v2  ;;  %v13014_v42 = vsel %vm1661_vm3, %v7197_v34, %v16325_v40  ;;  %v7198_v16 = vld [vmem:[#allocation3 + $0xe0] sm:$0xff]  ;;  %v16327_v20 = vld [vmem:[#allocation248_spill] sm:$0xff]  ;;  %5282 = vrot.lane.b32.xlu0 %v13005_v2, %s7262_s20  ;;  %5280 = vrot.lane.b32.xlu1 %v13010_v51, %s7262_s20 }
 0x73b   : > { %16324 = vst [vmem:[#allocation216_spill] sm:$0xff] %v13010_v51  ;;  %16326 = vst [vmem:[#allocation152_spill] sm:$0xff] %v13014_v42  ;;  %v13018_v19 = vsel %vm1661_vm3, %v7198_v16, %v16327_v20  ;;  %v7199_v58 = vld [vmem:[#allocation3 + $0xf0] sm:$0xff]  ;;  %v16329_v52 = vld [vmem:[#allocation139_spill] sm:$0xff] }
 0x73c   : > { %16328 = vst [vmem:[#allocation61_spill] sm:$0xff] %v13018_v19  ;;  %v13022_v24 = vsel %vm1661_vm3, %v7199_v58, %v16329_v52  ;;  %v7200_v56 = vld [vmem:[#allocation3 + $0xf8] sm:$0xff]  ;;  %v16331_v11 = vld [vmem:[#allocation76_spill] sm:$0xff]  ;;  %16333 = vst [vmem:[#allocation171_spill] sm:$0xff] %v13028_v36  ;;  %v13090_v2 = vpop.permute.xlu1 %4307 }
 0x73d   : > { %16330 = vst [vmem:[#allocation195_spill] sm:$0xff] %v13022_v24  ;;  %v13026_v23 = vsel %vm1661_vm3, %v7200_v56, %v16331_v11  ;;  %16334 = vst [vmem:[#allocation84_spill] sm:$0xff] %v13030_v28  ;;  %v7201_v34 = vld [vmem:[#allocation3 + $0x108] sm:$0xff]  ;;  %v16335_v40 = vld [vmem:[#allocation173_spill] sm:$0xff] }
 0x73e   : > { %16332 = vst [vmem:[#allocation63_spill] sm:$0xff] %v13026_v23  ;;  %v13034_v42 = vsel %vm1661_vm3, %v7201_v34, %v16335_v40  ;;  %v7202_v20 = vld [vmem:[#allocation3 + $0x110] sm:$0xff]  ;;  %v16337_v16 = vld [vmem:[#allocation222_spill] sm:$0xff]  ;;  %v7204_v11 = vld [vmem:[#allocation3 + $0x128] sm:$0xff] }
 0x73f   : > { %16336 = vst [vmem:[#allocation219_spill] sm:$0xff] %v13034_v42  ;;  %v13038_v19 = vsel %vm1661_vm3, %v7202_v20, %v16337_v16  ;;  %v7203_v52 = vld [vmem:[#allocation3 + $0x120] sm:$0xff]  ;;  %v16340_v56 = vld [vmem:[#allocation85_spill] sm:$0xff]  ;;  %v16342_v23 = vld [vmem:[#allocation43_spill] sm:$0xff] }
 0x740   : > { %16338 = vst [vmem:[#allocation86_spill] sm:$0xff] %v13038_v19  ;;  %v16339_v58 = vld [vmem:[#allocation10_spill] sm:$0xff]  ;;  %v13046_v36 = vsel %vm1661_vm3, %v7204_v11, %v16340_v56  ;;  %v7205_v28 = vld [vmem:[#allocation3 + $0x138] sm:$0xff]  ;;  %v16344_v42 = vld [vmem:[#allocation252_spill] sm:$0xff] }
 0x741   : > { %v13042_v24 = vsel %vm1661_vm3, %v7203_v52, %v16339_v58  ;;  %16341 = vst [vmem:[#allocation7_spill] sm:$0xff] %v13046_v36  ;;  %v13050_v34 = vsel %vm1661_vm3, %v7205_v28, %v16342_v23  ;;  %v7206_v40 = vld [vmem:[#allocation3 + $0x140] sm:$0xff]  ;;  %v7207_v16 = vld [vmem:[#allocation3 + $0x150] sm:$0xff]  ;;  %v7208_v58 = vld [vmem:[#allocation3 + $0x158] sm:$0xff] }
 0x742   : > { %16343 = vst [vmem:[#allocation89_spill] sm:$0xff] %v13050_v34  ;;  %v13054_v20 = vsel %vm1661_vm3, %v7206_v40, %v16344_v42  ;;  %v16346_v19 = vld [vmem:[#allocation12_spill] sm:$0xff]  ;;  %v16348_v11 = vld [vmem:[#allocation218_spill] sm:$0xff]  ;;  %v7209_v51 = vld [vmem:[#allocation3 + $0x168] sm:$0xff] }
 0x743   : > { %16345 = vst [vmem:[#allocation82_spill] sm:$0xff] %v13054_v20  ;;  %v13058_v52 = vsel %vm1661_vm3, %v7207_v16, %v16346_v19  ;;  %v13066_v23 = vsel %vm1661_vm3, %v7208_v58, %v16348_v11  ;;  %v16350_v28 = vld [vmem:[#allocation184_spill] sm:$0xff]  ;;  %v13075_v19 = vld [vmem:[%s14892_s8 + $0xc8] sm:$0xff]  ;;  %v16352_v58 = vld [vmem:[#allocation130_spill] sm:$0xff] }
 0x744   : > { %16347 = vst [vmem:[#allocation95_spill] sm:$0xff] %v13058_v52  ;;  %16349 = vst [vmem:[#allocation194_spill] sm:$0xff] %v13066_v23  ;;  %v4471_v42 = vsel %vm1727_vm7, %v4439_v35, %v16350_v28  ;;  %v16351_v56 = vld [vmem:[#allocation224_spill] sm:$0xff]  ;;  %v13084_v11 = vsel %vm1661_vm3, %v7209_v51, %v16352_v58  ;;  %v13092_v23 = vpop.permute.xlu0 %4309  ;;  %v16356_v20 = vld [vmem:[#allocation77_spill] sm:$0xff]  ;;  %5286 = vrot.lane.b32.xlu0 %v13075_v19, %s7262_s20 }
 0x745   : > { %v4472_v40 = vsel %vm1727_vm7, %v4440_v38, %v16351_v56  ;;  %v13080_v16 = vld [vmem:[%s14892_s8 + $0xc0] sm:$0xff]  ;;  %16353 = vst [vmem:[#allocation91_spill] sm:$0xff] %v13084_v11  ;;  %v16357_v36 = vld [vmem:[#allocation42_spill] sm:$0xff] }
 0x746   : > { %v16354_v35 = vld [vmem:[#allocation160_spill] sm:$0xff]  ;;  %5284 = vrot.lane.b32.xlu1 %v13080_v16, %s7262_s20 }
 0x747   : > { %v4503_v28 = vsel %vm1793_vm9, %v4471_v42, %v16354_v35  ;;  %v16355_v38 = vld [vmem:[#allocation196_spill] sm:$0xff] }
 0x748   : > { %v4504_v56 = vsel %vm1793_vm9, %v4472_v40, %v16355_v38  ;;  %v7210_v52 = vld [vmem:[#allocation3 + $0x170] sm:$0xff]  ;;  %v4535_v51 = vsel %vm1859_vm11, %v4503_v28, %v16357_v36  ;;  %v16362_v28 = vld [vmem:[#allocation51_spill] sm:$0xff] }
 0x749   : > { %v13096_v34 = vsel %vm1661_vm3, %v7210_v52, %v16356_v20  ;;  %v16358_v58 = vld [vmem:[#allocation44_spill] sm:$0xff]  ;;  %v4568_v35 = vsel %vm4567_vm1, %v4535_v51, %v12405_v46  ;;  %vm4708_vm3 = vcmask 588800   ;;  %v16361_v52 = vld [vmem:[#allocation62_spill] sm:$0xff]  ;;  %v4344_v51 = vpop.permute.xlu1 %4343 }
 0x74a   : > { %v4536_v11 = vsel %vm1859_vm11, %v4504_v56, %v16358_v58  ;;  %v16359_v42 = vld [vmem:[#allocation156_spill] sm:$0xff]  ;;  %v13136_v58 = vld [vmem:[%s14892_s8 + $0xd0] sm:$0xff] }
 0x74b   : > { %v4473_v40 = vsel %vm1727_vm7, %v12910_v48, %v16359_v42  ;;  %v4569_v38 = vsel %vm4567_vm1, %v4536_v11, %v12407_v31  ;;  %v16360_v36 = vld [vmem:[#allocation64_spill] sm:$0xff]  ;;  %v4601_v48 = vsel %vm4600_vm2, %v4568_v35, %v12564_v43  ;;  %v13123_v31 = vld [vmem:[%s14892_s8 + $0xd8] sm:$0xff]  ;;  %5288 = vrot.lane.b32.xlu1 %v13136_v58, %s7262_s20 }
 0x74c   : > { %v4474_v20 = vsel %vm1727_vm7, %v12924_v53, %v16360_v36  ;;  %v4602_v46 = vsel %vm4600_vm2, %v4569_v38, %v12566_v15  ;;  %v4505_v11 = vsel %vm1793_vm9, %v4473_v40, %v16361_v52  ;;  %v4634_v53 = vsel %vm4633_vm4, %v4601_v48, %v12697_v12  ;;  %v4346_v15 = vpop.permute.xlu0 %4345  ;;  %v16363_v42 = vld [vmem:[#allocation47_spill] sm:$0xff]  ;;  %v16364_v40 = vld [vmem:[#allocation49_spill] sm:$0xff]  ;;  %5290 = vrot.lane.b32.xlu0 %v13123_v31, %s7262_s20 }
 0x74d   : > { %v4506_v56 = vsel %vm1793_vm9, %v4474_v20, %v16362_v28  ;;  %v4635_v43 = vsel %vm4633_vm4, %v4602_v46, %v12699_v21  ;;  %v4537_v35 = vsel %vm1859_vm11, %v4505_v11, %v16363_v42  ;;  %v4667_v36 = vsel %vm4666_vm5, %v4634_v53, %v4344_v51  ;;  %v16365_v20 = vld [vmem:[#allocation250_spill] sm:$0xff]  ;;  %v16366_v52 = vld [vmem:[#allocation41_spill] sm:$0xff]  ;;  %v16369_v42 = vld [vmem:[#allocation52_spill] sm:$0xff] }
 0x74e   : > { %v4538_v38 = vsel %vm1859_vm11, %v4506_v56, %v16364_v40  ;;  %v4668_v12 = vsel %vm4666_vm5, %v4635_v43, %v4346_v15  ;;  %v4475_v21 = vsel %vm1727_vm7, %v12929_v8, %v16365_v20  ;;  %v4570_v48 = vsel %vm4567_vm1, %v4537_v35, %v12413_v39  ;;  %6960 = vmatprep.mubr.msk.f32.mxu1 %vm4708_vm3, %v4667_v36  ;;  %v13167_v39 = vld [vmem:[%s14892_s8 + $0xe8] sm:$0xff]  ;;  %v4348_v43 = vpop.permute.xlu1 %4347  ;;  %v13180_v15 = vld [vmem:[%s14892_s8 + $0xe0] sm:$0xff] }
 0x74f   : > { %v4571_v46 = vsel %vm4567_vm1, %v4538_v38, %v12415_v13  ;;  %v4476_v11 = vsel %vm1727_vm7, %v12934_v41, %v16366_v52  ;;  %v4603_v28 = vsel %vm4600_vm2, %v4570_v48, %v12577_v6  ;;  %6961 = vmatmul.mubr.msk.f32.vlgmr.msra.gmra.mrb[16].mxu1 %vm4708_vm3, %v4668_v12  ;;  %v16367_v13 = vld [vmem:[#allocation179_spill] sm:$0xff]  ;;  %v16368_v41 = vld [vmem:[#allocation228_spill] sm:$0xff]  ;;  %v16370_v40 = vld [vmem:[#allocation53_spill] sm:$0xff]  ;;  %5292 = vrot.lane.b32.xlu1 %v13180_v15, %s7262_s20 }
 0x750   : > { %v4604_v8 = vsel %vm4600_vm2, %v4571_v46, %v12579_v49  ;;  %v4507_v56 = vsel %vm1793_vm9, %v4475_v21, %v16367_v13  ;;  %v4508_v53 = vsel %vm1793_vm9, %v4476_v11, %v16368_v41  ;;  %v4636_v6 = vsel %vm4633_vm4, %v4603_v28, %v12708_v61  ;;  %v4350_v51 = vpop.permute.xlu0 %4349  ;;  %v16371_v12 = vld [vmem:[#allocation175_spill] sm:$0xff]  ;;  %5294 = vrot.lane.b32.xlu0 %v13167_v39, %s7262_s20  ;;  %v16372_v48 = vld [vmem:[#allocation225_spill] sm:$0xff]  ;;  %v16375_v41 = vld [vmem:[#allocation56_spill] sm:$0xff] }
 0x751   : > { %v4637_v49 = vsel %vm4633_vm4, %v4604_v8, %v12710_v22  ;;  %v4539_v35 = vsel %vm1859_vm11, %v4507_v56, %v16369_v42  ;;  %v4540_v38 = vsel %vm1859_vm11, %v4508_v53, %v16370_v40  ;;  %v4669_v36 = vsel %vm4666_vm5, %v4636_v6, %v4348_v43  ;;  %v13224_v56 = vld [vmem:[%s14892_s8 + $0xf0] sm:$0xff]  ;;  %v16376_v6 = vld [vmem:[#allocation57_spill] sm:$0xff] }
 0x752   : > { %v4670_v61 = vsel %vm4666_vm5, %v4637_v49, %v4350_v51  ;;  %v4477_v22 = vsel %vm1727_vm7, %v12939_v17, %v16371_v12  ;;  %v4572_v20 = vsel %vm4567_vm1, %v4539_v35, %v12425_v27  ;;  %v4573_v21 = vsel %vm4567_vm1, %v4540_v38, %v12427_v47  ;;  %6963 = vmatprep.mubr.msk.f32.mxu1 %vm4708_vm3, %v4669_v36  ;;  %v13211_v27 = vld [vmem:[%s14892_s8 + $0xf8] sm:$0xff]  ;;  %v16373_v47 = vld [vmem:[#allocation22_spill] sm:$0xff]  ;;  %v4352_v8 = vpop.permute.xlu1 %4351 }
 0x753   : > { %v4478_v46 = vsel %vm1727_vm7, %v12948_v29, %v16372_v48  ;;  %v4605_v52 = vsel %vm4600_vm2, %v4572_v20, %v12587_v33  ;;  %v4606_v17 = vsel %vm4600_vm2, %v4573_v21, %v12589_v37  ;;  %6964 = vmatmul.mubr.msk.f32.gmra.mrb[18].mxu1 %vm4708_vm3, %v4670_v61  ;;  %v4509_v11 = vsel %vm1793_vm9, %v4477_v22, %v16373_v47  ;;  %v16374_v29 = vld [vmem:[#allocation108_spill] sm:$0xff]  ;;  %v16377_v51 = vld [vmem:[#allocation14_spill] sm:$0xff]  ;;  %v16382_v48 = vld [vmem:[#allocation81_spill] sm:$0xff] }
 0x754   : > { %v4510_v28 = vsel %vm1793_vm9, %v4478_v46, %v16374_v29  ;;  %v4638_v33 = vsel %vm4633_vm4, %v4605_v52, %v12718_v14  ;;  %v4639_v37 = vsel %vm4633_vm4, %v4606_v17, %v12720_v1  ;;  %v4354_v13 = vpop.permute.xlu0 %4353  ;;  %v4541_v53 = vsel %vm1859_vm11, %v4509_v11, %v16375_v41  ;;  %5298 = vrot.lane.b32.xlu0 %v13211_v27, %s7262_s20  ;;  %v16378_v40 = vld [vmem:[#allocation162_spill] sm:$0xff]  ;;  %v16383_v47 = vld [vmem:[#allocation45_spill] sm:$0xff] }
 0x755   : > { %v4542_v49 = vsel %vm1859_vm11, %v4510_v28, %v16376_v6  ;;  %v4671_v43 = vsel %vm4666_vm5, %v4638_v33, %v4352_v8  ;;  %v4672_v14 = vsel %vm4666_vm5, %v4639_v37, %v4354_v13  ;;  %v4479_v1 = vsel %vm1727_vm7, %v12953_v7, %v16377_v51  ;;  %5296 = vrot.lane.b32.xlu1 %v13224_v56, %s7262_s20  ;;  %v16380_v61 = vld [vmem:[#allocation50_spill] sm:$0xff]  ;;  %v16386_v37 = vld [vmem:[#allocation24_spill] sm:$0xff]  ;;  %s413_s20 = scalar_lea.vmem %s14896_s12, %s6772_s24 }
 0x756   : > { %v4574_v42 = vsel %vm4567_vm1, %v4541_v53, %v12433_v50  ;;  %v4575_v35 = vsel %vm4567_vm1, %v4542_v49, %v12435_v30  ;;  %6966 = vmatprep.mubr.msk.f32.mxu1 %vm4708_vm3, %v4671_v43  ;;  %v4480_v38 = vsel %vm1727_vm7, %v12958_v18, %v16378_v40  ;;  %v16379_v50 = vld [vmem:[#allocation17_spill] sm:$0xff]  ;;  %v4356_v22 = vpop.permute.xlu1 %4355  ;;  %v4481_v11 = vsel %vm1727_vm7, %v12963_v5, %v16383_v47  ;;  %v16384_v29 = vld [vmem:[#allocation254_spill] sm:$0xff]  ;;  %v16388_v6 = vld [vmem:[#allocation88_spill] sm:$0xff] }
 0x757   : > { %v4607_v36 = vsel %vm4600_vm2, %v4574_v42, %v12593_v54  ;;  %v4608_v7 = vsel %vm4600_vm2, %v4575_v35, %v12595_v63  ;;  %6967 = vmatmul.mubr.msk.f32.gmra.mrb[20].mxu1 %vm4708_vm3, %v4672_v14  ;;  %v4511_v30 = vsel %vm1793_vm9, %v4479_v1, %v16379_v50  ;;  %v4512_v12 = vsel %vm1793_vm9, %v4480_v38, %v16380_v61  ;;  %v16381_v63 = vld [vmem:[#allocation83_spill] sm:$0xff]  ;;  %v16389_v51 = vld [vmem:[#allocation16_spill] sm:$0xff]  ;;  %v16390_v42 = vld [vmem:[#allocation221_spill] sm:$0xff] }
 0x758   : > { %v4640_v18 = vsel %vm4633_vm4, %v4607_v36, %v12734_v9  ;;  %v4641_v54 = vsel %vm4633_vm4, %v4608_v7, %v12736_v59  ;;  %v4358_v20 = vpop.permute.xlu0 %4357  ;;  %v4543_v21 = vsel %vm1859_vm11, %v4511_v30, %v16381_v63  ;;  %v4544_v46 = vsel %vm1859_vm11, %v4512_v12, %v16382_v48  ;;  %5366 = vrot.lane.b32.xlu0 %v12727_v4, %s7263_s27  ;;  %v16391_v35 = vld [vmem:[#allocation213_spill] sm:$0xff]  ;;  %v16392_v38 = vld [vmem:[#allocation103_spill] sm:$0xff]  ;;  %v16393_v7 = vld [vmem:[#allocation204_spill] sm:$0xff] }
 0x759   : > { %v4673_v52 = vsel %vm4666_vm5, %v4640_v18, %v4356_v22  ;;  %v4674_v17 = vsel %vm4666_vm5, %v4641_v54, %v4358_v20  ;;  %v4576_v9 = vsel %vm4567_vm1, %v4543_v21, %v12441_v0  ;;  %v4577_v59 = vsel %vm4567_vm1, %v4544_v46, %v12443_v44  ;;  %5364 = vrot.lane.b32.xlu1 %v12732_v3, %s7263_s27  ;;  %v16385_v44 = vld [vmem:[#allocation75_spill] sm:$0xff]  ;;  %v16396_v30 = vld [vmem:[#allocation188_spill] sm:$0xff]  ;;  %v16399_v21 = vld [vmem:[#allocation98_spill] sm:$0xff] }
 0x75a   : > { %6969 = vmatprep.mubr.msk.f32.mxu1 %vm4708_vm3, %v4673_v52  ;;  %v4482_v28 = vsel %vm1727_vm7, %v12968_v55, %v16384_v29  ;;  %v4609_v33 = vsel %vm4600_vm2, %v4576_v9, %v12601_v60  ;;  %v4610_v5 = vsel %vm4600_vm2, %v4577_v59, %v12603_v62  ;;  %v4513_v0 = vsel %vm1793_vm9, %v4481_v11, %v16385_v44  ;;  %v4360_v13 = vpop.permute.xlu1 %4359  ;;  %v16387_v62 = vld [vmem:[#allocation87_spill] sm:$0xff]  ;;  %v16400_v46 = vld [vmem:[#allocation90_spill] sm:$0xff]  ;;  %v16401_v11 = vld [vmem:[#allocation132_spill] sm:$0xff] }
 0x75b   : > { %6970 = vmatmul.mubr.msk.f32.gmra.mrb[22].mxu1 %vm4708_vm3, %v4674_v17  ;;  %v4514_v8 = vsel %vm1793_vm9, %v4482_v28, %v16386_v37  ;;  %v4642_v55 = vsel %vm4633_vm4, %v4609_v33, %v12752_v10  ;;  %v4643_v60 = vsel %vm4633_vm4, %v4610_v5, %v12754_v32  ;;  %v4545_v53 = vsel %vm1859_vm11, %v4513_v0, %v16387_v62  ;;  %v16397_v12 = vld [vmem:[#allocation207_spill] sm:$0xff]  ;;  %v16402_v9 = vld [vmem:[#allocation32_spill] sm:$0xff]  ;;  %v16403_v29 = vld [vmem:[#allocation206_spill] sm:$0xff] }
 0x75c   : > { %v4362_v41 = vpop.permute.xlu0 %4361  ;;  %v4546_v49 = vsel %vm1859_vm11, %v4514_v8, %v16388_v6  ;;  %v4675_v43 = vsel %vm4666_vm5, %v4642_v55, %v4360_v13  ;;  %v4483_v1 = vsel %vm1727_vm7, %v12973_v25, %v16389_v51  ;;  %v4578_v10 = vsel %vm4567_vm1, %v4545_v53, %v12449_v26  ;;  %5370 = vrot.lane.b32.xlu0 %v12745_v57, %s7263_s27  ;;  %v16394_v26 = vld [vmem:[#allocation239_spill] sm:$0xff]  ;;  %v16404_v33 = vld [vmem:[#allocation202_spill] sm:$0xff]  ;;  %v16406_v0 = vld [vmem:[#allocation185_spill] sm:$0xff] }
 0x75d   : > { %v4676_v14 = vsel %vm4666_vm5, %v4643_v60, %v4362_v41  ;;  %v4579_v32 = vsel %vm4567_vm1, %v4546_v49, %v12451_v45  ;;  %6972 = vmatprep.mubr.msk.f32.mxu1 %vm4708_vm3, %v4675_v43  ;;  %v4484_v40 = vsel %vm1727_vm7, %v16391_v35, %v16390_v42  ;;  %v4611_v36 = vsel %vm4600_vm2, %v4578_v10, %v16392_v38  ;;  %v16395_v45 = vld [vmem:[#allocation136_spill] sm:$0xff]  ;;  %v16398_v54 = vld [vmem:[#allocation191_spill] sm:$0xff]  ;;  %v16407_v37 = vld [vmem:[#allocation245_spill] sm:$0xff] }
 0x75e   : > { %v4612_v25 = vsel %vm4600_vm2, %v4579_v32, %v16393_v7  ;;  %5368 = vrot.lane.b32.xlu1 %v16394_v26, %s7263_s27  ;;  %v4515_v50 = vsel %vm1793_vm9, %v4483_v1, %v16395_v45  ;;  %v4516_v61 = vsel %vm1793_vm9, %v4484_v40, %v16396_v30  ;;  %v4644_v18 = vsel %vm4633_vm4, %v4611_v36, %v16397_v12  ;;  %v4364_v20 = vpop.permute.xlu1 %4363  ;;  %v16405_v44 = vld [vmem:[#allocation211_spill] sm:$0xff]  ;;  %v16409_v13 = vld [vmem:[#allocation118_spill] sm:$0xff]  ;;  %v16412_v49 = vld [vmem:[#allocation161_spill] sm:$0xff] }
 0x75f   : > { %6973 = vmatmul.mubr.msk.f32.gmra.mrb[24].mxu1 %vm4708_vm3, %v4676_v14  ;;  %v4645_v22 = vsel %vm4633_vm4, %v4612_v25, %v16398_v54  ;;  %v4547_v48 = vsel %vm1859_vm11, %v4515_v50, %v16399_v21  ;;  %v4548_v52 = vsel %vm1859_vm11, %v4516_v61, %v16400_v46  ;;  %v4677_v17 = vsel %vm4666_vm5, %v4644_v18, %v4364_v20  ;;  %v16408_v55 = vld [vmem:[#allocation147_spill] sm:$0xff]  ;;  %v16413_v14 = vld [vmem:[#allocation241_spill] sm:$0xff]  ;;  %v16414_v1 = vld [vmem:[#allocation208_spill] sm:$0xff] }
 0x760   : > { %v4366_v63 = vpop.permute.xlu0 %4365  ;;  %v4485_v59 = vsel %vm1727_vm7, %v16402_v9, %v16401_v11  ;;  %v4580_v28 = vsel %vm4567_vm1, %v4547_v48, %v16403_v29  ;;  %v4581_v5 = vsel %vm4567_vm1, %v4548_v52, %v16404_v33  ;;  %6975 = vmatprep.mubr.msk.f32.mxu1 %vm4708_vm3, %v4677_v17  ;;  %5374 = vrot.lane.b32.xlu0 %v16405_v44, %s7263_s27  ;;  %v16410_v62 = vld [vmem:[#allocation107_spill] sm:$0xff]  ;;  %v16415_v35 = vld [vmem:[#allocation92_spill] sm:$0xff]  ;;  %v16416_v38 = vld [vmem:[#allocation94_spill] sm:$0xff] }
 0x761   : > { %v4678_v47 = vsel %vm4666_vm5, %v4645_v22, %v4366_v63  ;;  %v4486_v8 = vsel %vm1727_vm7, %v16407_v37, %v16406_v0  ;;  %v4613_v60 = vsel %vm4600_vm2, %v4580_v28, %v16408_v55  ;;  %v4614_v41 = vsel %vm4600_vm2, %v4581_v5, %v16409_v13  ;;  %v16411_v53 = vld [vmem:[#allocation231_spill] sm:$0xff]  ;;  %v16418_v50 = vld [vmem:[#allocation246_spill] sm:$0xff]  ;;  %v16425_v52 = vld [vmem:[#allocation68_spill] sm:$0xff] }
 0x762   : > { %5372 = vrot.lane.b32.xlu1 %v16410_v62, %s7263_s27  ;;  %v4517_v6 = vsel %vm1793_vm9, %v4485_v59, %v16411_v53  ;;  %v4518_v43 = vsel %vm1793_vm9, %v4486_v8, %v16412_v49  ;;  %v4646_v51 = vsel %vm4633_vm4, %v4613_v60, %v16413_v14  ;;  %v4647_v10 = vsel %vm4633_vm4, %v4614_v41, %v16414_v1  ;;  %v4368_v32 = vpop.permute.xlu1 %4367  ;;  %v16417_v45 = vld [vmem:[#allocation227_spill] sm:$0xff]  ;;  %v16419_v61 = vld [vmem:[#allocation106_spill] sm:$0xff]  ;;  %v16427_v11 = vld [vmem:[#allocation197_spill] sm:$0xff] }
 0x763   : > { %6976 = vmatmul.mubr.msk.f32.gmra.mrb[26].mxu1 %vm4708_vm3, %v4678_v47  ;;  %v4549_v40 = vsel %vm1859_vm11, %v4517_v6, %v16415_v35  ;;  %v4550_v36 = vsel %vm1859_vm11, %v4518_v43, %v16416_v38  ;;  %v4679_v7 = vsel %vm4666_vm5, %v4646_v51, %v4368_v32  ;;  %v4487_v30 = vsel %vm1727_vm7, %v16418_v50, %v16417_v45  ;;  %v16420_v18 = vld [vmem:[#allocation155_spill] sm:$0xff]  ;;  %v16422_v20 = vld [vmem:[#allocation158_spill] sm:$0xff]  ;;  %v16428_v59 = vld [vmem:[#allocation72_spill] sm:$0xff] }
 0x764   : > { %v4370_v42 = vpop.permute.xlu0 %4369  ;;  %v4582_v12 = vsel %vm4567_vm1, %v4549_v40, %v16419_v61  ;;  %v4583_v54 = vsel %vm4567_vm1, %v4550_v36, %v16420_v18  ;;  %6978 = vmatprep.mubr.msk.f32.mxu1 %vm4708_vm3, %v4679_v7  ;;  %v16421_v22 = vld [vmem:[#allocation159_spill] sm:$0xff]  ;;  %v16423_v63 = vld [vmem:[#allocation6_spill] sm:$0xff]  ;;  %v4519_v9 = vsel %vm1793_vm9, %v4487_v30, %v16427_v11  ;;  %v16429_v28 = vld [vmem:[#allocation148_spill] sm:$0xff] }
 0x765   : > { %v4680_v25 = vsel %vm4666_vm5, %v4647_v10, %v4370_v42  ;;  %5378 = vrot.lane.b32.xlu0 %v16421_v22, %s7263_s27  ;;  %v4488_v21 = vsel %vm1727_vm7, %v16423_v63, %v16422_v20  ;;  %v16424_v48 = vld [vmem:[#allocation131_spill] sm:$0xff]  ;;  %v4616_v17 = vsel %vm4600_vm2, %v4583_v54, %v16425_v52  ;;  %v16426_v47 = vld [vmem:[#allocation126_spill] sm:$0xff]  ;;  %v16430_v5 = vld [vmem:[#allocation244_spill] sm:$0xff] }
 0x766   : > { %v4615_v46 = vsel %vm4600_vm2, %v4582_v12, %v16424_v48  ;;  %5376 = vrot.lane.b32.xlu1 %v16426_v47, %s7263_s27  ;;  %v4520_v29 = vsel %vm1793_vm9, %v4488_v21, %v16428_v59  ;;  %v4649_v0 = vsel %vm4633_vm4, %v4616_v17, %v16430_v5  ;;  %v4372_v37 = vpop.permute.xlu1 %4371  ;;  %v16431_v55 = vld [vmem:[#allocation96_spill] sm:$0xff]  ;;  %v16432_v13 = vld [vmem:[#allocation113_spill] sm:$0xff]  ;;  %v16433_v49 = vld [vmem:[#allocation46_spill] sm:$0xff] }
 0x767   : > { %6979 = vmatmul.mubr.msk.f32.gmra.mrb[28].mxu1 %vm4708_vm3, %v4680_v25  ;;  %v4648_v33 = vsel %vm4633_vm4, %v4615_v46, %v16429_v28  ;;  %v4551_v60 = vsel %vm1859_vm11, %v4519_v9, %v16431_v55  ;;  %v4552_v41 = vsel %vm1859_vm11, %v4520_v29, %v16432_v13  ;;  %v16434_v43 = vld [vmem:[#allocation152_spill] sm:$0xff]  ;;  %v16435_v51 = vld [vmem:[#allocation189_spill] sm:$0xff]  ;;  %v16437_v42 = vld [vmem:[#allocation178_spill] sm:$0xff] }
 0x768   : > { %v4374_v8 = vpop.permute.xlu0 %4373  ;;  %v4681_v53 = vsel %vm4666_vm5, %v4648_v33, %v4372_v37  ;;  %v4489_v14 = vsel %vm1727_vm7, %v16434_v43, %v16433_v49  ;;  %v4584_v1 = vsel %vm4567_vm1, %v4551_v60, %v16435_v51  ;;  %v16436_v10 = vld [vmem:[#allocation237_spill] sm:$0xff]  ;;  %v16440_v36 = vld [vmem:[#allocation144_spill] sm:$0xff]  ;;  %v16441_v25 = vld [vmem:[#allocation23_spill] sm:$0xff] }
 0x769   : > { %v4682_v6 = vsel %vm4666_vm5, %v4649_v0, %v4374_v8  ;;  %v4585_v32 = vsel %vm4567_vm1, %v4552_v41, %v16436_v10  ;;  %6981 = vmatprep.mubr.msk.f32.mxu1 %vm4708_vm3, %v4681_v53  ;;  %5382 = vrot.lane.b32.xlu0 %v16437_v42, %s7263_s27  ;;  %v16438_v35 = vld [vmem:[#allocation253_spill] sm:$0xff]  ;;  %v4617_v7 = vsel %vm4600_vm2, %v4584_v1, %v16440_v36  ;;  %v16442_v50 = vld [vmem:[#allocation26_spill] sm:$0xff]  ;;  %v16445_v54 = vld [vmem:[#allocation79_spill] sm:$0xff] }
 0x76a   : > { %v16439_v40 = vld [vmem:[#allocation61_spill] sm:$0xff]  ;;  %v4618_v45 = vsel %vm4600_vm2, %v4585_v32, %v16441_v25  ;;  %5380 = vrot.lane.b32.xlu1 %v16442_v50, %s7263_s27  ;;  %v16444_v12 = vld [vmem:[#allocation230_spill] sm:$0xff]  ;;  %v4650_v20 = vsel %vm4633_vm4, %v4617_v7, %v16445_v54  ;;  %v4376_v48 = vpop.permute.xlu1 %4375  ;;  %v16448_v11 = vld [vmem:[#allocation111_spill] sm:$0xff] }
 0x76b   : > { %v4490_v38 = vsel %vm1727_vm7, %v16439_v40, %v16438_v35  ;;  %6982 = vmatmul.mubr.msk.f32.gmra.mrb[30].mxu1 %vm4708_vm3, %v4682_v6  ;;  %v16443_v30 = vld [vmem:[#allocation181_spill] sm:$0xff]  ;;  %v4683_v59 = vsel %vm4666_vm5, %v4650_v20, %v4376_v48  ;;  %v16449_v28 = vld [vmem:[#allocation143_spill] sm:$0xff]  ;;  %v16451_v0 = vld [vmem:[#allocation122_spill] sm:$0xff] }
 0x76c   : > { %v4521_v61 = vsel %vm1793_vm9, %v4489_v14, %v16443_v30  ;;  %v4522_v18 = vsel %vm1793_vm9, %v4490_v38, %v16444_v12  ;;  %v16446_v63 = vld [vmem:[#allocation5_spill] sm:$0xff]  ;;  %v4378_v46 = vpop.permute.xlu0 %4377  ;;  %v16450_v33 = vld [vmem:[#allocation195_spill] sm:$0xff]  ;;  %6984 = vmatprep.mubr.msk.f32.mxu1 %vm4708_vm3, %v4683_v59  ;;  %v16456_v6 = vld [vmem:[#allocation58_spill] sm:$0xff] }
 0x76d   : > { %v4651_v21 = vsel %vm4633_vm4, %v4618_v45, %v16446_v63  ;;  %v16447_v52 = vld [vmem:[#allocation97_spill] sm:$0xff]  ;;  %v4554_v9 = vsel %vm1859_vm11, %v4522_v18, %v16448_v11  ;;  %v4491_v5 = vsel %vm1727_vm7, %v16450_v33, %v16449_v28  ;;  %v16452_v8 = vld [vmem:[#allocation71_spill] sm:$0xff]  ;;  %v16458_v51 = vld [vmem:[#allocation180_spill] sm:$0xff] }
 0x76e   : > { %v4553_v17 = vsel %vm1859_vm11, %v4521_v61, %v16447_v52  ;;  %v4684_v29 = vsel %vm4666_vm5, %v4651_v21, %v4378_v46  ;;  %v4587_v55 = vsel %vm4567_vm1, %v4554_v9, %v16452_v8  ;;  %v16453_v60 = vld [vmem:[#allocation127_spill] sm:$0xff]  ;;  %v16454_v13 = vld [vmem:[#allocation177_spill] sm:$0xff]  ;;  %5384 = vrot.lane.b32.xlu1 %v16458_v51, %s7263_s27  ;;  %v16460_v32 = vld [vmem:[#allocation54_spill] sm:$0xff]  ;;  %v4380_v25 = vpop.permute.xlu1 %4379 }
 0x76f   : > { %v4586_v37 = vsel %vm4567_vm1, %v4553_v17, %v16451_v0  ;;  %5386 = vrot.lane.b32.xlu0 %v16453_v60, %s7263_s27  ;;  %v16455_v41 = vld [vmem:[#allocation63_spill] sm:$0xff]  ;;  %6985 = vmatmul.mubr.msk.f32.gmra.mrb[32].mxu1 %vm4708_vm3, %v4684_v29  ;;  %v16459_v1 = vld [vmem:[#allocation25_spill] sm:$0xff]  ;;  %v16461_v40 = vld [vmem:[#allocation74_spill] sm:$0xff] }
 0x770   : > { %v4492_v53 = vsel %vm1727_vm7, %v16455_v41, %v16454_v13  ;;  %v4619_v49 = vsel %vm4600_vm2, %v4586_v37, %v16456_v6  ;;  %v16457_v43 = vld [vmem:[#allocation243_spill] sm:$0xff]  ;;  %v4523_v10 = vsel %vm1793_vm9, %v4491_v5, %v16459_v1  ;;  %v16462_v36 = vld [vmem:[#allocation70_spill] sm:$0xff]  ;;  %v4382_v45 = vpop.permute.xlu0 %4381  ;;  %v16463_v30 = vld [vmem:[#allocation101_spill] sm:$0xff] }
 0x771   : > { %v4620_v14 = vsel %vm4600_vm2, %v4587_v55, %v16457_v43  ;;  %v4524_v35 = vsel %vm1793_vm9, %v4492_v53, %v16460_v32  ;;  %v4652_v38 = vsel %vm4633_vm4, %v4619_v49, %v16461_v40  ;;  %v4555_v61 = vsel %vm1859_vm11, %v4523_v10, %v16463_v30  ;;  %v16464_v12 = vld [vmem:[#allocation100_spill] sm:$0xff]  ;;  %v16465_v63 = vld [vmem:[#allocation226_spill] sm:$0xff]  ;;  %v16466_v21 = vld [vmem:[#allocation219_spill] sm:$0xff] }
 0x772   : > { %v4653_v7 = vsel %vm4633_vm4, %v4620_v14, %v16462_v36  ;;  %v4556_v18 = vsel %vm1859_vm11, %v4524_v35, %v16464_v12  ;;  %v4685_v54 = vsel %vm4666_vm5, %v4652_v38, %v4380_v25  ;;  %v4493_v48 = vsel %vm1727_vm7, %v16466_v21, %v16465_v63  ;;  %v16467_v46 = vld [vmem:[#allocation174_spill] sm:$0xff]  ;;  %v16468_v17 = vld [vmem:[#allocation201_spill] sm:$0xff]  ;;  %v16474_v8 = vld [vmem:[#allocation240_spill] sm:$0xff]  ;;  %v4384_v1 = vpop.permute.xlu1 %4383 }
 0x773   : > { %v4686_v20 = vsel %vm4666_vm5, %v4653_v7, %v4382_v45  ;;  %v4588_v52 = vsel %vm4567_vm1, %v4555_v61, %v16467_v46  ;;  %v4589_v11 = vsel %vm4567_vm1, %v4556_v18, %v16468_v17  ;;  %6987 = vmatprep.mubr.msk.f32.mxu1 %vm4708_vm3, %v4685_v54  ;;  %v16469_v9 = vld [vmem:[#allocation193_spill] sm:$0xff]  ;;  %v16470_v59 = vld [vmem:[#allocation18_spill] sm:$0xff]  ;;  %5388 = vrot.lane.b32.xlu1 %v16474_v8, %s7263_s27  ;;  %v16475_v55 = vld [vmem:[#allocation80_spill] sm:$0xff] }
 0x774   : > { %5390 = vrot.lane.b32.xlu0 %v16469_v9, %s7263_s27  ;;  %v16471_v29 = vld [vmem:[#allocation86_spill] sm:$0xff]  ;;  %v16472_v33 = vld [vmem:[#allocation21_spill] sm:$0xff]  ;;  %6988 = vmatmul.mubr.msk.f32.gmra.mrb[34].mxu1 %vm4708_vm3, %v4686_v20  ;;  %v4525_v13 = vsel %vm1793_vm9, %v4493_v48, %v16475_v55  ;;  %v16476_v41 = vld [vmem:[#allocation27_spill] sm:$0xff]  ;;  %v4386_v10 = vpop.permute.xlu0 %4385 }
 0x775   : > { %v4494_v28 = vsel %vm1727_vm7, %v16471_v29, %v16470_v59  ;;  %v4621_v5 = vsel %vm4600_vm2, %v4588_v52, %v16472_v33  ;;  %v16473_v0 = vld [vmem:[#allocation209_spill] sm:$0xff]  ;;  %v16477_v6 = vld [vmem:[#allocation167_spill] sm:$0xff]  ;;  %v16480_v40 = vld [vmem:[#allocation110_spill] sm:$0xff] }
 0x776   : > { %v4622_v37 = vsel %vm4600_vm2, %v4589_v11, %v16473_v0  ;;  %v4526_v53 = vsel %vm1793_vm9, %v4494_v28, %v16476_v41  ;;  %v4654_v49 = vsel %vm4633_vm4, %v4621_v5, %v16477_v6  ;;  %v16478_v43 = vld [vmem:[#allocation109_spill] sm:$0xff]  ;;  %v16482_v30 = vld [vmem:[#allocation124_spill] sm:$0xff]  ;;  %v16483_v12 = vld [vmem:[#allocation123_spill] sm:$0xff]  ;;  %v4388_v55 = vpop.permute.xlu1 %4387 }
 0x777   : > { %v4655_v14 = vsel %vm4633_vm4, %v4622_v37, %v16478_v43  ;;  %v16479_v32 = vld [vmem:[#allocation117_spill] sm:$0xff]  ;;  %v4558_v38 = vsel %vm1859_vm11, %v4526_v53, %v16480_v40  ;;  %v4687_v36 = vsel %vm4666_vm5, %v4654_v49, %v4384_v1  ;;  %v16484_v54 = vld [vmem:[#allocation135_spill] sm:$0xff]  ;;  %v16485_v20 = vld [vmem:[#allocation48_spill] sm:$0xff] }
 0x778   : > { %v4557_v35 = vsel %vm1859_vm11, %v4525_v13, %v16479_v32  ;;  %v4688_v7 = vsel %vm4666_vm5, %v4655_v14, %v4386_v10  ;;  %v16481_v25 = vld [vmem:[#allocation13_spill] sm:$0xff]  ;;  %v4591_v18 = vsel %vm4567_vm1, %v4558_v38, %v16483_v12  ;;  %6990 = vmatprep.mubr.msk.f32.mxu1 %vm4708_vm3, %v4687_v36  ;;  %5394 = vrot.lane.b32.xlu0 %v16484_v54, %s7263_s27  ;;  %v16486_v63 = vld [vmem:[#allocation7_spill] sm:$0xff]  ;;  %v16488_v52 = vld [vmem:[#allocation238_spill] sm:$0xff]  ;;  %v4390_v13 = vpop.permute.xlu0 %4389 }
 0x779   : > { %v4495_v45 = vsel %vm1727_vm7, %v13042_v24, %v16481_v25  ;;  %v4590_v61 = vsel %vm4567_vm1, %v4557_v35, %v16482_v30  ;;  %v4496_v21 = vsel %vm1727_vm7, %v16486_v63, %v16485_v20  ;;  %v16487_v48 = vld [vmem:[#allocation11_spill] sm:$0xff]  ;;  %v4624_v24 = vsel %vm4600_vm2, %v4591_v18, %v16488_v52  ;;  %6991 = vmatmul.mubr.msk.f32.gmra.mrb[36].mxu1 %vm4708_vm3, %v4688_v7  ;;  %v16489_v17 = vld [vmem:[#allocation214_spill] sm:$0xff]  ;;  %v16490_v11 = vld [vmem:[#allocation232_spill] sm:$0xff] }
 0x77a   : > { %v4623_v46 = vsel %vm4600_vm2, %v4590_v61, %v16487_v48  ;;  %5392 = vrot.lane.b32.xlu1 %v16489_v17, %s7263_s27  ;;  %v4527_v59 = vsel %vm1793_vm9, %v4495_v45, %v16490_v11  ;;  %v16491_v29 = vld [vmem:[#allocation28_spill] sm:$0xff]  ;;  %v16492_v33 = vld [vmem:[#allocation78_spill] sm:$0xff]  ;;  %v16494_v41 = vld [vmem:[#allocation121_spill] sm:$0xff] }
 0x77b   : > { %v4528_v28 = vsel %vm1793_vm9, %v4496_v21, %v16491_v29  ;;  %v4656_v5 = vsel %vm4633_vm4, %v4623_v46, %v16492_v33  ;;  %v16493_v0 = vld [vmem:[#allocation4_spill] sm:$0xff]  ;;  %v4559_v53 = vsel %vm1859_vm11, %v4527_v59, %v16494_v41  ;;  %v16495_v6 = vld [vmem:[#allocation59_spill] sm:$0xff]  ;;  %v16496_v1 = vld [vmem:[#allocation65_spill] sm:$0xff] }
 0x77c   : > { %v4657_v37 = vsel %vm4633_vm4, %v4624_v24, %v16493_v0  ;;  %v4560_v49 = vsel %vm1859_vm11, %v4528_v28, %v16495_v6  ;;  %v4689_v43 = vsel %vm4666_vm5, %v4656_v5, %v4388_v55  ;;  %v16497_v10 = vld [vmem:[#allocation89_spill] sm:$0xff]  ;;  %v16498_v35 = vld [vmem:[#allocation146_spill] sm:$0xff]  ;;  %v16499_v38 = vld [vmem:[#allocation19_spill] sm:$0xff]  ;;  %v4392_v28 = vpop.permute.xlu1 %4391  ;;  %v4394_v33 = vpop.permute.xlu0 %4393 }
 0x77d   : > { %v4690_v14 = vsel %vm4666_vm5, %v4657_v37, %v4390_v13  ;;  %v4497_v32 = vsel %vm1727_vm7, %v16497_v10, %v16496_v1  ;;  %v4592_v40 = vsel %vm4567_vm1, %v4559_v53, %v16498_v35  ;;  %v4593_v36 = vsel %vm4567_vm1, %v4560_v49, %v16499_v38  ;;  %6993 = vmatprep.mubr.msk.f32.mxu1 %vm4708_vm3, %v4689_v43  ;;  %v16500_v7 = vld [vmem:[#allocation210_spill] sm:$0xff]  ;;  %v16501_v25 = vld [vmem:[#allocation20_spill] sm:$0xff]  ;;  %v16503_v61 = vld [vmem:[#allocation133_spill] sm:$0xff] }
 0x77e   : > { %5398 = vrot.lane.b32.xlu0 %v16500_v7, %s7263_s27  ;;  %v16502_v45 = vld [vmem:[#allocation82_spill] sm:$0xff]  ;;  %v4625_v12 = vsel %vm4600_vm2, %v4592_v40, %v16503_v61  ;;  %v16504_v18 = vld [vmem:[#allocation164_spill] sm:$0xff]  ;;  %6994 = vmatmul.mubr.msk.f32.gmra.mrb[38].mxu1 %vm4708_vm3, %v4690_v14  ;;  %v16507_v46 = vld [vmem:[#allocation31_spill] sm:$0xff] }
 0x77f   : > { %v4498_v30 = vsel %vm1727_vm7, %v16502_v45, %v16501_v25  ;;  %v4626_v20 = vsel %vm4600_vm2, %v4593_v36, %v16504_v18  ;;  %v16505_v63 = vld [vmem:[#allocation192_spill] sm:$0xff]  ;;  %v16506_v21 = vld [vmem:[#allocation30_spill] sm:$0xff]  ;;  %v16508_v24 = vld [vmem:[#allocation29_spill] sm:$0xff] }
 0x780   : > { %5396 = vrot.lane.b32.xlu1 %v16505_v63, %s7263_s27  ;;  %v4529_v48 = vsel %vm1793_vm9, %v4497_v32, %v16506_v21  ;;  %v4530_v52 = vsel %vm1793_vm9, %v4498_v30, %v16507_v46  ;;  %v4658_v11 = vsel %vm4633_vm4, %v4625_v12, %v16508_v24  ;;  %v16509_v59 = vld [vmem:[#allocation242_spill] sm:$0xff]  ;;  %v16510_v5 = vld [vmem:[#allocation116_spill] sm:$0xff]  ;;  %v16511_v37 = vld [vmem:[#allocation149_spill] sm:$0xff] }
 0x781   : > { %v4659_v29 = vsel %vm4633_vm4, %v4626_v20, %v16509_v59  ;;  %v4561_v0 = vsel %vm1859_vm11, %v4529_v48, %v16510_v5  ;;  %v4562_v55 = vsel %vm1859_vm11, %v4530_v52, %v16511_v37  ;;  %v4691_v13 = vsel %vm4666_vm5, %v4658_v11, %v4392_v28  ;;  %v16512_v53 = vld [vmem:[#allocation223_spill] sm:$0xff]  ;;  %v16514_v43 = vld [vmem:[#allocation168_spill] sm:$0xff]  ;;  %v16515_v1 = vld [vmem:[#allocation73_spill] sm:$0xff]  ;;  %v4396_v11 = vpop.permute.xlu1 %4395  ;;  %v4398_v59 = vpop.permute.xlu0 %4397 }
 0x782   : > { %v4692_v41 = vsel %vm4666_vm5, %v4659_v29, %v4394_v33  ;;  %v16513_v6 = vld [vmem:[#allocation95_spill] sm:$0xff]  ;;  %v4594_v14 = vsel %vm4567_vm1, %v4561_v0, %v16514_v43  ;;  %v4595_v10 = vsel %vm4567_vm1, %v4562_v55, %v16515_v1  ;;  %6996 = vmatprep.mubr.msk.f32.mxu1 %vm4708_vm3, %v4691_v13  ;;  %v16516_v32 = vld [vmem:[#allocation212_spill] sm:$0xff]  ;;  %v16517_v35 = vld [vmem:[#allocation134_spill] sm:$0xff] }
 0x783   : > { %v4499_v49 = vsel %vm1727_vm7, %v16513_v6, %v16512_v53  ;;  %5402 = vrot.lane.b32.xlu0 %v16516_v32, %s7263_s27  ;;  %v16518_v40 = vld [vmem:[#allocation194_spill] sm:$0xff]  ;;  %v16519_v36 = vld [vmem:[#allocation205_spill] sm:$0xff]  ;;  %6997 = vmatmul.mubr.msk.f32.gmra.mrb[40].mxu1 %vm4708_vm3, %v4692_v41  ;;  %v16529_v13 = vld [vmem:[#allocation91_spill] sm:$0xff] }
 0x784   : > { %v4500_v38 = vsel %vm1727_vm7, %v16518_v40, %v16517_v35  ;;  %v4627_v25 = vsel %vm4600_vm2, %v4594_v14, %v16519_v36  ;;  %v16520_v45 = vld [vmem:[#allocation105_spill] sm:$0xff]  ;;  %v16521_v61 = vld [vmem:[#allocation150_spill] sm:$0xff]  ;;  %v16530_v53 = vld [vmem:[#allocation176_spill] sm:$0xff] }
 0x785   : > { %v4628_v30 = vsel %vm4600_vm2, %v4595_v10, %v16520_v45  ;;  %5400 = vrot.lane.b32.xlu1 %v16521_v61, %s7263_s27  ;;  %v16522_v12 = vld [vmem:[#allocation33_spill] sm:$0xff]  ;;  %v16523_v20 = vld [vmem:[#allocation34_spill] sm:$0xff] }
 0x786   : > { %v4531_v18 = vsel %vm1793_vm9, %v4499_v49, %v16522_v12  ;;  %v4532_v21 = vsel %vm1793_vm9, %v4500_v38, %v16523_v20  ;;  %v16524_v48 = vld [vmem:[#allocation217_spill] sm:$0xff]  ;;  %v16525_v52 = vld [vmem:[#allocation38_spill] sm:$0xff]  ;;  %v16531_v49 = vld [vmem:[#allocation35_spill] sm:$0xff] }
 0x787   : > { %v4660_v46 = vsel %vm4633_vm4, %v4627_v25, %v16524_v48  ;;  %v4661_v24 = vsel %vm4633_vm4, %v4628_v30, %v16525_v52  ;;  %v16526_v29 = vld [vmem:[#allocation170_spill] sm:$0xff]  ;;  %v16527_v33 = vld [vmem:[#allocation129_spill] sm:$0xff]  ;;  %v16538_v12 = vld [vmem:[#allocation39_spill] sm:$0xff]  ;;  %v4402_v52 = vpop.permute.xlu0 %4401 }
 0x788   : > { %v4563_v28 = vsel %vm1859_vm11, %v4531_v18, %v16526_v29  ;;  %v4564_v5 = vsel %vm1859_vm11, %v4532_v21, %v16527_v33  ;;  %v4693_v0 = vsel %vm4666_vm5, %v4660_v46, %v4396_v11  ;;  %v4694_v37 = vsel %vm4666_vm5, %v4661_v24, %v4398_v59  ;;  %v16528_v55 = vld [vmem:[#allocation186_spill] sm:$0xff]  ;;  %v16532_v14 = vld [vmem:[#allocation169_spill] sm:$0xff]  ;;  %v16539_v20 = vld [vmem:[#allocation171_spill] sm:$0xff]  ;;  %v4400_v46 = vpop.permute.xlu1 %4399 }
 0x789   : > { %v4501_v41 = vsel %vm1727_vm7, %v16529_v13, %v16528_v55  ;;  %v4596_v6 = vsel %vm4567_vm1, %v4563_v28, %v16530_v53  ;;  %v4597_v43 = vsel %vm4567_vm1, %v4564_v5, %v16531_v49  ;;  %6999 = vmatprep.mubr.msk.f32.mxu1 %vm4708_vm3, %v4693_v0  ;;  %5406 = vrot.lane.b32.xlu0 %v16532_v14, %s7263_s27  ;;  %v16533_v1 = vld [vmem:[#allocation229_spill] sm:$0xff]  ;;  %v16534_v35 = vld [vmem:[#allocation142_spill] sm:$0xff]  ;;  %v16540_v21 = vld [vmem:[#allocation84_spill] sm:$0xff] }
 0x78a   : > { %v4502_v10 = vsel %vm1727_vm7, %v13096_v34, %v16533_v1  ;;  %v4629_v40 = vsel %vm4600_vm2, %v4596_v6, %v16534_v35  ;;  %v16535_v38 = vld [vmem:[#allocation166_spill] sm:$0xff]  ;;  %7000 = vmatmul.mubr.msk.f32.gmra.mrb[42].mxu1 %vm4708_vm3, %v4694_v37  ;;  %v16536_v25 = vld [vmem:[#allocation137_spill] sm:$0xff]  ;;  %v16541_v24 = vld [vmem:[#allocation67_spill] sm:$0xff] }
 0x78b   : > { %v4630_v36 = vsel %vm4600_vm2, %v4597_v43, %v16535_v38  ;;  %5404 = vrot.lane.b32.xlu1 %v16536_v25, %s7263_s27  ;;  %v16537_v45 = vld [vmem:[#allocation37_spill] sm:$0xff]  ;;  %v4534_v18 = vsel %vm1793_vm9, %v4502_v10, %v16538_v12  ;;  %v4662_v34 = vsel %vm4633_vm4, %v4629_v40, %v16539_v20  ;;  %v16543_v5 = vld [vmem:[#allocation251_spill] sm:$0xff]  ;;  %v16544_v37 = vld [vmem:[#allocation236_spill] sm:$0xff]  ;;  %v4406_v40 = vpop.permute.xlu0 %4405 }
 0x78c   : > { %v4533_v30 = vsel %vm1793_vm9, %v4501_v41, %v16537_v45  ;;  %v4663_v48 = vsel %vm4633_vm4, %v4630_v36, %v16540_v21  ;;  %v16542_v59 = vld [vmem:[#allocation165_spill] sm:$0xff]  ;;  %v4695_v28 = vsel %vm4666_vm5, %v4662_v34, %v4400_v46  ;;  %v16545_v13 = vld [vmem:[#allocation182_spill] sm:$0xff]  ;;  %v16548_v43 = vld [vmem:[#allocation216_spill] sm:$0xff]  ;;  %v4404_v35 = vpop.permute.xlu1 %4403 }
 0x78d   : > { %v4565_v11 = vsel %vm1859_vm11, %v4533_v30, %v16541_v24  ;;  %v4566_v29 = vsel %vm1859_vm11, %v4534_v18, %v16542_v59  ;;  %v4696_v33 = vsel %vm4666_vm5, %v4663_v48, %v4402_v52  ;;  %7002 = vmatprep.mubr.msk.f32.mxu1 %vm4708_vm3, %v4695_v28  ;;  %5410 = vrot.lane.b32.xlu0 %v16545_v13, %s7263_s27  ;;  %v16546_v41 = vld [vmem:[#allocation157_spill] sm:$0xff]  ;;  %v16547_v6 = vld [vmem:[#allocation190_spill] sm:$0xff] }
 0x78e   : > { %v4598_v0 = vsel %vm4567_vm1, %v4565_v11, %v16543_v5  ;;  %v4599_v55 = vsel %vm4567_vm1, %v4566_v29, %v16544_v37  ;;  %7003 = vmatmul.mubr.msk.f32.gmra.mrb[44].mxu1 %vm4708_vm3, %v4696_v33 }
 0x78f   : > { %v4631_v53 = vsel %vm4600_vm2, %v4598_v0, %v16546_v41  ;;  %v4632_v49 = vsel %vm4600_vm2, %v4599_v55, %v16547_v6  ;;  %5408 = vrot.lane.b32.xlu1 %v16548_v43, %s7263_s27 }
 0x790   : > { %v4664_v1 = vsel %vm4633_vm4, %v4631_v53, %v13090_v2  ;;  %v4665_v10 = vsel %vm4633_vm4, %v4632_v49, %v13092_v23  ;;  %v13666_v2 = vpop.permute.xlu0 %5238  ;;  %v13668_v45 = vpop.permute.xlu1 %5236  ;;  %v13853_v53 = vld [vmem:[%s14890_s6] ss:$0 sm:$0xff] }
 0x791   : > { %v4697_v38 = vsel %vm4666_vm5, %v4664_v1, %v4404_v35  ;;  %v4698_v36 = vsel %vm4666_vm5, %v4665_v10, %v4406_v40  ;;  %5414 = vrot.lane.b32.xlu0 %v13075_v19, %s7263_s27  ;;  %v13862_v1 = vld [vmem:[%s14891_s7] ss:$0 sm:$0xff] }
 0x792   : > { %7005 = vmatprep.mubr.msk.f32.mxu1 %vm4708_vm3, %v4697_v38 }
 0x793   : > { %7006 = vmatmul.mubr.msk.f32.gmra.mrb[46].mxu1 %vm4708_vm3, %v4698_v36  ;;  %5412 = vrot.lane.b32.xlu1 %v13080_v16, %s7263_s27 }
 0x794   : > { %v13674_v23 = vpop.permute.xlu0 %5242  ;;  %v13676_v30 = vpop.permute.xlu1 %5240 }
 0x795   : > { %5418 = vrot.lane.b32.xlu0 %v13123_v31, %s7263_s27 }
 0x797   : > { %5416 = vrot.lane.b32.xlu1 %v13136_v58, %s7263_s27 }
 0x798   : > { %v13682_v12 = vpop.permute.xlu0 %5246  ;;  %v13684_v18 = vpop.permute.xlu1 %5244 }
 0x799   : > { %5422 = vrot.lane.b32.xlu0 %v13167_v39, %s7263_s27 }
 0x79b   : > { %5420 = vrot.lane.b32.xlu1 %v13180_v15, %s7263_s27 }
 0x79c   : > { %v13690_v20 = vpop.permute.xlu0 %5250  ;;  %v13692_v34 = vpop.permute.xlu1 %5248 }
 0x79d   : > { %5426 = vrot.lane.b32.xlu0 %v13211_v27, %s7263_s27 }
 0x79f   : > { %5424 = vrot.lane.b32.xlu1 %v13224_v56, %s7263_s27 }
 0x7a0   : > { %v13698_v21 = vpop.permute.xlu0 %5254  ;;  %v13700_v48 = vpop.permute.xlu1 %5252 }
 0x7a1   : > { %5494 = vrot.lane.b32.xlu0 %v12727_v4, %s7264_s19 }
 0x7a3   : > { %5492 = vrot.lane.b32.xlu1 %v12732_v3, %s7264_s19 }
 0x7a4   : > { %v13706_v46 = vpop.permute.xlu0 %5258  ;;  %v13708_v52 = vpop.permute.xlu1 %5256 }
 0x7a5   : > { %5498 = vrot.lane.b32.xlu0 %v12745_v57, %s7264_s19 }
 0x7a7   : > { %5496 = vrot.lane.b32.xlu1 %v16394_v26, %s7264_s19 }
 0x7a8   : > { %v13714_v4 = vpop.permute.xlu0 %5262  ;;  %v13716_v3 = vpop.permute.xlu1 %5260 }
 0x7a9   : > { %5502 = vrot.lane.b32.xlu0 %v16405_v44, %s7264_s19 }
 0x7ab   : > { %5500 = vrot.lane.b32.xlu1 %v16410_v62, %s7264_s19 }
 0x7ac   : > { %v13722_v57 = vpop.permute.xlu0 %5266  ;;  %v13724_v26 = vpop.permute.xlu1 %5264 }
 0x7ad   : > { %5506 = vrot.lane.b32.xlu0 %v16421_v22, %s7264_s19 }
 0x7af   : > { %5504 = vrot.lane.b32.xlu1 %v16426_v47, %s7264_s19 }
 0x7b0   : > { %v13732_v44 = vpop.permute.xlu0 %5270  ;;  %v13736_v62 = vpop.permute.xlu1 %5268 }
 0x7b1   : > { %5510 = vrot.lane.b32.xlu0 %v16437_v42, %s7264_s19 }
 0x7b3   : > { %5508 = vrot.lane.b32.xlu1 %v16442_v50, %s7264_s19 }
 0x7b4   : > { %v13742_v22 = vpop.permute.xlu0 %5274  ;;  %v13744_v47 = vpop.permute.xlu1 %5272 }
 0x7b5   : > { %5514 = vrot.lane.b32.xlu0 %v16453_v60, %s7264_s19 }
 0x7b7   : > { %5512 = vrot.lane.b32.xlu1 %v16458_v51, %s7264_s19 }
 0x7b8   : > { %v13752_v42 = vpop.permute.xlu0 %5278  ;;  %v13756_v50 = vpop.permute.xlu1 %5276 }
 0x7b9   : > { %5518 = vrot.lane.b32.xlu0 %v16469_v9, %s7264_s19 }
 0x7bb   : > { %5516 = vrot.lane.b32.xlu1 %v16474_v8, %s7264_s19 }
 0x7bc   : > { %v13762_v60 = vpop.permute.xlu0 %5282  ;;  %v13764_v51 = vpop.permute.xlu1 %5280 }
 0x7bd   : > { %5522 = vrot.lane.b32.xlu0 %v16484_v54, %s7264_s19 }
 0x7bf   : > { %5520 = vrot.lane.b32.xlu1 %v16489_v17, %s7264_s19 }
 0x7c0   : > { %v13772_v9 = vpop.permute.xlu0 %5286  ;;  %v13776_v8 = vpop.permute.xlu1 %5284 }
 0x7c1   : > { %5526 = vrot.lane.b32.xlu0 %v16500_v7, %s7264_s19 }
 0x7c3   : > { %5524 = vrot.lane.b32.xlu1 %v16505_v63, %s7264_s19 }
 0x7c4   : > { %v13782_v54 = vpop.permute.xlu0 %5290  ;;  %v13784_v17 = vpop.permute.xlu1 %5288 }
 0x7c5   : > { %5530 = vrot.lane.b32.xlu0 %v16516_v32, %s7264_s19 }
 0x7c7   : > { %5528 = vrot.lane.b32.xlu1 %v16521_v61, %s7264_s19 }
 0x7c8   : > { %v13792_v7 = vpop.permute.xlu0 %5294 }
 0x7c9   : > { %5534 = vrot.lane.b32.xlu0 %v16532_v14, %s7264_s19 }
 0x7cb   : > { %5532 = vrot.lane.b32.xlu1 %v16536_v25, %s7264_s19 }
 0x7cd   : > { %5538 = vrot.lane.b32.xlu0 %v16545_v13, %s7264_s19 }
 0x7cf   : > { %5536 = vrot.lane.b32.xlu1 %v16548_v43, %s7264_s19 }
 0x7d1   : > { %5542 = vrot.lane.b32.xlu0 %v13075_v19, %s7264_s19  ;;  %v13796_v19 = vpop.permute.xlu1 %5292 }
 0x7d3   : > { %5540 = vrot.lane.b32.xlu1 %v13080_v16, %s7264_s19  ;;  %v13802_v16 = vpop.permute.xlu0 %5298 }
 0x7d5   : > { %5546 = vrot.lane.b32.xlu0 %v13123_v31, %s7264_s19  ;;  %v13804_v31 = vpop.permute.xlu1 %5296 }
 0x7d7   : > { %5544 = vrot.lane.b32.xlu1 %v13136_v58, %s7264_s19  ;;  %v13806_v58 = vpop.permute.xlu0 %5366 }
 0x7d9   : > { %5550 = vrot.lane.b32.xlu0 %v13167_v39, %s7264_s19  ;;  %v13808_v39 = vpop.permute.xlu1 %5364 }
 0x7db   : > { %5548 = vrot.lane.b32.xlu1 %v13180_v15, %s7264_s19  ;;  %v13810_v63 = vpop.permute.xlu0 %5370 }
 0x7dd   : > { %5554 = vrot.lane.b32.xlu0 %v13211_v27, %s7264_s19  ;;  %v13812_v32 = vpop.permute.xlu1 %5368 }
 0x7df   : > { %5552 = vrot.lane.b32.xlu1 %v13224_v56, %s7264_s19  ;;  %v13814_v15 = vpop.permute.xlu0 %5374 }
 0x7e1   : > { %v13816_v61 = vpop.permute.xlu1 %5372 }
 0x7e3   : > { %v13818_v27 = vpop.permute.xlu0 %5378 }
 0x7e5   : > { %v13820_v14 = vpop.permute.xlu1 %5376 }
 0x7e7   : > { %v13822_v56 = vpop.permute.xlu0 %5382 }
 0x7e9   : > { %v13824_v25 = vpop.permute.xlu1 %5380 }
 0x7eb   : > { %v13826_v24 = vpop.permute.xlu0 %5386 }
 0x7ed   : > { %v13828_v11 = vpop.permute.xlu1 %5384 }
 0x7ef   : > { %v13830_v59 = vpop.permute.xlu0 %5390 }
 0x7f1   : > { %v13832_v29 = vpop.permute.xlu1 %5388 }
 0x7f3   : > { %v13834_v28 = vpop.permute.xlu0 %5394 }
 0x7f5   : > { %v13836_v33 = vpop.permute.xlu1 %5392 }
 0x7f7   : > { %v13838_v5 = vpop.permute.xlu0 %5398 }
 0x7f8   : > { %16549 = vst [vmem:[#allocation249_spill] sm:$0xff] %v13838_v5 }
 0x7f9   : > { %v13840_v0 = vpop.permute.xlu1 %5396 }
 0x7fa   : > { %16550 = vst [vmem:[#allocation9_spill] sm:$0xff] %v13840_v0 }
 0x7fb   : > { %v13842_v37 = vpop.permute.xlu0 %5402 }
 0x7fc   : > { %16551 = vst [vmem:[#allocation93_spill] sm:$0xff] %v13842_v37 }
 0x7fd   : > { %v13844_v55 = vpop.permute.xlu1 %5400 }
 0x7fe   : > { %16552 = vst [vmem:[#allocation215_spill] sm:$0xff] %v13844_v55 }
 0x7ff   : > { %v13846_v13 = vpop.permute.xlu0 %5406 }
 0x800   : > { %16553 = vst [vmem:[#allocation128_spill] sm:$0xff] %v13846_v13 }
 0x801   : > { %v13848_v41 = vpop.permute.xlu1 %5404 }
 0x802   : > { %16554 = vst [vmem:[#allocation183_spill] sm:$0xff] %v13848_v41 }
 0x803   : > { %v13855_v6 = vpop.permute.xlu0 %5410 }
 0x804   : > { %16555 = vst [vmem:[#allocation99_spill] sm:$0xff] %v13855_v6 }
 0x805   : > { %v13857_v49 = vpop.permute.xlu1 %5408 }
 0x806   : > { %16556 = vst [vmem:[#allocation220_spill] sm:$0xff] %v13857_v49 }
 0x807   : > { %v13868_v13 = vpop.permute.xlu0 %5414 }
 0x808   : > { %16557 = vst [vmem:[#allocation154_spill] sm:$0xff] %v13868_v13 }
 0x809   : > { %v13873_v37 = vpop.permute.xlu1 %5412 }
 0x80a   : > { %16558 = vst [vmem:[#allocation36_spill] sm:$0xff] %v13873_v37 }
 0x822   : > { %v6962_v43 = vpop.f32.mrb[16].mxu1 }
 0x823   : > { %v5038_v10 = vmul.f32 %v6962_v43, %v13853_v53  ;;  %v4871_v35 = vpop.f32.mrb[17].mxu1 }
 0x824   : > { %v5037_v40 = vmul.f32 %v13853_v53, %v4871_v35 }
 0x825   : > { %v5077_v38 = vadd.f32 %v13862_v1, %v5038_v10 }
 0x826   : > { %v5076_v36 = vadd.f32 %v13862_v1, %v5037_v40  ;;  %v6965_v41 = vpop.f32.mrb[18].mxu1 }
 0x827   : > { %v13870_v6 = vmax.f32 %v5077_v38, 0.0  ;;  %v5040_v49 = vmul.f32 %v6965_v41, %v13853_v53  ;;  %v4881_v55 = vpop.f32.mrb[19].mxu1 }
 0x828   : > { %v13875_v0 = vmax.f32 %v5076_v36, 0.0  ;;  %v5039_v43 = vmul.f32 %v13853_v53, %v4881_v55 }
 0x829   : > { %v5079_v35 = vadd.f32 %v13862_v1, %v5040_v49  ;;  %v5333_v10 = vmul.f32 %v13666_v2, %v13870_v6  ;;  %v13892_v2 = vpop.permute.xlu0 %5418 }
 0x82a   : > { %v5078_v40 = vadd.f32 %v13862_v1, %v5039_v43  ;;  %v6968_v5 = vpop.f32.mrb[20].mxu1  ;;  %v5332_v38 = vmul.f32 %v13668_v45, %v13875_v0  ;;  %16559 = vst [vmem:[#allocation248_spill] sm:$0xff] %v13892_v2  ;;  %v13897_v43 = vpop.permute.xlu1 %5416 }
 0x82b   : > { %v13884_v13 = vmax.f32 %v5079_v35, 0.0  ;;  %v5042_v41 = vmul.f32 %v6968_v5, %v13853_v53  ;;  %v4891_v37 = vpop.f32.mrb[21].mxu1  ;;  %5654 = vrot.lane.b32.xlu0 %v5333_v10, %s7265_s14  ;;  %16560 = vst [vmem:[#allocation139_spill] sm:$0xff] %v13897_v43 }
 0x82c   : > { %v13888_v36 = vmax.f32 %v5078_v40, 0.0  ;;  %v5041_v55 = vmul.f32 %v13853_v53, %v4891_v37  ;;  %5652 = vrot.lane.b32.xlu1 %v5332_v38, %s7265_s14 }
 0x82d   : > { %v5081_v49 = vadd.f32 %v13862_v1, %v5042_v41  ;;  %v5335_v45 = vmul.f32 %v13674_v23, %v13884_v13  ;;  %v13916_v43 = vpop.permute.xlu0 %5422 }
 0x82e   : > { %v5080_v5 = vadd.f32 %v13862_v1, %v5041_v55  ;;  %v6971_v35 = vpop.f32.mrb[22].mxu1  ;;  %v5334_v10 = vmul.f32 %v13676_v30, %v13888_v36  ;;  %16561 = vst [vmem:[#allocation76_spill] sm:$0xff] %v13916_v43 }
 0x82f   : > { %v13902_v40 = vmax.f32 %v5081_v49, 0.0  ;;  %v5044_v37 = vmul.f32 %v6971_v35, %v13853_v53  ;;  %v4901_v38 = vpop.f32.mrb[23].mxu1  ;;  %5658 = vrot.lane.b32.xlu0 %v5335_v45, %s7265_s14 }
 0x830   : > { %v13906_v2 = vmax.f32 %v5080_v5, 0.0  ;;  %v5043_v41 = vmul.f32 %v13853_v53, %v4901_v38  ;;  %5656 = vrot.lane.b32.xlu1 %v5334_v10, %s7265_s14  ;;  %v13922_v10 = vpop.permute.xlu1 %5420 }
 0x831   : > { %v5083_v23 = vadd.f32 %v13862_v1, %v5044_v37  ;;  %v5337_v55 = vmul.f32 %v13682_v12, %v13902_v40  ;;  %16562 = vst [vmem:[#allocation173_spill] sm:$0xff] %v13922_v10 }
 0x832   : > { %v5082_v30 = vadd.f32 %v13862_v1, %v5043_v41  ;;  %v6974_v49 = vpop.f32.mrb[24].mxu1  ;;  %v5336_v35 = vmul.f32 %v13684_v18, %v13906_v2 }
 0x833   : > { %v13918_v45 = vmax.f32 %v5083_v23, 0.0  ;;  %v5046_v5 = vmul.f32 %v6974_v49, %v13853_v53  ;;  %v4911_v38 = vpop.f32.mrb[25].mxu1  ;;  %5662 = vrot.lane.b32.xlu0 %v5337_v55, %s7265_s14 }
 0x834   : > { %v13924_v37 = vmax.f32 %v5082_v30, 0.0  ;;  %v5045_v12 = vmul.f32 %v13853_v53, %v4911_v38  ;;  %5660 = vrot.lane.b32.xlu1 %v5336_v35, %s7265_s14 }
 0x835   : > { %v5085_v41 = vadd.f32 %v13862_v1, %v5046_v5  ;;  %v5339_v18 = vmul.f32 %v13690_v20, %v13918_v45  ;;  %v13942_v20 = vpop.permute.xlu0 %5426 }
 0x836   : > { %v5084_v23 = vadd.f32 %v13862_v1, %v5045_v12  ;;  %v6977_v43 = vpop.f32.mrb[26].mxu1  ;;  %v5338_v49 = vmul.f32 %v13692_v34, %v13924_v37  ;;  %16563 = vst [vmem:[#allocation222_spill] sm:$0xff] %v13942_v20  ;;  %v13947_v12 = vpop.permute.xlu1 %5424 }
 0x837   : > { %v13934_v55 = vmax.f32 %v5085_v41, 0.0  ;;  %v5048_v30 = vmul.f32 %v6977_v43, %v13853_v53  ;;  %v4921_v10 = vpop.f32.mrb[27].mxu1  ;;  %5666 = vrot.lane.b32.xlu0 %v5339_v18, %s7265_s14  ;;  %16564 = vst [vmem:[#allocation10_spill] sm:$0xff] %v13947_v12 }
 0x838   : > { %v13938_v38 = vmax.f32 %v5084_v23, 0.0  ;;  %v5047_v35 = vmul.f32 %v13853_v53, %v4921_v10  ;;  %5664 = vrot.lane.b32.xlu1 %v5338_v49, %s7265_s14 }
 0x839   : > { %v5087_v5 = vadd.f32 %v13862_v1, %v5048_v30  ;;  %v5341_v34 = vmul.f32 %v13698_v21, %v13934_v55  ;;  %v13966_v12 = vpop.permute.xlu0 %5494 }
 0x83a   : > { %v5086_v43 = vadd.f32 %v13862_v1, %v5047_v35  ;;  %v6980_v41 = vpop.f32.mrb[28].mxu1  ;;  %v5340_v18 = vmul.f32 %v13700_v48, %v13938_v38  ;;  %16565 = vst [vmem:[#allocation85_spill] sm:$0xff] %v13966_v12 }
 0x83b   : > { %v13952_v23 = vmax.f32 %v5087_v5, 0.0  ;;  %v5050_v10 = vmul.f32 %v6980_v41, %v13853_v53  ;;  %v4931_v49 = vpop.f32.mrb[29].mxu1  ;;  %5670 = vrot.lane.b32.xlu0 %v5341_v34, %s7265_s14 }
 0x83c   : > { %v13956_v20 = vmax.f32 %v5086_v43, 0.0  ;;  %v5049_v30 = vmul.f32 %v13853_v53, %v4931_v49  ;;  %5668 = vrot.lane.b32.xlu1 %v5340_v18, %s7265_s14  ;;  %v13972_v18 = vpop.permute.xlu1 %5492 }
 0x83d   : > { %v5089_v21 = vadd.f32 %v13862_v1, %v5050_v10  ;;  %v5343_v35 = vmul.f32 %v13706_v46, %v13952_v23  ;;  %16566 = vst [vmem:[#allocation43_spill] sm:$0xff] %v13972_v18 }
 0x83e   : > { %v5088_v48 = vadd.f32 %v13862_v1, %v5049_v30  ;;  %v6983_v5 = vpop.f32.mrb[30].mxu1  ;;  %v5342_v41 = vmul.f32 %v13708_v52, %v13956_v20 }
 0x83f   : > { %v13968_v34 = vmax.f32 %v5089_v21, 0.0  ;;  %v5052_v43 = vmul.f32 %v6983_v5, %v13853_v53  ;;  %v4941_v49 = vpop.f32.mrb[31].mxu1  ;;  %5674 = vrot.lane.b32.xlu0 %v5343_v35, %s7265_s14 }
 0x840   : > { %v13974_v10 = vmax.f32 %v5088_v48, 0.0  ;;  %v5051_v46 = vmul.f32 %v13853_v53, %v4941_v49  ;;  %5672 = vrot.lane.b32.xlu1 %v5342_v41, %s7265_s14 }
 0x841   : > { %v5091_v30 = vadd.f32 %v13862_v1, %v5052_v43  ;;  %v5345_v52 = vmul.f32 %v13714_v4, %v13968_v34  ;;  %v13992_v4 = vpop.permute.xlu0 %5498 }
 0x842   : > { %v5090_v21 = vadd.f32 %v13862_v1, %v5051_v46  ;;  %v6986_v12 = vpop.f32.mrb[32].mxu1  ;;  %v5344_v5 = vmul.f32 %v13716_v3, %v13974_v10  ;;  %16567 = vst [vmem:[#allocation252_spill] sm:$0xff] %v13992_v4  ;;  %v13997_v46 = vpop.permute.xlu1 %5496 }
 0x843   : > { %v13984_v35 = vmax.f32 %v5091_v30, 0.0  ;;  %v5054_v48 = vmul.f32 %v6986_v12, %v13853_v53  ;;  %v4951_v18 = vpop.f32.mrb[33].mxu1  ;;  %5678 = vrot.lane.b32.xlu0 %v5345_v52, %s7265_s14  ;;  %16568 = vst [vmem:[#allocation12_spill] sm:$0xff] %v13997_v46 }
 0x844   : > { %v13988_v49 = vmax.f32 %v5090_v21, 0.0  ;;  %v5053_v41 = vmul.f32 %v13853_v53, %v4951_v18  ;;  %5676 = vrot.lane.b32.xlu1 %v5344_v5, %s7265_s14 }
 0x845   : > { %v5093_v43 = vadd.f32 %v13862_v1, %v5054_v48  ;;  %v5347_v3 = vmul.f32 %v13722_v57, %v13984_v35  ;;  %v14016_v46 = vpop.permute.xlu0 %5502 }
 0x846   : > { %v5092_v12 = vadd.f32 %v13862_v1, %v5053_v41  ;;  %v5346_v52 = vmul.f32 %v13724_v26, %v13988_v49  ;;  %16569 = vst [vmem:[#allocation218_spill] sm:$0xff] %v14016_v46 }
 0x847   : > { %v6989_v30 = vpop.f32.mrb[34].mxu1  ;;  %v14002_v21 = vmax.f32 %v5093_v43, 0.0  ;;  %5682 = vrot.lane.b32.xlu0 %v5347_v3, %s7265_s14 }
 0x848   : > { %v5056_v18 = vmul.f32 %v6989_v30, %v13853_v53  ;;  %v4961_v5 = vpop.f32.mrb[35].mxu1  ;;  %v14006_v4 = vmax.f32 %v5092_v12, 0.0  ;;  %5680 = vrot.lane.b32.xlu1 %v5346_v52, %s7265_s14  ;;  %v14022_v52 = vpop.permute.xlu1 %5500 }
 0x849   : > { %v5055_v48 = vmul.f32 %v13853_v53, %v4961_v5  ;;  %v5349_v41 = vmul.f32 %v13732_v44, %v14002_v21  ;;  %16570 = vst [vmem:[#allocation184_spill] sm:$0xff] %v14022_v52 }
 0x84a   : > { %v5095_v57 = vadd.f32 %v13862_v1, %v5056_v18  ;;  %v5348_v30 = vmul.f32 %v13736_v62, %v14006_v4 }
 0x84b   : > { %v5094_v26 = vadd.f32 %v13862_v1, %v5055_v48  ;;  %5686 = vrot.lane.b32.xlu0 %v5349_v41, %s7265_s14 }
 0x84c   : > { %v6992_v43 = vpop.f32.mrb[36].mxu1  ;;  %v14018_v3 = vmax.f32 %v5095_v57, 0.0  ;;  %5684 = vrot.lane.b32.xlu1 %v5348_v30, %s7265_s14 }
 0x84d   : > { %v5058_v12 = vmul.f32 %v6992_v43, %v13853_v53  ;;  %v4971_v5 = vpop.f32.mrb[37].mxu1  ;;  %v14024_v18 = vmax.f32 %v5094_v26, 0.0 }
 0x84e   : > { %v5057_v44 = vmul.f32 %v13853_v53, %v4971_v5  ;;  %v5351_v62 = vmul.f32 %v13742_v22, %v14018_v3  ;;  %v14042_v22 = vpop.permute.xlu0 %5506 }
 0x84f   : > { %v5097_v48 = vadd.f32 %v13862_v1, %v5058_v12  ;;  %v5350_v43 = vmul.f32 %v13744_v47, %v14024_v18  ;;  %16571 = vst [vmem:[#allocation224_spill] sm:$0xff] %v14042_v22 }
 0x850   : > { %v5096_v57 = vadd.f32 %v13862_v1, %v5057_v44  ;;  %5690 = vrot.lane.b32.xlu0 %v5351_v62, %s7265_s14  ;;  %v14047_v44 = vpop.permute.xlu1 %5504 }
 0x851   : > { %v6995_v46 = vpop.f32.mrb[38].mxu1  ;;  %v14034_v41 = vmax.f32 %v5097_v48, 0.0  ;;  %5688 = vrot.lane.b32.xlu1 %v5350_v43, %s7265_s14  ;;  %16572 = vst [vmem:[#allocation130_spill] sm:$0xff] %v14047_v44 }
 0x852   : > { %v5060_v26 = vmul.f32 %v6995_v46, %v13853_v53  ;;  %v4981_v52 = vpop.f32.mrb[39].mxu1  ;;  %v14038_v5 = vmax.f32 %v5096_v57, 0.0  ;;  %v14066_v44 = vpop.permute.xlu0 %5510 }
 0x853   : > { %v5059_v30 = vmul.f32 %v13853_v53, %v4981_v52  ;;  %v5353_v47 = vmul.f32 %v13752_v42, %v14034_v41  ;;  %16573 = vst [vmem:[#allocation160_spill] sm:$0xff] %v14066_v44 }
 0x854   : > { %v5099_v12 = vadd.f32 %v13862_v1, %v5060_v26  ;;  %v5352_v62 = vmul.f32 %v13756_v50, %v14038_v5 }
 0x855   : > { %v5098_v46 = vadd.f32 %v13862_v1, %v5059_v30  ;;  %5694 = vrot.lane.b32.xlu0 %v5353_v47, %s7265_s14 }
 0x856   : > { %v6998_v48 = vpop.f32.mrb[40].mxu1  ;;  %v14052_v57 = vmax.f32 %v5099_v12, 0.0  ;;  %5692 = vrot.lane.b32.xlu1 %v5352_v62, %s7265_s14  ;;  %v14072_v62 = vpop.permute.xlu1 %5508 }
 0x857   : > { %v5062_v52 = vmul.f32 %v6998_v48, %v13853_v53  ;;  %v4991_v43 = vpop.f32.mrb[41].mxu1  ;;  %v14056_v22 = vmax.f32 %v5098_v46, 0.0  ;;  %16574 = vst [vmem:[#allocation196_spill] sm:$0xff] %v14072_v62 }
 0x858   : > { %v5061_v26 = vmul.f32 %v13853_v53, %v4991_v43  ;;  %v5355_v30 = vmul.f32 %v13762_v60, %v14052_v57 }
 0x859   : > { %v5101_v42 = vadd.f32 %v13862_v1, %v5062_v52  ;;  %v5354_v48 = vmul.f32 %v13764_v51, %v14056_v22 }
 0x85a   : > { %v5100_v50 = vadd.f32 %v13862_v1, %v5061_v26  ;;  %5698 = vrot.lane.b32.xlu0 %v5355_v30, %s7265_s14 }
 0x85b   : > { %v14068_v47 = vmax.f32 %v5101_v42, 0.0  ;;  %5696 = vrot.lane.b32.xlu1 %v5354_v48, %s7265_s14 }
 0x85c   : > { %v14074_v52 = vmax.f32 %v5100_v50, 0.0 }
 0x85d   : > { %v7001_v12 = vpop.f32.mrb[42].mxu1  ;;  %v5357_v51 = vmul.f32 %v13772_v9, %v14068_v47  ;;  %v14092_v9 = vpop.permute.xlu0 %5514 }
 0x85e   : > { %v5064_v46 = vmul.f32 %v7001_v12, %v13853_v53  ;;  %v5001_v43 = vpop.f32.mrb[43].mxu1  ;;  %v5356_v12 = vmul.f32 %v13776_v8, %v14074_v52  ;;  %16575 = vst [vmem:[#allocation77_spill] sm:$0xff] %v14092_v9 }
 0x85f   : > { %v5063_v60 = vmul.f32 %v13853_v53, %v5001_v43  ;;  %5702 = vrot.lane.b32.xlu0 %v5357_v51, %s7265_s14 }
 0x860   : > { %v5103_v26 = vadd.f32 %v13862_v1, %v5064_v46  ;;  %5700 = vrot.lane.b32.xlu1 %v5356_v12, %s7265_s14 }
 0x861   : > { %v5102_v42 = vadd.f32 %v13862_v1, %v5063_v60  ;;  %v7004_v44 = vpop.f32.mrb[44].mxu1  ;;  %v14097_v60 = vpop.permute.xlu1 %5512 }
 0x862   : > { %v14084_v30 = vmax.f32 %v5103_v26, 0.0  ;;  %v5066_v50 = vmul.f32 %v7004_v44, %v13853_v53  ;;  %v5011_v62 = vpop.f32.mrb[45].mxu1  ;;  %16576 = vst [vmem:[#allocation42_spill] sm:$0xff] %v14097_v60 }
 0x863   : > { %v14088_v43 = vmax.f32 %v5102_v42, 0.0  ;;  %v5065_v48 = vmul.f32 %v13853_v53, %v5011_v62 }
 0x864   : > { %v5105_v46 = vadd.f32 %v13862_v1, %v5066_v50  ;;  %v5359_v8 = vmul.f32 %v13782_v54, %v14084_v30 }
 0x865   : > { %v5104_v44 = vadd.f32 %v13862_v1, %v5065_v48  ;;  %v5358_v51 = vmul.f32 %v13784_v17, %v14088_v43 }
 0x866   : > { %v7007_v26 = vpop.f32.mrb[46].mxu1  ;;  %v14102_v42 = vmax.f32 %v5105_v46, 0.0  ;;  %5706 = vrot.lane.b32.xlu0 %v5359_v8, %s7265_s14  ;;  %v14121_v8 = vpop.permute.xlu1 %5516 }
 0x867   : > { %v5068_v62 = vmul.f32 %v7007_v26, %v13853_v53  ;;  %v5021_v12 = vpop.f32.mrb[47].mxu1  ;;  %v14106_v9 = vmax.f32 %v5104_v44, 0.0  ;;  %5704 = vrot.lane.b32.xlu1 %v5358_v51, %s7265_s14  ;;  %v14116_v26 = vpop.permute.xlu0 %5518  ;;  %v5461_v44 = vmul.f32 %v13806_v58, %v13870_v6 }
 0x868   : > { %v5067_v50 = vmul.f32 %v13853_v53, %v5021_v12  ;;  %v5361_v48 = vmul.f32 %v13792_v7, %v14102_v42 }
 0x869   : > { %v5107_v54 = vadd.f32 %v13862_v1, %v5068_v62  ;;  %v5360_v46 = vmul.f32 %v13796_v19, %v14106_v9  ;;  %v5460_v62 = vmul.f32 %v13808_v39, %v13875_v0  ;;  %v5465_v39 = vmul.f32 %v13814_v15, %v13902_v40 }
 0x86a   : > { %v5106_v17 = vadd.f32 %v13862_v1, %v5067_v50  ;;  %5710 = vrot.lane.b32.xlu0 %v5361_v48, %s7265_s14  ;;  %v14136_v51 = vpop.permute.xlu1 %5520  ;;  %v5464_v50 = vmul.f32 %v13816_v61, %v13906_v2  ;;  %v5466_v48 = vmul.f32 %v13820_v14, %v13924_v37  ;;  %v5469_v15 = vmul.f32 %v13822_v56, %v13934_v55 }
 0x86b   : > { %v14118_v60 = vmax.f32 %v5107_v54, 0.0  ;;  %5708 = vrot.lane.b32.xlu1 %v5360_v46, %s7265_s14  ;;  %v14132_v19 = vpop.permute.xlu0 %5522  ;;  %v5468_v61 = vmul.f32 %v13824_v25, %v13938_v38  ;;  %v5471_v14 = vmul.f32 %v13826_v24, %v13952_v23  ;;  %v5470_v46 = vmul.f32 %v13828_v11, %v13956_v20 }
 0x86c   : > { %v14123_v53 = vmax.f32 %v5106_v17, 0.0  ;;  %16577 = vst [vmem:[#allocation44_spill] sm:$0xff] %v14132_v19  ;;  %v5473_v25 = vmul.f32 %v13830_v59, %v13968_v34  ;;  %v5475_v24 = vmul.f32 %v13834_v28, %v13984_v35  ;;  %v5474_v11 = vmul.f32 %v13836_v33, %v13988_v49  ;;  %v16580_v33 = vld [vmem:[#allocation93_spill] sm:$0xff] }
 0x86d   : > { %v5363_v7 = vmul.f32 %v13802_v16, %v14118_v60  ;;  %v5463_v16 = vmul.f32 %v13810_v63, %v13884_v13 }
 0x86e   : > { %v5362_v1 = vmul.f32 %v13804_v31, %v14123_v53  ;;  %v5462_v31 = vmul.f32 %v13812_v32, %v13888_v36  ;;  %v14149_v58 = vpop.permute.xlu1 %5524  ;;  %v5467_v32 = vmul.f32 %v13818_v27, %v13918_v45 }
 0x86f   : > { %5714 = vrot.lane.b32.xlu0 %v5363_v7, %s7265_s14  ;;  %v14146_v12 = vpop.permute.xlu0 %5526 }
 0x870   : > { %5712 = vrot.lane.b32.xlu1 %v5362_v1, %s7265_s14  ;;  %v5472_v1 = vmul.f32 %v13832_v29, %v13974_v10  ;;  %v16578_v29 = vld [vmem:[#allocation249_spill] sm:$0xff] }
 0x872   : > { %v14162_v54 = vpop.permute.xlu1 %5528 }
 0x873   : > { %5782 = vrot.lane.b32.xlu0 %v5461_v44, %s7254_s28  ;;  %v14158_v63 = vpop.permute.xlu0 %5530 }
 0x874   : > { %5780 = vrot.lane.b32.xlu1 %v5460_v62, %s7254_s28  ;;  %v5477_v62 = vmul.f32 %v16578_v29, %v14002_v21  ;;  %v16585_v29 = vld [vmem:[#allocation220_spill] sm:$0xff] }
 0x876   : > { %v14175_v27 = vpop.permute.xlu1 %5532 }
 0x877   : > { %5786 = vrot.lane.b32.xlu0 %v5463_v16, %s7254_s28  ;;  %v14172_v17 = vpop.permute.xlu0 %5534  ;;  %v16579_v16 = vld [vmem:[#allocation9_spill] sm:$0xff] }
 0x878   : > { %5784 = vrot.lane.b32.xlu1 %v5462_v31, %s7254_s28  ;;  %v5476_v31 = vmul.f32 %v16579_v16, %v14006_v4 }
 0x87a   : > { %v14188_v7 = vpop.permute.xlu1 %5536 }
 0x87b   : > { %5790 = vrot.lane.b32.xlu0 %v5465_v39, %s7254_s28  ;;  %v14184_v56 = vpop.permute.xlu0 %5538  ;;  %v5479_v39 = vmul.f32 %v16580_v33, %v14018_v3 }
 0x87c   : > { %5788 = vrot.lane.b32.xlu1 %v5464_v50, %s7254_s28 }
 0x87e   : > { %v14201_v59 = vpop.permute.xlu1 %5540 }
 0x87f   : > { %5794 = vrot.lane.b32.xlu0 %v5467_v32, %s7254_s28  ;;  %v14198_v44 = vpop.permute.xlu0 %5542  ;;  %v16581_v32 = vld [vmem:[#allocation215_spill] sm:$0xff] }
 0x880   : > { %5792 = vrot.lane.b32.xlu1 %v5466_v48, %s7254_s28  ;;  %v5478_v48 = vmul.f32 %v16581_v32, %v14024_v18  ;;  %v16588_v32 = vld [vmem:[#allocation36_spill] sm:$0xff] }
 0x882   : > { %v14214_v50 = vpop.permute.xlu1 %5544 }
 0x883   : > { %5798 = vrot.lane.b32.xlu0 %v5469_v15, %s7254_s28  ;;  %v14210_v28 = vpop.permute.xlu0 %5546  ;;  %v16582_v15 = vld [vmem:[#allocation128_spill] sm:$0xff] }
 0x884   : > { %5796 = vrot.lane.b32.xlu1 %v5468_v61, %s7254_s28  ;;  %v5481_v61 = vmul.f32 %v16582_v15, %v14034_v41  ;;  %v7211_v15 = vld [vmem:[%s14892_s8 + $0x8] sm:$0xff] }
 0x887   : > { %5802 = vrot.lane.b32.xlu0 %v5471_v14, %s7254_s28  ;;  %v16583_v14 = vld [vmem:[#allocation183_spill] sm:$0xff] }
 0x888   : > { %5800 = vrot.lane.b32.xlu1 %v5470_v46, %s7254_s28  ;;  %v5480_v46 = vmul.f32 %v16583_v14, %v14038_v5 }
 0x88b   : > { %5806 = vrot.lane.b32.xlu0 %v5473_v25, %s7254_s28  ;;  %v14224_v25 = vpop.permute.xlu0 %5550 }
 0x88c   : > { %5804 = vrot.lane.b32.xlu1 %v5472_v1, %s7254_s28  ;;  %v14227_v1 = vpop.permute.xlu1 %5548 }
 0x88f   : > { %5810 = vrot.lane.b32.xlu0 %v5475_v24, %s7254_s28  ;;  %v16584_v24 = vld [vmem:[#allocation99_spill] sm:$0xff]  ;;  %v14236_v16 = vpop.permute.xlu0 %5554 }
 0x890   : > { %5808 = vrot.lane.b32.xlu1 %v5474_v11, %s7254_s28  ;;  %v5483_v11 = vmul.f32 %v16584_v24, %v14052_v57  ;;  %16586 = vst [vmem:[#allocation156_spill] sm:$0xff] %v14236_v16 }
 0x893   : > { %5814 = vrot.lane.b32.xlu0 %v5477_v62, %s7254_s28  ;;  %v5482_v62 = vmul.f32 %v16585_v29, %v14056_v22 }
 0x894   : > { %5812 = vrot.lane.b32.xlu1 %v5476_v31, %s7254_s28  ;;  %v16587_v31 = vld [vmem:[#allocation154_spill] sm:$0xff] }
 0x895   : > { %v5485_v33 = vmul.f32 %v16587_v31, %v14068_v47 }
 0x897   : > { %5818 = vrot.lane.b32.xlu0 %v5479_v39, %s7254_s28  ;;  %v14240_v39 = vpop.permute.xlu1 %5552 }
 0x898   : > { %5816 = vrot.lane.b32.xlu1 %v5478_v48, %s7254_s28  ;;  %v5484_v48 = vmul.f32 %v16588_v32, %v14074_v52 }
 0x89b   : > { %5822 = vrot.lane.b32.xlu0 %v5481_v61, %s7254_s28  ;;  %v5173_v61 = vmul.f32 %v7211_v15, %v13870_v6  ;;  %v7213_v15 = vld [vmem:[%s14892_s8 + $0x18] sm:$0xff] }
 0x89c   : > { %5820 = vrot.lane.b32.xlu1 %v5480_v46, %s7254_s28  ;;  %v7212_v46 = vld [vmem:[%s14892_s8] sm:$0xff] }
 0x89d   : > { %v5655_v14 = vpop.permute.xlu0 %5654  ;;  %v5172_v24 = vmul.f32 %v7212_v46, %v13875_v0  ;;  %v5175_v46 = vmul.f32 %v7213_v15, %v13884_v13  ;;  %v7215_v15 = vld [vmem:[%s14892_s8 + $0x28] sm:$0xff] }
 0x89e   : > { %v5653_v31 = vpop.permute.xlu1 %5652 }
 0x89f   : > { %5826 = vrot.lane.b32.xlu0 %v5483_v11, %s7254_s28  ;;  %v16589_v11 = vld [vmem:[#allocation248_spill] sm:$0xff] }
 0x8a0   : > { %5824 = vrot.lane.b32.xlu1 %v5482_v62, %s7254_s28  ;;  %v5487_v29 = vmul.f32 %v16589_v11, %v14084_v30  ;;  %v14257_v62 = vsel %vm3197_vm14, %v5173_v61, %v5655_v14  ;;  %v7214_v61 = vld [vmem:[%s14892_s8 + $0x10] sm:$0xff] }
 0x8a1   : > { %16590 = vst [vmem:[#allocation64_spill] sm:$0xff] %v14257_v62  ;;  %v5659_v11 = vpop.permute.xlu0 %5658  ;;  %v5174_v14 = vmul.f32 %v7214_v61, %v13888_v36  ;;  %v5177_v61 = vmul.f32 %v7215_v15, %v13902_v40  ;;  %v7217_v15 = vld [vmem:[%s14892_s8 + $0x38] sm:$0xff] }
 0x8a3   : > { %5830 = vrot.lane.b32.xlu0 %v5485_v33, %s7254_s28  ;;  %v16591_v33 = vld [vmem:[#allocation139_spill] sm:$0xff] }
 0x8a4   : > { %5828 = vrot.lane.b32.xlu1 %v5484_v48, %s7254_s28  ;;  %v5486_v32 = vmul.f32 %v16591_v33, %v14088_v43  ;;  %v14262_v48 = vsel %vm3197_vm14, %v5172_v24, %v5653_v31  ;;  %v16593_v24 = vld [vmem:[#allocation76_spill] sm:$0xff]  ;;  %v5657_v33 = vpop.permute.xlu1 %5656 }
 0x8a5   : > { %16592 = vst [vmem:[#allocation62_spill] sm:$0xff] %v14262_v48  ;;  %v5489_v31 = vmul.f32 %v16593_v24, %v14102_v42  ;;  %v14282_v62 = vsel %vm3197_vm14, %v5174_v14, %v5657_v33  ;;  %v5663_v24 = vpop.permute.xlu0 %5662  ;;  %v16595_v14 = vld [vmem:[#allocation222_spill] sm:$0xff] }
 0x8a6   : > { %v5491_v33 = vmul.f32 %v16595_v14, %v14118_v60 }
 0x8a7   : > { %5834 = vrot.lane.b32.xlu0 %v5487_v29, %s7254_s28  ;;  %v14277_v29 = vsel %vm3197_vm14, %v5175_v46, %v5659_v11  ;;  %v7216_v46 = vld [vmem:[%s14892_s8 + $0x20] sm:$0xff] }
 0x8a8   : > { %5832 = vrot.lane.b32.xlu1 %v5486_v32, %s7254_s28  ;;  %v16594_v32 = vld [vmem:[#allocation173_spill] sm:$0xff]  ;;  %v5176_v11 = vmul.f32 %v7216_v46, %v13906_v2  ;;  %v5179_v46 = vmul.f32 %v7217_v15, %v13918_v45 }
 0x8a9   : > { %v5488_v48 = vmul.f32 %v16594_v32, %v14106_v9  ;;  %v16597_v32 = vld [vmem:[#allocation10_spill] sm:$0xff]  ;;  %v5667_v14 = vpop.permute.xlu0 %5666 }
 0x8aa   : > { %v5490_v19 = vmul.f32 %v16597_v32, %v14123_v53  ;;  %v7218_v32 = vld [vmem:[%s14892_s8 + $0x30] sm:$0xff] }
 0x8ab   : > { %5838 = vrot.lane.b32.xlu0 %v5489_v31, %s7254_s28  ;;  %v14297_v31 = vsel %vm3197_vm14, %v5177_v61, %v5663_v24  ;;  %v16599_v61 = vld [vmem:[#allocation85_spill] sm:$0xff] }
 0x8ac   : > { %5836 = vrot.lane.b32.xlu1 %v5488_v48, %s7254_s28  ;;  %16596 = vst [vmem:[#allocation51_spill] sm:$0xff] %v14297_v31  ;;  %v5661_v48 = vpop.permute.xlu1 %5660  ;;  %v5589_v24 = vmul.f32 %v16599_v61, %v13870_v6  ;;  %v7219_v6 = vld [vmem:[%s14892_s8 + $0x48] sm:$0xff]  ;;  %v16601_v61 = vld [vmem:[#allocation252_spill] sm:$0xff] }
 0x8ad   : > { %v14302_v16 = vsel %vm3197_vm14, %v5176_v11, %v5661_v48  ;;  %v5178_v11 = vmul.f32 %v7218_v32, %v13924_v37  ;;  %v5181_v15 = vmul.f32 %v7219_v6, %v13934_v55  ;;  %v5671_v32 = vpop.permute.xlu0 %5670 }
 0x8ae   : > { %16598 = vst [vmem:[#allocation47_spill] sm:$0xff] %v14302_v16 }
 0x8af   : > { %5842 = vrot.lane.b32.xlu0 %v5491_v33, %s7254_s28  ;;  %v16600_v33 = vld [vmem:[#allocation43_spill] sm:$0xff] }
 0x8b0   : > { %5840 = vrot.lane.b32.xlu1 %v5490_v19, %s7254_s28  ;;  %v5588_v48 = vmul.f32 %v16600_v33, %v13875_v0  ;;  %v14319_v19 = vsel %vm3197_vm14, %v5179_v46, %v5667_v14  ;;  %v5665_v16 = vpop.permute.xlu1 %5664  ;;  %v5591_v0 = vmul.f32 %v16601_v61, %v13884_v13  ;;  %v7220_v46 = vld [vmem:[%s14892_s8 + $0x40] sm:$0xff]  ;;  %v7221_v13 = vld [vmem:[%s14892_s8 + $0x58] sm:$0xff]  ;;  %v16603_v61 = vld [vmem:[#allocation218_spill] sm:$0xff] }
 0x8b1   : > { %v14322_v31 = vsel %vm3197_vm14, %v5178_v11, %v5665_v16  ;;  %v5180_v16 = vmul.f32 %v7220_v46, %v13938_v38  ;;  %v14339_v11 = vsel %vm3197_vm14, %v5181_v15, %v5671_v32  ;;  %v5183_v6 = vmul.f32 %v7221_v13, %v13952_v23  ;;  %v5675_v46 = vpop.permute.xlu0 %5674  ;;  %v7222_v15 = vld [vmem:[%s14892_s8 + $0x50] sm:$0xff] }
 0x8b2   : > { %v5182_v32 = vmul.f32 %v7222_v15, %v13956_v20 }
 0x8b3   : > { %5910 = vrot.lane.b32.xlu0 %v5589_v24, %s7266_s26  ;;  %v16602_v24 = vld [vmem:[#allocation12_spill] sm:$0xff] }
 0x8b4   : > { %5908 = vrot.lane.b32.xlu1 %v5588_v48, %s7266_s26  ;;  %v5590_v14 = vmul.f32 %v16602_v24, %v13888_v36  ;;  %v5669_v33 = vpop.permute.xlu1 %5668  ;;  %v5593_v36 = vmul.f32 %v16603_v61, %v13902_v40  ;;  %v14359_v24 = vsel %vm3197_vm14, %v5183_v6, %v5675_v46  ;;  %v7223_v40 = vld [vmem:[%s14892_s8 + $0x68] sm:$0xff]  ;;  %v16605_v61 = vld [vmem:[#allocation224_spill] sm:$0xff] }
 0x8b5   : > { %v14342_v48 = vsel %vm3197_vm14, %v5180_v16, %v5669_v33  ;;  %v5185_v13 = vmul.f32 %v7223_v40, %v13968_v34  ;;  %v5679_v15 = vpop.permute.xlu0 %5678  ;;  %v7224_v6 = vld [vmem:[%s14892_s8 + $0x60] sm:$0xff] }
 0x8b6   : > { %v5184_v46 = vmul.f32 %v7224_v6, %v13974_v10 }
 0x8b7   : > { %5914 = vrot.lane.b32.xlu0 %v5591_v0, %s7266_s26  ;;  %v16604_v0 = vld [vmem:[#allocation184_spill] sm:$0xff] }
 0x8b8   : > { %5912 = vrot.lane.b32.xlu1 %v5590_v14, %s7266_s26  ;;  %v5592_v16 = vmul.f32 %v16604_v0, %v13906_v2  ;;  %v5673_v14 = vpop.permute.xlu1 %5672  ;;  %v5595_v2 = vmul.f32 %v16605_v61, %v13918_v45  ;;  %v14379_v0 = vsel %vm3197_vm14, %v5185_v13, %v5679_v15  ;;  %v7225_v45 = vld [vmem:[%s14892_s8 + $0x78] sm:$0xff]  ;;  %v7226_v13 = vld [vmem:[%s14892_s8 + $0x70] sm:$0xff] }
 0x8b9   : > { %v14362_v33 = vsel %vm3197_vm14, %v5182_v32, %v5673_v14  ;;  %v5187_v40 = vmul.f32 %v7225_v45, %v13984_v35  ;;  %v5683_v61 = vpop.permute.xlu0 %5682  ;;  %v5186_v15 = vmul.f32 %v7226_v13, %v13988_v49  ;;  %v7228_v45 = vld [vmem:[%s14892_s8 + $0x80] sm:$0xff] }
 0x8bb   : > { %5918 = vrot.lane.b32.xlu0 %v5593_v36, %s7266_s26  ;;  %v16606_v36 = vld [vmem:[#allocation130_spill] sm:$0xff]  ;;  %v14399_v6 = vsel %vm3197_vm14, %v5187_v40, %v5683_v61  ;;  %v5188_v40 = vmul.f32 %v7228_v45, %v14006_v4  ;;  %v7232_v45 = vld [vmem:[%s14892_s8 + $0xa0] sm:$0xff] }
 0x8bc   : > { %5916 = vrot.lane.b32.xlu1 %v5592_v16, %s7266_s26  ;;  %v5594_v32 = vmul.f32 %v16606_v36, %v13924_v37  ;;  %v5677_v16 = vpop.permute.xlu1 %5676  ;;  %v5605_v37 = vmul.f32 %v14146_v12, %v14002_v21  ;;  %v7227_v12 = vld [vmem:[%s14892_s8 + $0x88] sm:$0xff] }
 0x8bd   : > { %v14382_v14 = vsel %vm3197_vm14, %v5184_v46, %v5677_v16  ;;  %v5687_v16 = vpop.permute.xlu0 %5686 }
 0x8bf   : > { %5922 = vrot.lane.b32.xlu0 %v5595_v2, %s7266_s26  ;;  %v5604_v2 = vmul.f32 %v14149_v58, %v14006_v4  ;;  %v5607_v58 = vmul.f32 %v14158_v63, %v14018_v3  ;;  %v5609_v63 = vmul.f32 %v14172_v17, %v14034_v41  ;;  %v5611_v17 = vmul.f32 %v14184_v56, %v14052_v57 }
 0x8c0   : > { %5920 = vrot.lane.b32.xlu1 %v5594_v32, %s7266_s26  ;;  %v5681_v46 = vpop.permute.xlu1 %5680  ;;  %v5189_v32 = vmul.f32 %v7227_v12, %v14002_v21  ;;  %v7229_v21 = vld [vmem:[%s14892_s8 + $0x98] sm:$0xff]  ;;  %v5608_v12 = vmul.f32 %v14175_v27, %v14038_v5  ;;  %v5612_v56 = vmul.f32 %v14201_v59, %v14074_v52 }
 0x8c1   : > { %v14402_v36 = vsel %vm3197_vm14, %v5186_v15, %v5681_v46  ;;  %v5191_v4 = vmul.f32 %v7229_v21, %v14018_v3  ;;  %v7231_v3 = vld [vmem:[%s14892_s8 + $0xa8] sm:$0xff] }
 0x8c2   : > { %v14419_v61 = vsel %vm3197_vm14, %v5189_v32, %v5687_v16 }
 0x8c3   : > { %5942 = vrot.lane.b32.xlu0 %v5605_v37, %s7266_s26  ;;  %v5606_v37 = vmul.f32 %v14162_v54, %v14024_v18  ;;  %v5691_v54 = vpop.permute.xlu0 %5690 }
 0x8c4   : > { %5940 = vrot.lane.b32.xlu1 %v5604_v2, %s7266_s26  ;;  %v5685_v13 = vpop.permute.xlu1 %5684  ;;  %v7230_v2 = vld [vmem:[%s14892_s8 + $0x90] sm:$0xff]  ;;  %v14439_v32 = vsel %vm3197_vm14, %v5191_v4, %v5691_v54 }
 0x8c5   : > { %v14422_v15 = vsel %vm3197_vm14, %v5188_v40, %v5685_v13  ;;  %v5190_v46 = vmul.f32 %v7230_v2, %v14024_v18  ;;  %v5193_v18 = vmul.f32 %v7231_v3, %v14034_v41  ;;  %v5192_v40 = vmul.f32 %v7232_v45, %v14038_v5  ;;  %v7233_v41 = vld [vmem:[%s14892_s8 + $0xb8] sm:$0xff]  ;;  %v16607_v2 = vld [vmem:[#allocation196_spill] sm:$0xff] }
 0x8c6   : > { %v5195_v5 = vmul.f32 %v7233_v41, %v14052_v57  ;;  %v7235_v57 = vld [vmem:[%s14892_s8 + $0xc8] sm:$0xff]  ;;  %v7238_v41 = vld [vmem:[%s14892_s8 + $0xd0] sm:$0xff] }
 0x8c7   : > { %5946 = vrot.lane.b32.xlu0 %v5607_v58, %s7266_s26  ;;  %v5695_v27 = vpop.permute.xlu0 %5694 }
 0x8c8   : > { %5944 = vrot.lane.b32.xlu1 %v5606_v37, %s7266_s26  ;;  %v5689_v58 = vpop.permute.xlu1 %5688  ;;  %v5610_v37 = vmul.f32 %v14188_v7, %v14056_v22  ;;  %v14459_v13 = vsel %vm3197_vm14, %v5193_v18, %v5695_v27  ;;  %v7236_v18 = vld [vmem:[%s14892_s8 + $0xc0] sm:$0xff] }
 0x8c9   : > { %v14442_v16 = vsel %vm3197_vm14, %v5190_v46, %v5689_v58  ;;  %v5596_v46 = vmul.f32 %v16607_v2, %v13938_v38  ;;  %v5613_v38 = vmul.f32 %v14198_v44, %v14068_v47  ;;  %v16608_v27 = vld [vmem:[#allocation160_spill] sm:$0xff] }
 0x8ca   : > { %v5597_v45 = vmul.f32 %v16608_v27, %v13934_v55  ;;  %v5614_v55 = vmul.f32 %v14214_v50, %v14088_v43  ;;  %v7239_v50 = vld [vmem:[%s14892_s8 + $0xe8] sm:$0xff] }
 0x8cb   : > { %5950 = vrot.lane.b32.xlu0 %v5609_v63, %s7266_s26  ;;  %v7234_v63 = vld [vmem:[%s14892_s8 + $0xb0] sm:$0xff] }
 0x8cc   : > { %5948 = vrot.lane.b32.xlu1 %v5608_v12, %s7266_s26  ;;  %v5693_v21 = vpop.permute.xlu1 %5692  ;;  %v5699_v7 = vpop.permute.xlu0 %5698  ;;  %v5194_v54 = vmul.f32 %v7234_v63, %v14056_v22  ;;  %v5197_v22 = vmul.f32 %v7235_v57, %v14068_v47  ;;  %v7237_v47 = vld [vmem:[%s14892_s8 + $0xd8] sm:$0xff] }
 0x8cd   : > { %v14462_v4 = vsel %vm3197_vm14, %v5192_v40, %v5693_v21  ;;  %v14479_v12 = vsel %vm3197_vm14, %v5195_v5, %v5699_v7  ;;  %v5198_v5 = vmul.f32 %v7238_v41, %v14088_v43  ;;  %v5201_v43 = vmul.f32 %v7239_v50, %v14102_v42  ;;  %v16614_v50 = vld [vmem:[#allocation47_spill] sm:$0xff] }
 0x8ce   : > { %v5601_v41 = vmul.f32 %v14116_v26, %v13968_v34  ;;  %v16611_v26 = vld [vmem:[#allocation156_spill] sm:$0xff] }
 0x8cf   : > { %5954 = vrot.lane.b32.xlu0 %v5611_v17, %s7266_s26  ;;  %v5196_v17 = vmul.f32 %v7236_v18, %v14074_v52  ;;  %v5199_v52 = vmul.f32 %v7237_v47, %v14084_v30  ;;  %v5600_v47 = vmul.f32 %v14121_v8, %v13974_v10  ;;  %v5618_v8 = vmul.f32 %v14240_v39, %v14123_v53 }
 0x8d0   : > { %5952 = vrot.lane.b32.xlu1 %v5610_v37, %s7266_s26  ;;  %v5697_v58 = vpop.permute.xlu1 %5696 }
 0x8d1   : > { %v14482_v3 = vsel %vm3197_vm14, %v5194_v54, %v5697_v58  ;;  %v5703_v59 = vpop.permute.xlu0 %5702  ;;  %v7240_v58 = vld [vmem:[%s14892_s8 + $0xe0] sm:$0xff] }
 0x8d2   : > { %v14499_v40 = vsel %vm3197_vm14, %v5197_v22, %v5703_v59  ;;  %v5200_v57 = vmul.f32 %v7240_v58, %v14106_v9  ;;  %v16610_v22 = vld [vmem:[#allocation77_spill] sm:$0xff] }
 0x8d3   : > { %5956 = vrot.lane.b32.xlu0 %v5612_v56, %s7266_s26  ;;  %v16609_v56 = vld [vmem:[#allocation42_spill] sm:$0xff] }
 0x8d4   : > { %5924 = vrot.lane.b32.xlu1 %v5596_v46, %s7266_s26  ;;  %v5701_v37 = vpop.permute.xlu1 %5700  ;;  %v5598_v7 = vmul.f32 %v16609_v56, %v13956_v20  ;;  %v5615_v20 = vmul.f32 %v14210_v28, %v14084_v30  ;;  %v7241_v30 = vld [vmem:[%s14892_s8 + $0xf8] sm:$0xff]  ;;  %v5602_v56 = vmul.f32 %v14136_v51, %v13988_v49 }
 0x8d5   : > { %v14502_v21 = vsel %vm3197_vm14, %v5196_v17, %v5701_v37  ;;  %v5203_v28 = vmul.f32 %v7241_v30, %v14118_v60  ;;  %v16613_v51 = vld [vmem:[#allocation51_spill] sm:$0xff] }
 0x8d7   : > { %5958 = vrot.lane.b32.xlu0 %v5613_v38, %s7266_s26  ;;  %v5599_v38 = vmul.f32 %v16610_v22, %v13952_v23  ;;  %v5616_v23 = vmul.f32 %v14227_v1, %v14106_v9  ;;  %v5617_v9 = vmul.f32 %v14224_v25, %v14102_v42 }
 0x8d8   : > { %5926 = vrot.lane.b32.xlu1 %v5597_v45, %s7266_s26  ;;  %v5707_v44 = vpop.permute.xlu0 %5706  ;;  %v7242_v45 = vld [vmem:[%s14892_s8 + $0xf0] sm:$0xff] }
 0x8d9   : > { %v14519_v63 = vsel %vm3197_vm14, %v5199_v52, %v5707_v44  ;;  %v5705_v54 = vpop.permute.xlu1 %5704  ;;  %v5202_v37 = vmul.f32 %v7242_v45, %v14123_v53  ;;  %v5619_v53 = vmul.f32 %v16611_v26, %v14118_v60 }
 0x8da   : > { %v14522_v2 = vsel %vm3197_vm14, %v5198_v5, %v5705_v54 }
 0x8db   : > { %5960 = vrot.lane.b32.xlu0 %v5614_v55, %s7266_s26 }
 0x8dc   : > { %5928 = vrot.lane.b32.xlu1 %v5598_v7, %s7266_s26  ;;  %v5711_v46 = vpop.permute.xlu0 %5710  ;;  %v16612_v7 = vld [vmem:[#allocation44_spill] sm:$0xff] }
 0x8dd   : > { %v14539_v59 = vsel %vm3197_vm14, %v5201_v43, %v5711_v46  ;;  %v5709_v18 = vpop.permute.xlu1 %5708  ;;  %v5603_v49 = vmul.f32 %v16612_v7, %v13984_v35 }
 0x8de   : > { %v14542_v17 = vsel %vm3197_vm14, %v5200_v57, %v5709_v18 }
 0x8df   : > { %5962 = vrot.lane.b32.xlu0 %v5615_v20, %s7266_s26 }
 0x8e0   : > { %5930 = vrot.lane.b32.xlu1 %v5599_v38, %s7266_s26 }
 0x8e1   : > { %v5715_v27 = vpop.permute.xlu0 %5714 }
 0x8e2   : > { %v14559_v52 = vsel %vm3197_vm14, %v5203_v28, %v5715_v27  ;;  %v5713_v55 = vpop.permute.xlu1 %5712 }
 0x8e3   : > { %v14562_v44 = vsel %vm3197_vm14, %v5202_v37, %v5713_v55  ;;  %5964 = vrot.lane.b32.xlu0 %v5616_v23, %s7266_s26 }
 0x8e4   : > { %5932 = vrot.lane.b32.xlu1 %v5600_v47, %s7266_s26 }
 0x8e5   : > { %v14568_v1 = vpop.permute.xlu0 %5782 }
 0x8e6   : > { %v14572_v10 = vpop.permute.xlu1 %5780 }
 0x8e7   : > { %5966 = vrot.lane.b32.xlu0 %v5617_v9, %s7266_s26 }
 0x8e8   : > { %5934 = vrot.lane.b32.xlu1 %v5601_v41, %s7266_s26 }
 0x8e9   : > { %v5787_v5 = vpop.permute.xlu0 %5786 }
 0x8ea   : > { %v14582_v42 = vsel %vm482_vm0, %v14277_v29, %v5787_v5  ;;  %v5785_v25 = vpop.permute.xlu1 %5784 }
 0x8eb   : > { %v14586_v34 = vsel %vm482_vm0, %v14282_v62, %v5785_v25  ;;  %5968 = vrot.lane.b32.xlu0 %v5618_v8, %s7266_s26 }
 0x8ec   : > { %5936 = vrot.lane.b32.xlu1 %v5602_v56, %s7266_s26 }
 0x8ed   : > { %v5791_v39 = vpop.permute.xlu0 %5790 }
 0x8ee   : > { %v14596_v29 = vsel %vm482_vm0, %v16613_v51, %v5791_v39  ;;  %v5789_v54 = vpop.permute.xlu1 %5788 }
 0x8ef   : > { %v14600_v62 = vsel %vm482_vm0, %v16614_v50, %v5789_v54  ;;  %5970 = vrot.lane.b32.xlu0 %v5619_v53, %s7266_s26  ;;  %v16616_v54 = vld [vmem:[#allocation55_spill] sm:$0xff] }
 0x8f0   : > { %5938 = vrot.lane.b32.xlu1 %v5603_v49, %s7266_s26  ;;  %v16615_v49 = vld [vmem:[#allocation102_spill] sm:$0xff] }
 0x8f1   : > { %v5795_v43 = vpop.permute.xlu0 %5794 }
 0x8f2   : > { %v14606_v60 = vsel %vm482_vm0, %v14319_v19, %v5795_v43  ;;  %v5793_v20 = vpop.permute.xlu1 %5792 }
 0x8f3   : > { %v14610_v35 = vsel %vm482_vm0, %v14322_v31, %v5793_v20  ;;  %v14700_v20 = vld [vmem:[%s14895_s11] ss:$0 sm:$0xff] }
 0x8f5   : > { %v5799_v46 = vpop.permute.xlu0 %5798 }
 0x8f6   : > { %v14614_v58 = vsel %vm482_vm0, %v14339_v11, %v5799_v46  ;;  %v5797_v57 = vpop.permute.xlu1 %5796 }
 0x8f7   : > { %v14618_v22 = vsel %vm482_vm0, %v14342_v48, %v5797_v57  ;;  %v16617_v57 = vld [vmem:[#allocation115_spill] sm:$0xff] }
 0x8f9   : > { %v5803_v38 = vpop.permute.xlu0 %5802 }
 0x8fa   : > { %v14622_v19 = vsel %vm482_vm0, %v14359_v24, %v5803_v38  ;;  %v5801_v18 = vpop.permute.xlu1 %5800 }
 0x8fb   : > { %v14626_v31 = vsel %vm482_vm0, %v14362_v33, %v5801_v18  ;;  %v16618_v18 = vld [vmem:[#allocation64_spill] sm:$0xff] }
 0x8fd   : > { %v5807_v30 = vpop.permute.xlu0 %5806 }
 0x8fe   : > { %v14630_v11 = vsel %vm482_vm0, %v14379_v0, %v5807_v30  ;;  %v5805_v28 = vpop.permute.xlu1 %5804 }
 0x8ff   : > { %v14634_v48 = vsel %vm482_vm0, %v14382_v14, %v5805_v28 }
 0x901   : > { %v5811_v23 = vpop.permute.xlu0 %5810 }
 0x902   : > { %v14638_v24 = vsel %vm482_vm0, %v14399_v6, %v5811_v23  ;;  %v5809_v27 = vpop.permute.xlu1 %5808  ;;  %v16619_v23 = vld [vmem:[#allocation138_spill] sm:$0xff] }
 0x903   : > { %v14642_v33 = vsel %vm482_vm0, %v14402_v36, %v5809_v27  ;;  %v16620_v27 = vld [vmem:[#allocation62_spill] sm:$0xff] }
 0x905   : > { %v14644_v45 = vpop.permute.xlu0 %5814 }
 0x906   : > { %v14646_v37 = vpop.permute.xlu1 %5812 }
 0x909   : > { %v14648_v0 = vpop.permute.xlu0 %5818 }
 0x90a   : > { %v14650_v47 = vpop.permute.xlu1 %5816 }
 0x90d   : > { %v14652_v14 = vpop.permute.xlu0 %5822 }
 0x90e   : > { %v14654_v55 = vpop.permute.xlu1 %5820 }
 0x911   : > { %v14656_v9 = vpop.permute.xlu0 %5826 }
 0x912   : > { %v14658_v6 = vpop.permute.xlu1 %5824 }
 0x915   : > { %v14660_v41 = vpop.permute.xlu0 %5830 }
 0x916   : > { %v14662_v36 = vpop.permute.xlu1 %5828 }
 0x919   : > { %v5835_v8 = vpop.permute.xlu0 %5834 }
 0x91a   : > { %v14666_v5 = vsel %vm482_vm0, %v14519_v63, %v5835_v8  ;;  %v5833_v56 = vpop.permute.xlu1 %5832  ;;  %v14683_v63 = vld [vmem:[%s14894_s10] ss:$0 sm:$0xff]  ;;  %v6036_v8 = vsel %vm482_vm0, %v16620_v27, %v14572_v10 }
 0x91b   : > { %v14670_v25 = vsel %vm482_vm0, %v14522_v2, %v5833_v56  ;;  %v6433_v51 = vmul.f32 %v14683_v63, %v16615_v49  ;;  %v6432_v50 = vmul.f32 %v14683_v63, %v16616_v54  ;;  %v6435_v38 = vmul.f32 %v14683_v63, %v16617_v57  ;;  %v16622_v57 = vld [vmem:[#allocation60_spill] sm:$0xff] }
 0x91d   : > { %v5839_v26 = vpop.permute.xlu0 %5838  ;;  %v6472_v46 = vadd.f32 %v14700_v20, %v6433_v51  ;;  %v6471_v28 = vadd.f32 %v14700_v20, %v6432_v50 }
 0x91e   : > { %v14674_v53 = vsel %vm482_vm0, %v14539_v59, %v5839_v26  ;;  %v5837_v39 = vpop.permute.xlu1 %5836 }
 0x91f   : > { %v14678_v7 = vsel %vm482_vm0, %v14542_v17, %v5837_v39 }
 0x921   : > { %v5843_v2 = vpop.permute.xlu0 %5842 }
 0x922   : > { %v14691_v59 = vsel %vm482_vm0, %v14559_v52, %v5843_v2  ;;  %v5841_v43 = vpop.permute.xlu1 %5840  ;;  %v6037_v52 = vsel %vm482_vm0, %v16618_v18, %v14568_v1  ;;  %v6474_v2 = vadd.f32 %v14700_v20, %v6435_v38  ;;  %v16621_v1 = vld [vmem:[#allocation112_spill] sm:$0xff]  ;;  %v6436_v18 = vmul.f32 %v14683_v63, %v16622_v57 }
 0x923   : > { %v14695_v17 = vsel %vm482_vm0, %v14562_v44, %v5841_v43  ;;  %v6434_v44 = vmul.f32 %v14683_v63, %v16619_v23  ;;  %v6437_v54 = vmul.f32 %v14683_v63, %v16621_v1  ;;  %v16623_v23 = vld [vmem:[#allocation119_spill] sm:$0xff] }
 0x924   : > { %v6439_v27 = vmul.f32 %v14683_v63, %v16623_v23  ;;  %v16627_v23 = vld [vmem:[#allocation203_spill] sm:$0xff] }
 0x925   : > { %v5911_v30 = vpop.permute.xlu0 %5910  ;;  %v6473_v43 = vadd.f32 %v14700_v20, %v6434_v44  ;;  %v6476_v38 = vadd.f32 %v14700_v20, %v6437_v54  ;;  %v6475_v44 = vadd.f32 %v14700_v20, %v6436_v18  ;;  %v16625_v54 = vld [vmem:[#allocation233_spill] sm:$0xff]  ;;  %v16626_v18 = vld [vmem:[#allocation66_spill] sm:$0xff] }
 0x926   : > { %v6069_v56 = vsel %vm3262_vm15, %v6037_v52, %v5911_v30  ;;  %v5909_v26 = vpop.permute.xlu1 %5908  ;;  %v6478_v1 = vadd.f32 %v14700_v20, %v6439_v27  ;;  %v6451_v27 = vmul.f32 %v14683_v63, %v16627_v23 }
 0x927   : > { %v6504_v39 = vadd.f32 %v6472_v46, %v6069_v56  ;;  %v6068_v49 = vsel %vm3262_vm15, %v6036_v8, %v5909_v26  ;;  %v16624_v56 = vld [vmem:[#allocation114_spill] sm:$0xff] }
 0x928   : > { %v6503_v51 = vadd.f32 %v6471_v28, %v6068_v49  ;;  %v6438_v26 = vmul.f32 %v14683_v63, %v16624_v56  ;;  %v16628_v56 = vld [vmem:[#allocation200_spill] sm:$0xff] }
 0x929   : > { %v5915_v50 = vpop.permute.xlu0 %5914 }
 0x92a   : > { %v6071_v10 = vsel %vm3262_vm15, %v14582_v42, %v5915_v50  ;;  %v5913_v52 = vpop.permute.xlu1 %5912  ;;  %6535 = vxpose.xlu1.b32.start [1/16] (narrow) %v6503_v51, 8  ;;  %v6449_v50 = vmul.f32 %v14683_v63, %v16625_v54  ;;  %v6477_v57 = vadd.f32 %v14700_v20, %v6438_v26 }
 0x92b   : > { %v6506_v46 = vadd.f32 %v6474_v2, %v6071_v10  ;;  %v6070_v30 = vsel %vm3262_vm15, %v14586_v34, %v5913_v52  ;;  %v6448_v10 = vmul.f32 %v14683_v63, %v16626_v18 }
 0x92c   : > { %v6505_v28 = vadd.f32 %v6473_v43, %v6070_v30 }
 0x92d   : > { %v5919_v8 = vpop.permute.xlu0 %5918 }
 0x92e   : > { %v6073_v42 = vsel %vm3262_vm15, %v14596_v29, %v5919_v8  ;;  %v5917_v49 = vpop.permute.xlu1 %5916  ;;  %6536 = vxpose.xlu1.b32.cont [2/16] (narrow) %v6504_v39, 8  ;;  %v6053_v8 = vsel %vm482_vm0, %v14419_v61, %v14644_v45  ;;  %v6490_v61 = vadd.f32 %v14700_v20, %v6451_v27  ;;  %v16629_v45 = vld [vmem:[#allocation104_spill] sm:$0xff]  ;;  %v16632_v27 = vld [vmem:[#allocation235_spill] sm:$0xff] }
 0x92f   : > { %v6508_v51 = vadd.f32 %v6476_v38, %v6073_v42  ;;  %v6072_v34 = vsel %vm3262_vm15, %v14600_v62, %v5917_v49  ;;  %v6488_v38 = vadd.f32 %v14700_v20, %v6449_v50  ;;  %v6453_v54 = vmul.f32 %v14683_v63, %v16629_v45  ;;  %v16630_v50 = vld [vmem:[#allocation153_spill] sm:$0xff] }
 0x930   : > { %v6507_v2 = vadd.f32 %v6475_v44, %v6072_v34 }
 0x931   : > { %v5923_v43 = vpop.permute.xlu0 %5922 }
 0x932   : > { %v6075_v29 = vsel %vm3262_vm15, %v14606_v60, %v5923_v43  ;;  %v5921_v39 = vpop.permute.xlu1 %5920  ;;  %6537 = vxpose.xlu1.b32.cont [3/16] (narrow) %v6505_v28, 8  ;;  %v6487_v60 = vadd.f32 %v14700_v20, %v6448_v10  ;;  %v6450_v28 = vmul.f32 %v14683_v63, %v16628_v56  ;;  %v6452_v43 = vmul.f32 %v14683_v63, %v16630_v50 }
 0x933   : > { %v14744_v52 = vadd.f32 %v6478_v1, %v6075_v29  ;;  %v6074_v62 = vsel %vm3262_vm15, %v14610_v35, %v5921_v39  ;;  %v6052_v35 = vsel %vm482_vm0, %v14422_v15, %v14646_v37  ;;  %v6055_v15 = vsel %vm482_vm0, %v14439_v32, %v14648_v0  ;;  %v16631_v0 = vld [vmem:[#allocation187_spill] sm:$0xff] }
 0x934   : > { %v6509_v30 = vadd.f32 %v6477_v57, %v6074_v62  ;;  %v6489_v57 = vadd.f32 %v14700_v20, %v6450_v28  ;;  %v6491_v32 = vadd.f32 %v14700_v20, %v6452_v43  ;;  %v6455_v23 = vmul.f32 %v14683_v63, %v16631_v0  ;;  %v16635_v43 = vld [vmem:[#allocation120_spill] sm:$0xff] }
 0x935   : > { %v5943_v44 = vpop.permute.xlu0 %5942 }
 0x936   : > { %v6085_v26 = vsel %vm3262_vm15, %v6053_v8, %v5943_v44  ;;  %v5941_v42 = vpop.permute.xlu1 %5940  ;;  %6538 = vxpose.xlu1.b32.cont [4/16] (narrow) %v6506_v46, 8  ;;  %v6054_v46 = vsel %vm482_vm0, %v14442_v16, %v14650_v47  ;;  %v6057_v16 = vsel %vm482_vm0, %v14459_v13, %v14652_v14  ;;  %v6454_v8 = vmul.f32 %v14683_v63, %v16632_v27 }
 0x937   : > { %v6520_v49 = vadd.f32 %v6488_v38, %v6085_v26  ;;  %v6084_v34 = vsel %vm3262_vm15, %v6052_v35, %v5941_v42  ;;  %v6492_v38 = vadd.f32 %v14700_v20, %v6453_v54  ;;  %v16633_v26 = vld [vmem:[#allocation140_spill] sm:$0xff]  ;;  %v6494_v14 = vadd.f32 %v14700_v20, %v6455_v23  ;;  %v16634_v42 = vld [vmem:[#allocation69_spill] sm:$0xff] }
 0x938   : > { %v6519_v1 = vadd.f32 %v6487_v60, %v6084_v34  ;;  %v6440_v13 = vmul.f32 %v14683_v63, %v16633_v26  ;;  %v6456_v34 = vmul.f32 %v14683_v63, %v16634_v42  ;;  %v16638_v23 = vld [vmem:[#allocation141_spill] sm:$0xff] }
 0x939   : > { %v5947_v37 = vpop.permute.xlu0 %5946 }
 0x93a   : > { %v6087_v18 = vsel %vm3262_vm15, %v6055_v15, %v5947_v37  ;;  %v5945_v10 = vpop.permute.xlu1 %5944  ;;  %6567 = vxpose.xlu0.b32.start [1/16] (narrow) %v6519_v1, 8  ;;  %6539 = vxpose.xlu1.b32.cont [5/16] (narrow) %v6507_v2, 8  ;;  %v6056_v2 = vsel %vm482_vm0, %v14462_v4, %v14654_v55  ;;  %v6059_v4 = vsel %vm482_vm0, %v14479_v12, %v14656_v9 }
 0x93b   : > { %v6522_v29 = vadd.f32 %v6490_v61, %v6087_v18  ;;  %v6086_v39 = vsel %vm3262_vm15, %v6054_v46, %v5945_v10  ;;  %v6457_v15 = vmul.f32 %v14683_v63, %v16635_v43  ;;  %v6495_v12 = vadd.f32 %v14700_v20, %v6456_v34 }
 0x93c   : > { %v6521_v62 = vadd.f32 %v6489_v57, %v6086_v39  ;;  %v6060_v9 = vsel %vm482_vm0, %v14502_v21, %v14662_v36  ;;  %v16637_v21 = vld [vmem:[#allocation199_spill] sm:$0xff] }
 0x93d   : > { %v5951_v47 = vpop.permute.xlu0 %5950  ;;  %v6458_v36 = vmul.f32 %v14683_v63, %v16637_v21  ;;  %v16646_v21 = vld [vmem:[#allocation198_spill] sm:$0xff] }
 0x93e   : > { %v6089_v44 = vsel %vm3262_vm15, %v6057_v16, %v5951_v47  ;;  %v5949_v60 = vpop.permute.xlu1 %5948  ;;  %6540 = vxpose.xlu1.b32.cont [6/16] (narrow) %v6508_v51, 8  ;;  %6568 = vxpose.xlu0.b32.cont [2/16] (narrow) %v6520_v49, 8  ;;  %v6493_v51 = vadd.f32 %v14700_v20, %v6454_v8  ;;  %v6058_v49 = vsel %vm482_vm0, %v14482_v3, %v14658_v6  ;;  %v16636_v3 = vld [vmem:[#allocation125_spill] sm:$0xff]  ;;  %v16639_v8 = vld [vmem:[#allocation172_spill] sm:$0xff] }
 0x93f   : > { %v6524_v56 = vadd.f32 %v6492_v38, %v6089_v44  ;;  %v6088_v28 = vsel %vm3262_vm15, %v6056_v2, %v5949_v60  ;;  %v6441_v6 = vmul.f32 %v14683_v63, %v16636_v3  ;;  %v6061_v38 = vsel %vm482_vm0, %v14499_v40, %v14660_v41  ;;  %v16640_v44 = vld [vmem:[#allocation8_spill] sm:$0xff] }
 0x940   : > { %v6523_v35 = vadd.f32 %v6491_v32, %v6088_v28  ;;  %v6459_v2 = vmul.f32 %v14683_v63, %v16639_v8  ;;  %v6497_v40 = vadd.f32 %v14700_v20, %v6458_v36  ;;  %v6443_v60 = vmul.f32 %v14683_v63, %v16640_v44 }
 0x941   : > { %v5955_v55 = vpop.permute.xlu0 %5954  ;;  %v6480_v0 = vadd.f32 %v14700_v20, %v6441_v6  ;;  %v6447_v36 = vmul.f32 %v14683_v63, %v16646_v21 }
 0x942   : > { %v6091_v1 = vsel %vm3262_vm15, %v6059_v4, %v5955_v55  ;;  %v5953_v61 = vpop.permute.xlu1 %5952  ;;  %6541 = vxpose.xlu1.b32.cont [7/16] (narrow) %v6509_v30, 8  ;;  %6569 = vxpose.xlu0.b32.cont [3/16] (narrow) %v6521_v62, 8  ;;  %v6479_v30 = vadd.f32 %v14700_v20, %v6440_v13  ;;  %v6496_v62 = vadd.f32 %v14700_v20, %v6457_v15  ;;  %v16641_v55 = vld [vmem:[#allocation151_spill] sm:$0xff] }
 0x943   : > { %v6526_v45 = vadd.f32 %v6494_v14, %v6091_v1  ;;  %v6090_v54 = vsel %vm3262_vm15, %v6058_v49, %v5953_v61  ;;  %v6498_v42 = vadd.f32 %v14700_v20, %v6459_v2  ;;  %v6482_v4 = vadd.f32 %v14700_v20, %v6443_v60 }
 0x944   : > { %v6525_v50 = vadd.f32 %v6493_v51, %v6090_v54  ;;  %v6444_v51 = vmul.f32 %v14683_v63, %v16641_v55  ;;  %v16642_v54 = vld [vmem:[#allocation163_spill] sm:$0xff] }
 0x945   : > { %v5957_v37 = vpop.permute.xlu0 %5956  ;;  %v6445_v43 = vmul.f32 %v14683_v63, %v16642_v54 }
 0x946   : > { %v6092_v57 = vsel %vm3262_vm15, %v6060_v9, %v5957_v37  ;;  %v5925_v46 = vpop.permute.xlu1 %5924  ;;  %6542 = vxpose.xlu1.b32.cont [8/16] (narrow) %v14744_v52, 8  ;;  %6570 = vxpose.xlu0.b32.cont [4/16] (narrow) %v6522_v29, 8  ;;  %v6442_v52 = vmul.f32 %v14683_v63, %v16638_v23  ;;  %v6483_v15 = vadd.f32 %v14700_v20, %v6444_v51 }
 0x947   : > { %v6527_v18 = vadd.f32 %v6495_v12, %v6092_v57  ;;  %v6076_v10 = vsel %vm3262_vm15, %v14618_v22, %v5925_v46  ;;  %v6484_v6 = vadd.f32 %v14700_v20, %v6445_v43 }
 0x948   : > { %v6511_v39 = vadd.f32 %v6479_v30, %v6076_v10  ;;  %v6481_v28 = vadd.f32 %v14700_v20, %v6442_v52  ;;  %v16644_v30 = vld [vmem:[#allocation40_spill] sm:$0xff] }
 0x949   : > { %v5959_v32 = vpop.permute.xlu0 %5958  ;;  %v6446_v57 = vmul.f32 %v14683_v63, %v16644_v30 }
 0x94a   : > { %v6093_v29 = vsel %vm3262_vm15, %v6061_v38, %v5959_v32  ;;  %v5927_v16 = vpop.permute.xlu1 %5926  ;;  %6543 = vxpose.xlu1.b32.cont [9/16] (narrow) %v6511_v39, 8  ;;  %6571 = vxpose.xlu0.b32.cont [5/16] (narrow) %v6523_v35, 8 }
 0x94b   : > { %v6528_v22 = vadd.f32 %v6496_v62, %v6093_v29  ;;  %v6077_v47 = vsel %vm3262_vm15, %v14614_v58, %v5927_v16  ;;  %v6485_v38 = vadd.f32 %v14700_v20, %v6446_v57  ;;  %v6486_v29 = vadd.f32 %v14700_v20, %v6447_v36 }
 0x94c   : > { %v6512_v27 = vadd.f32 %v6480_v0, %v6077_v47 }
 0x94d   : > { %v5961_v41 = vpop.permute.xlu0 %5960 }
 0x94e   : > { %v6094_v26 = vsel %vm3262_vm15, %v14670_v25, %v5961_v41  ;;  %v5929_v35 = vpop.permute.xlu1 %5928  ;;  %6544 = vxpose.xlu1.b32.cont [10/16] (narrow) %v6512_v27, 8  ;;  %6572 = vxpose.xlu0.b32.cont [6/16] (narrow) %v6524_v56, 8 }
 0x94f   : > { %v6529_v13 = vadd.f32 %v6497_v40, %v6094_v26  ;;  %v6078_v58 = vsel %vm3262_vm15, %v14626_v31, %v5929_v35 }
 0x950   : > { %v6513_v14 = vadd.f32 %v6481_v28, %v6078_v58 }
 0x951   : > { %v5963_v34 = vpop.permute.xlu0 %5962 }
 0x952   : > { %v6095_v49 = vsel %vm3262_vm15, %v14666_v5, %v5963_v34  ;;  %v5931_v25 = vpop.permute.xlu1 %5930  ;;  %6545 = vxpose.xlu1.b32.cont [11/16] (narrow) %v6513_v14, 8  ;;  %6573 = vxpose.xlu0.b32.cont [7/16] (narrow) %v6525_v50, 8  ;;  %v16643_v5 = vld [vmem:[#allocation15_spill] sm:$0xff] }
 0x953   : > { %v6530_v56 = vadd.f32 %v6498_v42, %v6095_v49  ;;  %v6079_v1 = vsel %vm3262_vm15, %v14622_v19, %v5931_v25 }
 0x954   : > { %v6514_v31 = vadd.f32 %v6482_v4, %v6079_v1 }
 0x955   : > { %v5965_v61 = vpop.permute.xlu0 %5964 }
 0x956   : > { %v6096_v12 = vsel %vm3262_vm15, %v14678_v7, %v5965_v61  ;;  %v5933_v9 = vpop.permute.xlu1 %5932  ;;  %6546 = vxpose.xlu1.b32.cont [12/16] (narrow) %v6514_v31, 8  ;;  %6574 = vxpose.xlu0.b32.cont [8/16] (narrow) %v6526_v45, 8  ;;  %v16645_v7 = vld [vmem:[#allocation145_spill] sm:$0xff] }
 0x957   : > { %v6531_v37 = vadd.f32 %v16643_v5, %v6096_v12  ;;  %v6080_v50 = vsel %vm3262_vm15, %v14634_v48, %v5933_v9 }
 0x958   : > { %v6515_v3 = vadd.f32 %v6483_v15, %v6080_v50 }
 0x959   : > { %v5967_v19 = vpop.permute.xlu0 %5966 }
 0x95a   : > { %v6097_v46 = vsel %vm3262_vm15, %v14674_v53, %v5967_v19  ;;  %v5935_v10 = vpop.permute.xlu1 %5934  ;;  %6547 = vxpose.xlu1.b32.cont [13/16] (narrow) %v6515_v3, 8  ;;  %6575 = vxpose.xlu0.b32.cont [9/16] (narrow) %v6527_v18, 8  ;;  %v16647_v53 = vld [vmem:[#allocation234_spill] sm:$0xff] }
 0x95b   : > { %v6532_v45 = vadd.f32 %v16645_v7, %v6097_v46  ;;  %v6081_v39 = vsel %vm3262_vm15, %v14630_v11, %v5935_v10 }
 0x95c   : > { %v6516_v62 = vadd.f32 %v6484_v6, %v6081_v39 }
 0x95d   : > { %v5969_v48 = vpop.permute.xlu0 %5968 }
 0x95e   : > { %v6098_v32 = vsel %vm3262_vm15, %v14695_v17, %v5969_v48  ;;  %v5937_v0 = vpop.permute.xlu1 %5936  ;;  %6548 = vxpose.xlu1.b32.cont [14/16] (narrow) %v6516_v62, 8  ;;  %6576 = vxpose.xlu0.b32.cont [10/16] (narrow) %v6528_v22, 8  ;;  %v16648_v17 = vld [vmem:[#allocation247_spill] sm:$0xff] }
 0x95f   : > { %v6533_v18 = vadd.f32 %v16647_v53, %v6098_v32  ;;  %v6082_v23 = vsel %vm3262_vm15, %v14642_v33, %v5937_v0 }
 0x960   : > { %v6517_v52 = vadd.f32 %v6485_v38, %v6082_v23 }
 0x961   : > { %v5971_v11 = vpop.permute.xlu0 %5970 }
 0x962   : > { %v6099_v63 = vsel %vm3262_vm15, %v14691_v59, %v5971_v11  ;;  %v5939_v16 = vpop.permute.xlu1 %5938  ;;  %6549 = vxpose.xlu1.b32.cont [15/16] (narrow) %v6517_v52, 8  ;;  %6577 = vxpose.xlu0.b32.cont [11/16] (narrow) %v6529_v13, 8 }
 0x963   : > { %v6534_v47 = vadd.f32 %v16648_v17, %v6099_v63  ;;  %v6083_v22 = vsel %vm3262_vm15, %v14638_v24, %v5939_v16 }
 0x964   : > { %v6518_v27 = vadd.f32 %v6486_v29, %v6083_v22 }
 0x966   : > { %6550 = vxpose.xlu1.b32.end [16/16] (narrow) %v6518_v27, 8  ;;  %6578 = vxpose.xlu0.b32.cont [12/16] (narrow) %v6530_v56, 8 }
 0x96a   : > { %6579 = vxpose.xlu0.b32.cont [13/16] (narrow) %v6531_v37, 8 }
 0x96e   : > { %6580 = vxpose.xlu0.b32.cont [14/16] (narrow) %v6532_v45, 8 }
 0x972   : > { %6581 = vxpose.xlu0.b32.cont [15/16] (narrow) %v6533_v18, 8 }
 0x976   : > { %6582 = vxpose.xlu0.b32.end [16/16] (narrow) %v6534_v47, 8 }
 0x9aa   : > { %v6551_v33 = vpop.trf.xlu1 }
 0x9ab   : > { %6599 = vst [vmem:[%s413_s20] sm:$0xff] %v6551_v33 }
 0x9ba   : > { %v6583_v59 = vpop.trf.xlu0 }
 0x9bb   : > { %6600 = vst [vmem:[%s413_s20 + $0x8] sm:$0xff] %v6583_v59 }
 0x9bc PF: > { %s22_s21 = sadd.s32 1, %s7251_s21  }
 0x9bd   : > { %p19_p4 = scmp.ge.s32.totalorder %s22_s21, 4  }
 0x9bf   :  { %21 = sbr.rel (!%p19_p4) target bundleno = 1 (0x1), region = 100 }

</bundles_post_ra>
